<compile_context>
chip_gen: v7x
topology: tpu7x:2x2x1
jax: 0.10.0
libtpu: 0.0.40
codegen_flags: <defaults>
</compile_context>

<pallas_src>
import functools

import jax
import jax.numpy as jnp
from jax.experimental import pallas as pl
from jax.experimental.pallas import tpu as pltpu


def space_cross_attn_kernel(a_ref, b_ref, wa_ref, ba_ref, wb_ref, bb_ref,
                            oa_ref, ob_ref):
    # a_ref: (T, N, Ca), b_ref: (T, N, Cb); weights resident across the grid.
    a = a_ref[...].astype(jnp.float32)           # [T, N, Ca]
    b = b_ref[...].astype(jnp.float32)           # [T, N, Cb]
    wa = wa_ref[...].astype(jnp.float32)         # [Ca, H]
    wb = wb_ref[...].astype(jnp.float32)         # [Cb, H]
    ba = ba_ref[...].astype(jnp.float32)         # [1, H]
    bb = bb_ref[...].astype(jnp.float32)         # [1, H]

    T, N, Ca = a.shape
    Cb = b.shape[-1]
    H = wa.shape[-1]

    # Linear projections as single big MXU matmuls over the folded (T*N) rows.
    # (Leading-dim reshapes with an unchanged 128-lane last dim are free.)
    # NOTE: block-diagonal weight fusion was considered but skipped: splitting
    # the fused [., 2H] result at a non-128 lane offset would force a relayout.
    ma = (jnp.dot(a.reshape(T * N, Ca), wa,
                  preferred_element_type=jnp.float32) + ba).reshape(T, N, H)
    mb = (jnp.dot(b.reshape(T * N, Cb), wb,
                  preferred_element_type=jnp.float32) + bb).reshape(T, N, H)

    # Full score matrix is only needed for the softmax max / denominator.
    scores = jnp.einsum('tnh,txh->tnx', ma, mb,
                        preferred_element_type=jnp.float32)      # [T, N, N]
    row_max = jnp.max(scores, axis=-1, keepdims=True)            # [T, N, 1]
    denom = jnp.sum(jnp.exp(scores - row_max), axis=-1, keepdims=True)

    # Diagonal score as an elementwise dot — no [N,N] iota/select/masked sum.
    diag = jnp.sum(ma * mb, axis=-1, keepdims=True)              # [T, N, 1]

    # attn[.., n, n] = exp(diag - max) / denom  (EUP approximate reciprocal)
    w = jnp.exp(diag - row_max) * pl.reciprocal(denom, approx=True)

    # einsum('blnn,blnc->blnc') == diagonal-scaled copy of the *other* input.
    oa_ref[...] = (w * b).astype(oa_ref.dtype)                   # [T, N, Cb]
    ob_ref[...] = (w * a).astype(ob_ref.dtype)                   # [T, N, Ca]


def _pick_block_rows(bl, n, ca, cb):
    """Largest divisor of bl keeping one f32 input block around ~1 MiB, and a
    grid length >= 2 where possible (so "parallel" uses both v7x TensorCores)."""
    bytes_per_row = n * max(ca, cb) * 4
    target = max(1, min(512, (1 << 20) // max(1, bytes_per_row)))
    t = 1
    for d in range(1, min(bl, target) + 1):
        if bl % d == 0:
            t = d
    if t == bl and bl > 1:
        for d in range(t // 2, 0, -1):
            if bl % d == 0:
                return d
    return t


@functools.partial(jax.jit, static_argnames=("block_rows",))
def space_cross_attention(input_a, input_b, wa, ba, wb, bb, *, block_rows=None):
    """input_a: [B, Ca, N, L], input_b: [B, Cb, N, L].
    wa: [Ca, H] (= W_a^T of nn.Linear), ba: [H]; wb: [Cb, H], bb: [H]."""
    B, Ca, N, L = input_a.shape
    Cb = input_b.shape[1]
    H = wa.shape[1]
    BL = B * L

    # Layout glue (single fused XLA transpose each way): NCHW -> [BL, N, C]
    # channel-last so channels sit on lanes (lane-dense for the module's C>=128).
    a_t = jnp.transpose(input_a, (0, 3, 2, 1)).reshape(BL, N, Ca)
    b_t = jnp.transpose(input_b, (0, 3, 2, 1)).reshape(BL, N, Cb)
    ba2 = ba.reshape(1, H)
    bb2 = bb.reshape(1, H)

    T = block_rows if block_rows is not None else _pick_block_rows(BL, N, Ca, Cb)
    assert BL % T == 0
    grid = (BL // T,)

    out_a, out_b = pl.pallas_call(
        space_cross_attn_kernel,
        out_shape=(jax.ShapeDtypeStruct((BL, N, Cb), input_b.dtype),
                   jax.ShapeDtypeStruct((BL, N, Ca), input_a.dtype)),
        grid_spec=pltpu.PrefetchScalarGridSpec(
            num_scalar_prefetch=0,
            grid=grid,
            in_specs=[
                pl.BlockSpec((T, N, Ca), lambda i: (i, 0, 0)),
                pl.BlockSpec((T, N, Cb), lambda i: (i, 0, 0)),
                pl.BlockSpec((Ca, H), lambda i: (0, 0)),   # weights stay resident
                pl.BlockSpec((1, H), lambda i: (0, 0)),
                pl.BlockSpec((Cb, H), lambda i: (0, 0)),
                pl.BlockSpec((1, H), lambda i: (0, 0)),
            ],
            out_specs=[
                pl.BlockSpec((T, N, Cb), lambda i: (i, 0, 0)),
                pl.BlockSpec((T, N, Ca), lambda i: (i, 0, 0)),
            ],
        ),
        compiler_params=pltpu.CompilerParams(
            dimension_semantics=("parallel",)),
    )(a_t, b_t, wa, ba2, wb, bb2)

    # Undo the layout glue: [BL, N, C] -> [B, C, N, L].
    out_a = out_a.reshape(B, L, N, Cb).transpose(0, 3, 2, 1)
    out_b = out_b.reshape(B, L, N, Ca).transpose(0, 3, 2, 1)
    return out_a, out_b


def _reference(input_a, input_b, wa, ba, wb, bb):
    # Pure-JAX replica of the PyTorch forward.
    xa = jnp.transpose(input_a, (0, 3, 2, 1)).astype(jnp.float32)  # [B,L,N,Ca]
    xb = jnp.transpose(input_b, (0, 3, 2, 1)).astype(jnp.float32)  # [B,L,N,Cb]
    ma = xa @ wa + ba
    mb = xb @ wb + bb
    scores = jnp.einsum('bcnl,bcxl->bcnx', ma, mb)
    attn = jax.nn.softmax(scores, axis=-1)
    oa = jnp.einsum('blnn,blnc->blnc', attn, xb)
    ob = jnp.einsum('blnn,blnc->blnc', attn, xa)
    return oa.transpose(0, 3, 2, 1), ob.transpose(0, 3, 2, 1)


if __name__ == "__main__":
    # Small shapes consistent with the module (module: C=256, N=307, L=1, H=64).
    # C=128 keeps stores lane-dense; L=64 gives B*L=128 rows to exercise folding.
    B, Ca, Cb, N, L, H = 2, 128, 128, 16, 64, 64

    key = jax.random.PRNGKey(0)
    k1, k2, k3, k4, k5, k6 = jax.random.split(key, 6)

    input_a = jax.random.normal(k1, (B, Ca, N, L), dtype=jnp.float32)
    input_b = jax.random.normal(k2, (B, Cb, N, L), dtype=jnp.float32)

    # nn.Linear(Cin, H) weights are [H, Cin]; stored here pre-transposed [Cin, H].
    wa = jax.random.normal(k3, (Ca, H), dtype=jnp.float32) / jnp.sqrt(Ca)
    ba = jax.random.normal(k4, (H,), dtype=jnp.float32) * 0.01
    wb = jax.random.normal(k5, (Cb, H), dtype=jnp.float32) / jnp.sqrt(Cb)
    bb = jax.random.normal(k6, (H,), dtype=jnp.float32) * 0.01

    out_a, out_b = space_cross_attention(input_a, input_b, wa, ba, wb, bb)
    jax.block_until_ready((out_a, out_b))

    ref_a, ref_b = _reference(input_a, input_b, wa, ba, wb, bb)
    assert out_a.shape == (B, Cb, N, L) and out_b.shape == (B, Ca, N, L)
    # Tolerance slightly loosened for the approximate (EUP) reciprocal.
    assert jnp.allclose(out_a, ref_a, atol=5e-3, rtol=5e-3), \
        float(jnp.max(jnp.abs(out_a - ref_a)))
    assert jnp.allclose(out_b, ref_b, atol=5e-3, rtol=5e-3), \
        float(jnp.max(jnp.abs(out_b - ref_b)))

    print("KERNEL_OK")
</pallas_src>

<mosaic_0001>
module attributes {stable_mosaic.version = 11 : i64} {
  func.func @space_cross_attn_kernel(%arg0: i32, %arg1: memref<64x16x128xf32, #tpu.memory_space<vmem>>, %arg2: memref<64x16x128xf32, #tpu.memory_space<vmem>>, %arg3: memref<128x64xf32, #tpu.memory_space<vmem>>, %arg4: memref<1x64xf32, #tpu.memory_space<vmem>>, %arg5: memref<128x64xf32, #tpu.memory_space<vmem>>, %arg6: memref<1x64xf32, #tpu.memory_space<vmem>>, %arg7: memref<64x16x128xf32, #tpu.memory_space<vmem>>, %arg8: memref<64x16x128xf32, #tpu.memory_space<vmem>>) attributes {dimension_semantics = [#tpu.dimension_semantics<parallel>], iteration_bounds = array<i64: 2>, scalar_prefetch = 0 : i64, scratch_operands = 0 : i64, tpu.core_type = #tpu.core_type<tc>, window_params = [{transform_indices = @transform_0, window_bounds = array<i64: 64, 16, 128>}, {transform_indices = @transform_1, window_bounds = array<i64: 64, 16, 128>}, {pipeline_mode = #tpu.pipeline_mode<synchronous>, transform_indices = @transform_2, window_bounds = array<i64: 128, 64>}, {pipeline_mode = #tpu.pipeline_mode<synchronous>, transform_indices = @transform_3, window_bounds = array<i64: 1, 64>}, {pipeline_mode = #tpu.pipeline_mode<synchronous>, transform_indices = @transform_4, window_bounds = array<i64: 128, 64>}, {pipeline_mode = #tpu.pipeline_mode<synchronous>, transform_indices = @transform_5, window_bounds = array<i64: 1, 64>}, {transform_indices = @transform_6, window_bounds = array<i64: 64, 16, 128>}, {transform_indices = @transform_7, window_bounds = array<i64: 64, 16, 128>}]} {
    %c0 = arith.constant 0 : index
    %c0_0 = arith.constant 0 : index
    %c0_1 = arith.constant 0 : index
    %0 = vector.load %arg1[%c0, %c0_0, %c0_1] : memref<64x16x128xf32, #tpu.memory_space<vmem>>, vector<64x16x128xf32>
    %c0_2 = arith.constant 0 : index
    %c0_3 = arith.constant 0 : index
    %c0_4 = arith.constant 0 : index
    %1 = vector.load %arg2[%c0_2, %c0_3, %c0_4] : memref<64x16x128xf32, #tpu.memory_space<vmem>>, vector<64x16x128xf32>
    %c0_5 = arith.constant 0 : index
    %c0_6 = arith.constant 0 : index
    %2 = vector.load %arg3[%c0_5, %c0_6] : memref<128x64xf32, #tpu.memory_space<vmem>>, vector<128x64xf32>
    %c0_7 = arith.constant 0 : index
    %c0_8 = arith.constant 0 : index
    %3 = vector.load %arg5[%c0_7, %c0_8] : memref<128x64xf32, #tpu.memory_space<vmem>>, vector<128x64xf32>
    %c0_9 = arith.constant 0 : index
    %c0_10 = arith.constant 0 : index
    %4 = vector.load %arg4[%c0_9, %c0_10] : memref<1x64xf32, #tpu.memory_space<vmem>>, vector<1x64xf32>
    %c0_11 = arith.constant 0 : index
    %c0_12 = arith.constant 0 : index
    %5 = vector.load %arg6[%c0_11, %c0_12] : memref<1x64xf32, #tpu.memory_space<vmem>>, vector<1x64xf32>
    %6 = vector.shape_cast %0 : vector<64x16x128xf32> to vector<1024x128xf32>
    %cst = arith.constant dense<0.000000e+00> : vector<1024x64xf32>
    %7 = tpu.matmul %6, %2, %cst {dimension_numbers = #tpu.dot_dimension_numbers<[1], [0], [0], [1], [0, 0, 1, 1], [], []>} : vector<1024x128xf32>, vector<128x64xf32>, vector<1024x64xf32> -> vector<1024x64xf32>
    %8 = vector.broadcast %4 : vector<1x64xf32> to vector<1024x64xf32>
    %9 = arith.addf %7, %8 : vector<1024x64xf32>
    %10 = vector.shape_cast %9 : vector<1024x64xf32> to vector<64x16x64xf32>
    %11 = vector.shape_cast %1 : vector<64x16x128xf32> to vector<1024x128xf32>
    %cst_13 = arith.constant dense<0.000000e+00> : vector<1024x64xf32>
    %12 = tpu.matmul %11, %3, %cst_13 {dimension_numbers = #tpu.dot_dimension_numbers<[1], [0], [0], [1], [0, 0, 1, 1], [], []>} : vector<1024x128xf32>, vector<128x64xf32>, vector<1024x64xf32> -> vector<1024x64xf32>
    %13 = vector.broadcast %5 : vector<1x64xf32> to vector<1024x64xf32>
    %14 = arith.addf %12, %13 : vector<1024x64xf32>
    %15 = vector.shape_cast %14 : vector<1024x64xf32> to vector<64x16x64xf32>
    "tpu.trace_start"() <{level = 10 : i32, message = "tnh,txh->tnx"}> : () -> ()
    %cst_14 = arith.constant dense<0.000000e+00> : vector<64x16x16xf32>
    %16 = tpu.matmul %10, %15, %cst_14 {dimension_numbers = #tpu.dot_dimension_numbers<[2], [2], [1], [1], [0, 0, 0, 1, 1, 1], [0], [0]>} : vector<64x16x64xf32>, vector<64x16x64xf32>, vector<64x16x16xf32> -> vector<64x16x16xf32>
    "tpu.trace_stop"() : () -> ()
    %cst_15 = arith.constant dense<0xFF800000> : vector<64x16xf32>
    %17 = vector.multi_reduction <maximumf>, %16, %cst_15 [2] : vector<64x16x16xf32> to vector<64x16xf32>
    %18 = vector.shape_cast %17 : vector<64x16xf32> to vector<64x16x1xf32>
    %19 = vector.broadcast %18 : vector<64x16x1xf32> to vector<64x16x16xf32>
    %20 = arith.subf %16, %19 : vector<64x16x16xf32>
    %21 = math.exp %20 : vector<64x16x16xf32>
    %cst_16 = arith.constant dense<0.000000e+00> : vector<64x16xf32>
    %22 = vector.multi_reduction <add>, %21, %cst_16 [2] : vector<64x16x16xf32> to vector<64x16xf32>
    %23 = vector.shape_cast %22 : vector<64x16xf32> to vector<64x16x1xf32>
    %24 = arith.mulf %10, %15 : vector<64x16x64xf32>
    %cst_17 = arith.constant dense<0.000000e+00> : vector<64x16xf32>
    %25 = vector.multi_reduction <add>, %24, %cst_17 [2] : vector<64x16x64xf32> to vector<64x16xf32>
    %26 = vector.shape_cast %25 : vector<64x16xf32> to vector<64x16x1xf32>
    %27 = arith.subf %26, %18 : vector<64x16x1xf32>
    %28 = math.exp %27 : vector<64x16x1xf32>
    %29 = tpu.reciprocal %23 {approx = true} : vector<64x16x1xf32> -> vector<64x16x1xf32>
    %30 = arith.mulf %28, %29 : vector<64x16x1xf32>
    %31 = vector.broadcast %30 : vector<64x16x1xf32> to vector<64x16x128xf32>
    %32 = arith.mulf %31, %1 : vector<64x16x128xf32>
    %c0_18 = arith.constant 0 : index
    %c0_19 = arith.constant 0 : index
    %c0_20 = arith.constant 0 : index
    %33 = vector.load %arg7[%c0_18, %c0_19, %c0_20] : memref<64x16x128xf32, #tpu.memory_space<vmem>>, vector<64x16x128xf32>
    tpu.vector_store %arg7[%c0_18, %c0_19, %c0_20], %32 {strides = array<i32>} : memref<64x16x128xf32, #tpu.memory_space<vmem>>, vector<64x16x128xf32>,
    %34 = vector.broadcast %30 : vector<64x16x1xf32> to vector<64x16x128xf32>
    %35 = arith.mulf %34, %0 : vector<64x16x128xf32>
    %c0_21 = arith.constant 0 : index
    %c0_22 = arith.constant 0 : index
    %c0_23 = arith.constant 0 : index
    %36 = vector.load %arg8[%c0_21, %c0_22, %c0_23] : memref<64x16x128xf32, #tpu.memory_space<vmem>>, vector<64x16x128xf32>
    tpu.vector_store %arg8[%c0_21, %c0_22, %c0_23], %35 {strides = array<i32>} : memref<64x16x128xf32, #tpu.memory_space<vmem>>, vector<64x16x128xf32>,
    return
  }
  func.func @transform_0(%arg0: i32) -> (i32, i32, i32) {
    %c0_i32 = arith.constant 0 : i32
    %c0_i32_0 = arith.constant 0 : i32
    %c0_i32_1 = arith.constant 0 : i32
    return %arg0, %c0_i32, %c0_i32_0 : i32, i32, i32
  }
  func.func @transform_1(%arg0: i32) -> (i32, i32, i32) {
    %c0_i32 = arith.constant 0 : i32
    %c0_i32_0 = arith.constant 0 : i32
    %c0_i32_1 = arith.constant 0 : i32
    return %arg0, %c0_i32, %c0_i32_0 : i32, i32, i32
  }
  func.func @transform_2(%arg0: i32) -> (i32, i32) {
    %c0_i32 = arith.constant 0 : i32
    %c0_i32_0 = arith.constant 0 : i32
    %c0_i32_1 = arith.constant 0 : i32
    return %c0_i32, %c0_i32_0 : i32, i32
  }
  func.func @transform_3(%arg0: i32) -> (i32, i32) {
    %c0_i32 = arith.constant 0 : i32
    %c0_i32_0 = arith.constant 0 : i32
    %c0_i32_1 = arith.constant 0 : i32
    return %c0_i32, %c0_i32_0 : i32, i32
  }
  func.func @transform_4(%arg0: i32) -> (i32, i32) {
    %c0_i32 = arith.constant 0 : i32
    %c0_i32_0 = arith.constant 0 : i32
    %c0_i32_1 = arith.constant 0 : i32
    return %c0_i32, %c0_i32_0 : i32, i32
  }
  func.func @transform_5(%arg0: i32) -> (i32, i32) {
    %c0_i32 = arith.constant 0 : i32
    %c0_i32_0 = arith.constant 0 : i32
    %c0_i32_1 = arith.constant 0 : i32
    return %c0_i32, %c0_i32_0 : i32, i32
  }
  func.func @transform_6(%arg0: i32) -> (i32, i32, i32) {
    %c0_i32 = arith.constant 0 : i32
    %c0_i32_0 = arith.constant 0 : i32
    %c0_i32_1 = arith.constant 0 : i32
    return %arg0, %c0_i32, %c0_i32_0 : i32, i32, i32
  }
  func.func @transform_7(%arg0: i32) -> (i32, i32, i32) {
    %c0_i32 = arith.constant 0 : i32
    %c0_i32_0 = arith.constant 0 : i32
    %c0_i32_1 = arith.constant 0 : i32
    return %arg0, %c0_i32, %c0_i32_0 : i32, i32, i32
  }
}

</mosaic_0001>

<bundles_post_ra>
// kernel: space_cross_attention.1
= control target key start
LH: loop header
LB: loop body
LE: loop exit
PB: predicated region body
PF: predicated region fallthrough
CT: control target
= control target key end

     0   :  { %s13785_s24 = smov 0   ;;  %s18445_s0 = inlined_call_operand.vmem [shape: f32[128,16,128], index: 0, kind: input, shape index: {}]   ;;  %s18446_s1 = inlined_call_operand.vmem [shape: f32[128,16,128], index: 1, kind: input, shape index: {}]   ;;  %s18447_s2 = inlined_call_operand.vmem [shape: f32[128,64], index: 2, kind: input, shape index: {}]   ;;  %s18448_s3 = inlined_call_operand.vmem [shape: f32[1,64], index: 3, kind: input, shape index: {}]   ;;  %s18449_s4 = inlined_call_operand.vmem [shape: f32[128,64], index: 4, kind: input, shape index: {}]   ;;  %s18450_s5 = inlined_call_operand.vmem [shape: f32[1,64], index: 5, kind: input, shape index: {}]   ;;  %s18451_s6 = inlined_call_operand.vmem [shape: f32[128,16,128], index: 6, kind: output, shape index: {0}]   ;;  %s18452_s7 = inlined_call_operand.vmem [shape: f32[128,16,128], index: 7, kind: output, shape index: {1}]  }
   0x1 LB: > { %s10532_s25 = sadd.s32 4294967295, %s13743_s24   ;;  %p10536_p0 = scmp.ge.s32.totalorder %s13743_s24, 1  ;;  %s13743_s24 = sphi %s13785_s24, %s18_s24  }
   0x2   : > { %p254_p1 = scmp.lt.s32.totalorder %s13743_s24, 3 }
   0x4   : > { %p255_p2 = pnand %p10536_p0, %p254_p1 }
   0x6   : > { %258 = sbr.rel (%p255_p2) target bundleno = 1197 (0x4ad), region = 44 }
   0xd   : > { %v584_v0 = vld [vmem:[%s18447_s2] sm:$0xff]  ;;  %v585_v1 = vld [vmem:[%s18447_s2 + $0x8] sm:$0xff]  ;;  %s10537_s9 = sshll.u32 %s10532_s25, 6  ;;  %v586_v5 = vld [vmem:[%s18447_s2 + $0x10] sm:$0xff]  ;;  %vm2040_vm0 = vcmask 523264   ;;  %vm7609_vm2 = vcmask 130048  }
   0xe   : > { %v600_v2 = vld [vmem:[%s18449_s4] sm:$0xff]  ;;  %v12253_v3 = vpack.c.bf16 %v585_v1, %v584_v0  ;;  %v601_v4 = vld [vmem:[%s18449_s4 + $0x8] sm:$0xff]  ;;  %v587_v6 = vld [vmem:[%s18447_s2 + $0x18] sm:$0xff]  ;;  %p301_p3 = scmp.lt.s32.totalorder %s10537_s9, 127 }
   0xf   : > { %v12285_v7 = vpack.c.bf16 %v601_v4, %v600_v2  ;;  %v12257_v8 = vpack.c.bf16 %v587_v6, %v586_v5  ;;  %v602_v9 = vld [vmem:[%s18449_s4 + $0x10] sm:$0xff]  ;;  %v603_v10 = vld [vmem:[%s18449_s4 + $0x18] sm:$0xff]  ;;  %v588_v11 = vld [vmem:[%s18447_s2 + $0x20] sm:$0xff] }
  0x10   : > { %12254 = vmatprep.subr.bf16.mxu0 %v12253_v3  ;;  %v12289_v12 = vpack.c.bf16 %v603_v10, %v602_v9  ;;  %v589_v13 = vld [vmem:[%s18447_s2 + $0x28] sm:$0xff]  ;;  %v604_v14 = vld [vmem:[%s18449_s4 + $0x20] sm:$0xff]  ;;  %s19554_s9 = smov (!%p301_p3, %s10537_s9), 127  ;;  %v590_v18 = vld [vmem:[%s18447_s2 + $0x30] sm:$0xff] }
  0x11   : > { %v605_v15 = vld [vmem:[%s18449_s4 + $0x28] sm:$0xff]  ;;  %12286 = vmatprep.subr.bf16.mxu1 %v12285_v7  ;;  %12256 = vmatpush3.bf16.msra.mxu0 %v12253_v3  ;;  %v12261_v16 = vpack.c.bf16 %v589_v13, %v588_v11  ;;  %s13829_s29 = sshll.u32 %s19554_s9, 4  ;;  %v591_v19 = vld [vmem:[%s18447_s2 + $0x38] sm:$0xff]  ;;  %v606_v20 = vld [vmem:[%s18449_s4 + $0x30] sm:$0xff] }
  0x12   : > { %12288 = vmatpush3.bf16.msra.mxu1 %v12285_v7  ;;  %12258 = vmatprep.subr.bf16.mxu0 %v12257_v8  ;;  %v12293_v17 = vpack.c.bf16 %v605_v15, %v604_v14  ;;  %v607_v21 = vld [vmem:[%s18449_s4 + $0x38] sm:$0xff]  ;;  %s13847_s17 = scalar_lea.vmem %s18445_s0, %s13829_s29  ;;  %s13853_s20 = scalar_lea.vmem %s18446_s1, %s13829_s29  ;;  %v12265_v22 = vpack.c.bf16 %v591_v19, %v590_v18  ;;  %v592_v24 = vld [vmem:[%s18447_s2 + $0x40] sm:$0xff]  ;;  %v593_v25 = vld [vmem:[%s18447_s2 + $0x48] sm:$0xff] }
  0x13   : > { %12290 = vmatprep.subr.bf16.mxu1 %v12289_v12  ;;  %v12297_v23 = vpack.c.bf16 %v607_v21, %v606_v20  ;;  %v328_v26 = vld [vmem:[%s13847_s17] sm:$0xff]  ;;  %v609_v28 = vld [vmem:[%s18449_s4 + $0x48] sm:$0xff]  ;;  %v12269_v30 = vpack.c.bf16 %v593_v25, %v592_v24  ;;  %v594_v32 = vld [vmem:[%s18447_s2 + $0x50] sm:$0xff]  ;;  %s17018_s8 = scalar_lea.vmem %s18451_s6, %s13829_s29  ;;  %s17024_s12 = scalar_lea.vmem %s18452_s7, %s13829_s29 }
  0x14   : > { %v608_v27 = vld [vmem:[%s18449_s4 + $0x40] sm:$0xff]  ;;  %11389 = vmatprep.mubr.f32.mxu0 %v328_v26  ;;  %v595_v33 = vld [vmem:[%s18447_s2 + $0x58] sm:$0xff]  ;;  %v610_v34 = vld [vmem:[%s18449_s4 + $0x50] sm:$0xff] }
  0x15   : > { %12260 = vmatpush3.bf16.msra.mxu0 %v12257_v8  ;;  %v456_v29 = vld [vmem:[%s13853_s20] sm:$0xff]  ;;  %v12301_v31 = vpack.c.bf16 %v609_v28, %v608_v27  ;;  %v611_v35 = vld [vmem:[%s18449_s4 + $0x58] sm:$0xff]  ;;  %v12273_v36 = vpack.c.bf16 %v595_v33, %v594_v32  ;;  %v597_v39 = vld [vmem:[%s18447_s2 + $0x68] sm:$0xff] }
  0x16   : > { %12292 = vmatpush3.bf16.msra.mxu1 %v12289_v12  ;;  %12262 = vmatprep.subr.bf16.mxu0 %v12261_v16  ;;  %v12305_v37 = vpack.c.bf16 %v611_v35, %v610_v34  ;;  %v596_v38 = vld [vmem:[%s18447_s2 + $0x60] sm:$0xff]  ;;  %v613_v41 = vld [vmem:[%s18449_s4 + $0x68] sm:$0xff]  ;;  %v598_v44 = vld [vmem:[%s18447_s2 + $0x70] sm:$0xff] }
  0x17   : > { %12294 = vmatprep.subr.bf16.mxu1 %v12293_v17  ;;  %11613 = vmatprep.mubr.f32.mxu1 %v456_v29  ;;  %v612_v40 = vld [vmem:[%s18449_s4 + $0x60] sm:$0xff]  ;;  %v12277_v42 = vpack.c.bf16 %v597_v39, %v596_v38  ;;  %v599_v45 = vld [vmem:[%s18447_s2 + $0x78] sm:$0xff]  ;;  %v614_v46 = vld [vmem:[%s18449_s4 + $0x70] sm:$0xff] }
  0x18   : > { %v12309_v43 = vpack.c.bf16 %v613_v41, %v612_v40  ;;  %v615_v47 = vld [vmem:[%s18449_s4 + $0x78] sm:$0xff]  ;;  %v12281_v48 = vpack.c.bf16 %v599_v45, %v598_v44  ;;  %v329_v50 = vld [vmem:[%s13847_s17 + $0x8] sm:$0xff]  ;;  %v330_v52 = vld [vmem:[%s13847_s17 + $0x10] sm:$0xff] }
  0x19   : > { %12264 = vmatpush3.bf16.msra.mxu0 %v12261_v16  ;;  %v12313_v49 = vpack.c.bf16 %v615_v47, %v614_v46  ;;  %v457_v51 = vld [vmem:[%s13853_s20 + $0x8] sm:$0xff]  ;;  %v458_v53 = vld [vmem:[%s13853_s20 + $0x10] sm:$0xff]  ;;  %v331_v54 = vld [vmem:[%s13847_s17 + $0x18] sm:$0xff] }
  0x1a   : > { %12296 = vmatpush3.bf16.msra.mxu1 %v12293_v17  ;;  %12266 = vmatprep.subr.bf16.mxu0 %v12265_v22  ;;  %v459_v55 = vld [vmem:[%s13853_s20 + $0x18] sm:$0xff]  ;;  %v332_v56 = vld [vmem:[%s13847_s17 + $0x20] sm:$0xff]  ;;  %v333_v58 = vld [vmem:[%s13847_s17 + $0x28] sm:$0xff] }
  0x1b   : > { %12298 = vmatprep.subr.bf16.mxu1 %v12297_v23  ;;  %v460_v57 = vld [vmem:[%s13853_s20 + $0x20] sm:$0xff]  ;;  %v461_v59 = vld [vmem:[%s13853_s20 + $0x28] sm:$0xff]  ;;  %v334_v60 = vld [vmem:[%s13847_s17 + $0x30] sm:$0xff] }
  0x1c   : > { %v462_v61 = vld [vmem:[%s13853_s20 + $0x30] sm:$0xff]  ;;  %v335_v62 = vld [vmem:[%s13847_s17 + $0x38] sm:$0xff]  ;;  %v336_v0 = vld [vmem:[%s13847_s17 + $0x40] sm:$0xff] }
  0x1d   : > { %12268 = vmatpush3.bf16.msra.mxu0 %v12265_v22  ;;  %v463_v63 = vld [vmem:[%s13853_s20 + $0x38] sm:$0xff]  ;;  %v464_v1 = vld [vmem:[%s13853_s20 + $0x40] sm:$0xff]  ;;  %v337_v2 = vld [vmem:[%s13847_s17 + $0x48] sm:$0xff] }
  0x1e   : > { %12300 = vmatpush3.bf16.msra.mxu1 %v12297_v23  ;;  %12270 = vmatprep.subr.bf16.mxu0 %v12269_v30  ;;  %v465_v3 = vld [vmem:[%s13853_s20 + $0x48] sm:$0xff]  ;;  %v338_v4 = vld [vmem:[%s13847_s17 + $0x50] sm:$0xff]  ;;  %v339_v6 = vld [vmem:[%s13847_s17 + $0x58] sm:$0xff] }
  0x1f   : > { %12302 = vmatprep.subr.bf16.mxu1 %v12301_v31  ;;  %v466_v5 = vld [vmem:[%s13853_s20 + $0x50] sm:$0xff]  ;;  %v467_v7 = vld [vmem:[%s13853_s20 + $0x58] sm:$0xff]  ;;  %v340_v8 = vld [vmem:[%s13847_s17 + $0x60] sm:$0xff] }
  0x20   : > { %v468_v9 = vld [vmem:[%s13853_s20 + $0x60] sm:$0xff]  ;;  %v341_v10 = vld [vmem:[%s13847_s17 + $0x68] sm:$0xff]  ;;  %v342_v12 = vld [vmem:[%s13847_s17 + $0x70] sm:$0xff] }
  0x21   : > { %12272 = vmatpush3.bf16.msra.mxu0 %v12269_v30  ;;  %v469_v11 = vld [vmem:[%s13853_s20 + $0x68] sm:$0xff]  ;;  %v470_v13 = vld [vmem:[%s13853_s20 + $0x70] sm:$0xff]  ;;  %v343_v14 = vld [vmem:[%s13847_s17 + $0x78] sm:$0xff] }
  0x22   : > { %12304 = vmatpush3.bf16.msra.mxu1 %v12301_v31  ;;  %12274 = vmatprep.subr.bf16.mxu0 %v12273_v36  ;;  %v471_v15 = vld [vmem:[%s13853_s20 + $0x78] sm:$0xff]  ;;  %v344_v16 = vld [vmem:[%s13847_s17 + $0x80] sm:$0xff]  ;;  %v345_v18 = vld [vmem:[%s13847_s17 + $0x88] sm:$0xff] }
  0x23   : > { %12306 = vmatprep.subr.bf16.mxu1 %v12305_v37  ;;  %v472_v17 = vld [vmem:[%s13853_s20 + $0x80] sm:$0xff]  ;;  %v473_v19 = vld [vmem:[%s13853_s20 + $0x88] sm:$0xff]  ;;  %v346_v20 = vld [vmem:[%s13847_s17 + $0x90] sm:$0xff] }
  0x24   : > { %v474_v21 = vld [vmem:[%s13853_s20 + $0x90] sm:$0xff]  ;;  %v347_v22 = vld [vmem:[%s13847_s17 + $0x98] sm:$0xff]  ;;  %v348_v24 = vld [vmem:[%s13847_s17 + $0xa0] sm:$0xff] }
  0x25   : > { %12276 = vmatpush3.bf16.msra.mxu0 %v12273_v36  ;;  %v475_v23 = vld [vmem:[%s13853_s20 + $0x98] sm:$0xff]  ;;  %v476_v25 = vld [vmem:[%s13853_s20 + $0xa0] sm:$0xff]  ;;  %v349_v26 = vld [vmem:[%s13847_s17 + $0xa8] sm:$0xff] }
  0x26   : > { %12308 = vmatpush3.bf16.msra.mxu1 %v12305_v37  ;;  %12278 = vmatprep.subr.bf16.mxu0 %v12277_v42  ;;  %v477_v27 = vld [vmem:[%s13853_s20 + $0xa8] sm:$0xff]  ;;  %v350_v28 = vld [vmem:[%s13847_s17 + $0xb0] sm:$0xff]  ;;  %v351_v30 = vld [vmem:[%s13847_s17 + $0xb8] sm:$0xff] }
  0x27   : > { %12310 = vmatprep.subr.bf16.mxu1 %v12309_v43  ;;  %v478_v29 = vld [vmem:[%s13853_s20 + $0xb0] sm:$0xff]  ;;  %v479_v31 = vld [vmem:[%s13853_s20 + $0xb8] sm:$0xff]  ;;  %v352_v32 = vld [vmem:[%s13847_s17 + $0xc0] sm:$0xff] }
  0x28   : > { %v480_v33 = vld [vmem:[%s13853_s20 + $0xc0] sm:$0xff]  ;;  %v353_v34 = vld [vmem:[%s13847_s17 + $0xc8] sm:$0xff]  ;;  %v354_v36 = vld [vmem:[%s13847_s17 + $0xd0] sm:$0xff] }
  0x29   : > { %12280 = vmatpush3.bf16.msra.mxu0 %v12277_v42  ;;  %v481_v35 = vld [vmem:[%s13853_s20 + $0xc8] sm:$0xff]  ;;  %v482_v37 = vld [vmem:[%s13853_s20 + $0xd0] sm:$0xff]  ;;  %v355_v38 = vld [vmem:[%s13847_s17 + $0xd8] sm:$0xff] }
  0x2a   : > { %12312 = vmatpush3.bf16.msra.mxu1 %v12309_v43  ;;  %12282 = vmatprep.subr.bf16.mxu0 %v12281_v48  ;;  %v483_v39 = vld [vmem:[%s13853_s20 + $0xd8] sm:$0xff]  ;;  %v356_v40 = vld [vmem:[%s13847_s17 + $0xe0] sm:$0xff]  ;;  %v357_v42 = vld [vmem:[%s13847_s17 + $0xe8] sm:$0xff] }
  0x2b   : > { %12314 = vmatprep.subr.bf16.mxu1 %v12313_v49  ;;  %v484_v41 = vld [vmem:[%s13853_s20 + $0xe0] sm:$0xff]  ;;  %v485_v43 = vld [vmem:[%s13853_s20 + $0xe8] sm:$0xff]  ;;  %v358_v44 = vld [vmem:[%s13847_s17 + $0xf0] sm:$0xff] }
  0x2c   : > { %v486_v45 = vld [vmem:[%s13853_s20 + $0xf0] sm:$0xff]  ;;  %v359_v46 = vld [vmem:[%s13847_s17 + $0xf8] sm:$0xff]  ;;  %vm14144_vm1 = vmpackc.low %vm2040_vm0, %vm2040_vm0 }
  0x2d   : > { %12284 = vmatpush3.bf16.msra.mxu0 %v12281_v48  ;;  %v487_v47 = vld [vmem:[%s13853_s20 + $0xf8] sm:$0xff]  ;;  %v360_v48 = vld [vmem:[%s13847_s17 + $0x100] sm:$0xff] }
  0x2e   : > { %12316 = vmatpush3.bf16.msra.mxu1 %v12313_v49  ;;  %v488_v49 = vld [vmem:[%s13853_s20 + $0x100] sm:$0xff] }
  0x30   : > { %11390 = vmatmul.mubr.f32.vlgmr.msra.gmra.mrb[0].mxu0 %v329_v50  ;;  %v361_v50 = vld [vmem:[%s13847_s17 + $0x108] sm:$0xff] }
  0x31   : > { %11614 = vmatmul.mubr.f32.vlgmr.msra.gmra.mrb[0].mxu1 %v457_v51  ;;  %11392 = vmatprep.mubr.f32.mxu0 %v330_v52  ;;  %v489_v51 = vld [vmem:[%s13853_s20 + $0x108] sm:$0xff]  ;;  %v362_v52 = vld [vmem:[%s13847_s17 + $0x110] sm:$0xff] }
  0x32   : > { %11616 = vmatprep.mubr.f32.mxu1 %v458_v53  ;;  %v490_v53 = vld [vmem:[%s13853_s20 + $0x110] sm:$0xff] }
  0x34   : > { %11393 = vmatmul.mubr.f32.gmra.mrb[2].mxu0 %v331_v54  ;;  %v363_v54 = vld [vmem:[%s13847_s17 + $0x118] sm:$0xff] }
  0x35   : > { %11617 = vmatmul.mubr.f32.gmra.mrb[2].mxu1 %v459_v55  ;;  %11395 = vmatprep.mubr.f32.mxu0 %v332_v56  ;;  %v491_v55 = vld [vmem:[%s13853_s20 + $0x118] sm:$0xff]  ;;  %v364_v56 = vld [vmem:[%s13847_s17 + $0x120] sm:$0xff] }
  0x36   : > { %11619 = vmatprep.mubr.f32.mxu1 %v460_v57  ;;  %v492_v57 = vld [vmem:[%s13853_s20 + $0x120] sm:$0xff] }
  0x38   : > { %11396 = vmatmul.mubr.f32.gmra.mrb[4].mxu0 %v333_v58  ;;  %v365_v58 = vld [vmem:[%s13847_s17 + $0x128] sm:$0xff] }
  0x39   : > { %11620 = vmatmul.mubr.f32.gmra.mrb[4].mxu1 %v461_v59  ;;  %11398 = vmatprep.mubr.f32.mxu0 %v334_v60  ;;  %v493_v59 = vld [vmem:[%s13853_s20 + $0x128] sm:$0xff]  ;;  %v366_v60 = vld [vmem:[%s13847_s17 + $0x130] sm:$0xff] }
  0x3a   : > { %11622 = vmatprep.mubr.f32.mxu1 %v462_v61  ;;  %v494_v61 = vld [vmem:[%s13853_s20 + $0x130] sm:$0xff] }
  0x3c   : > { %11399 = vmatmul.mubr.f32.gmra.mrb[6].mxu0 %v335_v62  ;;  %v367_v62 = vld [vmem:[%s13847_s17 + $0x138] sm:$0xff] }
  0x3d   : > { %11623 = vmatmul.mubr.f32.gmra.mrb[6].mxu1 %v463_v63  ;;  %11401 = vmatprep.mubr.f32.mxu0 %v336_v0  ;;  %v495_v63 = vld [vmem:[%s13853_s20 + $0x138] sm:$0xff]  ;;  %v368_v0 = vld [vmem:[%s13847_s17 + $0x140] sm:$0xff] }
  0x3e   : > { %11625 = vmatprep.mubr.f32.mxu1 %v464_v1  ;;  %v496_v1 = vld [vmem:[%s13853_s20 + $0x140] sm:$0xff] }
  0x40   : > { %11402 = vmatmul.mubr.f32.gmra.mrb[8].mxu0 %v337_v2  ;;  %v369_v2 = vld [vmem:[%s13847_s17 + $0x148] sm:$0xff] }
  0x41   : > { %11626 = vmatmul.mubr.f32.gmra.mrb[8].mxu1 %v465_v3  ;;  %11404 = vmatprep.mubr.f32.mxu0 %v338_v4  ;;  %v497_v3 = vld [vmem:[%s13853_s20 + $0x148] sm:$0xff]  ;;  %v370_v4 = vld [vmem:[%s13847_s17 + $0x150] sm:$0xff] }
  0x42   : > { %11628 = vmatprep.mubr.f32.mxu1 %v466_v5  ;;  %v498_v5 = vld [vmem:[%s13853_s20 + $0x150] sm:$0xff] }
  0x44   : > { %11405 = vmatmul.mubr.f32.gmra.mrb[10].mxu0 %v339_v6  ;;  %v371_v6 = vld [vmem:[%s13847_s17 + $0x158] sm:$0xff] }
  0x45   : > { %11629 = vmatmul.mubr.f32.gmra.mrb[10].mxu1 %v467_v7  ;;  %11407 = vmatprep.mubr.f32.mxu0 %v340_v8  ;;  %v499_v7 = vld [vmem:[%s13853_s20 + $0x158] sm:$0xff]  ;;  %v372_v8 = vld [vmem:[%s13847_s17 + $0x160] sm:$0xff] }
  0x46   : > { %11631 = vmatprep.mubr.f32.mxu1 %v468_v9  ;;  %v500_v9 = vld [vmem:[%s13853_s20 + $0x160] sm:$0xff] }
  0x48   : > { %11408 = vmatmul.mubr.f32.gmra.mrb[12].mxu0 %v341_v10  ;;  %v373_v10 = vld [vmem:[%s13847_s17 + $0x168] sm:$0xff] }
  0x49   : > { %11632 = vmatmul.mubr.f32.gmra.mrb[12].mxu1 %v469_v11  ;;  %11410 = vmatprep.mubr.f32.mxu0 %v342_v12  ;;  %v501_v11 = vld [vmem:[%s13853_s20 + $0x168] sm:$0xff]  ;;  %v374_v12 = vld [vmem:[%s13847_s17 + $0x170] sm:$0xff] }
  0x4a   : > { %11634 = vmatprep.mubr.f32.mxu1 %v470_v13  ;;  %v502_v13 = vld [vmem:[%s13853_s20 + $0x170] sm:$0xff] }
  0x4c   : > { %11411 = vmatmul.mubr.f32.gmra.mrb[14].mxu0 %v343_v14  ;;  %v375_v14 = vld [vmem:[%s13847_s17 + $0x178] sm:$0xff] }
  0x4d   : > { %11635 = vmatmul.mubr.f32.gmra.mrb[14].mxu1 %v471_v15  ;;  %11413 = vmatprep.mubr.f32.mxu0 %v344_v16  ;;  %v503_v15 = vld [vmem:[%s13853_s20 + $0x178] sm:$0xff]  ;;  %v376_v16 = vld [vmem:[%s13847_s17 + $0x180] sm:$0xff] }
  0x4e   : > { %11637 = vmatprep.mubr.f32.mxu1 %v472_v17  ;;  %v504_v17 = vld [vmem:[%s13853_s20 + $0x180] sm:$0xff] }
  0x50   : > { %11414 = vmatmul.mubr.f32.gmra.mrb[16].mxu0 %v345_v18  ;;  %v377_v18 = vld [vmem:[%s13847_s17 + $0x188] sm:$0xff] }
  0x51   : > { %11638 = vmatmul.mubr.f32.gmra.mrb[16].mxu1 %v473_v19  ;;  %11416 = vmatprep.mubr.f32.mxu0 %v346_v20  ;;  %v505_v19 = vld [vmem:[%s13853_s20 + $0x188] sm:$0xff]  ;;  %v378_v20 = vld [vmem:[%s13847_s17 + $0x190] sm:$0xff] }
  0x52   : > { %11640 = vmatprep.mubr.f32.mxu1 %v474_v21  ;;  %v506_v21 = vld [vmem:[%s13853_s20 + $0x190] sm:$0xff] }
  0x54   : > { %11417 = vmatmul.mubr.f32.gmra.mrb[18].mxu0 %v347_v22  ;;  %v379_v22 = vld [vmem:[%s13847_s17 + $0x198] sm:$0xff] }
  0x55   : > { %11641 = vmatmul.mubr.f32.gmra.mrb[18].mxu1 %v475_v23  ;;  %11419 = vmatprep.mubr.f32.mxu0 %v348_v24  ;;  %v507_v23 = vld [vmem:[%s13853_s20 + $0x198] sm:$0xff]  ;;  %v380_v24 = vld [vmem:[%s13847_s17 + $0x1a0] sm:$0xff] }
  0x56   : > { %11643 = vmatprep.mubr.f32.mxu1 %v476_v25  ;;  %v508_v25 = vld [vmem:[%s13853_s20 + $0x1a0] sm:$0xff] }
  0x58   : > { %11420 = vmatmul.mubr.f32.gmra.mrb[20].mxu0 %v349_v26  ;;  %v381_v26 = vld [vmem:[%s13847_s17 + $0x1a8] sm:$0xff] }
  0x59   : > { %11644 = vmatmul.mubr.f32.gmra.mrb[20].mxu1 %v477_v27  ;;  %11422 = vmatprep.mubr.f32.mxu0 %v350_v28  ;;  %v509_v27 = vld [vmem:[%s13853_s20 + $0x1a8] sm:$0xff]  ;;  %v382_v28 = vld [vmem:[%s13847_s17 + $0x1b0] sm:$0xff] }
  0x5a   : > { %11646 = vmatprep.mubr.f32.mxu1 %v478_v29  ;;  %v510_v29 = vld [vmem:[%s13853_s20 + $0x1b0] sm:$0xff] }
  0x5c   : > { %11423 = vmatmul.mubr.f32.gmra.mrb[22].mxu0 %v351_v30  ;;  %v383_v30 = vld [vmem:[%s13847_s17 + $0x1b8] sm:$0xff] }
  0x5d   : > { %11647 = vmatmul.mubr.f32.gmra.mrb[22].mxu1 %v479_v31  ;;  %11425 = vmatprep.mubr.f32.mxu0 %v352_v32  ;;  %v511_v31 = vld [vmem:[%s13853_s20 + $0x1b8] sm:$0xff]  ;;  %v384_v32 = vld [vmem:[%s13847_s17 + $0x1c0] sm:$0xff] }
  0x5e   : > { %11649 = vmatprep.mubr.f32.mxu1 %v480_v33  ;;  %v512_v33 = vld [vmem:[%s13853_s20 + $0x1c0] sm:$0xff] }
  0x60   : > { %11426 = vmatmul.mubr.f32.gmra.mrb[24].mxu0 %v353_v34  ;;  %v385_v34 = vld [vmem:[%s13847_s17 + $0x1c8] sm:$0xff] }
  0x61   : > { %11650 = vmatmul.mubr.f32.gmra.mrb[24].mxu1 %v481_v35  ;;  %11428 = vmatprep.mubr.f32.mxu0 %v354_v36  ;;  %v513_v35 = vld [vmem:[%s13853_s20 + $0x1c8] sm:$0xff]  ;;  %v386_v36 = vld [vmem:[%s13847_s17 + $0x1d0] sm:$0xff] }
  0x62   : > { %11652 = vmatprep.mubr.f32.mxu1 %v482_v37  ;;  %v514_v37 = vld [vmem:[%s13853_s20 + $0x1d0] sm:$0xff] }
  0x64   : > { %11429 = vmatmul.mubr.f32.gmra.mrb[26].mxu0 %v355_v38  ;;  %v387_v38 = vld [vmem:[%s13847_s17 + $0x1d8] sm:$0xff] }
  0x65   : > { %11653 = vmatmul.mubr.f32.gmra.mrb[26].mxu1 %v483_v39  ;;  %11431 = vmatprep.mubr.f32.mxu0 %v356_v40  ;;  %v515_v39 = vld [vmem:[%s13853_s20 + $0x1d8] sm:$0xff]  ;;  %v388_v40 = vld [vmem:[%s13847_s17 + $0x1e0] sm:$0xff] }
  0x66   : > { %11655 = vmatprep.mubr.f32.mxu1 %v484_v41  ;;  %v516_v41 = vld [vmem:[%s13853_s20 + $0x1e0] sm:$0xff] }
  0x68   : > { %11432 = vmatmul.mubr.f32.gmra.mrb[28].mxu0 %v357_v42  ;;  %v389_v42 = vld [vmem:[%s13847_s17 + $0x1e8] sm:$0xff] }
  0x69   : > { %11656 = vmatmul.mubr.f32.gmra.mrb[28].mxu1 %v485_v43  ;;  %11434 = vmatprep.mubr.f32.mxu0 %v358_v44  ;;  %v517_v43 = vld [vmem:[%s13853_s20 + $0x1e8] sm:$0xff]  ;;  %v390_v44 = vld [vmem:[%s13847_s17 + $0x1f0] sm:$0xff] }
  0x6a   : > { %11658 = vmatprep.mubr.f32.mxu1 %v486_v45  ;;  %v518_v45 = vld [vmem:[%s13853_s20 + $0x1f0] sm:$0xff] }
  0x6c   : > { %11435 = vmatmul.mubr.f32.gmra.mrb[30].mxu0 %v359_v46  ;;  %v391_v46 = vld [vmem:[%s13847_s17 + $0x1f8] sm:$0xff] }
  0x6d   : > { %11659 = vmatmul.mubr.f32.gmra.mrb[30].mxu1 %v487_v47  ;;  %11437 = vmatprep.mubr.f32.mxu0 %v360_v48  ;;  %v519_v47 = vld [vmem:[%s13853_s20 + $0x1f8] sm:$0xff]  ;;  %v392_v48 = vld [vmem:[%s13847_s17 + $0x200] sm:$0xff] }
  0x6e   : > { %11661 = vmatprep.mubr.f32.mxu1 %v488_v49  ;;  %v520_v49 = vld [vmem:[%s13853_s20 + $0x200] sm:$0xff] }
  0x70   : > { %11438 = vmatmul.mubr.f32.gmra.mrb[32].mxu0 %v361_v50  ;;  %v393_v50 = vld [vmem:[%s13847_s17 + $0x208] sm:$0xff] }
  0x71   : > { %11662 = vmatmul.mubr.f32.gmra.mrb[32].mxu1 %v489_v51  ;;  %11440 = vmatprep.mubr.f32.mxu0 %v362_v52  ;;  %v521_v51 = vld [vmem:[%s13853_s20 + $0x208] sm:$0xff]  ;;  %v394_v52 = vld [vmem:[%s13847_s17 + $0x210] sm:$0xff] }
  0x72   : > { %11664 = vmatprep.mubr.f32.mxu1 %v490_v53  ;;  %v522_v53 = vld [vmem:[%s13853_s20 + $0x210] sm:$0xff] }
  0x74   : > { %11441 = vmatmul.mubr.f32.gmra.mrb[34].mxu0 %v363_v54  ;;  %v395_v54 = vld [vmem:[%s13847_s17 + $0x218] sm:$0xff] }
  0x75   : > { %11665 = vmatmul.mubr.f32.gmra.mrb[34].mxu1 %v491_v55  ;;  %11443 = vmatprep.mubr.f32.mxu0 %v364_v56  ;;  %v523_v55 = vld [vmem:[%s13853_s20 + $0x218] sm:$0xff]  ;;  %v396_v56 = vld [vmem:[%s13847_s17 + $0x220] sm:$0xff] }
  0x76   : > { %11667 = vmatprep.mubr.f32.mxu1 %v492_v57  ;;  %v524_v57 = vld [vmem:[%s13853_s20 + $0x220] sm:$0xff] }
  0x78   : > { %11444 = vmatmul.mubr.f32.gmra.mrb[36].mxu0 %v365_v58  ;;  %v397_v58 = vld [vmem:[%s13847_s17 + $0x228] sm:$0xff] }
  0x79   : > { %11668 = vmatmul.mubr.f32.gmra.mrb[36].mxu1 %v493_v59  ;;  %11446 = vmatprep.mubr.f32.mxu0 %v366_v60  ;;  %v525_v59 = vld [vmem:[%s13853_s20 + $0x228] sm:$0xff]  ;;  %v398_v60 = vld [vmem:[%s13847_s17 + $0x230] sm:$0xff] }
  0x7a   : > { %11670 = vmatprep.mubr.f32.mxu1 %v494_v61  ;;  %v526_v61 = vld [vmem:[%s13853_s20 + $0x230] sm:$0xff] }
  0x7c   : > { %11447 = vmatmul.mubr.f32.gmra.mrb[38].mxu0 %v367_v62  ;;  %v399_v62 = vld [vmem:[%s13847_s17 + $0x238] sm:$0xff] }
  0x7d   : > { %11671 = vmatmul.mubr.f32.gmra.mrb[38].mxu1 %v495_v63  ;;  %11449 = vmatprep.mubr.f32.mxu0 %v368_v0  ;;  %v527_v63 = vld [vmem:[%s13853_s20 + $0x238] sm:$0xff]  ;;  %v400_v0 = vld [vmem:[%s13847_s17 + $0x240] sm:$0xff] }
  0x7e   : > { %11673 = vmatprep.mubr.f32.mxu1 %v496_v1  ;;  %v528_v1 = vld [vmem:[%s13853_s20 + $0x240] sm:$0xff] }
  0x80   : > { %11450 = vmatmul.mubr.f32.gmra.mrb[40].mxu0 %v369_v2  ;;  %v401_v2 = vld [vmem:[%s13847_s17 + $0x248] sm:$0xff] }
  0x81   : > { %11674 = vmatmul.mubr.f32.gmra.mrb[40].mxu1 %v497_v3  ;;  %11452 = vmatprep.mubr.f32.mxu0 %v370_v4  ;;  %v529_v3 = vld [vmem:[%s13853_s20 + $0x248] sm:$0xff]  ;;  %v402_v4 = vld [vmem:[%s13847_s17 + $0x250] sm:$0xff] }
  0x82   : > { %11676 = vmatprep.mubr.f32.mxu1 %v498_v5  ;;  %v530_v5 = vld [vmem:[%s13853_s20 + $0x250] sm:$0xff] }
  0x84   : > { %11453 = vmatmul.mubr.f32.gmra.mrb[42].mxu0 %v371_v6  ;;  %v403_v6 = vld [vmem:[%s13847_s17 + $0x258] sm:$0xff] }
  0x85   : > { %11677 = vmatmul.mubr.f32.gmra.mrb[42].mxu1 %v499_v7  ;;  %11455 = vmatprep.mubr.f32.mxu0 %v372_v8  ;;  %v531_v7 = vld [vmem:[%s13853_s20 + $0x258] sm:$0xff]  ;;  %v404_v8 = vld [vmem:[%s13847_s17 + $0x260] sm:$0xff] }
  0x86   : > { %11679 = vmatprep.mubr.f32.mxu1 %v500_v9  ;;  %v532_v9 = vld [vmem:[%s13853_s20 + $0x260] sm:$0xff] }
  0x88   : > { %11456 = vmatmul.mubr.f32.gmra.mrb[44].mxu0 %v373_v10  ;;  %v405_v10 = vld [vmem:[%s13847_s17 + $0x268] sm:$0xff] }
  0x89   : > { %11680 = vmatmul.mubr.f32.gmra.mrb[44].mxu1 %v501_v11  ;;  %11458 = vmatprep.mubr.f32.mxu0 %v374_v12  ;;  %v533_v11 = vld [vmem:[%s13853_s20 + $0x268] sm:$0xff]  ;;  %v406_v12 = vld [vmem:[%s13847_s17 + $0x270] sm:$0xff] }
  0x8a   : > { %11682 = vmatprep.mubr.f32.mxu1 %v502_v13  ;;  %v534_v13 = vld [vmem:[%s13853_s20 + $0x270] sm:$0xff] }
  0x8c   : > { %11459 = vmatmul.mubr.f32.gmra.mrb[46].mxu0 %v375_v14  ;;  %v407_v14 = vld [vmem:[%s13847_s17 + $0x278] sm:$0xff] }
  0x8d   : > { %11683 = vmatmul.mubr.f32.gmra.mrb[46].mxu1 %v503_v15  ;;  %11461 = vmatprep.mubr.f32.mxu0 %v376_v16  ;;  %v535_v15 = vld [vmem:[%s13853_s20 + $0x278] sm:$0xff]  ;;  %v408_v16 = vld [vmem:[%s13847_s17 + $0x280] sm:$0xff] }
  0x8e   : > { %11685 = vmatprep.mubr.f32.mxu1 %v504_v17  ;;  %v536_v17 = vld [vmem:[%s13853_s20 + $0x280] sm:$0xff] }
  0x90   : > { %11462 = vmatmul.mubr.f32.gmra.mrb[48].mxu0 %v377_v18  ;;  %v409_v18 = vld [vmem:[%s13847_s17 + $0x288] sm:$0xff] }
  0x91   : > { %11686 = vmatmul.mubr.f32.gmra.mrb[48].mxu1 %v505_v19  ;;  %11464 = vmatprep.mubr.f32.mxu0 %v378_v20  ;;  %v537_v19 = vld [vmem:[%s13853_s20 + $0x288] sm:$0xff]  ;;  %v410_v20 = vld [vmem:[%s13847_s17 + $0x290] sm:$0xff] }
  0x92   : > { %11688 = vmatprep.mubr.f32.mxu1 %v506_v21  ;;  %v538_v21 = vld [vmem:[%s13853_s20 + $0x290] sm:$0xff] }
  0x94   : > { %11465 = vmatmul.mubr.f32.gmra.mrb[50].mxu0 %v379_v22  ;;  %v411_v22 = vld [vmem:[%s13847_s17 + $0x298] sm:$0xff] }
  0x95   : > { %11689 = vmatmul.mubr.f32.gmra.mrb[50].mxu1 %v507_v23  ;;  %11467 = vmatprep.mubr.f32.mxu0 %v380_v24  ;;  %v539_v23 = vld [vmem:[%s13853_s20 + $0x298] sm:$0xff]  ;;  %v412_v24 = vld [vmem:[%s13847_s17 + $0x2a0] sm:$0xff] }
  0x96   : > { %11691 = vmatprep.mubr.f32.mxu1 %v508_v25  ;;  %v540_v25 = vld [vmem:[%s13853_s20 + $0x2a0] sm:$0xff] }
  0x98   : > { %11468 = vmatmul.mubr.f32.gmra.mrb[52].mxu0 %v381_v26  ;;  %v413_v26 = vld [vmem:[%s13847_s17 + $0x2a8] sm:$0xff] }
  0x99   : > { %11692 = vmatmul.mubr.f32.gmra.mrb[52].mxu1 %v509_v27  ;;  %11470 = vmatprep.mubr.f32.mxu0 %v382_v28  ;;  %v541_v27 = vld [vmem:[%s13853_s20 + $0x2a8] sm:$0xff]  ;;  %v414_v28 = vld [vmem:[%s13847_s17 + $0x2b0] sm:$0xff] }
  0x9a   : > { %11694 = vmatprep.mubr.f32.mxu1 %v510_v29  ;;  %v542_v29 = vld [vmem:[%s13853_s20 + $0x2b0] sm:$0xff] }
  0x9c   : > { %11471 = vmatmul.mubr.f32.gmra.mrb[54].mxu0 %v383_v30  ;;  %v415_v30 = vld [vmem:[%s13847_s17 + $0x2b8] sm:$0xff] }
  0x9d   : > { %11695 = vmatmul.mubr.f32.gmra.mrb[54].mxu1 %v511_v31  ;;  %11473 = vmatprep.mubr.f32.mxu0 %v384_v32  ;;  %v543_v31 = vld [vmem:[%s13853_s20 + $0x2b8] sm:$0xff]  ;;  %v416_v32 = vld [vmem:[%s13847_s17 + $0x2c0] sm:$0xff] }
  0x9e   : > { %11697 = vmatprep.mubr.f32.mxu1 %v512_v33  ;;  %v544_v33 = vld [vmem:[%s13853_s20 + $0x2c0] sm:$0xff] }
  0xa0   : > { %11474 = vmatmul.mubr.f32.gmra.mrb[56].mxu0 %v385_v34  ;;  %v417_v34 = vld [vmem:[%s13847_s17 + $0x2c8] sm:$0xff] }
  0xa1   : > { %11698 = vmatmul.mubr.f32.gmra.mrb[56].mxu1 %v513_v35  ;;  %11476 = vmatprep.mubr.f32.mxu0 %v386_v36  ;;  %v545_v35 = vld [vmem:[%s13853_s20 + $0x2c8] sm:$0xff]  ;;  %v418_v36 = vld [vmem:[%s13847_s17 + $0x2d0] sm:$0xff] }
  0xa2   : > { %11700 = vmatprep.mubr.f32.mxu1 %v514_v37  ;;  %v546_v37 = vld [vmem:[%s13853_s20 + $0x2d0] sm:$0xff] }
  0xa4   : > { %11477 = vmatmul.mubr.f32.gmra.mrb[58].mxu0 %v387_v38  ;;  %v419_v38 = vld [vmem:[%s13847_s17 + $0x2d8] sm:$0xff] }
  0xa5   : > { %11701 = vmatmul.mubr.f32.gmra.mrb[58].mxu1 %v515_v39  ;;  %11479 = vmatprep.mubr.f32.mxu0 %v388_v40  ;;  %v547_v39 = vld [vmem:[%s13853_s20 + $0x2d8] sm:$0xff]  ;;  %v420_v40 = vld [vmem:[%s13847_s17 + $0x2e0] sm:$0xff] }
  0xa6   : > { %11703 = vmatprep.mubr.f32.mxu1 %v516_v41  ;;  %v548_v41 = vld [vmem:[%s13853_s20 + $0x2e0] sm:$0xff] }
  0xa8   : > { %11480 = vmatmul.mubr.f32.gmra.mrb[60].mxu0 %v389_v42  ;;  %v421_v42 = vld [vmem:[%s13847_s17 + $0x2e8] sm:$0xff] }
  0xa9   : > { %11704 = vmatmul.mubr.f32.gmra.mrb[60].mxu1 %v517_v43  ;;  %11482 = vmatprep.mubr.f32.mxu0 %v390_v44  ;;  %v549_v43 = vld [vmem:[%s13853_s20 + $0x2e8] sm:$0xff]  ;;  %v422_v44 = vld [vmem:[%s13847_s17 + $0x2f0] sm:$0xff] }
  0xaa   : > { %11706 = vmatprep.mubr.f32.mxu1 %v518_v45  ;;  %v550_v45 = vld [vmem:[%s13853_s20 + $0x2f0] sm:$0xff] }
  0xac   : > { %11483 = vmatmul.mubr.f32.gmra.mrb[62].mxu0 %v391_v46  ;;  %v423_v46 = vld [vmem:[%s13847_s17 + $0x2f8] sm:$0xff] }
  0xad   : > { %11707 = vmatmul.mubr.f32.gmra.mrb[62].mxu1 %v519_v47  ;;  %11485 = vmatprep.mubr.f32.mxu0 %v392_v48  ;;  %v551_v47 = vld [vmem:[%s13853_s20 + $0x2f8] sm:$0xff]  ;;  %v424_v48 = vld [vmem:[%s13847_s17 + $0x300] sm:$0xff] }
  0xae   : > { %11709 = vmatprep.mubr.f32.mxu1 %v520_v49  ;;  %v552_v49 = vld [vmem:[%s13853_s20 + $0x300] sm:$0xff] }
  0xb0   : > { %11486 = vmatmul.mubr.f32.gmra.mrb[64].mxu0 %v393_v50  ;;  %v425_v50 = vld [vmem:[%s13847_s17 + $0x308] sm:$0xff] }
  0xb1   : > { %11710 = vmatmul.mubr.f32.gmra.mrb[64].mxu1 %v521_v51  ;;  %11488 = vmatprep.mubr.f32.mxu0 %v394_v52  ;;  %v553_v51 = vld [vmem:[%s13853_s20 + $0x308] sm:$0xff]  ;;  %v426_v52 = vld [vmem:[%s13847_s17 + $0x310] sm:$0xff] }
  0xb2   : > { %11712 = vmatprep.mubr.f32.mxu1 %v522_v53  ;;  %v554_v53 = vld [vmem:[%s13853_s20 + $0x310] sm:$0xff] }
  0xb4   : > { %11489 = vmatmul.mubr.f32.gmra.mrb[66].mxu0 %v395_v54  ;;  %v427_v54 = vld [vmem:[%s13847_s17 + $0x318] sm:$0xff] }
  0xb5   : > { %11713 = vmatmul.mubr.f32.gmra.mrb[66].mxu1 %v523_v55  ;;  %11491 = vmatprep.mubr.f32.mxu0 %v396_v56  ;;  %v555_v55 = vld [vmem:[%s13853_s20 + $0x318] sm:$0xff]  ;;  %v428_v56 = vld [vmem:[%s13847_s17 + $0x320] sm:$0xff] }
  0xb6   : > { %11715 = vmatprep.mubr.f32.mxu1 %v524_v57  ;;  %v556_v57 = vld [vmem:[%s13853_s20 + $0x320] sm:$0xff] }
  0xb8   : > { %11492 = vmatmul.mubr.f32.gmra.mrb[68].mxu0 %v397_v58  ;;  %v429_v58 = vld [vmem:[%s13847_s17 + $0x328] sm:$0xff] }
  0xb9   : > { %11716 = vmatmul.mubr.f32.gmra.mrb[68].mxu1 %v525_v59  ;;  %11494 = vmatprep.mubr.f32.mxu0 %v398_v60  ;;  %v557_v59 = vld [vmem:[%s13853_s20 + $0x328] sm:$0xff]  ;;  %v430_v60 = vld [vmem:[%s13847_s17 + $0x330] sm:$0xff] }
  0xba   : > { %11718 = vmatprep.mubr.f32.mxu1 %v526_v61  ;;  %v558_v61 = vld [vmem:[%s13853_s20 + $0x330] sm:$0xff] }
  0xbc   : > { %11495 = vmatmul.mubr.f32.gmra.mrb[70].mxu0 %v399_v62  ;;  %v431_v62 = vld [vmem:[%s13847_s17 + $0x338] sm:$0xff] }
  0xbd   : > { %11719 = vmatmul.mubr.f32.gmra.mrb[70].mxu1 %v527_v63  ;;  %11497 = vmatprep.mubr.f32.mxu0 %v400_v0  ;;  %v559_v63 = vld [vmem:[%s13853_s20 + $0x338] sm:$0xff]  ;;  %v432_v0 = vld [vmem:[%s13847_s17 + $0x340] sm:$0xff] }
  0xbe   : > { %11721 = vmatprep.mubr.f32.mxu1 %v528_v1  ;;  %v560_v1 = vld [vmem:[%s13853_s20 + $0x340] sm:$0xff] }
  0xc0   : > { %11498 = vmatmul.mubr.f32.gmra.mrb[72].mxu0 %v401_v2  ;;  %v433_v2 = vld [vmem:[%s13847_s17 + $0x348] sm:$0xff] }
  0xc1   : > { %11722 = vmatmul.mubr.f32.gmra.mrb[72].mxu1 %v529_v3  ;;  %11500 = vmatprep.mubr.f32.mxu0 %v402_v4  ;;  %v561_v3 = vld [vmem:[%s13853_s20 + $0x348] sm:$0xff]  ;;  %v434_v4 = vld [vmem:[%s13847_s17 + $0x350] sm:$0xff] }
  0xc2   : > { %11724 = vmatprep.mubr.f32.mxu1 %v530_v5  ;;  %v562_v5 = vld [vmem:[%s13853_s20 + $0x350] sm:$0xff] }
  0xc4   : > { %11501 = vmatmul.mubr.f32.gmra.mrb[74].mxu0 %v403_v6  ;;  %v14120_v6 = vld [vmem:[%s18448_s3] ss:$0 sm:$0xff] }
  0xc5   : > { %11725 = vmatmul.mubr.f32.gmra.mrb[74].mxu1 %v531_v7  ;;  %11503 = vmatprep.mubr.f32.mxu0 %v404_v8  ;;  %v435_v7 = vld [vmem:[%s13847_s17 + $0x358] sm:$0xff]  ;;  %v14126_v8 = vld [vmem:[%s18450_s5] ss:$0 sm:$0xff] }
  0xc6   : > { %11727 = vmatprep.mubr.f32.mxu1 %v532_v9  ;;  %v563_v9 = vld [vmem:[%s13853_s20 + $0x358] sm:$0xff] }
  0xc8   : > { %11504 = vmatmul.mubr.f32.gmra.mrb[76].mxu0 %v405_v10  ;;  %v436_v10 = vld [vmem:[%s13847_s17 + $0x360] sm:$0xff] }
  0xc9   : > { %11728 = vmatmul.mubr.f32.gmra.mrb[76].mxu1 %v533_v11  ;;  %11506 = vmatprep.mubr.f32.mxu0 %v406_v12  ;;  %v564_v12 = vld [vmem:[%s13853_s20 + $0x360] sm:$0xff] }
  0xca   : > { %11730 = vmatprep.mubr.f32.mxu1 %v534_v13 }
  0xcc   : > { %11507 = vmatmul.mubr.f32.gmra.mrb[78].mxu0 %v407_v14 }
  0xcd   : > { %11731 = vmatmul.mubr.f32.gmra.mrb[78].mxu1 %v535_v15  ;;  %11509 = vmatprep.mubr.f32.mxu0 %v408_v16 }
  0xce   : > { %11733 = vmatprep.mubr.f32.mxu1 %v536_v17 }
  0xd0   : > { %11510 = vmatmul.mubr.f32.gmra.mrb[80].mxu0 %v409_v18 }
  0xd1   : > { %11734 = vmatmul.mubr.f32.gmra.mrb[80].mxu1 %v537_v19  ;;  %11512 = vmatprep.mubr.f32.mxu0 %v410_v20  ;;  %v437_v19 = vld [vmem:[%s13847_s17 + $0x368] sm:$0xff] }
  0xd2   : > { %11736 = vmatprep.mubr.f32.mxu1 %v538_v21  ;;  %v565_v21 = vld [vmem:[%s13853_s20 + $0x368] sm:$0xff] }
  0xd4   : > { %11513 = vmatmul.mubr.f32.gmra.mrb[82].mxu0 %v411_v22  ;;  %v438_v22 = vld [vmem:[%s13847_s17 + $0x370] sm:$0xff] }
  0xd5   : > { %11737 = vmatmul.mubr.f32.gmra.mrb[82].mxu1 %v539_v23  ;;  %11515 = vmatprep.mubr.f32.mxu0 %v412_v24 }
  0xd6   : > { %11739 = vmatprep.mubr.f32.mxu1 %v540_v25 }
  0xd8   : > { %11516 = vmatmul.mubr.f32.gmra.mrb[84].mxu0 %v413_v26 }
  0xd9   : > { %11740 = vmatmul.mubr.f32.gmra.mrb[84].mxu1 %v541_v27  ;;  %11518 = vmatprep.mubr.f32.mxu0 %v414_v28 }
  0xda   : > { %11742 = vmatprep.mubr.f32.mxu1 %v542_v29 }
  0xdc   : > { %11519 = vmatmul.mubr.f32.gmra.mrb[86].mxu0 %v415_v30 }
  0xdd   : > { %11743 = vmatmul.mubr.f32.gmra.mrb[86].mxu1 %v543_v31  ;;  %11521 = vmatprep.mubr.f32.mxu0 %v416_v32 }
  0xde   : > { %11745 = vmatprep.mubr.f32.mxu1 %v544_v33 }
  0xe0   : > { %11522 = vmatmul.mubr.f32.gmra.mrb[88].mxu0 %v417_v34 }
  0xe1   : > { %11746 = vmatmul.mubr.f32.gmra.mrb[88].mxu1 %v545_v35  ;;  %11524 = vmatprep.mubr.f32.mxu0 %v418_v36  ;;  %v566_v35 = vld [vmem:[%s13853_s20 + $0x370] sm:$0xff]  ;;  %v439_v36 = vld [vmem:[%s13847_s17 + $0x378] sm:$0xff] }
  0xe2   : > { %11748 = vmatprep.mubr.f32.mxu1 %v546_v37 }
  0xe4   : > { %11525 = vmatmul.mubr.f32.gmra.mrb[90].mxu0 %v419_v38 }
  0xe5   : > { %11749 = vmatmul.mubr.f32.gmra.mrb[90].mxu1 %v547_v39  ;;  %11527 = vmatprep.mubr.f32.mxu0 %v420_v40  ;;  %v567_v39 = vld [vmem:[%s13853_s20 + $0x378] sm:$0xff]  ;;  %v440_v40 = vld [vmem:[%s13847_s17 + $0x380] sm:$0xff] }
  0xe6   : > { %11751 = vmatprep.mubr.f32.mxu1 %v548_v41 }
  0xe8   : > { %11528 = vmatmul.mubr.f32.gmra.mrb[92].mxu0 %v421_v42 }
  0xe9   : > { %11752 = vmatmul.mubr.f32.gmra.mrb[92].mxu1 %v549_v43  ;;  %11530 = vmatprep.mubr.f32.mxu0 %v422_v44 }
  0xea   : > { %11754 = vmatprep.mubr.f32.mxu1 %v550_v45 }
  0xec   : > { %11531 = vmatmul.mubr.f32.gmra.mrb[94].mxu0 %v423_v46 }
  0xed   : > { %11755 = vmatmul.mubr.f32.gmra.mrb[94].mxu1 %v551_v47  ;;  %11533 = vmatprep.mubr.f32.mxu0 %v424_v48 }
  0xee   : > { %11757 = vmatprep.mubr.f32.mxu1 %v552_v49 }
  0xf0   : > { %11534 = vmatmul.mubr.f32.gmra.mrb[96].mxu0 %v425_v50 }
  0xf1   : > { %11758 = vmatmul.mubr.f32.gmra.mrb[96].mxu1 %v553_v51  ;;  %11536 = vmatprep.mubr.f32.mxu0 %v426_v52  ;;  %v568_v52 = vld [vmem:[%s13853_s20 + $0x380] sm:$0xff] }
  0xf2   : > { %11760 = vmatprep.mubr.f32.mxu1 %v554_v53  ;;  %v441_v53 = vld [vmem:[%s13847_s17 + $0x388] sm:$0xff] }
  0xf4   : > { %11537 = vmatmul.mubr.f32.gmra.mrb[98].mxu0 %v427_v54 }
  0xf5   : > { %11761 = vmatmul.mubr.f32.gmra.mrb[98].mxu1 %v555_v55  ;;  %11539 = vmatprep.mubr.f32.mxu0 %v428_v56  ;;  %v569_v56 = vld [vmem:[%s13853_s20 + $0x388] sm:$0xff] }
  0xf6   : > { %11763 = vmatprep.mubr.f32.mxu1 %v556_v57  ;;  %v442_v57 = vld [vmem:[%s13847_s17 + $0x390] sm:$0xff] }
  0xf8   : > { %11540 = vmatmul.mubr.f32.gmra.mrb[100].mxu0 %v429_v58 }
  0xf9   : > { %11764 = vmatmul.mubr.f32.gmra.mrb[100].mxu1 %v557_v59  ;;  %11542 = vmatprep.mubr.f32.mxu0 %v430_v60  ;;  %v570_v60 = vld [vmem:[%s13853_s20 + $0x390] sm:$0xff] }
  0xfa   : > { %11766 = vmatprep.mubr.f32.mxu1 %v558_v61 }
  0xfc   : > { %11543 = vmatmul.mubr.f32.gmra.mrb[102].mxu0 %v431_v62 }
  0xfd   : > { %11767 = vmatmul.mubr.f32.gmra.mrb[102].mxu1 %v559_v63  ;;  %11545 = vmatprep.mubr.f32.mxu0 %v432_v0 }
  0xfe   : > { %11769 = vmatprep.mubr.f32.mxu1 %v560_v1 }
 0x100   : > { %11546 = vmatmul.mubr.f32.gmra.mrb[104].mxu0 %v433_v2 }
 0x101   : > { %11770 = vmatmul.mubr.f32.gmra.mrb[104].mxu1 %v561_v3  ;;  %11548 = vmatprep.mubr.f32.mxu0 %v434_v4 }
 0x102   : > { %11772 = vmatprep.mubr.f32.mxu1 %v562_v5 }
 0x103   : > { %v11391_v11 = vpop.f32.mrb[0].mxu0 }
 0x104   : > { %v14132_v13 = vadd.f32 %v11391_v11, %v14120_v6  ;;  %v11615_v14 = vpop.f32.mrb[0].mxu1  ;;  %v690_v15 = vpop.f32.mrb[1].mxu0  ;;  %11549 = vmatmul.mubr.f32.gmra.mrb[106].mxu0 %v435_v7  ;;  %v443_v7 = vld [vmem:[%s13847_s17 + $0x398] sm:$0xff] }
 0x105   : > { %v1407_v16 = vadd.f32 %v11615_v14, %v14126_v8  ;;  %v14136_v17 = vadd.f32 %v14120_v6, %v690_v15  ;;  %v1401_v18 = vpop.f32.mrb[1].mxu1  ;;  %11773 = vmatmul.mubr.f32.gmra.mrb[106].mxu1 %v563_v9  ;;  %11551 = vmatprep.mubr.f32.mxu0 %v436_v10  ;;  %v571_v11 = vld [vmem:[%s13853_s20 + $0x398] sm:$0xff] }
 0x106   : > { %v1402_v20 = vadd.f32 %v14126_v8, %v1401_v18  ;;  %11775 = vmatprep.mubr.f32.mxu1 %v564_v12  ;;  %v444_v12 = vld [vmem:[%s13847_s17 + $0x3a0] sm:$0xff] }
 0x107   : > { %v11394_v23 = vpop.f32.mrb[2].mxu0  ;;  %v8763_v25 = vmul.f32 %v1407_v16, %v14132_v13 }
 0x108   : > { %v12317_v26 = vpack.c.bf16 %v1407_v16, %v1402_v20  ;;  %v14150_v27 = vadd.f32 %v11394_v23, %v14120_v6  ;;  %v11618_v28 = vpop.f32.mrb[2].mxu1  ;;  %v700_v29 = vpop.f32.mrb[3].mxu0  ;;  %11552 = vmatmul.mubr.f32.gmra.mrb[108].mxu0 %v437_v19  ;;  %v8762_v30 = vmul.f32 %v1402_v20, %v14136_v17  ;;  %v572_v16 = vld [vmem:[%s13853_s20 + $0x3a0] sm:$0xff] }
 0x109   : > { %v1417_v31 = vadd.f32 %v11618_v28, %v14126_v8  ;;  %v14155_v32 = vadd.f32 %v14120_v6, %v700_v29  ;;  %v1411_v33 = vpop.f32.mrb[3].mxu1  ;;  %11776 = vmatmul.mubr.f32.gmra.mrb[108].mxu1 %v565_v21  ;;  %v8893_v34 = vsel %vm2040_vm0, %v8763_v25, 0.0  ;;  %11554 = vmatprep.mubr.f32.mxu0 %v438_v22  ;;  %v445_v29 = vld [vmem:[%s13847_s17 + $0x3a8] sm:$0xff] }
 0x10a   : > { %v1412_v37 = vadd.f32 %v14126_v8, %v1411_v33  ;;  %12319 = vmatprep.subr.msk.bf16.mxu0 %vm14144_vm1, %v12317_v26  ;;  %8894 = vadd.xlane.f32.xlu1 %v8893_v34  ;;  %v8890_v38 = vsel %vm2040_vm0, %v8762_v30, 0.0  ;;  %v573_v33 = vld [vmem:[%s13853_s20 + $0x3a8] sm:$0xff]  ;;  %v446_v34 = vld [vmem:[%s13847_s17 + $0x3b0] sm:$0xff] }
 0x10b   : > { %12322 = vmatpush3.bf16.xpose.msk.msra.mxu0 %vm14144_vm1, %v12317_v26  ;;  %8891 = vadd.xlane.f32.xlu0 %v8890_v38  ;;  %v11397_v41 = vpop.f32.mrb[4].mxu0  ;;  %v8765_v42 = vmul.f32 %v1417_v31, %v14150_v27 }
 0x10c   : > { %v12323_v43 = vpack.c.bf16 %v1417_v31, %v1412_v37  ;;  %v14170_v44 = vadd.f32 %v11397_v41, %v14120_v6  ;;  %v11621_v45 = vpop.f32.mrb[4].mxu1  ;;  %11778 = vmatprep.mubr.f32.mxu1 %v566_v35  ;;  %v710_v46 = vpop.f32.mrb[5].mxu0  ;;  %11555 = vmatmul.mubr.f32.gmra.mrb[110].mxu0 %v439_v36  ;;  %v8764_v47 = vmul.f32 %v1412_v37, %v14155_v32  ;;  %v574_v37 = vld [vmem:[%s13853_s20 + $0x3b0] sm:$0xff] }
 0x10d   : > { %v1427_v48 = vadd.f32 %v11621_v45, %v14126_v8  ;;  %v14175_v49 = vadd.f32 %v14120_v6, %v710_v46  ;;  %v1421_v50 = vpop.f32.mrb[5].mxu1  ;;  %11779 = vmatmul.mubr.f32.gmra.mrb[110].mxu1 %v567_v39  ;;  %v8899_v51 = vsel %vm2040_vm0, %v8765_v42, 0.0  ;;  %11557 = vmatprep.mubr.f32.mxu0 %v440_v40 }
 0x10e   : > { %v1422_v54 = vadd.f32 %v14126_v8, %v1421_v50  ;;  %12325 = vmatprep.subr.msk.bf16.mxu1 %vm14144_vm1, %v12323_v43  ;;  %8900 = vadd.xlane.f32.xlu1 %v8899_v51  ;;  %v8896_v55 = vsel %vm2040_vm0, %v8764_v47, 0.0 }
 0x10f   : > { %12328 = vmatpush3.bf16.xpose.msk.msra.mxu1 %vm14144_vm1, %v12323_v43  ;;  %8897 = vadd.xlane.f32.xlu0 %v8896_v55  ;;  %v11400_v58 = vpop.f32.mrb[6].mxu0  ;;  %v8767_v59 = vmul.f32 %v1427_v48, %v14170_v44 }
 0x110   : > { %v14190_v61 = vpack.c.bf16 %v1427_v48, %v1422_v54  ;;  %v14193_v62 = vadd.f32 %v11400_v58, %v14120_v6  ;;  %v11624_v63 = vpop.f32.mrb[6].mxu1  ;;  %11781 = vmatprep.mubr.f32.mxu1 %v568_v52  ;;  %v720_v0 = vpop.f32.mrb[7].mxu0  ;;  %11558 = vmatmul.mubr.f32.gmra.mrb[112].mxu0 %v441_v53  ;;  %v8766_v1 = vmul.f32 %v1422_v54, %v14175_v49  ;;  %v447_v48 = vld [vmem:[%s13847_s17 + $0x3b8] sm:$0xff]  ;;  %v448_v53 = vld [vmem:[%s13847_s17 + $0x3c0] sm:$0xff] }
 0x111   : > { %v1437_v2 = vadd.f32 %v11624_v63, %v14126_v8  ;;  %v14198_v3 = vadd.f32 %v14120_v6, %v720_v0  ;;  %v1431_v4 = vpop.f32.mrb[7].mxu1  ;;  %11782 = vmatmul.mubr.f32.gmra.mrb[112].mxu1 %v569_v56  ;;  %v8905_v5 = vsel %vm2040_vm0, %v8767_v59, 0.0  ;;  %11560 = vmatprep.mubr.f32.mxu0 %v442_v57  ;;  %v575_v52 = vld [vmem:[%s13853_s20 + $0x3b8] sm:$0xff]  ;;  %v576_v56 = vld [vmem:[%s13853_s20 + $0x3c0] sm:$0xff] }
 0x112   : > { %v1432_v9 = vadd.f32 %v14126_v8, %v1431_v4  ;;  %8906 = vadd.xlane.f32.xlu1 %v8905_v5  ;;  %v8902_v10 = vsel %vm2040_vm0, %v8766_v1, 0.0  ;;  %11784 = vmatprep.mubr.f32.mxu1 %v570_v60  ;;  %v449_v5 = vld [vmem:[%s13847_s17 + $0x3c8] sm:$0xff] }
 0x113   : > { %8903 = vadd.xlane.f32.xlu0 %v8902_v10  ;;  %v11403_v14 = vpop.f32.mrb[8].mxu0  ;;  %v8769_v15 = vmul.f32 %v1437_v2, %v14193_v62  ;;  %12331 = vmatprep.subr.msk.bf16.mxu0 %vm14144_vm1, %v14190_v61  ;;  %v577_v10 = vld [vmem:[%s13853_s20 + $0x3c8] sm:$0xff] }
 0x114   : > { %v14211_v18 = vpack.c.bf16 %v1437_v2, %v1432_v9  ;;  %v14214_v19 = vadd.f32 %v11403_v14, %v14120_v6  ;;  %v11627_v20 = vpop.f32.mrb[8].mxu1  ;;  %v730_v21 = vpop.f32.mrb[9].mxu0  ;;  %11561 = vmatmul.mubr.f32.gmra.mrb[114].mxu0 %v443_v7  ;;  %v8768_v22 = vmul.f32 %v1432_v9, %v14198_v3 }
 0x115   : > { %v1447_v23 = vadd.f32 %v11627_v20, %v14126_v8  ;;  %v14219_v25 = vadd.f32 %v14120_v6, %v730_v21  ;;  %v1441_v26 = vpop.f32.mrb[9].mxu1  ;;  %11785 = vmatmul.mubr.f32.gmra.mrb[114].mxu1 %v571_v11  ;;  %v8911_v28 = vsel %vm2040_vm0, %v8769_v15, 0.0  ;;  %11563 = vmatprep.mubr.f32.mxu0 %v444_v12  ;;  %v450_v11 = vld [vmem:[%s13847_s17 + $0x3d0] sm:$0xff] }
 0x116   : > { %v1442_v30 = vadd.f32 %v14126_v8, %v1441_v26  ;;  %8912 = vadd.xlane.f32.xlu1 %v8911_v28  ;;  %v8908_v31 = vsel %vm2040_vm0, %v8768_v22, 0.0  ;;  %11787 = vmatprep.mubr.f32.mxu1 %v572_v16  ;;  %v578_v15 = vld [vmem:[%s13853_s20 + $0x3d0] sm:$0xff] }
 0x117   : > { %8909 = vadd.xlane.f32.xlu0 %v8908_v31  ;;  %v11406_v35 = vpop.f32.mrb[10].mxu0  ;;  %v8771_v36 = vmul.f32 %v1447_v23, %v14214_v19  ;;  %12337 = vmatprep.subr.msk.bf16.mxu1 %vm14144_vm1, %v14211_v18  ;;  %v451_v31 = vld [vmem:[%s13847_s17 + $0x3d8] sm:$0xff] }
 0x118   : > { %v14232_v38 = vpack.c.bf16 %v1447_v23, %v1442_v30  ;;  %v14235_v39 = vadd.f32 %v11406_v35, %v14120_v6  ;;  %v11630_v40 = vpop.f32.mrb[10].mxu1  ;;  %v740_v41 = vpop.f32.mrb[11].mxu0  ;;  %11564 = vmatmul.mubr.f32.gmra.mrb[116].mxu0 %v445_v29  ;;  %v8770_v42 = vmul.f32 %v1442_v30, %v14219_v25  ;;  %v579_v35 = vld [vmem:[%s13853_s20 + $0x3d8] sm:$0xff] }
 0x119   : > { %v1457_v43 = vadd.f32 %v11630_v40, %v14126_v8  ;;  %v14240_v45 = vadd.f32 %v14120_v6, %v740_v41  ;;  %v1451_v46 = vpop.f32.mrb[11].mxu1  ;;  %11788 = vmatmul.mubr.f32.gmra.mrb[116].mxu1 %v573_v33  ;;  %v8917_v47 = vsel %vm2040_vm0, %v8771_v36, 0.0  ;;  %11566 = vmatprep.mubr.f32.mxu0 %v446_v34  ;;  %v452_v36 = vld [vmem:[%s13847_s17 + $0x3e0] sm:$0xff] }
 0x11a   : > { %v1452_v50 = vadd.f32 %v14126_v8, %v1451_v46  ;;  %8918 = vadd.xlane.f32.xlu1 %v8917_v47  ;;  %v8914_v51 = vsel %vm2040_vm0, %v8770_v42, 0.0  ;;  %11790 = vmatprep.mubr.f32.mxu1 %v574_v37  ;;  %v580_v41 = vld [vmem:[%s13853_s20 + $0x3e0] sm:$0xff] }
 0x11b   : > { %8915 = vadd.xlane.f32.xlu0 %v8914_v51  ;;  %v11409_v54 = vpop.f32.mrb[12].mxu0  ;;  %v8773_v55 = vmul.f32 %v1457_v43, %v14235_v39 }
 0x11c   : > { %v14250_v57 = vpack.c.bf16 %v1457_v43, %v1452_v50  ;;  %v14253_v58 = vadd.f32 %v11409_v54, %v14120_v6  ;;  %v11633_v59 = vpop.f32.mrb[12].mxu1  ;;  %v750_v60 = vpop.f32.mrb[13].mxu0  ;;  %11567 = vmatmul.mubr.f32.gmra.mrb[118].mxu0 %v447_v48  ;;  %v8772_v63 = vmul.f32 %v1452_v50, %v14240_v45  ;;  %v453_v54 = vld [vmem:[%s13847_s17 + $0x3e8] sm:$0xff] }
 0x11d   : > { %v1467_v0 = vadd.f32 %v11633_v59, %v14126_v8  ;;  %v14258_v1 = vadd.f32 %v14120_v6, %v750_v60  ;;  %v1461_v2 = vpop.f32.mrb[13].mxu1  ;;  %11791 = vmatmul.mubr.f32.gmra.mrb[118].mxu1 %v575_v52  ;;  %v8923_v4 = vsel %vm2040_vm0, %v8773_v55, 0.0  ;;  %11569 = vmatprep.mubr.f32.mxu0 %v448_v53  ;;  %v581_v59 = vld [vmem:[%s13853_s20 + $0x3e8] sm:$0xff]  ;;  %v454_v60 = vld [vmem:[%s13847_s17 + $0x3f0] sm:$0xff] }
 0x11e   : > { %v1462_v7 = vadd.f32 %v14126_v8, %v1461_v2  ;;  %8924 = vadd.xlane.f32.xlu1 %v8923_v4  ;;  %v8920_v9 = vsel %vm2040_vm0, %v8772_v63, 0.0  ;;  %11793 = vmatprep.mubr.f32.mxu1 %v576_v56  ;;  %v582_v2 = vld [vmem:[%s13853_s20 + $0x3f0] sm:$0xff] }
 0x11f   : > { %8921 = vadd.xlane.f32.xlu0 %v8920_v9  ;;  %v11412_v12 = vpop.f32.mrb[14].mxu0  ;;  %v8775_v14 = vmul.f32 %v1467_v0, %v14253_v58 }
 0x120   : > { %v14268_v16 = vpack.c.bf16 %v1467_v0, %v1462_v7  ;;  %v14271_v20 = vadd.f32 %v11412_v12, %v14120_v6  ;;  %v11636_v21 = vpop.f32.mrb[14].mxu1  ;;  %v760_v22 = vpop.f32.mrb[15].mxu0  ;;  %11570 = vmatmul.mubr.f32.gmra.mrb[120].mxu0 %v449_v5  ;;  %v8774_v23 = vmul.f32 %v1462_v7, %v14258_v1 }
 0x121   : > { %v1477_v26 = vadd.f32 %v11636_v21, %v14126_v8  ;;  %v14276_v28 = vadd.f32 %v14120_v6, %v760_v22  ;;  %v1471_v29 = vpop.f32.mrb[15].mxu1  ;;  %11794 = vmatmul.mubr.f32.gmra.mrb[120].mxu1 %v577_v10  ;;  %v8929_v30 = vsel %vm2040_vm0, %v8775_v14, 0.0  ;;  %11572 = vmatprep.mubr.f32.mxu0 %v450_v11  ;;  %v455_v21 = vld [vmem:[%s13847_s17 + $0x3f8] sm:$0xff] }
 0x122   : > { %v1472_v33 = vadd.f32 %v14126_v8, %v1471_v29  ;;  %8930 = vadd.xlane.f32.xlu1 %v8929_v30  ;;  %v8926_v34 = vsel %vm2040_vm0, %v8774_v23, 0.0  ;;  %11796 = vmatprep.mubr.f32.mxu1 %v578_v15 }
 0x123   : > { %8927 = vadd.xlane.f32.xlu0 %v8926_v34  ;;  %v11415_v37 = vpop.f32.mrb[16].mxu0  ;;  %v8777_v40 = vmul.f32 %v1477_v26, %v14271_v20 }
 0x124   : > { %v14286_v42 = vpack.c.bf16 %v1477_v26, %v1472_v33  ;;  %v14289_v43 = vadd.f32 %v11415_v37, %v14120_v6  ;;  %v11639_v46 = vpop.f32.mrb[16].mxu1  ;;  %v770_v47 = vpop.f32.mrb[17].mxu0  ;;  %11573 = vmatmul.mubr.f32.gmra.mrb[122].mxu0 %v451_v31  ;;  %v8776_v48 = vmul.f32 %v1472_v33, %v14276_v28  ;;  %v583_v26 = vld [vmem:[%s13853_s20 + $0x3f8] sm:$0xff] }
 0x125   : > { %v1487_v50 = vadd.f32 %v11639_v46, %v14126_v8  ;;  %v14294_v51 = vadd.f32 %v14120_v6, %v770_v47  ;;  %v1481_v52 = vpop.f32.mrb[17].mxu1  ;;  %11797 = vmatmul.mubr.f32.gmra.mrb[122].mxu1 %v579_v35  ;;  %v8935_v53 = vsel %vm2040_vm0, %v8777_v40, 0.0  ;;  %11575 = vmatprep.mubr.f32.mxu0 %v452_v36 }
 0x126   : > { %v1482_v55 = vadd.f32 %v14126_v8, %v1481_v52  ;;  %8936 = vadd.xlane.f32.xlu1 %v8935_v53  ;;  %v8932_v56 = vsel %vm2040_vm0, %v8776_v48, 0.0  ;;  %11799 = vmatprep.mubr.f32.mxu1 %v580_v41 }
 0x127   : > { %8933 = vadd.xlane.f32.xlu0 %v8932_v56  ;;  %v11418_v63 = vpop.f32.mrb[18].mxu0  ;;  %v8779_v0 = vmul.f32 %v1487_v50, %v14289_v43 }
 0x128   : > { %v14304_v4 = vpack.c.bf16 %v1487_v50, %v1482_v55  ;;  %v14307_v5 = vadd.f32 %v11418_v63, %v14120_v6  ;;  %v11642_v7 = vpop.f32.mrb[18].mxu1  ;;  %v780_v9 = vpop.f32.mrb[19].mxu0  ;;  %11576 = vmatmul.mubr.f32.gmra.mrb[124].mxu0 %v453_v54  ;;  %v8778_v10 = vmul.f32 %v1482_v55, %v14294_v51 }
 0x129   : > { %v1497_v11 = vadd.f32 %v11642_v7, %v14126_v8  ;;  %v14312_v12 = vadd.f32 %v14120_v6, %v780_v9  ;;  %v1491_v14 = vpop.f32.mrb[19].mxu1  ;;  %11800 = vmatmul.mubr.f32.gmra.mrb[124].mxu1 %v581_v59  ;;  %v8941_v15 = vsel %vm2040_vm0, %v8779_v0, 0.0  ;;  %11578 = vmatprep.mubr.f32.mxu0 %v454_v60 }
 0x12a   : > { %v1492_v22 = vadd.f32 %v14126_v8, %v1491_v14  ;;  %8942 = vadd.xlane.f32.xlu1 %v8941_v15  ;;  %v8938_v23 = vsel %vm2040_vm0, %v8778_v10, 0.0  ;;  %11802 = vmatprep.mubr.f32.mxu1 %v582_v2 }
 0x12b   : > { %8939 = vadd.xlane.f32.xlu0 %v8938_v23  ;;  %v11421_v29 = vpop.f32.mrb[20].mxu0  ;;  %v8781_v30 = vmul.f32 %v1497_v11, %v14307_v5 }
 0x12c   : > { %v14320_v31 = vpack.c.bf16 %v1497_v11, %v1492_v22  ;;  %v14323_v33 = vadd.f32 %v11421_v29, %v14120_v6  ;;  %v11645_v34 = vpop.f32.mrb[20].mxu1  ;;  %v790_v35 = vpop.f32.mrb[21].mxu0  ;;  %11579 = vmatmul.mubr.f32.gmra.mrb[126].mxu0 %v455_v21  ;;  %v8780_v36 = vmul.f32 %v1492_v22, %v14312_v12 }
 0x12d   : > { %v1507_v37 = vadd.f32 %v11645_v34, %v14126_v8  ;;  %v14328_v40 = vadd.f32 %v14120_v6, %v790_v35  ;;  %v1501_v41 = vpop.f32.mrb[21].mxu1  ;;  %11803 = vmatmul.mubr.f32.gmra.mrb[126].mxu1 %v583_v26  ;;  %v8947_v46 = vsel %vm2040_vm0, %v8781_v30, 0.0  ;;  %11809 = vmatprep.mubr.msk.f32.mxu0 %vm2040_vm0, %v14136_v17 }
 0x12e   : > { %v1502_v47 = vadd.f32 %v14126_v8, %v1501_v41  ;;  %8948 = vadd.xlane.f32.xlu1 %v8947_v46  ;;  %v8944_v48 = vsel %vm2040_vm0, %v8780_v36, 0.0  ;;  %11816 = vmatprep.mubr.msk.f32.mxu1 %vm2040_vm0, %v14155_v32 }
 0x12f   : > { %8945 = vadd.xlane.f32.xlu0 %v8944_v48  ;;  %v11424_v50 = vpop.f32.mrb[22].mxu0  ;;  %v8783_v52 = vmul.f32 %v1507_v37, %v14323_v33 }
 0x130   : > { %v14338_v53 = vpack.c.bf16 %v1507_v37, %v1502_v47  ;;  %v14341_v54 = vadd.f32 %v11424_v50, %v14120_v6  ;;  %v11648_v55 = vpop.f32.mrb[22].mxu1  ;;  %v800_v56 = vpop.f32.mrb[23].mxu0  ;;  %11810 = vmatmul.mubr.msk.f32.vlgmr.msra.gmra.mrb[128].mxu0 %vm2040_vm0, %v14132_v13  ;;  %v8782_v17 = vmul.f32 %v1502_v47, %v14328_v40 }
 0x131   : > { %v1517_v59 = vadd.f32 %v11648_v55, %v14126_v8  ;;  %v14348_v32 = vadd.f32 %v14120_v6, %v800_v56  ;;  %v1511_v60 = vpop.f32.mrb[23].mxu1  ;;  %11817 = vmatmul.mubr.msk.f32.vlgmr.msra.gmra.mrb[128].mxu1 %vm2040_vm0, %v14150_v27  ;;  %v8953_v63 = vsel %vm2040_vm0, %v8783_v52, 0.0  ;;  %12334 = vmatpush3.bf16.xpose.msk.msra.mxu0 %vm14144_vm1, %v14190_v61 }
 0x132   : > { %v1512_v0 = vadd.f32 %v14126_v8, %v1511_v60  ;;  %8954 = vadd.xlane.f32.xlu1 %v8953_v63  ;;  %v8950_v13 = vsel %vm2040_vm0, %v8782_v17, 0.0  ;;  %12340 = vmatpush3.bf16.xpose.msk.msra.mxu1 %vm14144_vm1, %v14211_v18 }
 0x133   : > { %8951 = vadd.xlane.f32.xlu0 %v8950_v13  ;;  %v11427_v2 = vpop.f32.mrb[24].mxu0  ;;  %v8785_v7 = vmul.f32 %v1517_v59, %v14341_v54  ;;  %11823 = vmatprep.mubr.msk.f32.mxu0 %vm2040_vm0, %v14175_v49 }
 0x134   : > { %v14364_v27 = vpack.c.bf16 %v1517_v59, %v1512_v0  ;;  %v14367_v61 = vadd.f32 %v11427_v2, %v14120_v6  ;;  %v11651_v9 = vpop.f32.mrb[24].mxu1  ;;  %v810_v10 = vpop.f32.mrb[25].mxu0  ;;  %v8784_v11 = vmul.f32 %v1512_v0, %v14348_v32  ;;  %12343 = vmatprep.subr.msk.bf16.mxu0 %vm14144_vm1, %v14232_v38  ;;  %11830 = vmatprep.mubr.msk.f32.mxu1 %vm2040_vm0, %v14198_v3 }
 0x135   : > { %v1527_v18 = vadd.f32 %v11651_v9, %v14126_v8  ;;  %v14377_v49 = vadd.f32 %v14120_v6, %v810_v10  ;;  %v1521_v14 = vpop.f32.mrb[25].mxu1  ;;  %v8959_v15 = vsel %vm2040_vm0, %v8785_v7, 0.0  ;;  %12349 = vmatprep.subr.msk.bf16.mxu1 %vm14144_vm1, %v14250_v57 }
 0x136   : > { %v1522_v21 = vadd.f32 %v14126_v8, %v1521_v14  ;;  %8960 = vadd.xlane.f32.xlu1 %v8959_v15  ;;  %v8956_v22 = vsel %vm2040_vm0, %v8784_v11, 0.0 }
 0x137   : > { %8957 = vadd.xlane.f32.xlu0 %v8956_v22  ;;  %v11430_v23 = vpop.f32.mrb[26].mxu0  ;;  %v8787_v3 = vmul.f32 %v1527_v18, %v14367_v61 }
 0x138   : > { %v14386_v26 = vpack.c.bf16 %v1527_v18, %v1522_v21  ;;  %v14389_v29 = vadd.f32 %v11430_v23, %v14120_v6  ;;  %v11654_v30 = vpop.f32.mrb[26].mxu1  ;;  %v820_v34 = vpop.f32.mrb[27].mxu0  ;;  %11824 = vmatmul.mubr.msk.f32.vlgmr.msra.gmra.mrb[130].mxu0 %vm2040_vm0, %v14170_v44  ;;  %v8786_v35 = vmul.f32 %v1522_v21, %v14377_v49 }
 0x139   : > { %v1537_v36 = vadd.f32 %v11654_v30, %v14126_v8  ;;  %v14396_v37 = vadd.f32 %v14120_v6, %v820_v34  ;;  %v1531_v41 = vpop.f32.mrb[27].mxu1  ;;  %v8965_v46 = vsel %vm2040_vm0, %v8787_v3, 0.0  ;;  %12346 = vmatpush3.bf16.xpose.msk.msra.mxu0 %vm14144_vm1, %v14232_v38  ;;  %11831 = vmatmul.mubr.msk.f32.vlgmr.msra.gmra.mrb[130].mxu1 %vm2040_vm0, %v14193_v62 }
 0x13a   : > { %v1532_v47 = vadd.f32 %v14126_v8, %v1531_v41  ;;  %8966 = vadd.xlane.f32.xlu1 %v8965_v46  ;;  %v8962_v44 = vsel %vm2040_vm0, %v8786_v35, 0.0  ;;  %12352 = vmatpush3.bf16.xpose.msk.msra.mxu1 %vm14144_vm1, %v14250_v57 }
 0x13b   : > { %8963 = vadd.xlane.f32.xlu0 %v8962_v44  ;;  %v11433_v48 = vpop.f32.mrb[28].mxu0  ;;  %v8789_v50 = vmul.f32 %v1537_v36, %v14389_v29  ;;  %11837 = vmatprep.mubr.msk.f32.mxu0 %vm2040_vm0, %v14219_v25 }
 0x13c   : > { %v14412_v38 = vpack.c.bf16 %v1537_v36, %v1532_v47  ;;  %v14415_v62 = vadd.f32 %v11433_v48, %v14120_v6  ;;  %v11657_v52 = vpop.f32.mrb[28].mxu1  ;;  %v830_v55 = vpop.f32.mrb[29].mxu0  ;;  %v8788_v56 = vmul.f32 %v1532_v47, %v14396_v37  ;;  %12355 = vmatprep.subr.msk.bf16.mxu0 %vm14144_vm1, %v14268_v16  ;;  %11844 = vmatprep.mubr.msk.f32.mxu1 %vm2040_vm0, %v14240_v45 }
 0x13d   : > { %v1547_v57 = vadd.f32 %v11657_v52, %v14126_v8  ;;  %v14425_v25 = vadd.f32 %v14120_v6, %v830_v55  ;;  %v1541_v17 = vpop.f32.mrb[29].mxu1  ;;  %v8971_v59 = vsel %vm2040_vm0, %v8789_v50, 0.0  ;;  %12361 = vmatprep.subr.msk.bf16.mxu1 %vm14144_vm1, %v14286_v42 }
 0x13e   : > { %v1542_v60 = vadd.f32 %v14126_v8, %v1541_v17  ;;  %8972 = vadd.xlane.f32.xlu1 %v8971_v59  ;;  %v8968_v63 = vsel %vm2040_vm0, %v8788_v56, 0.0 }
 0x13f   : > { %8969 = vadd.xlane.f32.xlu0 %v8968_v63  ;;  %v11436_v0 = vpop.f32.mrb[30].mxu0  ;;  %v8791_v45 = vmul.f32 %v1547_v57, %v14415_v62 }
 0x140   : > { %v14434_v13 = vpack.c.bf16 %v1547_v57, %v1542_v60  ;;  %v14437_v2 = vadd.f32 %v11436_v0, %v14120_v6  ;;  %v11660_v7 = vpop.f32.mrb[30].mxu1  ;;  %v840_v9 = vpop.f32.mrb[31].mxu0  ;;  %11838 = vmatmul.mubr.msk.f32.vlgmr.msra.gmra.mrb[132].mxu0 %vm2040_vm0, %v14214_v19  ;;  %v8790_v10 = vmul.f32 %v1542_v60, %v14425_v25 }
 0x141   : > { %v1557_v11 = vadd.f32 %v11660_v7, %v14126_v8  ;;  %v14444_v18 = vadd.f32 %v14120_v6, %v840_v9  ;;  %v1551_v14 = vpop.f32.mrb[31].mxu1  ;;  %v8977_v15 = vsel %vm2040_vm0, %v8791_v45, 0.0  ;;  %12358 = vmatpush3.bf16.xpose.msk.msra.mxu0 %vm14144_vm1, %v14268_v16  ;;  %11845 = vmatmul.mubr.msk.f32.vlgmr.msra.gmra.mrb[132].mxu1 %vm2040_vm0, %v14235_v39 }
 0x142   : > { %v1552_v21 = vadd.f32 %v14126_v8, %v1551_v14  ;;  %8978 = vadd.xlane.f32.xlu1 %v8977_v15  ;;  %v8974_v19 = vsel %vm2040_vm0, %v8790_v10, 0.0  ;;  %12364 = vmatpush3.bf16.xpose.msk.msra.mxu1 %vm14144_vm1, %v14286_v42 }
 0x143   : > { %8975 = vadd.xlane.f32.xlu0 %v8974_v19  ;;  %v11439_v22 = vpop.f32.mrb[32].mxu0  ;;  %v8793_v23 = vmul.f32 %v1557_v11, %v14437_v2  ;;  %11851 = vmatprep.mubr.msk.f32.mxu0 %vm2040_vm0, %v14258_v1 }
 0x144   : > { %v14460_v16 = vpack.c.bf16 %v1557_v11, %v1552_v21  ;;  %v14463_v39 = vadd.f32 %v11439_v22, %v14120_v6  ;;  %v11663_v3 = vpop.f32.mrb[32].mxu1  ;;  %v850_v30 = vpop.f32.mrb[33].mxu0  ;;  %v8792_v34 = vmul.f32 %v1552_v21, %v14444_v18  ;;  %12367 = vmatprep.subr.msk.bf16.mxu0 %vm14144_vm1, %v14304_v4  ;;  %11858 = vmatprep.mubr.msk.f32.mxu1 %vm2040_vm0, %v14276_v28 }
 0x145   : > { %v1567_v42 = vadd.f32 %v11663_v3, %v14126_v8  ;;  %v14473_v1 = vadd.f32 %v14120_v6, %v850_v30  ;;  %v1561_v35 = vpop.f32.mrb[33].mxu1  ;;  %v8983_v36 = vsel %vm2040_vm0, %v8793_v23, 0.0  ;;  %12373 = vmatprep.subr.msk.bf16.mxu1 %vm14144_vm1, %v14320_v31 }
 0x146   : > { %v1562_v41 = vadd.f32 %v14126_v8, %v1561_v35  ;;  %8984 = vadd.xlane.f32.xlu1 %v8983_v36  ;;  %v8980_v46 = vsel %vm2040_vm0, %v8792_v34, 0.0 }
 0x147   : > { %8981 = vadd.xlane.f32.xlu0 %v8980_v46  ;;  %v11442_v47 = vpop.f32.mrb[34].mxu0  ;;  %v8795_v28 = vmul.f32 %v1567_v42, %v14463_v39 }
 0x148   : > { %v14482_v44 = vpack.c.bf16 %v1567_v42, %v1562_v41  ;;  %v14485_v48 = vadd.f32 %v11442_v47, %v14120_v6  ;;  %v11666_v50 = vpop.f32.mrb[34].mxu1  ;;  %v860_v52 = vpop.f32.mrb[35].mxu0  ;;  %11852 = vmatmul.mubr.msk.f32.vlgmr.msra.gmra.mrb[134].mxu0 %vm2040_vm0, %v14253_v58  ;;  %v8794_v55 = vmul.f32 %v1562_v41, %v14473_v1 }
 0x149   : > { %v1577_v56 = vadd.f32 %v11666_v50, %v14126_v8  ;;  %v14492_v57 = vadd.f32 %v14120_v6, %v860_v52  ;;  %v1571_v17 = vpop.f32.mrb[35].mxu1  ;;  %v8989_v59 = vsel %vm2040_vm0, %v8795_v28, 0.0  ;;  %12370 = vmatpush3.bf16.xpose.msk.msra.mxu0 %vm14144_vm1, %v14304_v4  ;;  %11859 = vmatmul.mubr.msk.f32.vlgmr.msra.gmra.mrb[134].mxu1 %vm2040_vm0, %v14271_v20 }
 0x14a   : > { %v1572_v60 = vadd.f32 %v14126_v8, %v1571_v17  ;;  %8990 = vadd.xlane.f32.xlu1 %v8989_v59  ;;  %v8986_v58 = vsel %vm2040_vm0, %v8794_v55, 0.0  ;;  %12376 = vmatpush3.bf16.xpose.msk.msra.mxu1 %vm14144_vm1, %v14320_v31 }
 0x14b   : > { %8987 = vadd.xlane.f32.xlu0 %v8986_v58  ;;  %v11445_v63 = vpop.f32.mrb[36].mxu0  ;;  %v8797_v0 = vmul.f32 %v1577_v56, %v14485_v48  ;;  %11865 = vmatprep.mubr.msk.f32.mxu0 %vm2040_vm0, %v14294_v51 }
 0x14c   : > { %v14508_v4 = vpack.c.bf16 %v1577_v56, %v1572_v60  ;;  %v14511_v20 = vadd.f32 %v11445_v63, %v14120_v6  ;;  %v11669_v45 = vpop.f32.mrb[36].mxu1  ;;  %v870_v7 = vpop.f32.mrb[37].mxu0  ;;  %v8796_v9 = vmul.f32 %v1572_v60, %v14492_v57  ;;  %12379 = vmatprep.subr.msk.bf16.mxu0 %vm14144_vm1, %v14338_v53  ;;  %11872 = vmatprep.mubr.msk.f32.mxu1 %vm2040_vm0, %v14312_v12 }
 0x14d   : > { %v1587_v31 = vadd.f32 %v11669_v45, %v14126_v8  ;;  %v14521_v51 = vadd.f32 %v14120_v6, %v870_v7  ;;  %v1581_v10 = vpop.f32.mrb[37].mxu1  ;;  %v8995_v11 = vsel %vm2040_vm0, %v8797_v0, 0.0  ;;  %12385 = vmatprep.subr.msk.bf16.mxu1 %vm14144_vm1, %v14364_v27 }
 0x14e   : > { %v1582_v14 = vadd.f32 %v14126_v8, %v1581_v10  ;;  %8996 = vadd.xlane.f32.xlu1 %v8995_v11  ;;  %v8992_v15 = vsel %vm2040_vm0, %v8796_v9, 0.0 }
 0x14f   : > { %8993 = vadd.xlane.f32.xlu0 %v8992_v15  ;;  %v11448_v21 = vpop.f32.mrb[38].mxu0  ;;  %v8799_v12 = vmul.f32 %v1587_v31, %v14511_v20 }
 0x150   : > { %v14530_v19 = vpack.c.bf16 %v1587_v31, %v1582_v14  ;;  %v14533_v22 = vadd.f32 %v11448_v21, %v14120_v6  ;;  %v11672_v23 = vpop.f32.mrb[38].mxu1  ;;  %v880_v3 = vpop.f32.mrb[39].mxu0  ;;  %11866 = vmatmul.mubr.msk.f32.vlgmr.msra.gmra.mrb[136].mxu0 %vm2040_vm0, %v14289_v43  ;;  %v8798_v30 = vmul.f32 %v1582_v14, %v14521_v51 }
 0x151   : > { %v1597_v34 = vadd.f32 %v11672_v23, %v14126_v8  ;;  %v14540_v42 = vadd.f32 %v14120_v6, %v880_v3  ;;  %v1591_v35 = vpop.f32.mrb[39].mxu1  ;;  %v9001_v36 = vsel %vm2040_vm0, %v8799_v12, 0.0  ;;  %12382 = vmatpush3.bf16.xpose.msk.msra.mxu0 %vm14144_vm1, %v14338_v53  ;;  %11873 = vmatmul.mubr.msk.f32.vlgmr.msra.gmra.mrb[136].mxu1 %vm2040_vm0, %v14307_v5 }
 0x152   : > { %v1592_v41 = vadd.f32 %v14126_v8, %v1591_v35  ;;  %9002 = vadd.xlane.f32.xlu1 %v9001_v36  ;;  %v8998_v43 = vsel %vm2040_vm0, %v8798_v30, 0.0  ;;  %12388 = vmatpush3.bf16.xpose.msk.msra.mxu1 %vm14144_vm1, %v14364_v27 }
 0x153   : > { %8999 = vadd.xlane.f32.xlu0 %v8998_v43  ;;  %v11451_v46 = vpop.f32.mrb[40].mxu0  ;;  %v8801_v47 = vmul.f32 %v1597_v34, %v14533_v22  ;;  %11879 = vmatprep.mubr.msk.f32.mxu0 %vm2040_vm0, %v14328_v40 }
 0x154   : > { %v14556_v53 = vpack.c.bf16 %v1597_v34, %v1592_v41  ;;  %v14559_v5 = vadd.f32 %v11451_v46, %v14120_v6  ;;  %v11675_v28 = vpop.f32.mrb[40].mxu1  ;;  %v890_v50 = vpop.f32.mrb[41].mxu0  ;;  %v8800_v52 = vmul.f32 %v1592_v41, %v14540_v42  ;;  %12391 = vmatprep.subr.msk.bf16.mxu0 %vm14144_vm1, %v14386_v26  ;;  %11886 = vmatprep.mubr.msk.f32.mxu1 %vm2040_vm0, %v14348_v32 }
 0x155   : > { %v1607_v27 = vadd.f32 %v11675_v28, %v14126_v8  ;;  %v14569_v40 = vadd.f32 %v14120_v6, %v890_v50  ;;  %v1601_v55 = vpop.f32.mrb[41].mxu1  ;;  %v9007_v56 = vsel %vm2040_vm0, %v8801_v47, 0.0  ;;  %12397 = vmatprep.subr.msk.bf16.mxu1 %vm14144_vm1, %v14412_v38 }
 0x156   : > { %v1602_v17 = vadd.f32 %v14126_v8, %v1601_v55  ;;  %9008 = vadd.xlane.f32.xlu1 %v9007_v56  ;;  %v9004_v59 = vsel %vm2040_vm0, %v8800_v52, 0.0 }
 0x157   : > { %9005 = vadd.xlane.f32.xlu0 %v9004_v59  ;;  %v11454_v60 = vpop.f32.mrb[42].mxu0  ;;  %v8803_v32 = vmul.f32 %v1607_v27, %v14559_v5 }
 0x158   : > { %v14578_v58 = vpack.c.bf16 %v1607_v27, %v1602_v17  ;;  %v14581_v63 = vadd.f32 %v11454_v60, %v14120_v6  ;;  %v11678_v0 = vpop.f32.mrb[42].mxu1  ;;  %v900_v45 = vpop.f32.mrb[43].mxu0  ;;  %11880 = vmatmul.mubr.msk.f32.vlgmr.msra.gmra.mrb[138].mxu0 %vm2040_vm0, %v14323_v33  ;;  %v8802_v7 = vmul.f32 %v1602_v17, %v14569_v40 }
 0x159   : > { %v1617_v9 = vadd.f32 %v11678_v0, %v14126_v8  ;;  %v14588_v31 = vadd.f32 %v14120_v6, %v900_v45  ;;  %v1611_v10 = vpop.f32.mrb[43].mxu1  ;;  %v9013_v11 = vsel %vm2040_vm0, %v8803_v32, 0.0  ;;  %12394 = vmatpush3.bf16.xpose.msk.msra.mxu0 %vm14144_vm1, %v14386_v26  ;;  %11887 = vmatmul.mubr.msk.f32.vlgmr.msra.gmra.mrb[138].mxu1 %vm2040_vm0, %v14341_v54 }
 0x15a   : > { %v1612_v14 = vadd.f32 %v14126_v8, %v1611_v10  ;;  %9014 = vadd.xlane.f32.xlu1 %v9013_v11  ;;  %v9010_v33 = vsel %vm2040_vm0, %v8802_v7, 0.0  ;;  %12400 = vmatpush3.bf16.xpose.msk.msra.mxu1 %vm14144_vm1, %v14412_v38 }
 0x15b   : > { %9011 = vadd.xlane.f32.xlu0 %v9010_v33  ;;  %v11457_v15 = vpop.f32.mrb[44].mxu0  ;;  %v8805_v21 = vmul.f32 %v1617_v9, %v14581_v63  ;;  %11893 = vmatprep.mubr.msk.f32.mxu0 %vm2040_vm0, %v14377_v49 }
 0x15c   : > { %v14604_v26 = vpack.c.bf16 %v1617_v9, %v1612_v14  ;;  %v14607_v54 = vadd.f32 %v11457_v15, %v14120_v6  ;;  %v11681_v12 = vpop.f32.mrb[44].mxu1  ;;  %v910_v23 = vpop.f32.mrb[45].mxu0  ;;  %v8804_v3 = vmul.f32 %v1612_v14, %v14588_v31  ;;  %12403 = vmatprep.subr.msk.bf16.mxu0 %vm14144_vm1, %v14434_v13  ;;  %11900 = vmatprep.mubr.msk.f32.mxu1 %vm2040_vm0, %v14396_v37 }
 0x15d   : > { %v1627_v38 = vadd.f32 %v11681_v12, %v14126_v8  ;;  %v14617_v49 = vadd.f32 %v14120_v6, %v910_v23  ;;  %v1621_v30 = vpop.f32.mrb[45].mxu1  ;;  %v9019_v34 = vsel %vm2040_vm0, %v8805_v21, 0.0  ;;  %12409 = vmatprep.subr.msk.bf16.mxu1 %vm14144_vm1, %v14460_v16 }
 0x15e   : > { %v1622_v35 = vadd.f32 %v14126_v8, %v1621_v30  ;;  %9020 = vadd.xlane.f32.xlu1 %v9019_v34  ;;  %v9016_v36 = vsel %vm2040_vm0, %v8804_v3, 0.0 }
 0x15f   : > { %9017 = vadd.xlane.f32.xlu0 %v9016_v36  ;;  %v11460_v41 = vpop.f32.mrb[46].mxu0  ;;  %v8807_v37 = vmul.f32 %v1627_v38, %v14607_v54 }
 0x160   : > { %v14626_v43 = vpack.c.bf16 %v1627_v38, %v1622_v35  ;;  %v14629_v46 = vadd.f32 %v11460_v41, %v14120_v6  ;;  %v11684_v47 = vpop.f32.mrb[46].mxu1  ;;  %v920_v28 = vpop.f32.mrb[47].mxu0  ;;  %11894 = vmatmul.mubr.msk.f32.vlgmr.msra.gmra.mrb[140].mxu0 %vm2040_vm0, %v14367_v61  ;;  %v8806_v50 = vmul.f32 %v1622_v35, %v14617_v49 }
 0x161   : > { %v1637_v52 = vadd.f32 %v11684_v47, %v14126_v8  ;;  %v14636_v27 = vadd.f32 %v14120_v6, %v920_v28  ;;  %v1631_v55 = vpop.f32.mrb[47].mxu1  ;;  %v9025_v56 = vsel %vm2040_vm0, %v8807_v37, 0.0  ;;  %12406 = vmatpush3.bf16.xpose.msk.msra.mxu0 %vm14144_vm1, %v14434_v13  ;;  %11901 = vmatmul.mubr.msk.f32.vlgmr.msra.gmra.mrb[140].mxu1 %vm2040_vm0, %v14389_v29 }
 0x162   : > { %v1632_v17 = vadd.f32 %v14126_v8, %v1631_v55  ;;  %9026 = vadd.xlane.f32.xlu1 %v9025_v56  ;;  %v9022_v61 = vsel %vm2040_vm0, %v8806_v50, 0.0  ;;  %12412 = vmatpush3.bf16.xpose.msk.msra.mxu1 %vm14144_vm1, %v14460_v16 }
 0x163   : > { %9023 = vadd.xlane.f32.xlu0 %v9022_v61  ;;  %v11463_v59 = vpop.f32.mrb[48].mxu0  ;;  %v8809_v60 = vmul.f32 %v1637_v52, %v14629_v46  ;;  %11907 = vmatprep.mubr.msk.f32.mxu0 %vm2040_vm0, %v14425_v25  ;;  %v14667_v25 = vld [vmem:[%s18448_s3] ss:$0 sm:$0xff] }
 0x164   : > { %v14652_v13 = vpack.c.bf16 %v1637_v52, %v1632_v17  ;;  %v14655_v29 = vadd.f32 %v11463_v59, %v14120_v6  ;;  %v11687_v32 = vpop.f32.mrb[48].mxu1  ;;  %v930_v0 = vpop.f32.mrb[49].mxu0  ;;  %v8808_v45 = vmul.f32 %v1632_v17, %v14636_v27  ;;  %12415 = vmatprep.subr.msk.bf16.mxu0 %vm14144_vm1, %v14482_v44  ;;  %11914 = vmatprep.mubr.msk.f32.mxu1 %vm2040_vm0, %v14444_v18  ;;  %v14679_v18 = vld [vmem:[%s18450_s5] ss:$0 sm:$0xff] }
 0x165   : > { %v1647_v16 = vadd.f32 %v11687_v32, %v14126_v8  ;;  %v14670_v6 = vadd.f32 %v14667_v25, %v930_v0  ;;  %v1641_v7 = vpop.f32.mrb[49].mxu1  ;;  %v9031_v9 = vsel %vm2040_vm0, %v8809_v60, 0.0  ;;  %12421 = vmatprep.subr.msk.bf16.mxu1 %vm14144_vm1, %v14508_v4 }
 0x166   : > { %v1642_v8 = vadd.f32 %v14679_v18, %v1641_v7  ;;  %9032 = vadd.xlane.f32.xlu1 %v9031_v9  ;;  %v9028_v10 = vsel %vm2040_vm0, %v8808_v45, 0.0 }
 0x167   : > { %9029 = vadd.xlane.f32.xlu0 %v9028_v10  ;;  %v11466_v11 = vpop.f32.mrb[50].mxu0  ;;  %v8811_v14 = vmul.f32 %v1647_v16, %v14655_v29 }
 0x168   : > { %v14684_v33 = vpack.c.bf16 %v1647_v16, %v1642_v8  ;;  %v14687_v15 = vadd.f32 %v14667_v25, %v11466_v11  ;;  %v11690_v21 = vpop.f32.mrb[50].mxu1  ;;  %v940_v12 = vpop.f32.mrb[51].mxu0  ;;  %11908 = vmatmul.mubr.msk.f32.vlgmr.msra.gmra.mrb[142].mxu0 %vm2040_vm0, %v14415_v62  ;;  %v8810_v23 = vmul.f32 %v1642_v8, %v14670_v6 }
 0x169   : > { %v1657_v3 = vadd.f32 %v14679_v18, %v11690_v21  ;;  %v14694_v38 = vadd.f32 %v14667_v25, %v940_v12  ;;  %v1651_v30 = vpop.f32.mrb[51].mxu1  ;;  %v9037_v34 = vsel %vm2040_vm0, %v8811_v14, 0.0  ;;  %12418 = vmatpush3.bf16.xpose.msk.msra.mxu0 %vm14144_vm1, %v14482_v44  ;;  %11915 = vmatmul.mubr.msk.f32.vlgmr.msra.gmra.mrb[142].mxu1 %vm2040_vm0, %v14437_v2 }
 0x16a   : > { %v1652_v35 = vadd.f32 %v14679_v18, %v1651_v30  ;;  %9038 = vadd.xlane.f32.xlu1 %v9037_v34  ;;  %v9034_v62 = vsel %vm2040_vm0, %v8810_v23, 0.0  ;;  %12424 = vmatpush3.bf16.xpose.msk.msra.mxu1 %vm14144_vm1, %v14508_v4 }
 0x16b   : > { %9035 = vadd.xlane.f32.xlu0 %v9034_v62  ;;  %v11469_v36 = vpop.f32.mrb[52].mxu0  ;;  %v8813_v41 = vmul.f32 %v1657_v3, %v14687_v15  ;;  %11921 = vmatprep.mubr.msk.f32.mxu0 %vm2040_vm0, %v14473_v1 }
 0x16c   : > { %v14710_v44 = vpack.c.bf16 %v1657_v3, %v1652_v35  ;;  %v14713_v2 = vadd.f32 %v14667_v25, %v11469_v36  ;;  %v11693_v37 = vpop.f32.mrb[52].mxu1  ;;  %v950_v47 = vpop.f32.mrb[53].mxu0  ;;  %v8812_v28 = vmul.f32 %v1652_v35, %v14694_v38  ;;  %12427 = vmatprep.subr.msk.bf16.mxu0 %vm14144_vm1, %v14530_v19  ;;  %11928 = vmatprep.mubr.msk.f32.mxu1 %vm2040_vm0, %v14492_v57 }
 0x16d   : > { %v1667_v4 = vadd.f32 %v14679_v18, %v11693_v37  ;;  %v14723_v1 = vadd.f32 %v14667_v25, %v950_v47  ;;  %v1661_v50 = vpop.f32.mrb[53].mxu1  ;;  %v9043_v52 = vsel %vm2040_vm0, %v8813_v41, 0.0  ;;  %12433 = vmatprep.subr.msk.bf16.mxu1 %vm14144_vm1, %v14556_v53 }
 0x16e   : > { %v1662_v55 = vadd.f32 %v14679_v18, %v1661_v50  ;;  %9044 = vadd.xlane.f32.xlu1 %v9043_v52  ;;  %v9040_v56 = vsel %vm2040_vm0, %v8812_v28, 0.0 }
 0x16f   : > { %9041 = vadd.xlane.f32.xlu0 %v9040_v56  ;;  %v11472_v17 = vpop.f32.mrb[54].mxu0  ;;  %v8815_v57 = vmul.f32 %v1667_v4, %v14713_v2 }
 0x170   : > { %v14732_v61 = vpack.c.bf16 %v1667_v4, %v1662_v55  ;;  %v14735_v59 = vadd.f32 %v14667_v25, %v11472_v17  ;;  %v11696_v60 = vpop.f32.mrb[54].mxu1  ;;  %v960_v32 = vpop.f32.mrb[55].mxu0  ;;  %11922 = vmatmul.mubr.msk.f32.vlgmr.msra.gmra.mrb[144].mxu0 %vm2040_vm0, %v14463_v39  ;;  %v8814_v0 = vmul.f32 %v1662_v55, %v14723_v1 }
 0x171   : > { %v1677_v45 = vadd.f32 %v14679_v18, %v11696_v60  ;;  %v14742_v16 = vadd.f32 %v14667_v25, %v960_v32  ;;  %v1671_v7 = vpop.f32.mrb[55].mxu1  ;;  %v9049_v9 = vsel %vm2040_vm0, %v8815_v57, 0.0  ;;  %12430 = vmatpush3.bf16.xpose.msk.msra.mxu0 %vm14144_vm1, %v14530_v19  ;;  %11929 = vmatmul.mubr.msk.f32.vlgmr.msra.gmra.mrb[144].mxu1 %vm2040_vm0, %v14485_v48 }
 0x172   : > { %v1672_v8 = vadd.f32 %v14679_v18, %v1671_v7  ;;  %9050 = vadd.xlane.f32.xlu1 %v9049_v9  ;;  %v9046_v39 = vsel %vm2040_vm0, %v8814_v0, 0.0  ;;  %12436 = vmatpush3.bf16.xpose.msk.msra.mxu1 %vm14144_vm1, %v14556_v53 }
 0x173   : > { %9047 = vadd.xlane.f32.xlu0 %v9046_v39  ;;  %v11475_v10 = vpop.f32.mrb[56].mxu0  ;;  %v8817_v11 = vmul.f32 %v1677_v45, %v14735_v59  ;;  %11935 = vmatprep.mubr.msk.f32.mxu0 %vm2040_vm0, %v14521_v51 }
 0x174   : > { %v14758_v19 = vpack.c.bf16 %v1677_v45, %v1672_v8  ;;  %v14761_v48 = vadd.f32 %v14667_v25, %v11475_v10  ;;  %v11699_v14 = vpop.f32.mrb[56].mxu1  ;;  %v970_v21 = vpop.f32.mrb[57].mxu0  ;;  %v8816_v12 = vmul.f32 %v1672_v8, %v14742_v16  ;;  %12439 = vmatprep.subr.msk.bf16.mxu0 %vm14144_vm1, %v14578_v58  ;;  %11942 = vmatprep.mubr.msk.f32.mxu1 %vm2040_vm0, %v14540_v42 }
 0x175   : > { %v1687_v53 = vadd.f32 %v14679_v18, %v11699_v14  ;;  %v14771_v51 = vadd.f32 %v14667_v25, %v970_v21  ;;  %v1681_v23 = vpop.f32.mrb[57].mxu1  ;;  %v9055_v3 = vsel %vm2040_vm0, %v8817_v11, 0.0  ;;  %12445 = vmatprep.subr.msk.bf16.mxu1 %vm14144_vm1, %v14604_v26 }
 0x176   : > { %v1682_v30 = vadd.f32 %v14679_v18, %v1681_v23  ;;  %9056 = vadd.xlane.f32.xlu1 %v9055_v3  ;;  %v9052_v34 = vsel %vm2040_vm0, %v8816_v12, 0.0 }
 0x177   : > { %9053 = vadd.xlane.f32.xlu0 %v9052_v34  ;;  %v11478_v35 = vpop.f32.mrb[58].mxu0  ;;  %v8819_v42 = vmul.f32 %v1687_v53, %v14761_v48 }
 0x178   : > { %v14780_v62 = vpack.c.bf16 %v1687_v53, %v1682_v30  ;;  %v14783_v36 = vadd.f32 %v14667_v25, %v11478_v35  ;;  %v11702_v41 = vpop.f32.mrb[58].mxu1  ;;  %v980_v37 = vpop.f32.mrb[59].mxu0  ;;  %11936 = vmatmul.mubr.msk.f32.vlgmr.msra.gmra.mrb[146].mxu0 %vm2040_vm0, %v14511_v20  ;;  %v8818_v47 = vmul.f32 %v1682_v30, %v14771_v51 }
 0x179   : > { %v1697_v28 = vadd.f32 %v14679_v18, %v11702_v41  ;;  %v14790_v4 = vadd.f32 %v14667_v25, %v980_v37  ;;  %v1691_v50 = vpop.f32.mrb[59].mxu1  ;;  %v9061_v52 = vsel %vm2040_vm0, %v8819_v42, 0.0  ;;  %12442 = vmatpush3.bf16.xpose.msk.msra.mxu0 %vm14144_vm1, %v14578_v58  ;;  %11943 = vmatmul.mubr.msk.f32.vlgmr.msra.gmra.mrb[146].mxu1 %vm2040_vm0, %v14533_v22 }
 0x17a   : > { %v1692_v55 = vadd.f32 %v14679_v18, %v1691_v50  ;;  %9062 = vadd.xlane.f32.xlu1 %v9061_v52  ;;  %v9058_v20 = vsel %vm2040_vm0, %v8818_v47, 0.0  ;;  %12448 = vmatpush3.bf16.xpose.msk.msra.mxu1 %vm14144_vm1, %v14604_v26 }
 0x17b   : > { %9059 = vadd.xlane.f32.xlu0 %v9058_v20  ;;  %v11481_v56 = vpop.f32.mrb[60].mxu0  ;;  %v8821_v17 = vmul.f32 %v1697_v28, %v14783_v36  ;;  %11949 = vmatprep.mubr.msk.f32.mxu0 %vm2040_vm0, %v14569_v40 }
 0x17c   : > { %v14806_v58 = vpack.c.bf16 %v1697_v28, %v1692_v55  ;;  %v14809_v22 = vadd.f32 %v14667_v25, %v11481_v56  ;;  %v11705_v57 = vpop.f32.mrb[60].mxu1  ;;  %v990_v60 = vpop.f32.mrb[61].mxu0  ;;  %v8820_v32 = vmul.f32 %v1692_v55, %v14790_v4  ;;  %12451 = vmatprep.subr.msk.bf16.mxu0 %vm14144_vm1, %v14626_v43  ;;  %11956 = vmatprep.mubr.msk.f32.mxu1 %vm2040_vm0, %v14588_v31 }
 0x17d   : > { %v1707_v26 = vadd.f32 %v14679_v18, %v11705_v57  ;;  %v14819_v40 = vadd.f32 %v14667_v25, %v990_v60  ;;  %v1701_v0 = vpop.f32.mrb[61].mxu1  ;;  %v9067_v45 = vsel %vm2040_vm0, %v8821_v17, 0.0  ;;  %12457 = vmatprep.subr.msk.bf16.mxu1 %vm14144_vm1, %v14652_v13 }
 0x17e   : > { %v1702_v7 = vadd.f32 %v14679_v18, %v1701_v0  ;;  %9068 = vadd.xlane.f32.xlu1 %v9067_v45  ;;  %v9064_v9 = vsel %vm2040_vm0, %v8820_v32, 0.0 }
 0x17f   : > { %9065 = vadd.xlane.f32.xlu0 %v9064_v9  ;;  %v11484_v8 = vpop.f32.mrb[62].mxu0  ;;  %v8823_v31 = vmul.f32 %v1707_v26, %v14809_v22 }
 0x180   : > { %v14828_v39 = vpack.c.bf16 %v1707_v26, %v1702_v7  ;;  %v14831_v10 = vadd.f32 %v14667_v25, %v11484_v8  ;;  %v11708_v11 = vpop.f32.mrb[62].mxu1  ;;  %v1000_v14 = vpop.f32.mrb[63].mxu0  ;;  %11950 = vmatmul.mubr.msk.f32.vlgmr.msra.gmra.mrb[148].mxu0 %vm2040_vm0, %v14559_v5  ;;  %v8822_v21 = vmul.f32 %v1702_v7, %v14819_v40 }
 0x181   : > { %v1717_v12 = vadd.f32 %v14679_v18, %v11708_v11  ;;  %v14838_v53 = vadd.f32 %v14667_v25, %v1000_v14  ;;  %v1711_v23 = vpop.f32.mrb[63].mxu1  ;;  %v9073_v3 = vsel %vm2040_vm0, %v8823_v31, 0.0  ;;  %12454 = vmatpush3.bf16.xpose.msk.msra.mxu0 %vm14144_vm1, %v14626_v43  ;;  %11957 = vmatmul.mubr.msk.f32.vlgmr.msra.gmra.mrb[148].mxu1 %vm2040_vm0, %v14581_v63 }
 0x182   : > { %v1712_v30 = vadd.f32 %v14679_v18, %v1711_v23  ;;  %9074 = vadd.xlane.f32.xlu1 %v9073_v3  ;;  %v9070_v5 = vsel %vm2040_vm0, %v8822_v21, 0.0  ;;  %12460 = vmatpush3.bf16.xpose.msk.msra.mxu1 %vm14144_vm1, %v14652_v13 }
 0x183   : > { %9071 = vadd.xlane.f32.xlu0 %v9070_v5  ;;  %v11487_v34 = vpop.f32.mrb[64].mxu0  ;;  %v8825_v35 = vmul.f32 %v1717_v12, %v14831_v10  ;;  %11963 = vmatprep.mubr.msk.f32.mxu0 %vm2040_vm0, %v14617_v49 }
 0x184   : > { %v14854_v43 = vpack.c.bf16 %v1717_v12, %v1712_v30  ;;  %v14857_v63 = vadd.f32 %v14667_v25, %v11487_v34  ;;  %v11711_v42 = vpop.f32.mrb[64].mxu1  ;;  %v1010_v41 = vpop.f32.mrb[65].mxu0  ;;  %v8824_v37 = vmul.f32 %v1712_v30, %v14838_v53  ;;  %12463 = vmatprep.subr.msk.bf16.mxu0 %vm14144_vm1, %v14684_v33  ;;  %11970 = vmatprep.mubr.msk.f32.mxu1 %vm2040_vm0, %v14636_v27 }
 0x185   : > { %v1727_v13 = vadd.f32 %v14679_v18, %v11711_v42  ;;  %v14867_v49 = vadd.f32 %v14667_v25, %v1010_v41  ;;  %v1721_v47 = vpop.f32.mrb[65].mxu1  ;;  %v9079_v28 = vsel %vm2040_vm0, %v8825_v35, 0.0  ;;  %12469 = vmatprep.subr.msk.bf16.mxu1 %vm14144_vm1, %v14710_v44 }
 0x186   : > { %v1722_v50 = vadd.f32 %v14679_v18, %v1721_v47  ;;  %9080 = vadd.xlane.f32.xlu1 %v9079_v28  ;;  %v9076_v52 = vsel %vm2040_vm0, %v8824_v37, 0.0 }
 0x187   : > { %9077 = vadd.xlane.f32.xlu0 %v9076_v52  ;;  %v11490_v55 = vpop.f32.mrb[66].mxu0  ;;  %v8827_v27 = vmul.f32 %v1727_v13, %v14857_v63 }
 0x188   : > { %v14876_v20 = vpack.c.bf16 %v1727_v13, %v1722_v50  ;;  %v14879_v56 = vadd.f32 %v14667_v25, %v11490_v55  ;;  %v11714_v17 = vpop.f32.mrb[66].mxu1  ;;  %v1020_v57 = vpop.f32.mrb[67].mxu0  ;;  %11964 = vmatmul.mubr.msk.f32.vlgmr.msra.gmra.mrb[150].mxu0 %vm2040_vm0, %v14607_v54  ;;  %v8826_v60 = vmul.f32 %v1722_v50, %v14867_v49 }
 0x189   : > { %v1737_v32 = vadd.f32 %v14679_v18, %v11714_v17  ;;  %v14886_v26 = vadd.f32 %v14667_v25, %v1020_v57  ;;  %v1731_v0 = vpop.f32.mrb[67].mxu1  ;;  %v9085_v45 = vsel %vm2040_vm0, %v8827_v27, 0.0  ;;  %12466 = vmatpush3.bf16.xpose.msk.msra.mxu0 %vm14144_vm1, %v14684_v33  ;;  %11971 = vmatmul.mubr.msk.f32.vlgmr.msra.gmra.mrb[150].mxu1 %vm2040_vm0, %v14629_v46 }
 0x18a   : > { %v1732_v7 = vadd.f32 %v14679_v18, %v1731_v0  ;;  %9086 = vadd.xlane.f32.xlu1 %v9085_v45  ;;  %v9082_v54 = vsel %vm2040_vm0, %v8826_v60, 0.0  ;;  %12472 = vmatpush3.bf16.xpose.msk.msra.mxu1 %vm14144_vm1, %v14710_v44 }
 0x18b   : > { %9083 = vadd.xlane.f32.xlu0 %v9082_v54  ;;  %v11493_v9 = vpop.f32.mrb[68].mxu0  ;;  %v8829_v8 = vmul.f32 %v1737_v32, %v14879_v56  ;;  %11977 = vmatprep.mubr.msk.f32.mxu0 %vm2040_vm0, %v14670_v6 }
 0x18c   : > { %v14902_v33 = vpack.c.bf16 %v1737_v32, %v1732_v7  ;;  %v14905_v46 = vadd.f32 %v14667_v25, %v11493_v9  ;;  %v11717_v31 = vpop.f32.mrb[68].mxu1  ;;  %v1030_v11 = vpop.f32.mrb[69].mxu0  ;;  %v8828_v14 = vmul.f32 %v1732_v7, %v14886_v26  ;;  %12475 = vmatprep.subr.msk.bf16.mxu0 %vm14144_vm1, %v14732_v61  ;;  %11984 = vmatprep.mubr.msk.f32.mxu1 %vm2040_vm0, %v14694_v38 }
 0x18d   : > { %v1747_v44 = vadd.f32 %v14679_v18, %v11717_v31  ;;  %v14915_v6 = vadd.f32 %v14667_v25, %v1030_v11  ;;  %v1741_v21 = vpop.f32.mrb[69].mxu1  ;;  %v9091_v12 = vsel %vm2040_vm0, %v8829_v8, 0.0  ;;  %12481 = vmatprep.subr.msk.bf16.mxu1 %vm14144_vm1, %v14758_v19 }
 0x18e   : > { %v1742_v23 = vadd.f32 %v14679_v18, %v1741_v21  ;;  %9092 = vadd.xlane.f32.xlu1 %v9091_v12  ;;  %v9088_v3 = vsel %vm2040_vm0, %v8828_v14, 0.0 }
 0x18f   : > { %9089 = vadd.xlane.f32.xlu0 %v9088_v3  ;;  %v11496_v30 = vpop.f32.mrb[70].mxu0  ;;  %v8831_v38 = vmul.f32 %v1747_v44, %v14905_v46 }
 0x190   : > { %v14924_v5 = vpack.c.bf16 %v1747_v44, %v1742_v23  ;;  %v14927_v34 = vadd.f32 %v14667_v25, %v11496_v30  ;;  %v11720_v35 = vpop.f32.mrb[70].mxu1  ;;  %v1040_v42 = vpop.f32.mrb[71].mxu0  ;;  %11978 = vmatmul.mubr.msk.f32.vlgmr.msra.gmra.mrb[152].mxu0 %vm2040_vm0, %v14655_v29  ;;  %v8830_v41 = vmul.f32 %v1742_v23, %v14915_v6 }
 0x191   : > { %v1757_v37 = vadd.f32 %v14679_v18, %v11720_v35  ;;  %v14934_v13 = vadd.f32 %v14667_v25, %v1040_v42  ;;  %v1751_v47 = vpop.f32.mrb[71].mxu1  ;;  %v9097_v28 = vsel %vm2040_vm0, %v8831_v38, 0.0  ;;  %12478 = vmatpush3.bf16.xpose.msk.msra.mxu0 %vm14144_vm1, %v14732_v61  ;;  %11985 = vmatmul.mubr.msk.f32.vlgmr.msra.gmra.mrb[152].mxu1 %vm2040_vm0, %v14687_v15 }
 0x192   : > { %v1752_v50 = vadd.f32 %v14679_v18, %v1751_v47  ;;  %9098 = vadd.xlane.f32.xlu1 %v9097_v28  ;;  %v9094_v29 = vsel %vm2040_vm0, %v8830_v41, 0.0  ;;  %12484 = vmatpush3.bf16.xpose.msk.msra.mxu1 %vm14144_vm1, %v14758_v19 }
 0x193   : > { %9095 = vadd.xlane.f32.xlu0 %v9094_v29  ;;  %v11499_v52 = vpop.f32.mrb[72].mxu0  ;;  %v8833_v55 = vmul.f32 %v1757_v37, %v14927_v34  ;;  %11991 = vmatprep.mubr.msk.f32.mxu0 %vm2040_vm0, %v14723_v1 }
 0x194   : > { %v14950_v61 = vpack.c.bf16 %v1757_v37, %v1752_v50  ;;  %v14953_v15 = vadd.f32 %v14667_v25, %v11499_v52  ;;  %v11723_v27 = vpop.f32.mrb[72].mxu1  ;;  %v1050_v17 = vpop.f32.mrb[73].mxu0  ;;  %v8832_v57 = vmul.f32 %v1752_v50, %v14934_v13  ;;  %12487 = vmatprep.subr.msk.bf16.mxu0 %vm14144_vm1, %v14780_v62  ;;  %11998 = vmatprep.mubr.msk.f32.mxu1 %vm2040_vm0, %v14742_v16 }
 0x195   : > { %v1767_v19 = vadd.f32 %v14679_v18, %v11723_v27  ;;  %v14963_v1 = vadd.f32 %v14667_v25, %v1050_v17  ;;  %v1761_v60 = vpop.f32.mrb[73].mxu1  ;;  %v9103_v32 = vsel %vm2040_vm0, %v8833_v55, 0.0  ;;  %12493 = vmatprep.subr.msk.bf16.mxu1 %vm14144_vm1, %v14806_v58 }
 0x196   : > { %v1762_v0 = vadd.f32 %v14679_v18, %v1761_v60  ;;  %9104 = vadd.xlane.f32.xlu1 %v9103_v32  ;;  %v9100_v45 = vsel %vm2040_vm0, %v8832_v57, 0.0 }
 0x197   : > { %v14971_v7 = vpop.xlane.xlu1 %8894  ;;  %9101 = vadd.xlane.f32.xlu0 %v9100_v45  ;;  %v11502_v16 = vpop.f32.mrb[74].mxu0  ;;  %v8835_v54 = vmul.f32 %v1767_v19, %v14953_v15 }
 0x198   : > { %18742 = vst [vmem:[#allocation2_spill] sm:$0xff] %v14971_v7  ;;  %v14974_v9 = vpack.c.bf16 %v1767_v19, %v1762_v0  ;;  %v14977_v8 = vadd.f32 %v14667_v25, %v11502_v16  ;;  %v11726_v31 = vpop.f32.mrb[74].mxu1  ;;  %v14979_v11 = vpop.xlane.xlu0 %8891  ;;  %11992 = vmatmul.mubr.msk.f32.vlgmr.msra.gmra.mrb[154].mxu0 %vm2040_vm0, %v14713_v2  ;;  %v8834_v14 = vmul.f32 %v1762_v0, %v14963_v1 }
 0x199   : > { %18743 = vst [vmem:[#allocation3_spill] sm:$0xff] %v14979_v11  ;;  %v1777_v44 = vadd.f32 %v14679_v18, %v11726_v31  ;;  %v1060_v21 = vpop.f32.mrb[75].mxu0  ;;  %v1771_v12 = vpop.f32.mrb[75].mxu1  ;;  %v9109_v23 = vsel %vm2040_vm0, %v8835_v54, 0.0  ;;  %12490 = vmatpush3.bf16.xpose.msk.msra.mxu0 %vm14144_vm1, %v14780_v62  ;;  %11999 = vmatmul.mubr.msk.f32.vlgmr.msra.gmra.mrb[154].mxu1 %vm2040_vm0, %v14735_v59 }
 0x19a   : > { %v14992_v3 = vadd.f32 %v14667_v25, %v1060_v21  ;;  %v1772_v2 = vadd.f32 %v14679_v18, %v1771_v12  ;;  %9110 = vadd.xlane.f32.xlu1 %v9109_v23  ;;  %v9106_v30 = vsel %vm2040_vm0, %v8834_v14, 0.0  ;;  %12496 = vmatpush3.bf16.xpose.msk.msra.mxu1 %vm14144_vm1, %v14806_v58 }
 0x19b   : > { %v14999_v38 = vpop.xlane.xlu1 %8900  ;;  %9107 = vadd.xlane.f32.xlu0 %v9106_v30  ;;  %v11505_v35 = vpop.f32.mrb[76].mxu0  ;;  %v8837_v62 = vmul.f32 %v1777_v44, %v14977_v8  ;;  %12005 = vmatprep.mubr.msk.f32.mxu0 %vm2040_vm0, %v14771_v51 }
 0x19c   : > { %18744 = vst [vmem:[#allocation4_spill] sm:$0xff] %v14999_v38  ;;  %v15004_v59 = vpack.c.bf16 %v1777_v44, %v1772_v2  ;;  %v15007_v42 = vadd.f32 %v14667_v25, %v11505_v35  ;;  %v11729_v41 = vpop.f32.mrb[76].mxu1  ;;  %v15009_v37 = vpop.xlane.xlu0 %8897  ;;  %v8836_v47 = vmul.f32 %v1772_v2, %v14992_v3  ;;  %12499 = vmatprep.subr.msk.bf16.mxu0 %vm14144_vm1, %v14828_v39 }
 0x19d   : > { %18745 = vst [vmem:[#allocation5_spill] sm:$0xff] %v15009_v37  ;;  %12012 = vmatprep.mubr.msk.f32.mxu1 %vm2040_vm0, %v14790_v4  ;;  %v1787_v58 = vadd.f32 %v14679_v18, %v11729_v41  ;;  %v1070_v51 = vpop.f32.mrb[77].mxu0  ;;  %v1781_v28 = vpop.f32.mrb[77].mxu1  ;;  %v9115_v50 = vsel %vm2040_vm0, %v8837_v62, 0.0  ;;  %12505 = vmatprep.subr.msk.bf16.mxu1 %vm14144_vm1, %v14854_v43 }
 0x19e   : > { %v15023_v29 = vadd.f32 %v14667_v25, %v1070_v51  ;;  %v1782_v52 = vadd.f32 %v14679_v18, %v1781_v28  ;;  %9116 = vadd.xlane.f32.xlu1 %v9115_v50  ;;  %v9112_v55 = vsel %vm2040_vm0, %v8836_v47, 0.0 }
 0x19f   : > { %v15027_v27 = vpop.xlane.xlu1 %8906  ;;  %9113 = vadd.xlane.f32.xlu0 %v9112_v55  ;;  %v11508_v4 = vpop.f32.mrb[78].mxu0  ;;  %v8839_v17 = vmul.f32 %v1787_v58, %v15007_v42 }
 0x1a0   : > { %18746 = vst [vmem:[#allocation6_spill] sm:$0xff] %v15027_v27  ;;  %v15030_v57 = vpack.c.bf16 %v1787_v58, %v1782_v52  ;;  %v15033_v19 = vadd.f32 %v14667_v25, %v11508_v4  ;;  %v11732_v60 = vpop.f32.mrb[78].mxu1  ;;  %v15035_v32 = vpop.xlane.xlu0 %8903  ;;  %12006 = vmatmul.mubr.msk.f32.vlgmr.msra.gmra.mrb[156].mxu0 %vm2040_vm0, %v14761_v48  ;;  %v8838_v0 = vmul.f32 %v1782_v52, %v15023_v29 }
 0x1a1   : > { %18747 = vst [vmem:[#allocation7_spill] sm:$0xff] %v15035_v32  ;;  %v1797_v45 = vadd.f32 %v14679_v18, %v11732_v60  ;;  %v1080_v16 = vpop.f32.mrb[79].mxu0  ;;  %v1791_v54 = vpop.f32.mrb[79].mxu1  ;;  %v9121_v31 = vsel %vm2040_vm0, %v8839_v17, 0.0  ;;  %12502 = vmatpush3.bf16.xpose.msk.msra.mxu0 %vm14144_vm1, %v14828_v39  ;;  %12013 = vmatmul.mubr.msk.f32.vlgmr.msra.gmra.mrb[156].mxu1 %vm2040_vm0, %v14783_v36 }
 0x1a2   : > { %v15048_v14 = vadd.f32 %v14667_v25, %v1080_v16  ;;  %v1792_v48 = vadd.f32 %v14679_v18, %v1791_v54  ;;  %9122 = vadd.xlane.f32.xlu1 %v9121_v31  ;;  %v9118_v44 = vsel %vm2040_vm0, %v8838_v0, 0.0  ;;  %12508 = vmatpush3.bf16.xpose.msk.msra.mxu1 %vm14144_vm1, %v14854_v43 }
 0x1a3   : > { %v15055_v21 = vpop.xlane.xlu1 %8912  ;;  %9119 = vadd.xlane.f32.xlu0 %v9118_v44  ;;  %v11511_v12 = vpop.f32.mrb[80].mxu0  ;;  %v8841_v39 = vmul.f32 %v1797_v45, %v15033_v19  ;;  %12019 = vmatprep.mubr.msk.f32.mxu0 %vm2040_vm0, %v14819_v40 }
 0x1a4   : > { %18748 = vst [vmem:[#allocation8_spill] sm:$0xff] %v15055_v21  ;;  %v15060_v36 = vpack.c.bf16 %v1797_v45, %v1792_v48  ;;  %v15063_v23 = vadd.f32 %v14667_v25, %v11511_v12  ;;  %v11735_v2 = vpop.f32.mrb[80].mxu1  ;;  %v15065_v30 = vpop.xlane.xlu0 %8909  ;;  %v8840_v35 = vmul.f32 %v1792_v48, %v15048_v14  ;;  %12511 = vmatprep.subr.msk.bf16.mxu0 %vm14144_vm1, %v14876_v20 }
 0x1a5   : > { %18749 = vst [vmem:[#allocation9_spill] sm:$0xff] %v15065_v30  ;;  %12026 = vmatprep.mubr.msk.f32.mxu1 %vm2040_vm0, %v14838_v53  ;;  %v1807_v43 = vadd.f32 %v14679_v18, %v11735_v2  ;;  %v1090_v40 = vpop.f32.mrb[81].mxu0  ;;  %v1801_v62 = vpop.f32.mrb[81].mxu1  ;;  %v9127_v41 = vsel %vm2040_vm0, %v8841_v39, 0.0  ;;  %12517 = vmatprep.subr.msk.bf16.mxu1 %vm14144_vm1, %v14902_v33 }
 0x1a6   : > { %v15079_v47 = vadd.f32 %v14667_v25, %v1090_v40  ;;  %v1802_v58 = vadd.f32 %v14679_v18, %v1801_v62  ;;  %9128 = vadd.xlane.f32.xlu1 %v9127_v41  ;;  %v9124_v51 = vsel %vm2040_vm0, %v8840_v35, 0.0 }
 0x1a7   : > { %v15083_v28 = vpop.xlane.xlu1 %8918  ;;  %9125 = vadd.xlane.f32.xlu0 %v9124_v51  ;;  %v11514_v53 = vpop.f32.mrb[82].mxu0  ;;  %v8843_v50 = vmul.f32 %v1807_v43, %v15063_v23 }
 0x1a8   : > { %18750 = vst [vmem:[#allocation10_spill] sm:$0xff] %v15083_v28  ;;  %v15086_v52 = vpack.c.bf16 %v1807_v43, %v1802_v58  ;;  %v15089_v55 = vadd.f32 %v14667_v25, %v11514_v53  ;;  %v11738_v4 = vpop.f32.mrb[82].mxu1  ;;  %v15091_v17 = vpop.xlane.xlu0 %8915  ;;  %12020 = vmatmul.mubr.msk.f32.vlgmr.msra.gmra.mrb[158].mxu0 %vm2040_vm0, %v14809_v22  ;;  %v8842_v60 = vmul.f32 %v1802_v58, %v15079_v47 }
 0x1a9   : > { %18751 = vst [vmem:[#allocation11_spill] sm:$0xff] %v15091_v17  ;;  %v1817_v0 = vadd.f32 %v14679_v18, %v11738_v4  ;;  %v1100_v45 = vpop.f32.mrb[83].mxu0  ;;  %v1811_v16 = vpop.f32.mrb[83].mxu1  ;;  %v9133_v54 = vsel %vm2040_vm0, %v8843_v50, 0.0  ;;  %12514 = vmatpush3.bf16.xpose.msk.msra.mxu0 %vm14144_vm1, %v14876_v20  ;;  %12027 = vmatmul.mubr.msk.f32.vlgmr.msra.gmra.mrb[158].mxu1 %vm2040_vm0, %v14831_v10 }
 0x1aa   : > { %v15104_v31 = vadd.f32 %v14667_v25, %v1100_v45  ;;  %v1812_v22 = vadd.f32 %v14679_v18, %v1811_v16  ;;  %9134 = vadd.xlane.f32.xlu1 %v9133_v54  ;;  %v9130_v48 = vsel %vm2040_vm0, %v8842_v60, 0.0  ;;  %12520 = vmatpush3.bf16.xpose.msk.msra.mxu1 %vm14144_vm1, %v14902_v33 }
 0x1ab   : > { %v15111_v44 = vpop.xlane.xlu1 %8924  ;;  %9131 = vadd.xlane.f32.xlu0 %v9130_v48  ;;  %v11517_v12 = vpop.f32.mrb[84].mxu0  ;;  %v8845_v20 = vmul.f32 %v1817_v0, %v15089_v55  ;;  %12033 = vmatprep.mubr.msk.f32.mxu0 %vm2040_vm0, %v14867_v49 }
 0x1ac   : > { %18752 = vst [vmem:[#allocation12_spill] sm:$0xff] %v15111_v44  ;;  %v15116_v10 = vpack.c.bf16 %v1817_v0, %v1812_v22  ;;  %v15119_v39 = vadd.f32 %v14667_v25, %v11517_v12  ;;  %v11741_v2 = vpop.f32.mrb[84].mxu1  ;;  %v15121_v35 = vpop.xlane.xlu0 %8921  ;;  %v8844_v43 = vmul.f32 %v1812_v22, %v15104_v31  ;;  %12523 = vmatprep.subr.msk.bf16.mxu0 %vm14144_vm1, %v14924_v5 }
 0x1ad   : > { %18753 = vst [vmem:[#allocation13_spill] sm:$0xff] %v15121_v35  ;;  %12040 = vmatprep.mubr.msk.f32.mxu1 %vm2040_vm0, %v14886_v26  ;;  %v1827_v33 = vadd.f32 %v14679_v18, %v11741_v2  ;;  %v1110_v49 = vpop.f32.mrb[85].mxu0  ;;  %v1821_v40 = vpop.f32.mrb[85].mxu1  ;;  %v9139_v62 = vsel %vm2040_vm0, %v8845_v20, 0.0  ;;  %12529 = vmatprep.subr.msk.bf16.mxu1 %vm14144_vm1, %v14950_v61 }
 0x1ae   : > { %v15135_v41 = vadd.f32 %v14667_v25, %v1110_v49  ;;  %v1822_v58 = vadd.f32 %v14679_v18, %v1821_v40  ;;  %9140 = vadd.xlane.f32.xlu1 %v9139_v62  ;;  %v9136_v51 = vsel %vm2040_vm0, %v8844_v43, 0.0 }
 0x1af   : > { %v15139_v53 = vpop.xlane.xlu1 %8930  ;;  %9137 = vadd.xlane.f32.xlu0 %v9136_v51  ;;  %v11520_v26 = vpop.f32.mrb[86].mxu0  ;;  %v8847_v50 = vmul.f32 %v1827_v33, %v15119_v39 }
 0x1b0   : > { %18754 = vst [vmem:[#allocation14_spill] sm:$0xff] %v15139_v53  ;;  %v15142_v4 = vpack.c.bf16 %v1827_v33, %v1822_v58  ;;  %v15145_v60 = vadd.f32 %v14667_v25, %v11520_v26  ;;  %v11744_v0 = vpop.f32.mrb[86].mxu1  ;;  %v15147_v45 = vpop.xlane.xlu0 %8927  ;;  %12034 = vmatmul.mubr.msk.f32.vlgmr.msra.gmra.mrb[160].mxu0 %vm2040_vm0, %v14857_v63  ;;  %v8846_v16 = vmul.f32 %v1822_v58, %v15135_v41 }
 0x1b1   : > { %18755 = vst [vmem:[#allocation15_spill] sm:$0xff] %v15147_v45  ;;  %v1837_v54 = vadd.f32 %v14679_v18, %v11744_v0  ;;  %v1120_v22 = vpop.f32.mrb[87].mxu0  ;;  %v1831_v48 = vpop.f32.mrb[87].mxu1  ;;  %v9145_v12 = vsel %vm2040_vm0, %v8847_v50, 0.0  ;;  %12526 = vmatpush3.bf16.xpose.msk.msra.mxu0 %vm14144_vm1, %v14924_v5  ;;  %12041 = vmatmul.mubr.msk.f32.vlgmr.msra.gmra.mrb[160].mxu1 %vm2040_vm0, %v14879_v56 }
 0x1b2   : > { %v15160_v20 = vadd.f32 %v14667_v25, %v1120_v22  ;;  %v1832_v63 = vadd.f32 %v14679_v18, %v1831_v48  ;;  %9146 = vadd.xlane.f32.xlu1 %v9145_v12  ;;  %v9142_v2 = vsel %vm2040_vm0, %v8846_v16, 0.0  ;;  %12532 = vmatpush3.bf16.xpose.msk.msra.mxu1 %vm14144_vm1, %v14950_v61 }
 0x1b3   : > { %v15167_v43 = vpop.xlane.xlu1 %8936  ;;  %9143 = vadd.xlane.f32.xlu0 %v9142_v2  ;;  %v11523_v33 = vpop.f32.mrb[88].mxu0  ;;  %v8849_v5 = vmul.f32 %v1837_v54, %v15145_v60  ;;  %12047 = vmatprep.mubr.msk.f32.mxu0 %vm2040_vm0, %v14915_v6 }
 0x1b4   : > { %18756 = vst [vmem:[#allocation16_spill] sm:$0xff] %v15167_v43  ;;  %v15172_v56 = vpack.c.bf16 %v1837_v54, %v1832_v63  ;;  %v15175_v49 = vadd.f32 %v14667_v25, %v11523_v33  ;;  %v11747_v40 = vpop.f32.mrb[88].mxu1  ;;  %v15177_v62 = vpop.xlane.xlu0 %8933  ;;  %v8848_v58 = vmul.f32 %v1832_v63, %v15160_v20  ;;  %12535 = vmatprep.subr.msk.bf16.mxu0 %vm14144_vm1, %v14974_v9 }
 0x1b5   : > { %18757 = vst [vmem:[#allocation17_spill] sm:$0xff] %v15177_v62  ;;  %12054 = vmatprep.mubr.msk.f32.mxu1 %vm2040_vm0, %v14934_v13  ;;  %v1847_v61 = vadd.f32 %v14679_v18, %v11747_v40  ;;  %v1130_v6 = vpop.f32.mrb[89].mxu0  ;;  %v1841_v51 = vpop.f32.mrb[89].mxu1  ;;  %v9151_v26 = vsel %vm2040_vm0, %v8849_v5, 0.0  ;;  %12541 = vmatprep.subr.msk.bf16.mxu1 %vm14144_vm1, %v15004_v59 }
 0x1b6   : > { %v15191_v50 = vadd.f32 %v14667_v25, %v1130_v6  ;;  %v1842_v0 = vadd.f32 %v14679_v18, %v1841_v51  ;;  %9152 = vadd.xlane.f32.xlu1 %v9151_v26  ;;  %v9148_v16 = vsel %vm2040_vm0, %v8848_v58, 0.0 }
 0x1b7   : > { %v15195_v54 = vpop.xlane.xlu1 %8942  ;;  %9149 = vadd.xlane.f32.xlu0 %v9148_v16  ;;  %v11526_v13 = vpop.f32.mrb[90].mxu0  ;;  %v8851_v22 = vmul.f32 %v1847_v61, %v15175_v49 }
 0x1b8   : > { %18758 = vst [vmem:[#allocation18_spill] sm:$0xff] %v15195_v54  ;;  %v15198_v48 = vpack.c.bf16 %v1847_v61, %v1842_v0  ;;  %v15201_v12 = vadd.f32 %v14667_v25, %v11526_v13  ;;  %v11750_v63 = vpop.f32.mrb[90].mxu1  ;;  %v15203_v2 = vpop.xlane.xlu0 %8939  ;;  %12048 = vmatmul.mubr.msk.f32.vlgmr.msra.gmra.mrb[162].mxu0 %vm2040_vm0, %v14905_v46  ;;  %v8850_v33 = vmul.f32 %v1842_v0, %v15191_v50 }
 0x1b9   : > { %18759 = vst [vmem:[#allocation19_spill] sm:$0xff] %v15203_v2  ;;  %v1857_v5 = vadd.f32 %v14679_v18, %v11750_v63  ;;  %v1140_v40 = vpop.f32.mrb[91].mxu0  ;;  %v1851_v58 = vpop.f32.mrb[91].mxu1  ;;  %v9157_v6 = vsel %vm2040_vm0, %v8851_v22, 0.0  ;;  %12538 = vmatpush3.bf16.xpose.msk.msra.mxu0 %vm14144_vm1, %v14974_v9  ;;  %12055 = vmatmul.mubr.msk.f32.vlgmr.msra.gmra.mrb[162].mxu1 %vm2040_vm0, %v14927_v34 }
 0x1ba   : > { %v15216_v61 = vadd.f32 %v14667_v25, %v1140_v40  ;;  %v1852_v46 = vadd.f32 %v14679_v18, %v1851_v58  ;;  %9158 = vadd.xlane.f32.xlu1 %v9157_v6  ;;  %v9154_v51 = vsel %vm2040_vm0, %v8850_v33, 0.0  ;;  %12544 = vmatpush3.bf16.xpose.msk.msra.mxu1 %vm14144_vm1, %v15004_v59 }
 0x1bb   : > { %v15223_v26 = vpop.xlane.xlu1 %8948  ;;  %9155 = vadd.xlane.f32.xlu0 %v9154_v51  ;;  %v11529_v0 = vpop.f32.mrb[92].mxu0  ;;  %v8853_v9 = vmul.f32 %v1857_v5, %v15201_v12  ;;  %12061 = vmatprep.mubr.msk.f32.mxu0 %vm2040_vm0, %v14963_v1 }
 0x1bc   : > { %18760 = vst [vmem:[#allocation20_spill] sm:$0xff] %v15223_v26  ;;  %v15228_v34 = vpack.c.bf16 %v1857_v5, %v1852_v46  ;;  %v15231_v16 = vadd.f32 %v14667_v25, %v11529_v0  ;;  %v11753_v13 = vpop.f32.mrb[92].mxu1  ;;  %v15233_v22 = vpop.xlane.xlu0 %8945  ;;  %v8852_v63 = vmul.f32 %v1852_v46, %v15216_v61  ;;  %12547 = vmatprep.subr.msk.bf16.mxu0 %vm14144_vm1, %v15030_v57 }
 0x1bd   : > { %18761 = vst [vmem:[#allocation21_spill] sm:$0xff] %v15233_v22  ;;  %12068 = vmatprep.mubr.msk.f32.mxu1 %vm2040_vm0, %v14992_v3  ;;  %v1867_v59 = vadd.f32 %v14679_v18, %v11753_v13  ;;  %v1150_v1 = vpop.f32.mrb[93].mxu0  ;;  %v1861_v33 = vpop.f32.mrb[93].mxu1  ;;  %v9163_v5 = vsel %vm2040_vm0, %v8853_v9, 0.0  ;;  %12553 = vmatprep.subr.msk.bf16.mxu1 %vm14144_vm1, %v15060_v36 }
 0x1be   : > { %v15247_v40 = vadd.f32 %v14667_v25, %v1150_v1  ;;  %v1862_v58 = vadd.f32 %v14679_v18, %v1861_v33  ;;  %9164 = vadd.xlane.f32.xlu1 %v9163_v5  ;;  %v9160_v6 = vsel %vm2040_vm0, %v8852_v63, 0.0 }
 0x1bf   : > { %v15251_v46 = vpop.xlane.xlu1 %8954  ;;  %9161 = vadd.xlane.f32.xlu0 %v9160_v6  ;;  %v11532_v3 = vpop.f32.mrb[94].mxu0  ;;  %v8855_v51 = vmul.f32 %v1867_v59, %v15231_v16 }
 0x1c0   : > { %18762 = vst [vmem:[#allocation22_spill] sm:$0xff] %v15251_v46  ;;  %v15254_v0 = vpack.c.bf16 %v1867_v59, %v1862_v58  ;;  %v15257_v9 = vadd.f32 %v14667_v25, %v11532_v3  ;;  %v11756_v13 = vpop.f32.mrb[94].mxu1  ;;  %v15259_v22 = vpop.xlane.xlu0 %8951  ;;  %12062 = vmatmul.mubr.msk.f32.vlgmr.msra.gmra.mrb[164].mxu0 %vm2040_vm0, %v14953_v15  ;;  %v8854_v1 = vmul.f32 %v1862_v58, %v15247_v40 }
 0x1c1   : > { %18763 = vst [vmem:[#allocation23_spill] sm:$0xff] %v15259_v22  ;;  %v1877_v63 = vadd.f32 %v14679_v18, %v11756_v13  ;;  %v1160_v33 = vpop.f32.mrb[95].mxu0  ;;  %v1871_v5 = vpop.f32.mrb[95].mxu1  ;;  %v9169_v6 = vsel %vm2040_vm0, %v8855_v51, 0.0  ;;  %12550 = vmatpush3.bf16.xpose.msk.msra.mxu0 %vm14144_vm1, %v15030_v57  ;;  %12069 = vmatmul.mubr.msk.f32.vlgmr.msra.gmra.mrb[164].mxu1 %vm2040_vm0, %v14977_v8 }
 0x1c2   : > { %v15272_v59 = vadd.f32 %v14667_v25, %v1160_v33  ;;  %v1872_v15 = vadd.f32 %v14679_v18, %v1871_v5  ;;  %9170 = vadd.xlane.f32.xlu1 %v9169_v6  ;;  %v9166_v58 = vsel %vm2040_vm0, %v8854_v1, 0.0  ;;  %12556 = vmatpush3.bf16.xpose.msk.msra.mxu1 %vm14144_vm1, %v15060_v36 }
 0x1c3   : > { %v15279_v3 = vpop.xlane.xlu1 %8960  ;;  %9167 = vadd.xlane.f32.xlu0 %v9166_v58  ;;  %v11535_v51 = vpop.f32.mrb[96].mxu0  ;;  %v8857_v57 = vmul.f32 %v1877_v63, %v15257_v9  ;;  %12075 = vmatprep.mubr.msk.f32.mxu0 %vm2040_vm0, %v15023_v29 }
 0x1c4   : > { %18764 = vst [vmem:[#allocation24_spill] sm:$0xff] %v15279_v3  ;;  %v15284_v8 = vpack.c.bf16 %v1877_v63, %v1872_v15  ;;  %v15287_v13 = vadd.f32 %v14667_v25, %v11535_v51  ;;  %v11759_v33 = vpop.f32.mrb[96].mxu1  ;;  %v15289_v1 = vpop.xlane.xlu0 %8957  ;;  %v8856_v5 = vmul.f32 %v1872_v15, %v15272_v59  ;;  %12082 = vmatprep.mubr.msk.f32.mxu1 %vm2040_vm0, %v15048_v14 }
 0x1c5   : > { %18765 = vst [vmem:[#allocation25_spill] sm:$0xff] %v15289_v1  ;;  %12559 = vmatprep.subr.msk.bf16.mxu0 %vm14144_vm1, %v15086_v52  ;;  %v1887_v36 = vadd.f32 %v14679_v18, %v11759_v33  ;;  %v1170_v29 = vpop.f32.mrb[97].mxu0  ;;  %v1881_v63 = vpop.f32.mrb[97].mxu1  ;;  %v9175_v6 = vsel %vm2040_vm0, %v8857_v57, 0.0  ;;  %12565 = vmatprep.subr.msk.bf16.mxu1 %vm14144_vm1, %v15116_v10 }
 0x1c6   : > { %v15303_v58 = vadd.f32 %v14667_v25, %v1170_v29  ;;  %v1882_v15 = vadd.f32 %v14679_v18, %v1881_v63  ;;  %9176 = vadd.xlane.f32.xlu1 %v9175_v6  ;;  %v9172_v14 = vsel %vm2040_vm0, %v8856_v5, 0.0 }
 0x1c7   : > { %v15307_v51 = vpop.xlane.xlu1 %8966  ;;  %9173 = vadd.xlane.f32.xlu0 %v9172_v14  ;;  %v11538_v33 = vpop.f32.mrb[98].mxu0  ;;  %v8859_v1 = vmul.f32 %v1887_v36, %v15287_v13 }
 0x1c8   : > { %18766 = vst [vmem:[#allocation26_spill] sm:$0xff] %v15307_v51  ;;  %v15310_v3 = vpack.c.bf16 %v1887_v36, %v1882_v15  ;;  %v15313_v57 = vadd.f32 %v14667_v25, %v11538_v33  ;;  %v11762_v22 = vpop.f32.mrb[98].mxu1  ;;  %v15315_v46 = vpop.xlane.xlu0 %8963  ;;  %12076 = vmatmul.mubr.msk.f32.vlgmr.msra.gmra.mrb[166].mxu0 %vm2040_vm0, %v15007_v42  ;;  %v8858_v29 = vmul.f32 %v1882_v15, %v15303_v58 }
 0x1c9   : > { %18767 = vst [vmem:[#allocation27_spill] sm:$0xff] %v15315_v46  ;;  %v1897_v5 = vadd.f32 %v14679_v18, %v11762_v22  ;;  %v1180_v63 = vpop.f32.mrb[99].mxu0  ;;  %v1891_v6 = vpop.f32.mrb[99].mxu1  ;;  %v9181_v14 = vsel %vm2040_vm0, %v8859_v1, 0.0  ;;  %12083 = vmatmul.mubr.msk.f32.vlgmr.msra.gmra.mrb[166].mxu1 %vm2040_vm0, %v15033_v19  ;;  %12562 = vmatpush3.bf16.xpose.msk.msra.mxu0 %vm14144_vm1, %v15086_v52  ;;  %v15346_v52 = vld [vmem:[%s18448_s3] ss:$0 sm:$0xff] }
 0x1ca   : > { %v15328_v36 = vadd.f32 %v14667_v25, %v1180_v63  ;;  %v1892_v42 = vadd.f32 %v14679_v18, %v1891_v6  ;;  %9182 = vadd.xlane.f32.xlu1 %v9181_v14  ;;  %v9178_v15 = vsel %vm2040_vm0, %v8858_v29, 0.0  ;;  %12568 = vmatpush3.bf16.xpose.msk.msra.mxu1 %vm14144_vm1, %v15116_v10 }
 0x1cb   : > { %v8861_v22 = vmul.f32 %v1897_v5, %v15313_v57  ;;  %v15336_v1 = vpop.xlane.xlu1 %8972  ;;  %9179 = vadd.xlane.f32.xlu0 %v9178_v15  ;;  %v11541_v19 = vpop.f32.mrb[100].mxu0  ;;  %12089 = vmatprep.mubr.msk.f32.mxu0 %vm2040_vm0, %v15079_v47  ;;  %v15361_v47 = vld [vmem:[%s18450_s5] ss:$0 sm:$0xff] }
 0x1cc   : > { %18768 = vst [vmem:[#allocation28_spill] sm:$0xff] %v15336_v1  ;;  %v15340_v25 = vpack.c.bf16 %v1897_v5, %v1892_v42  ;;  %v8860_v18 = vmul.f32 %v1892_v42, %v15328_v36  ;;  %v15349_v10 = vadd.f32 %v15346_v52, %v11541_v19  ;;  %v11765_v33 = vpop.f32.mrb[100].mxu1  ;;  %v15351_v29 = vpop.xlane.xlu0 %8969  ;;  %12096 = vmatprep.mubr.msk.f32.mxu1 %vm2040_vm0, %v15104_v31 }
 0x1cd   : > { %18769 = vst [vmem:[#allocation29_spill] sm:$0xff] %v15351_v29  ;;  %12571 = vmatprep.subr.msk.bf16.mxu0 %vm14144_vm1, %v15142_v4  ;;  %v1907_v5 = vadd.f32 %v15361_v47, %v11765_v33  ;;  %v1190_v63 = vpop.f32.mrb[101].mxu0  ;;  %v1901_v6 = vpop.f32.mrb[101].mxu1  ;;  %v9187_v14 = vsel %vm2040_vm0, %v8861_v22, 0.0  ;;  %12577 = vmatprep.subr.msk.bf16.mxu1 %vm14144_vm1, %v15172_v56 }
 0x1ce   : > { %v15369_v31 = vadd.f32 %v15346_v52, %v1190_v63  ;;  %v1902_v42 = vadd.f32 %v15361_v47, %v1901_v6  ;;  %9188 = vadd.xlane.f32.xlu1 %v9187_v14  ;;  %v9184_v15 = vsel %vm2040_vm0, %v8860_v18, 0.0 }
 0x1cf   : > { %v8863_v19 = vmul.f32 %v1907_v5, %v15349_v10  ;;  %v15374_v29 = vpop.xlane.xlu1 %8978  ;;  %9185 = vadd.xlane.f32.xlu0 %v9184_v15  ;;  %v11544_v33 = vpop.f32.mrb[102].mxu0 }
 0x1d0   : > { %18770 = vst [vmem:[#allocation30_spill] sm:$0xff] %v15374_v29  ;;  %v15376_v1 = vpack.c.bf16 %v1907_v5, %v1902_v42  ;;  %v8862_v22 = vmul.f32 %v1902_v42, %v15369_v31  ;;  %v15380_v46 = vadd.f32 %v15346_v52, %v11544_v33  ;;  %v11768_v63 = vpop.f32.mrb[102].mxu1  ;;  %v15382_v51 = vpop.xlane.xlu0 %8975  ;;  %12090 = vmatmul.mubr.msk.f32.vlgmr.msra.gmra.mrb[168].mxu0 %vm2040_vm0, %v15063_v23 }
 0x1d1   : > { %18771 = vst [vmem:[#allocation31_spill] sm:$0xff] %v15382_v51  ;;  %v1917_v18 = vadd.f32 %v15361_v47, %v11768_v63  ;;  %v1200_v6 = vpop.f32.mrb[103].mxu0  ;;  %v1911_v14 = vpop.f32.mrb[103].mxu1  ;;  %v9193_v15 = vsel %vm2040_vm0, %v8863_v19, 0.0  ;;  %12097 = vmatmul.mubr.msk.f32.vlgmr.msra.gmra.mrb[168].mxu1 %vm2040_vm0, %v15089_v55  ;;  %12574 = vmatpush3.bf16.xpose.msk.msra.mxu0 %vm14144_vm1, %v15142_v4 }
 0x1d2   : > { %v15394_v5 = vadd.f32 %v15346_v52, %v1200_v6  ;;  %v1912_v42 = vadd.f32 %v15361_v47, %v1911_v14  ;;  %9194 = vadd.xlane.f32.xlu1 %v9193_v15  ;;  %v9190_v23 = vsel %vm2040_vm0, %v8862_v22, 0.0  ;;  %12580 = vmatpush3.bf16.xpose.msk.msra.mxu1 %vm14144_vm1, %v15172_v56 }
 0x1d3   : > { %v8865_v19 = vmul.f32 %v1917_v18, %v15380_v46  ;;  %v15402_v33 = vpop.xlane.xlu1 %8984  ;;  %9191 = vadd.xlane.f32.xlu0 %v9190_v23  ;;  %v11547_v55 = vpop.f32.mrb[104].mxu0  ;;  %12103 = vmatprep.mubr.msk.f32.mxu0 %vm2040_vm0, %v15135_v41 }
 0x1d4   : > { %18772 = vst [vmem:[#allocation32_spill] sm:$0xff] %v15402_v33  ;;  %v15406_v4 = vpack.c.bf16 %v1917_v18, %v1912_v42  ;;  %v8864_v63 = vmul.f32 %v1912_v42, %v15394_v5  ;;  %v15410_v6 = vadd.f32 %v15346_v52, %v11547_v55  ;;  %v11771_v22 = vpop.f32.mrb[104].mxu1  ;;  %v15412_v14 = vpop.xlane.xlu0 %8981  ;;  %12110 = vmatprep.mubr.msk.f32.mxu1 %vm2040_vm0, %v15160_v20 }
 0x1d5   : > { %18773 = vst [vmem:[#allocation33_spill] sm:$0xff] %v15412_v14  ;;  %12583 = vmatprep.subr.msk.bf16.mxu0 %vm14144_vm1, %v15198_v48  ;;  %v1927_v56 = vadd.f32 %v15361_v47, %v11771_v22  ;;  %v1210_v41 = vpop.f32.mrb[105].mxu0  ;;  %v1921_v18 = vpop.f32.mrb[105].mxu1  ;;  %v9199_v15 = vsel %vm2040_vm0, %v8865_v19, 0.0  ;;  %12589 = vmatprep.subr.msk.bf16.mxu1 %vm14144_vm1, %v15228_v34 }
 0x1d6   : > { %v15425_v42 = vadd.f32 %v15346_v52, %v1210_v41  ;;  %v1922_v23 = vadd.f32 %v15361_v47, %v1921_v18  ;;  %9200 = vadd.xlane.f32.xlu1 %v9199_v15  ;;  %v9196_v20 = vsel %vm2040_vm0, %v8864_v63, 0.0 }
 0x1d7   : > { %v8867_v55 = vmul.f32 %v1927_v56, %v15410_v6  ;;  %v15430_v14 = vpop.xlane.xlu1 %8990  ;;  %9197 = vadd.xlane.f32.xlu0 %v9196_v20  ;;  %v11550_v22 = vpop.f32.mrb[106].mxu0 }
 0x1d8   : > { %18774 = vst [vmem:[#allocation34_spill] sm:$0xff] %v15430_v14  ;;  %v15432_v33 = vpack.c.bf16 %v1927_v56, %v1922_v23  ;;  %v8866_v19 = vmul.f32 %v1922_v23, %v15425_v42  ;;  %v15436_v51 = vadd.f32 %v15346_v52, %v11550_v22  ;;  %v11774_v41 = vpop.f32.mrb[106].mxu1  ;;  %v15438_v29 = vpop.xlane.xlu0 %8987  ;;  %12104 = vmatmul.mubr.msk.f32.vlgmr.msra.gmra.mrb[170].mxu0 %vm2040_vm0, %v15119_v39 }
 0x1d9   : > { %18775 = vst [vmem:[#allocation35_spill] sm:$0xff] %v15438_v29  ;;  %v1937_v63 = vadd.f32 %v15361_v47, %v11774_v41  ;;  %v1220_v18 = vpop.f32.mrb[107].mxu0  ;;  %v1931_v15 = vpop.f32.mrb[107].mxu1  ;;  %v9205_v20 = vsel %vm2040_vm0, %v8867_v55, 0.0  ;;  %12111 = vmatmul.mubr.msk.f32.vlgmr.msra.gmra.mrb[170].mxu1 %vm2040_vm0, %v15145_v60  ;;  %12586 = vmatpush3.bf16.xpose.msk.msra.mxu0 %vm14144_vm1, %v15198_v48 }
 0x1da   : > { %v15450_v56 = vadd.f32 %v15346_v52, %v1220_v18  ;;  %v1932_v23 = vadd.f32 %v15361_v47, %v1931_v15  ;;  %9206 = vadd.xlane.f32.xlu1 %v9205_v20  ;;  %v9202_v39 = vsel %vm2040_vm0, %v8866_v19, 0.0  ;;  %12592 = vmatpush3.bf16.xpose.msk.msra.mxu1 %vm14144_vm1, %v15228_v34 }
 0x1db   : > { %v8869_v55 = vmul.f32 %v1937_v63, %v15436_v51  ;;  %v15458_v22 = vpop.xlane.xlu1 %8996  ;;  %9203 = vadd.xlane.f32.xlu0 %v9202_v39  ;;  %v11553_v60 = vpop.f32.mrb[108].mxu0  ;;  %12117 = vmatprep.mubr.msk.f32.mxu0 %vm2040_vm0, %v15191_v50 }
 0x1dc   : > { %18776 = vst [vmem:[#allocation36_spill] sm:$0xff] %v15458_v22  ;;  %v15462_v48 = vpack.c.bf16 %v1937_v63, %v1932_v23  ;;  %v8868_v41 = vmul.f32 %v1932_v23, %v15450_v56  ;;  %v15466_v18 = vadd.f32 %v15346_v52, %v11553_v60  ;;  %v11777_v19 = vpop.f32.mrb[108].mxu1  ;;  %v15468_v15 = vpop.xlane.xlu0 %8993  ;;  %12124 = vmatprep.mubr.msk.f32.mxu1 %vm2040_vm0, %v15216_v61 }
 0x1dd   : > { %18777 = vst [vmem:[#allocation37_spill] sm:$0xff] %v15468_v15  ;;  %12595 = vmatprep.subr.msk.bf16.mxu0 %vm14144_vm1, %v15254_v0  ;;  %v1947_v34 = vadd.f32 %v15361_v47, %v11777_v19  ;;  %v1230_v50 = vpop.f32.mrb[109].mxu0  ;;  %v1941_v63 = vpop.f32.mrb[109].mxu1  ;;  %v9211_v20 = vsel %vm2040_vm0, %v8869_v55, 0.0  ;;  %12601 = vmatprep.subr.msk.bf16.mxu1 %vm14144_vm1, %v15284_v8 }
 0x1de   : > { %v15481_v23 = vadd.f32 %v15346_v52, %v1230_v50  ;;  %v1942_v39 = vadd.f32 %v15361_v47, %v1941_v63  ;;  %9212 = vadd.xlane.f32.xlu1 %v9211_v20  ;;  %v9208_v61 = vsel %vm2040_vm0, %v8868_v41, 0.0 }
 0x1df   : > { %v8871_v60 = vmul.f32 %v1947_v34, %v15466_v18  ;;  %v15486_v15 = vpop.xlane.xlu1 %9002  ;;  %9209 = vadd.xlane.f32.xlu0 %v9208_v61  ;;  %v11556_v19 = vpop.f32.mrb[110].mxu0 }
 0x1e0   : > { %18778 = vst [vmem:[#allocation38_spill] sm:$0xff] %v15486_v15  ;;  %v15488_v22 = vpack.c.bf16 %v1947_v34, %v1942_v39  ;;  %v8870_v55 = vmul.f32 %v1942_v39, %v15481_v23  ;;  %v15492_v29 = vadd.f32 %v15346_v52, %v11556_v19  ;;  %v11780_v50 = vpop.f32.mrb[110].mxu1  ;;  %v15494_v14 = vpop.xlane.xlu0 %8999  ;;  %12118 = vmatmul.mubr.msk.f32.vlgmr.msra.gmra.mrb[172].mxu0 %vm2040_vm0, %v15175_v49 }
 0x1e1   : > { %18779 = vst [vmem:[#allocation39_spill] sm:$0xff] %v15494_v14  ;;  %v1957_v41 = vadd.f32 %v15361_v47, %v11780_v50  ;;  %v1240_v63 = vpop.f32.mrb[111].mxu0  ;;  %v1951_v20 = vpop.f32.mrb[111].mxu1  ;;  %v9217_v61 = vsel %vm2040_vm0, %v8871_v60, 0.0  ;;  %12125 = vmatmul.mubr.msk.f32.vlgmr.msra.gmra.mrb[172].mxu1 %vm2040_vm0, %v15201_v12  ;;  %12598 = vmatpush3.bf16.xpose.msk.msra.mxu0 %vm14144_vm1, %v15254_v0 }
 0x1e2   : > { %v15506_v34 = vadd.f32 %v15346_v52, %v1240_v63  ;;  %v1952_v39 = vadd.f32 %v15361_v47, %v1951_v20  ;;  %9218 = vadd.xlane.f32.xlu1 %v9217_v61  ;;  %v9214_v49 = vsel %vm2040_vm0, %v8870_v55, 0.0  ;;  %12604 = vmatpush3.bf16.xpose.msk.msra.mxu1 %vm14144_vm1, %v15284_v8 }
 0x1e3   : > { %v8873_v60 = vmul.f32 %v1957_v41, %v15492_v29  ;;  %v15514_v19 = vpop.xlane.xlu1 %9008  ;;  %9215 = vadd.xlane.f32.xlu0 %v9214_v49  ;;  %v11559_v12 = vpop.f32.mrb[112].mxu0  ;;  %12131 = vmatprep.mubr.msk.f32.mxu0 %vm2040_vm0, %v15247_v40 }
 0x1e4   : > { %18780 = vst [vmem:[#allocation40_spill] sm:$0xff] %v15514_v19  ;;  %v15518_v0 = vpack.c.bf16 %v1957_v41, %v1952_v39  ;;  %v8872_v50 = vmul.f32 %v1952_v39, %v15506_v34  ;;  %v15522_v63 = vadd.f32 %v15346_v52, %v11559_v12  ;;  %v11783_v55 = vpop.f32.mrb[112].mxu1  ;;  %v15524_v20 = vpop.xlane.xlu0 %9005  ;;  %12138 = vmatprep.mubr.msk.f32.mxu1 %vm2040_vm0, %v15272_v59 }
 0x1e5   : > { %18781 = vst [vmem:[#allocation41_spill] sm:$0xff] %v15524_v20  ;;  %12607 = vmatprep.subr.msk.bf16.mxu0 %vm14144_vm1, %v15310_v3  ;;  %v1967_v8 = vadd.f32 %v15361_v47, %v11783_v55  ;;  %v1250_v40 = vpop.f32.mrb[113].mxu0  ;;  %v1961_v41 = vpop.f32.mrb[113].mxu1  ;;  %v9223_v61 = vsel %vm2040_vm0, %v8873_v60, 0.0  ;;  %12613 = vmatprep.subr.msk.bf16.mxu1 %vm14144_vm1, %v15340_v25 }
 0x1e6   : > { %v15537_v39 = vadd.f32 %v15346_v52, %v1250_v40  ;;  %v1962_v49 = vadd.f32 %v15361_v47, %v1961_v41  ;;  %9224 = vadd.xlane.f32.xlu1 %v9223_v61  ;;  %v9220_v59 = vsel %vm2040_vm0, %v8872_v50, 0.0 }
 0x1e7   : > { %v8875_v12 = vmul.f32 %v1967_v8, %v15522_v63  ;;  %v15542_v20 = vpop.xlane.xlu1 %9014  ;;  %9221 = vadd.xlane.f32.xlu0 %v9220_v59  ;;  %v11562_v55 = vpop.f32.mrb[114].mxu0 }
 0x1e8   : > { %18782 = vst [vmem:[#allocation42_spill] sm:$0xff] %v15542_v20  ;;  %v15544_v19 = vpack.c.bf16 %v1967_v8, %v1962_v49  ;;  %v8874_v60 = vmul.f32 %v1962_v49, %v15537_v39  ;;  %v15548_v14 = vadd.f32 %v15346_v52, %v11562_v55  ;;  %v11786_v40 = vpop.f32.mrb[114].mxu1  ;;  %v15550_v15 = vpop.xlane.xlu0 %9011  ;;  %12132 = vmatmul.mubr.msk.f32.vlgmr.msra.gmra.mrb[174].mxu0 %vm2040_vm0, %v15231_v16 }
 0x1e9   : > { %18783 = vst [vmem:[#allocation43_spill] sm:$0xff] %v15550_v15  ;;  %v1977_v50 = vadd.f32 %v15361_v47, %v11786_v40  ;;  %v1260_v41 = vpop.f32.mrb[115].mxu0  ;;  %v1971_v61 = vpop.f32.mrb[115].mxu1  ;;  %v9229_v59 = vsel %vm2040_vm0, %v8875_v12, 0.0  ;;  %12139 = vmatmul.mubr.msk.f32.vlgmr.msra.gmra.mrb[174].mxu1 %vm2040_vm0, %v15257_v9  ;;  %12610 = vmatpush3.bf16.xpose.msk.msra.mxu0 %vm14144_vm1, %v15310_v3 }
 0x1ea   : > { %v15562_v8 = vadd.f32 %v15346_v52, %v1260_v41  ;;  %v1972_v49 = vadd.f32 %v15361_v47, %v1971_v61  ;;  %9230 = vadd.xlane.f32.xlu1 %v9229_v59  ;;  %v9226_v16 = vsel %vm2040_vm0, %v8874_v60, 0.0  ;;  %12616 = vmatpush3.bf16.xpose.msk.msra.mxu1 %vm14144_vm1, %v15340_v25 }
 0x1eb   : > { %v8877_v12 = vmul.f32 %v1977_v50, %v15548_v14  ;;  %v15570_v55 = vpop.xlane.xlu1 %9020  ;;  %9227 = vadd.xlane.f32.xlu0 %v9226_v16  ;;  %v11565_v9 = vpop.f32.mrb[116].mxu0  ;;  %12145 = vmatprep.mubr.msk.f32.mxu0 %vm2040_vm0, %v15303_v58 }
 0x1ec   : > { %18784 = vst [vmem:[#allocation44_spill] sm:$0xff] %v15570_v55  ;;  %v15574_v3 = vpack.c.bf16 %v1977_v50, %v1972_v49  ;;  %v8876_v40 = vmul.f32 %v1972_v49, %v15562_v8  ;;  %v15578_v41 = vadd.f32 %v15346_v52, %v11565_v9  ;;  %v11789_v60 = vpop.f32.mrb[116].mxu1  ;;  %v15580_v61 = vpop.xlane.xlu0 %9017  ;;  %12152 = vmatprep.mubr.msk.f32.mxu1 %vm2040_vm0, %v15328_v36 }
 0x1ed   : > { %18785 = vst [vmem:[#allocation45_spill] sm:$0xff] %v15580_v61  ;;  %12619 = vmatprep.subr.msk.bf16.mxu0 %vm14144_vm1, %v15376_v1  ;;  %v1987_v25 = vadd.f32 %v15361_v47, %v11789_v60  ;;  %v1270_v58 = vpop.f32.mrb[117].mxu0  ;;  %v1981_v50 = vpop.f32.mrb[117].mxu1  ;;  %v9235_v59 = vsel %vm2040_vm0, %v8877_v12, 0.0  ;;  %12625 = vmatprep.subr.msk.bf16.mxu1 %vm14144_vm1, %v15406_v4 }
 0x1ee   : > { %v15593_v49 = vadd.f32 %v15346_v52, %v1270_v58  ;;  %v1982_v16 = vadd.f32 %v15361_v47, %v1981_v50  ;;  %9236 = vadd.xlane.f32.xlu1 %v9235_v59  ;;  %v9232_v36 = vsel %vm2040_vm0, %v8876_v40, 0.0 }
 0x1ef   : > { %v8879_v9 = vmul.f32 %v1987_v25, %v15578_v41  ;;  %v15598_v61 = vpop.xlane.xlu1 %9026  ;;  %9233 = vadd.xlane.f32.xlu0 %v9232_v36  ;;  %v11568_v60 = vpop.f32.mrb[118].mxu0 }
 0x1f0   : > { %18786 = vst [vmem:[#allocation46_spill] sm:$0xff] %v15598_v61  ;;  %v15600_v55 = vpack.c.bf16 %v1987_v25, %v1982_v16  ;;  %v8878_v12 = vmul.f32 %v1982_v16, %v15593_v49  ;;  %v15604_v15 = vadd.f32 %v15346_v52, %v11568_v60  ;;  %v11792_v58 = vpop.f32.mrb[118].mxu1  ;;  %v15606_v20 = vpop.xlane.xlu0 %9023  ;;  %12146 = vmatmul.mubr.msk.f32.vlgmr.msra.gmra.mrb[176].mxu0 %vm2040_vm0, %v15287_v13 }
 0x1f1   : > { %18787 = vst [vmem:[#allocation47_spill] sm:$0xff] %v15606_v20  ;;  %v1997_v40 = vadd.f32 %v15361_v47, %v11792_v58  ;;  %v1280_v50 = vpop.f32.mrb[119].mxu0  ;;  %v1991_v59 = vpop.f32.mrb[119].mxu1  ;;  %v9241_v36 = vsel %vm2040_vm0, %v8879_v9, 0.0  ;;  %12153 = vmatmul.mubr.msk.f32.vlgmr.msra.gmra.mrb[176].mxu1 %vm2040_vm0, %v15313_v57  ;;  %12622 = vmatpush3.bf16.xpose.msk.msra.mxu0 %vm14144_vm1, %v15376_v1 }
 0x1f2   : > { %v15618_v25 = vadd.f32 %v15346_v52, %v1280_v50  ;;  %v1992_v16 = vadd.f32 %v15361_v47, %v1991_v59  ;;  %9242 = vadd.xlane.f32.xlu1 %v9241_v36  ;;  %v9238_v13 = vsel %vm2040_vm0, %v8878_v12, 0.0  ;;  %12628 = vmatpush3.bf16.xpose.msk.msra.mxu1 %vm14144_vm1, %v15406_v4 }
 0x1f3   : > { %v8881_v9 = vmul.f32 %v1997_v40, %v15604_v15  ;;  %v15626_v60 = vpop.xlane.xlu1 %9032  ;;  %9239 = vadd.xlane.f32.xlu0 %v9238_v13  ;;  %v11571_v57 = vpop.f32.mrb[120].mxu0  ;;  %12159 = vmatprep.mubr.msk.f32.mxu0 %vm2040_vm0, %v15369_v31 }
 0x1f4   : > { %18788 = vst [vmem:[#allocation48_spill] sm:$0xff] %v15626_v60  ;;  %v15630_v1 = vpack.c.bf16 %v1997_v40, %v1992_v16  ;;  %v8880_v58 = vmul.f32 %v1992_v16, %v15618_v25  ;;  %v15634_v50 = vadd.f32 %v15346_v52, %v11571_v57  ;;  %v11795_v12 = vpop.f32.mrb[120].mxu1  ;;  %v15636_v59 = vpop.xlane.xlu0 %9029  ;;  %12166 = vmatprep.mubr.msk.f32.mxu1 %vm2040_vm0, %v15394_v5 }
 0x1f5   : > { %18789 = vst [vmem:[#allocation49_spill] sm:$0xff] %v15636_v59  ;;  %12631 = vmatprep.subr.msk.bf16.mxu0 %vm14144_vm1, %v15432_v33  ;;  %v2007_v4 = vadd.f32 %v15361_v47, %v11795_v12  ;;  %v1290_v31 = vpop.f32.mrb[121].mxu0  ;;  %v2001_v40 = vpop.f32.mrb[121].mxu1  ;;  %v9247_v36 = vsel %vm2040_vm0, %v8881_v9, 0.0  ;;  %12637 = vmatprep.subr.msk.bf16.mxu1 %vm14144_vm1, %v15462_v48 }
 0x1f6   : > { %v15649_v16 = vadd.f32 %v15346_v52, %v1290_v31  ;;  %v2002_v13 = vadd.f32 %v15361_v47, %v2001_v40  ;;  %9248 = vadd.xlane.f32.xlu1 %v9247_v36  ;;  %v9244_v5 = vsel %vm2040_vm0, %v8880_v58, 0.0 }
 0x1f7   : > { %v8883_v57 = vmul.f32 %v2007_v4, %v15634_v50  ;;  %v15654_v59 = vpop.xlane.xlu1 %9038  ;;  %9245 = vadd.xlane.f32.xlu0 %v9244_v5  ;;  %v11574_v12 = vpop.f32.mrb[122].mxu0 }
 0x1f8   : > { %18790 = vst [vmem:[#allocation50_spill] sm:$0xff] %v15654_v59  ;;  %v15656_v60 = vpack.c.bf16 %v2007_v4, %v2002_v13  ;;  %v8882_v9 = vmul.f32 %v2002_v13, %v15649_v16  ;;  %v15660_v20 = vadd.f32 %v15346_v52, %v11574_v12  ;;  %v11798_v31 = vpop.f32.mrb[122].mxu1  ;;  %v15662_v61 = vpop.xlane.xlu0 %9035  ;;  %12160 = vmatmul.mubr.msk.f32.vlgmr.msra.gmra.mrb[178].mxu0 %vm2040_vm0, %v15349_v10 }
 0x1f9   : > { %18791 = vst [vmem:[#allocation51_spill] sm:$0xff] %v15662_v61  ;;  %v2017_v58 = vadd.f32 %v15361_v47, %v11798_v31  ;;  %v1300_v40 = vpop.f32.mrb[123].mxu0  ;;  %v2011_v36 = vpop.f32.mrb[123].mxu1  ;;  %v9253_v5 = vsel %vm2040_vm0, %v8883_v57, 0.0  ;;  %12167 = vmatmul.mubr.msk.f32.vlgmr.msra.gmra.mrb[178].mxu1 %vm2040_vm0, %v15380_v46  ;;  %12634 = vmatpush3.bf16.xpose.msk.msra.mxu0 %vm14144_vm1, %v15432_v33 }
 0x1fa   : > { %v15674_v4 = vadd.f32 %v15346_v52, %v1300_v40  ;;  %v2012_v13 = vadd.f32 %v15361_v47, %v2011_v36  ;;  %9254 = vadd.xlane.f32.xlu1 %v9253_v5  ;;  %v9250_v10 = vsel %vm2040_vm0, %v8882_v9, 0.0  ;;  %12640 = vmatpush3.bf16.xpose.msk.msra.mxu1 %vm14144_vm1, %v15462_v48 }
 0x1fb   : > { %v8885_v57 = vmul.f32 %v2017_v58, %v15660_v20  ;;  %v15682_v12 = vpop.xlane.xlu1 %9044  ;;  %9251 = vadd.xlane.f32.xlu0 %v9250_v10  ;;  %v11577_v46 = vpop.f32.mrb[124].mxu0  ;;  %12173 = vmatprep.mubr.msk.f32.mxu0 %vm2040_vm0, %v15425_v42 }
 0x1fc   : > { %18792 = vst [vmem:[#allocation52_spill] sm:$0xff] %v15682_v12  ;;  %v15686_v33 = vpack.c.bf16 %v2017_v58, %v2012_v13  ;;  %v8884_v31 = vmul.f32 %v2012_v13, %v15674_v4  ;;  %v15690_v40 = vadd.f32 %v15346_v52, %v11577_v46  ;;  %v11801_v9 = vpop.f32.mrb[124].mxu1  ;;  %v15692_v36 = vpop.xlane.xlu0 %9041  ;;  %12180 = vmatprep.mubr.msk.f32.mxu1 %vm2040_vm0, %v15450_v56 }
 0x1fd   : > { %18793 = vst [vmem:[#allocation53_spill] sm:$0xff] %v15692_v36  ;;  %12643 = vmatprep.subr.msk.bf16.mxu0 %vm14144_vm1, %v15488_v22  ;;  %v2027_v48 = vadd.f32 %v15361_v47, %v11801_v9  ;;  %v1310_v42 = vpop.f32.mrb[125].mxu0  ;;  %v2021_v58 = vpop.f32.mrb[125].mxu1  ;;  %v9259_v5 = vsel %vm2040_vm0, %v8885_v57, 0.0  ;;  %12649 = vmatprep.subr.msk.bf16.mxu1 %vm14144_vm1, %v15518_v0 }
 0x1fe   : > { %v15705_v13 = vadd.f32 %v15346_v52, %v1310_v42  ;;  %v2022_v10 = vadd.f32 %v15361_v47, %v2021_v58  ;;  %9260 = vadd.xlane.f32.xlu1 %v9259_v5  ;;  %v9256_v56 = vsel %vm2040_vm0, %v8884_v31, 0.0 }
 0x1ff   : > { %v8887_v46 = vmul.f32 %v2027_v48, %v15690_v40  ;;  %v15710_v36 = vpop.xlane.xlu1 %9050  ;;  %9257 = vadd.xlane.f32.xlu0 %v9256_v56  ;;  %v11580_v9 = vpop.f32.mrb[126].mxu0 }
 0x200   : > { %18794 = vst [vmem:[#allocation54_spill] sm:$0xff] %v15710_v36  ;;  %v15712_v12 = vpack.c.bf16 %v2027_v48, %v2022_v10  ;;  %v8886_v57 = vmul.f32 %v2022_v10, %v15705_v13  ;;  %v15715_v61 = vpop.xlane.xlu0 %9047  ;;  %v11804_v59 = vpop.f32.mrb[126].mxu1  ;;  %v15718_v42 = vadd.f32 %v15346_v52, %v11580_v9  ;;  %12174 = vmatmul.mubr.msk.f32.vlgmr.msra.gmra.mrb[180].mxu0 %vm2040_vm0, %v15410_v6 }
 0x201   : > { %18795 = vst [vmem:[#allocation55_spill] sm:$0xff] %v15715_v61  ;;  %v2037_v31 = vadd.f32 %v15361_v47, %v11804_v59  ;;  %v9265_v58 = vsel %vm2040_vm0, %v8887_v46, 0.0  ;;  %v2031_v5 = vpop.f32.mrb[127].mxu1  ;;  %v1320_v56 = vpop.f32.mrb[127].mxu0  ;;  %12181 = vmatmul.mubr.msk.f32.vlgmr.msra.gmra.mrb[180].mxu1 %vm2040_vm0, %v15436_v51  ;;  %12646 = vmatpush3.bf16.xpose.msk.msra.mxu0 %vm14144_vm1, %v15488_v22 }
 0x202   : > { %9266 = vadd.xlane.f32.xlu1 %v9265_v58  ;;  %v2032_v48 = vadd.f32 %v15361_v47, %v2031_v5  ;;  %v9262_v10 = vsel %vm2040_vm0, %v8886_v57, 0.0  ;;  %v15732_v6 = vadd.f32 %v15346_v52, %v1320_v56  ;;  %12652 = vmatpush3.bf16.xpose.msk.msra.mxu1 %vm14144_vm1, %v15518_v0 }
 0x203   : > { %v15737_v59 = vpop.xlane.xlu1 %9056  ;;  %v15740_v51 = vmul.f32 %v2037_v31, %v15718_v42  ;;  %9263 = vadd.xlane.f32.xlu0 %v9262_v10  ;;  %v15742_v46 = vpop.f32.mrb[128].mxu0  ;;  %12187 = vmatprep.mubr.msk.f32.mxu0 %vm2040_vm0, %v15481_v23 }
 0x204   : > { %18796 = vst [vmem:[#allocation56_spill] sm:$0xff] %v15737_v59  ;;  %v15746_v47 = vpack.c.bf16 %v2037_v31, %v2032_v48  ;;  %v15749_v52 = vmul.f32 %v2032_v48, %v15732_v6  ;;  %v15751_v22 = vpop.f32.mrb[128].mxu1  ;;  %v15753_v9 = vpop.xlane.xlu0 %9053  ;;  %v7613_v0 = vsel %vm7609_vm2, %v15742_v46, -inf  ;;  %12194 = vmatprep.mubr.msk.f32.mxu1 %vm2040_vm0, %v15506_v34  ;;  %12655 = vmatprep.subr.msk.bf16.mxu0 %vm14144_vm1, %v15544_v19 }
 0x205   : > { %18797 = vst [vmem:[#allocation57_spill] sm:$0xff] %v15740_v51  ;;  %18799 = vst [vmem:[#allocation59_spill] sm:$0xff] %v15753_v9  ;;  %v7619_v23 = vsel %vm7609_vm2, %v15751_v22, -inf  ;;  %v15764_v57 = vpop.f32.mrb[129].mxu1  ;;  %v15766_v31 = vpop.f32.mrb[129].mxu0  ;;  %12661 = vmatprep.subr.msk.bf16.mxu1 %vm14144_vm1, %v15574_v3 }
 0x206   : > { %18798 = vst [vmem:[#allocation58_spill] sm:$0xff] %v15749_v52  ;;  %7620 = vmax.xlane.f32.xlu1 %v7619_v23  ;;  %v7616_v5 = vsel %vm7609_vm2, %v15764_v57, -inf  ;;  %v7610_v56 = vsel %vm7609_vm2, %v15766_v31, -inf }
 0x207   : > { %v15771_v58 = vpop.xlane.xlu1 %9062  ;;  %7614 = vmax.xlane.f32.xlu0 %v7613_v0 }
 0x208   : > { %18800 = vst [vmem:[#allocation60_spill] sm:$0xff] %v15771_v58  ;;  %v15773_v34 = vpop.xlane.xlu0 %9059  ;;  %12188 = vmatmul.mubr.msk.f32.vlgmr.msra.gmra.mrb[182].mxu0 %vm2040_vm0, %v15466_v18 }
 0x209   : > { %18801 = vst [vmem:[#allocation61_spill] sm:$0xff] %v15773_v34  ;;  %12195 = vmatmul.mubr.msk.f32.vlgmr.msra.gmra.mrb[182].mxu1 %vm2040_vm0, %v15492_v29  ;;  %12658 = vmatpush3.bf16.xpose.msk.msra.mxu0 %vm14144_vm1, %v15544_v19 }
 0x20a   : > { %7617 = vmax.xlane.f32.xlu1 %v7616_v5  ;;  %12664 = vmatpush3.bf16.xpose.msk.msra.mxu1 %vm14144_vm1, %v15574_v3 }
 0x20b   : > { %v15789_v48 = vpop.xlane.xlu1 %9068  ;;  %7611 = vmax.xlane.f32.xlu0 %v7610_v56  ;;  %v15791_v18 = vpop.f32.mrb[130].mxu0  ;;  %12201 = vmatprep.mubr.msk.f32.mxu0 %vm2040_vm0, %v15537_v39 }
 0x20c   : > { %18802 = vst [vmem:[#allocation62_spill] sm:$0xff] %v15789_v48  ;;  %v15795_v29 = vpop.xlane.xlu0 %9065  ;;  %v15797_v10 = vpop.f32.mrb[131].mxu0  ;;  %v7625_v19 = vsel %vm7609_vm2, %v15791_v18, -inf  ;;  %12208 = vmatprep.mubr.msk.f32.mxu1 %vm2040_vm0, %v15562_v8  ;;  %12667 = vmatprep.subr.msk.bf16.mxu0 %vm14144_vm1, %v15600_v55 }
 0x20d   : > { %18803 = vst [vmem:[#allocation63_spill] sm:$0xff] %v15795_v29  ;;  %v7622_v3 = vsel %vm7609_vm2, %v15797_v10, -inf  ;;  %v15808_v0 = vpop.f32.mrb[130].mxu1  ;;  %12673 = vmatprep.subr.msk.bf16.mxu1 %vm14144_vm1, %v15630_v1 }
 0x20e   : > { %7626 = vmax.xlane.f32.xlu1 %v7625_v19  ;;  %v15813_v39 = vpop.f32.mrb[131].mxu1  ;;  %v7631_v5 = vsel %vm7609_vm2, %v15808_v0, -inf }
 0x20f   : > { %v15815_v23 = vpop.xlane.xlu1 %9074  ;;  %7623 = vmax.xlane.f32.xlu0 %v7622_v3  ;;  %v7628_v56 = vsel %vm7609_vm2, %v15813_v39, -inf }
 0x210   : > { %18804 = vst [vmem:[#allocation64_spill] sm:$0xff] %v15815_v23  ;;  %v15817_v8 = vpop.xlane.xlu0 %9071  ;;  %12202 = vmatmul.mubr.msk.f32.vlgmr.msra.gmra.mrb[184].mxu0 %vm2040_vm0, %v15522_v63 }
 0x211   : > { %18805 = vst [vmem:[#allocation65_spill] sm:$0xff] %v15817_v8  ;;  %12209 = vmatmul.mubr.msk.f32.vlgmr.msra.gmra.mrb[184].mxu1 %vm2040_vm0, %v15548_v14  ;;  %12670 = vmatpush3.bf16.xpose.msk.msra.mxu0 %vm14144_vm1, %v15600_v55 }
 0x212   : > { %7632 = vmax.xlane.f32.xlu1 %v7631_v5  ;;  %12676 = vmatpush3.bf16.xpose.msk.msra.mxu1 %vm14144_vm1, %v15630_v1 }
 0x213   : > { %v15833_v19 = vpop.xlane.xlu1 %9080  ;;  %7629 = vmax.xlane.f32.xlu0 %v7628_v56  ;;  %v15835_v63 = vpop.f32.mrb[132].mxu0  ;;  %12215 = vmatprep.mubr.msk.f32.mxu0 %vm2040_vm0, %v15593_v49 }
 0x214   : > { %18806 = vst [vmem:[#allocation66_spill] sm:$0xff] %v15833_v19  ;;  %v15839_v14 = vpop.xlane.xlu0 %9077  ;;  %v15841_v3 = vpop.f32.mrb[133].mxu0  ;;  %v7637_v55 = vsel %vm7609_vm2, %v15835_v63, -inf  ;;  %12222 = vmatprep.mubr.msk.f32.mxu1 %vm2040_vm0, %v15618_v25  ;;  %12679 = vmatprep.subr.msk.bf16.mxu0 %vm14144_vm1, %v15656_v60 }
 0x215   : > { %18807 = vst [vmem:[#allocation67_spill] sm:$0xff] %v15839_v14  ;;  %v7634_v1 = vsel %vm7609_vm2, %v15841_v3, -inf  ;;  %v15852_v5 = vpop.f32.mrb[132].mxu1  ;;  %12685 = vmatprep.subr.msk.bf16.mxu1 %vm14144_vm1, %v15686_v33 }
 0x216   : > { %7638 = vmax.xlane.f32.xlu1 %v7637_v55  ;;  %v15857_v49 = vpop.f32.mrb[133].mxu1  ;;  %v7643_v52 = vsel %vm7609_vm2, %v15852_v5, -inf }
 0x217   : > { %v15859_v56 = vpop.xlane.xlu1 %9086  ;;  %7635 = vmax.xlane.f32.xlu0 %v7634_v1  ;;  %v7640_v55 = vsel %vm7609_vm2, %v15857_v49, -inf }
 0x218   : > { %18808 = vst [vmem:[#allocation68_spill] sm:$0xff] %v15859_v56  ;;  %v15861_v25 = vpop.xlane.xlu0 %9083  ;;  %12216 = vmatmul.mubr.msk.f32.vlgmr.msra.gmra.mrb[186].mxu0 %vm2040_vm0, %v15578_v41 }
 0x219   : > { %18809 = vst [vmem:[#allocation69_spill] sm:$0xff] %v15861_v25  ;;  %12223 = vmatmul.mubr.msk.f32.vlgmr.msra.gmra.mrb[186].mxu1 %vm2040_vm0, %v15604_v15  ;;  %12682 = vmatpush3.bf16.xpose.msk.msra.mxu0 %vm14144_vm1, %v15656_v60 }
 0x21a   : > { %7644 = vmax.xlane.f32.xlu1 %v7643_v52  ;;  %12688 = vmatpush3.bf16.xpose.msk.msra.mxu1 %vm14144_vm1, %v15686_v33 }
 0x21b   : > { %v15877_v1 = vpop.xlane.xlu1 %9092  ;;  %7641 = vmax.xlane.f32.xlu0 %v7640_v55  ;;  %v15879_v41 = vpop.f32.mrb[134].mxu0  ;;  %12229 = vmatprep.mubr.msk.f32.mxu0 %vm2040_vm0, %v15649_v16 }
 0x21c   : > { %18810 = vst [vmem:[#allocation70_spill] sm:$0xff] %v15877_v1  ;;  %v15883_v15 = vpop.xlane.xlu0 %9089  ;;  %v15885_v51 = vpop.f32.mrb[135].mxu0  ;;  %v7649_v60 = vsel %vm7609_vm2, %v15879_v41, -inf  ;;  %12236 = vmatprep.mubr.msk.f32.mxu1 %vm2040_vm0, %v15674_v4  ;;  %12691 = vmatprep.subr.msk.bf16.mxu0 %vm14144_vm1, %v15712_v12 }
 0x21d   : > { %18811 = vst [vmem:[#allocation71_spill] sm:$0xff] %v15883_v15  ;;  %v7646_v33 = vsel %vm7609_vm2, %v15885_v51, -inf  ;;  %v15896_v52 = vpop.f32.mrb[134].mxu1  ;;  %12697 = vmatprep.subr.msk.bf16.mxu1 %vm14144_vm1, %v15746_v47 }
 0x21e   : > { %7650 = vmax.xlane.f32.xlu1 %v7649_v60  ;;  %v15901_v16 = vpop.f32.mrb[135].mxu1  ;;  %v7655_v15 = vsel %vm7609_vm2, %v15896_v52, -inf }
 0x21f   : > { %v15903_v55 = vpop.xlane.xlu1 %9098  ;;  %7647 = vmax.xlane.f32.xlu0 %v7646_v33  ;;  %v7652_v60 = vsel %vm7609_vm2, %v15901_v16, -inf }
 0x220   : > { %18812 = vst [vmem:[#allocation72_spill] sm:$0xff] %v15903_v55  ;;  %v15905_v4 = vpop.xlane.xlu0 %9095  ;;  %12230 = vmatmul.mubr.msk.f32.vlgmr.msra.gmra.mrb[188].mxu0 %vm2040_vm0, %v15634_v50 }
 0x221   : > { %18813 = vst [vmem:[#allocation73_spill] sm:$0xff] %v15905_v4  ;;  %12237 = vmatmul.mubr.msk.f32.vlgmr.msra.gmra.mrb[188].mxu1 %vm2040_vm0, %v15660_v20  ;;  %12694 = vmatpush3.bf16.xpose.msk.msra.mxu0 %vm14144_vm1, %v15712_v12 }
 0x222   : > { %7656 = vmax.xlane.f32.xlu1 %v7655_v15  ;;  %12700 = vmatpush3.bf16.xpose.msk.msra.mxu1 %vm14144_vm1, %v15746_v47 }
 0x223   : > { %v15921_v33 = vpop.xlane.xlu1 %9104  ;;  %7653 = vmax.xlane.f32.xlu0 %v7652_v60  ;;  %v15923_v50 = vpop.f32.mrb[136].mxu0  ;;  %12243 = vmatprep.mubr.msk.f32.mxu0 %vm2040_vm0, %v15705_v13 }
 0x224   : > { %18814 = vst [vmem:[#allocation74_spill] sm:$0xff] %v15921_v33  ;;  %v15927_v20 = vpop.xlane.xlu0 %9101  ;;  %v15929_v4 = vpop.f32.mrb[137].mxu0  ;;  %v7661_v12 = vsel %vm7609_vm2, %v15923_v50, -inf  ;;  %12250 = vmatprep.mubr.msk.f32.mxu1 %vm2040_vm0, %v15732_v6 }
 0x225   : > { %18815 = vst [vmem:[#allocation75_spill] sm:$0xff] %v15927_v20  ;;  %v7658_v24 = vsel %vm7609_vm2, %v15929_v4, -inf  ;;  %v15937_v47 = vpop.f32.mrb[136].mxu1 }
 0x226   : > { %7662 = vmax.xlane.f32.xlu1 %v7661_v12  ;;  %v15939_v15 = vpop.f32.mrb[137].mxu1  ;;  %v7667_v20 = vsel %vm7609_vm2, %v15937_v47, -inf }
 0x227   : > { %v15941_v60 = vpop.xlane.xlu1 %9110  ;;  %7659 = vmax.xlane.f32.xlu0 %v7658_v24  ;;  %v7664_v6 = vsel %vm7609_vm2, %v15939_v15, -inf }
 0x228   : > { %18816 = vst [vmem:[#allocation76_spill] sm:$0xff] %v15941_v60  ;;  %v15943_v13 = vpop.xlane.xlu0 %9107  ;;  %12244 = vmatmul.mubr.msk.f32.vlgmr.msra.gmra.mrb[190].mxu0 %vm2040_vm0, %v15690_v40 }
 0x229   : > { %18817 = vst [vmem:[#allocation77_spill] sm:$0xff] %v15943_v13  ;;  %12251 = vmatmul.mubr.msk.f32.vlgmr.msra.gmra.mrb[190].mxu1 %vm2040_vm0, %v15718_v42 }
 0x22a   : > { %7668 = vmax.xlane.f32.xlu1 %v7667_v20 }
 0x22b   : > { %v15953_v12 = vpop.xlane.xlu1 %9116  ;;  %7665 = vmax.xlane.f32.xlu0 %v7664_v6  ;;  %v15955_v60 = vpop.f32.mrb[138].mxu0 }
 0x22c   : > { %18818 = vst [vmem:[#allocation78_spill] sm:$0xff] %v15953_v12  ;;  %v15957_v24 = vpop.xlane.xlu0 %9113  ;;  %v15959_v13 = vpop.f32.mrb[139].mxu0  ;;  %v7673_v40 = vsel %vm7609_vm2, %v15955_v60, -inf }
 0x22d   : > { %18819 = vst [vmem:[#allocation79_spill] sm:$0xff] %v15957_v24  ;;  %v7670_v33 = vsel %vm7609_vm2, %v15959_v13, -inf  ;;  %v15965_v42 = vpop.f32.mrb[138].mxu1 }
 0x22e   : > { %7674 = vmax.xlane.f32.xlu1 %v7673_v40  ;;  %v15967_v20 = vpop.f32.mrb[139].mxu1  ;;  %v7679_v24 = vsel %vm7609_vm2, %v15965_v42, -inf }
 0x22f   : > { %v15969_v55 = vpop.xlane.xlu1 %9122  ;;  %7671 = vmax.xlane.f32.xlu0 %v7670_v33  ;;  %v7676_v12 = vsel %vm7609_vm2, %v15967_v20, -inf }
 0x230   : > { %18820 = vst [vmem:[#allocation80_spill] sm:$0xff] %v15969_v55  ;;  %v15971_v6 = vpop.xlane.xlu0 %9119 }
 0x231   : > { %18821 = vst [vmem:[#allocation81_spill] sm:$0xff] %v15971_v6 }
 0x232   : > { %7680 = vmax.xlane.f32.xlu1 %v7679_v24 }
 0x233   : > { %v15977_v1 = vpop.xlane.xlu1 %9128  ;;  %7677 = vmax.xlane.f32.xlu0 %v7676_v12  ;;  %v15979_v25 = vpop.f32.mrb[140].mxu0 }
 0x234   : > { %18822 = vst [vmem:[#allocation82_spill] sm:$0xff] %v15977_v1  ;;  %v15981_v40 = vpop.xlane.xlu0 %9125  ;;  %v15983_v56 = vpop.f32.mrb[141].mxu0  ;;  %v7685_v33 = vsel %vm7609_vm2, %v15979_v25, -inf }
 0x235   : > { %18823 = vst [vmem:[#allocation83_spill] sm:$0xff] %v15981_v40  ;;  %18824 = vst [vmem:[#allocation84_spill] sm:$0xff] %v15983_v56  ;;  %v7682_v6 = vsel %vm7609_vm2, %v15983_v56, -inf  ;;  %v15989_v55 = vpop.f32.mrb[140].mxu1 }
 0x236   : > { %18825 = vst [vmem:[#allocation85_spill] sm:$0xff] %v15989_v55  ;;  %7686 = vmax.xlane.f32.xlu1 %v7685_v33  ;;  %v15991_v24 = vpop.f32.mrb[141].mxu1  ;;  %v7691_v40 = vsel %vm7609_vm2, %v15989_v55, -inf }
 0x237   : > { %18826 = vst [vmem:[#allocation86_spill] sm:$0xff] %v15991_v24  ;;  %v15993_v14 = vpop.xlane.xlu1 %9134  ;;  %7683 = vmax.xlane.f32.xlu0 %v7682_v6  ;;  %v7688_v1 = vsel %vm7609_vm2, %v15991_v24, -inf }
 0x238   : > { %18827 = vst [vmem:[#allocation87_spill] sm:$0xff] %v15993_v14  ;;  %v15995_v12 = vpop.xlane.xlu0 %9131 }
 0x239   : > { %18828 = vst [vmem:[#allocation88_spill] sm:$0xff] %v15995_v12 }
 0x23a   : > { %7692 = vmax.xlane.f32.xlu1 %v7691_v40 }
 0x23b   : > { %v16001_v19 = vpop.xlane.xlu1 %9140  ;;  %7689 = vmax.xlane.f32.xlu0 %v7688_v1  ;;  %v16003_v8 = vpop.f32.mrb[142].mxu0 }
 0x23c   : > { %18829 = vst [vmem:[#allocation89_spill] sm:$0xff] %v16001_v19  ;;  %18830 = vst [vmem:[#allocation90_spill] sm:$0xff] %v16003_v8  ;;  %v16005_v33 = vpop.xlane.xlu0 %9137  ;;  %v16007_v23 = vpop.f32.mrb[143].mxu0  ;;  %v7697_v6 = vsel %vm7609_vm2, %v16003_v8, -inf }
 0x23d   : > { %18831 = vst [vmem:[#allocation91_spill] sm:$0xff] %v16005_v33  ;;  %18832 = vst [vmem:[#allocation92_spill] sm:$0xff] %v16007_v23  ;;  %v7694_v12 = vsel %vm7609_vm2, %v16007_v23, -inf  ;;  %v16013_v14 = vpop.f32.mrb[142].mxu1 }
 0x23e   : > { %18833 = vst [vmem:[#allocation93_spill] sm:$0xff] %v16013_v14  ;;  %7698 = vmax.xlane.f32.xlu1 %v7697_v6  ;;  %v16015_v40 = vpop.f32.mrb[143].mxu1  ;;  %v7703_v33 = vsel %vm7609_vm2, %v16013_v14, -inf }
 0x23f   : > { %18834 = vst [vmem:[#allocation94_spill] sm:$0xff] %v16015_v40  ;;  %v16017_v29 = vpop.xlane.xlu1 %9146  ;;  %7695 = vmax.xlane.f32.xlu0 %v7694_v12  ;;  %v7700_v19 = vsel %vm7609_vm2, %v16015_v40, -inf }
 0x240   : > { %18835 = vst [vmem:[#allocation95_spill] sm:$0xff] %v16017_v29  ;;  %v16019_v1 = vpop.xlane.xlu0 %9143 }
 0x241   : > { %18836 = vst [vmem:[#allocation96_spill] sm:$0xff] %v16019_v1 }
 0x242   : > { %7704 = vmax.xlane.f32.xlu1 %v7703_v33 }
 0x243   : > { %v16025_v48 = vpop.xlane.xlu1 %9152  ;;  %7701 = vmax.xlane.f32.xlu0 %v7700_v19  ;;  %v16027_v34 = vpop.f32.mrb[144].mxu0 }
 0x244   : > { %18837 = vst [vmem:[#allocation97_spill] sm:$0xff] %v16025_v48  ;;  %v16029_v6 = vpop.xlane.xlu0 %9149  ;;  %v16031_v58 = vpop.f32.mrb[145].mxu0  ;;  %v7709_v12 = vsel %vm7609_vm2, %v16027_v34, -inf }
 0x245   : > { %18838 = vst [vmem:[#allocation98_spill] sm:$0xff] %v16029_v6  ;;  %v7706_v1 = vsel %vm7609_vm2, %v16031_v58, -inf  ;;  %v16037_v29 = vpop.f32.mrb[144].mxu1 }
 0x246   : > { %7710 = vmax.xlane.f32.xlu1 %v7709_v12  ;;  %v16039_v33 = vpop.f32.mrb[145].mxu1  ;;  %v7715_v6 = vsel %vm7609_vm2, %v16037_v29, -inf }
 0x247   : > { %v16041_v9 = vpop.xlane.xlu1 %9158  ;;  %7707 = vmax.xlane.f32.xlu0 %v7706_v1  ;;  %v7712_v48 = vsel %vm7609_vm2, %v16039_v33, -inf }
 0x248   : > { %18839 = vst [vmem:[#allocation99_spill] sm:$0xff] %v16041_v9  ;;  %v16043_v19 = vpop.xlane.xlu0 %9155 }
 0x249   : > { %18840 = vst [vmem:[#allocation100_spill] sm:$0xff] %v16043_v19 }
 0x24a   : > { %7716 = vmax.xlane.f32.xlu1 %v7715_v6 }
 0x24b   : > { %v16049_v59 = vpop.xlane.xlu1 %9164  ;;  %7713 = vmax.xlane.f32.xlu0 %v7712_v48  ;;  %v16051_v61 = vpop.f32.mrb[146].mxu0 }
 0x24c   : > { %18841 = vst [vmem:[#allocation101_spill] sm:$0xff] %v16049_v59  ;;  %v16053_v12 = vpop.xlane.xlu0 %9161  ;;  %v16055_v36 = vpop.f32.mrb[147].mxu0  ;;  %v7721_v1 = vsel %vm7609_vm2, %v16051_v61, -inf }
 0x24d   : > { %18842 = vst [vmem:[#allocation102_spill] sm:$0xff] %v16053_v12  ;;  %v7718_v19 = vsel %vm7609_vm2, %v16055_v36, -inf  ;;  %v16061_v9 = vpop.f32.mrb[146].mxu1 }
 0x24e   : > { %7722 = vmax.xlane.f32.xlu1 %v7721_v1  ;;  %v16063_v6 = vpop.f32.mrb[147].mxu1  ;;  %v7727_v12 = vsel %vm7609_vm2, %v16061_v9, -inf }
 0x24f   : > { %18843 = vst [vmem:[#allocation103_spill] sm:$0xff] %v16063_v6  ;;  %v16065_v26 = vpop.xlane.xlu1 %9170  ;;  %7719 = vmax.xlane.f32.xlu0 %v7718_v19  ;;  %v7724_v59 = vsel %vm7609_vm2, %v16063_v6, -inf }
 0x250   : > { %18844 = vst [vmem:[#allocation104_spill] sm:$0xff] %v16065_v26  ;;  %v16067_v48 = vpop.xlane.xlu0 %9167 }
 0x251   : > { %18845 = vst [vmem:[#allocation105_spill] sm:$0xff] %v16067_v48 }
 0x252   : > { %7728 = vmax.xlane.f32.xlu1 %v7727_v12 }
 0x253   : > { %v16073_v2 = vpop.xlane.xlu1 %9176  ;;  %7725 = vmax.xlane.f32.xlu0 %v7724_v59  ;;  %v16075_v54 = vpop.f32.mrb[148].mxu0 }
 0x254   : > { %18846 = vst [vmem:[#allocation106_spill] sm:$0xff] %v16073_v2  ;;  %18847 = vst [vmem:[#allocation107_spill] sm:$0xff] %v16075_v54  ;;  %v16077_v1 = vpop.xlane.xlu0 %9173  ;;  %v16079_v62 = vpop.f32.mrb[149].mxu0  ;;  %v7733_v19 = vsel %vm7609_vm2, %v16075_v54, -inf }
 0x255   : > { %18848 = vst [vmem:[#allocation108_spill] sm:$0xff] %v16077_v1  ;;  %v7730_v48 = vsel %vm7609_vm2, %v16079_v62, -inf  ;;  %v16085_v26 = vpop.f32.mrb[148].mxu1 }
 0x256   : > { %7734 = vmax.xlane.f32.xlu1 %v7733_v19  ;;  %v16087_v12 = vpop.f32.mrb[149].mxu1  ;;  %v7739_v1 = vsel %vm7609_vm2, %v16085_v26, -inf }
 0x257   : > { %v16089_v43 = vpop.xlane.xlu1 %9182  ;;  %7731 = vmax.xlane.f32.xlu0 %v7730_v48  ;;  %v7736_v2 = vsel %vm7609_vm2, %v16087_v12, -inf }
 0x258   : > { %18849 = vst [vmem:[#allocation109_spill] sm:$0xff] %v16089_v43  ;;  %v16091_v59 = vpop.xlane.xlu0 %9179 }
 0x259   : > { %18850 = vst [vmem:[#allocation110_spill] sm:$0xff] %v16091_v59 }
 0x25a   : > { %7740 = vmax.xlane.f32.xlu1 %v7739_v1 }
 0x25b   : > { %v16097_v45 = vpop.xlane.xlu1 %9188  ;;  %7737 = vmax.xlane.f32.xlu0 %v7736_v2  ;;  %v16099_v53 = vpop.f32.mrb[150].mxu0 }
 0x25c   : > { %18851 = vst [vmem:[#allocation111_spill] sm:$0xff] %v16097_v45  ;;  %18852 = vst [vmem:[#allocation112_spill] sm:$0xff] %v16099_v53  ;;  %v16101_v19 = vpop.xlane.xlu0 %9185  ;;  %v16103_v35 = vpop.f32.mrb[151].mxu0  ;;  %v7745_v48 = vsel %vm7609_vm2, %v16099_v53, -inf }
 0x25d   : > { %18853 = vst [vmem:[#allocation113_spill] sm:$0xff] %v16101_v19  ;;  %18854 = vst [vmem:[#allocation114_spill] sm:$0xff] %v16103_v35  ;;  %v7742_v59 = vsel %vm7609_vm2, %v16103_v35, -inf  ;;  %v16109_v43 = vpop.f32.mrb[150].mxu1 }
 0x25e   : > { %18855 = vst [vmem:[#allocation115_spill] sm:$0xff] %v16109_v43  ;;  %7746 = vmax.xlane.f32.xlu1 %v7745_v48  ;;  %v16111_v1 = vpop.f32.mrb[151].mxu1  ;;  %v7751_v19 = vsel %vm7609_vm2, %v16109_v43, -inf  ;;  %v18989_v43 = vld [vmem:[#allocation85_spill] sm:$0xff] }
 0x25f   : > { %18856 = vst [vmem:[#allocation116_spill] sm:$0xff] %v16111_v1  ;;  %v16113_v44 = vpop.xlane.xlu1 %9194  ;;  %7743 = vmax.xlane.f32.xlu0 %v7742_v59  ;;  %v7748_v45 = vsel %vm7609_vm2, %v16111_v1, -inf }
 0x260   : > { %18857 = vst [vmem:[#allocation117_spill] sm:$0xff] %v16113_v44  ;;  %v16115_v2 = vpop.xlane.xlu0 %9191 }
 0x261   : > { %18858 = vst [vmem:[#allocation118_spill] sm:$0xff] %v16115_v2 }
 0x262   : > { %7752 = vmax.xlane.f32.xlu1 %v7751_v19 }
 0x263   : > { %v16121_v17 = vpop.xlane.xlu1 %9200  ;;  %7749 = vmax.xlane.f32.xlu0 %v7748_v45  ;;  %v16123_v28 = vpop.f32.mrb[152].mxu0 }
 0x264   : > { %18859 = vst [vmem:[#allocation119_spill] sm:$0xff] %v16121_v17  ;;  %18860 = vst [vmem:[#allocation120_spill] sm:$0xff] %v16123_v28  ;;  %v16125_v48 = vpop.xlane.xlu0 %9197  ;;  %v16127_v30 = vpop.f32.mrb[153].mxu0  ;;  %v7757_v59 = vsel %vm7609_vm2, %v16123_v28, -inf }
 0x265   : > { %18861 = vst [vmem:[#allocation121_spill] sm:$0xff] %v16125_v48  ;;  %18862 = vst [vmem:[#allocation122_spill] sm:$0xff] %v16127_v30  ;;  %v7754_v2 = vsel %vm7609_vm2, %v16127_v30, -inf  ;;  %v16133_v44 = vpop.f32.mrb[152].mxu1 }
 0x266   : > { %18863 = vst [vmem:[#allocation123_spill] sm:$0xff] %v16133_v44  ;;  %7758 = vmax.xlane.f32.xlu1 %v7757_v59  ;;  %v16135_v19 = vpop.f32.mrb[153].mxu1  ;;  %v7763_v48 = vsel %vm7609_vm2, %v16133_v44, -inf }
 0x267   : > { %18864 = vst [vmem:[#allocation124_spill] sm:$0xff] %v16135_v19  ;;  %v16137_v21 = vpop.xlane.xlu1 %9206  ;;  %7755 = vmax.xlane.f32.xlu0 %v7754_v2  ;;  %v7760_v17 = vsel %vm7609_vm2, %v16135_v19, -inf }
 0x268   : > { %18865 = vst [vmem:[#allocation125_spill] sm:$0xff] %v16137_v21  ;;  %v16139_v45 = vpop.xlane.xlu0 %9203 }
 0x269   : > { %18866 = vst [vmem:[#allocation126_spill] sm:$0xff] %v16139_v45 }
 0x26a   : > { %7764 = vmax.xlane.f32.xlu1 %v7763_v48 }
 0x26b   : > { %v16145_v32 = vpop.xlane.xlu1 %9212  ;;  %7761 = vmax.xlane.f32.xlu0 %v7760_v17  ;;  %v16147_v27 = vpop.f32.mrb[154].mxu0 }
 0x26c   : > { %18867 = vst [vmem:[#allocation127_spill] sm:$0xff] %v16145_v32  ;;  %18868 = vst [vmem:[#allocation128_spill] sm:$0xff] %v16147_v27  ;;  %v16149_v59 = vpop.xlane.xlu0 %9209  ;;  %v16151_v40 = vpop.f32.mrb[155].mxu0  ;;  %v7769_v2 = vsel %vm7609_vm2, %v16147_v27, -inf }
 0x26d   : > { %18869 = vst [vmem:[#allocation129_spill] sm:$0xff] %v16149_v59  ;;  %18870 = vst [vmem:[#allocation130_spill] sm:$0xff] %v16151_v40  ;;  %v7766_v45 = vsel %vm7609_vm2, %v16151_v40, -inf  ;;  %v16157_v21 = vpop.f32.mrb[154].mxu1 }
 0x26e   : > { %18871 = vst [vmem:[#allocation131_spill] sm:$0xff] %v16157_v21  ;;  %7770 = vmax.xlane.f32.xlu1 %v7769_v2  ;;  %v16159_v48 = vpop.f32.mrb[155].mxu1  ;;  %v7775_v59 = vsel %vm7609_vm2, %v16157_v21, -inf }
 0x26f   : > { %18872 = vst [vmem:[#allocation132_spill] sm:$0xff] %v16159_v48  ;;  %v16161_v11 = vpop.xlane.xlu1 %9218  ;;  %7767 = vmax.xlane.f32.xlu0 %v7766_v45  ;;  %v7772_v32 = vsel %vm7609_vm2, %v16159_v48, -inf }
 0x270   : > { %18873 = vst [vmem:[#allocation133_spill] sm:$0xff] %v16161_v11  ;;  %v16163_v17 = vpop.xlane.xlu0 %9215 }
 0x271   : > { %18874 = vst [vmem:[#allocation134_spill] sm:$0xff] %v16163_v17 }
 0x272   : > { %7776 = vmax.xlane.f32.xlu1 %v7775_v59 }
 0x273   : > { %v16169_v37 = vpop.xlane.xlu1 %9224  ;;  %7773 = vmax.xlane.f32.xlu0 %v7772_v32  ;;  %v16171_v14 = vpop.f32.mrb[156].mxu0 }
 0x274   : > { %18875 = vst [vmem:[#allocation135_spill] sm:$0xff] %v16169_v37  ;;  %18876 = vst [vmem:[#allocation136_spill] sm:$0xff] %v16171_v14  ;;  %v16173_v2 = vpop.xlane.xlu0 %9221  ;;  %v16175_v23 = vpop.f32.mrb[157].mxu0  ;;  %v7781_v45 = vsel %vm7609_vm2, %v16171_v14, -inf }
 0x275   : > { %18877 = vst [vmem:[#allocation137_spill] sm:$0xff] %v16173_v2  ;;  %18878 = vst [vmem:[#allocation138_spill] sm:$0xff] %v16175_v23  ;;  %v7778_v17 = vsel %vm7609_vm2, %v16175_v23, -inf  ;;  %v16181_v11 = vpop.f32.mrb[156].mxu1 }
 0x276   : > { %18879 = vst [vmem:[#allocation139_spill] sm:$0xff] %v16181_v11  ;;  %7782 = vmax.xlane.f32.xlu1 %v7781_v45  ;;  %v16183_v59 = vpop.f32.mrb[157].mxu1  ;;  %v7787_v2 = vsel %vm7609_vm2, %v16181_v11, -inf }
 0x277   : > { %18880 = vst [vmem:[#allocation140_spill] sm:$0xff] %v16183_v59  ;;  %v16185_v7 = vpop.xlane.xlu1 %9230  ;;  %7779 = vmax.xlane.f32.xlu0 %v7778_v17  ;;  %v7784_v37 = vsel %vm7609_vm2, %v16183_v59, -inf }
 0x278   : > { %18881 = vst [vmem:[#allocation141_spill] sm:$0xff] %v16185_v7  ;;  %v16187_v32 = vpop.xlane.xlu0 %9227 }
 0x279   : > { %18882 = vst [vmem:[#allocation142_spill] sm:$0xff] %v16187_v32 }
 0x27a   : > { %7788 = vmax.xlane.f32.xlu1 %v7787_v2 }
 0x27b   : > { %v16193_v14 = vpop.xlane.xlu1 %9236  ;;  %7785 = vmax.xlane.f32.xlu0 %v7784_v37  ;;  %v16195_v23 = vpop.f32.mrb[158].mxu0 }
 0x27c   : > { %18883 = vst [vmem:[#allocation143_spill] sm:$0xff] %v16193_v14  ;;  %18884 = vst [vmem:[#allocation144_spill] sm:$0xff] %v16195_v23  ;;  %v16197_v45 = vpop.xlane.xlu0 %9233  ;;  %v16199_v48 = vpop.f32.mrb[159].mxu0  ;;  %v7793_v17 = vsel %vm7609_vm2, %v16195_v23, -inf }
 0x27d   : > { %18885 = vst [vmem:[#allocation145_spill] sm:$0xff] %v16197_v45  ;;  %18886 = vst [vmem:[#allocation146_spill] sm:$0xff] %v16199_v48  ;;  %v7790_v32 = vsel %vm7609_vm2, %v16199_v48, -inf  ;;  %v16205_v7 = vpop.f32.mrb[158].mxu1 }
 0x27e   : > { %18887 = vst [vmem:[#allocation147_spill] sm:$0xff] %v16205_v7  ;;  %7794 = vmax.xlane.f32.xlu1 %v7793_v17  ;;  %v16207_v2 = vpop.f32.mrb[159].mxu1  ;;  %v7799_v45 = vsel %vm7609_vm2, %v16205_v7, -inf }
 0x27f   : > { %18888 = vst [vmem:[#allocation148_spill] sm:$0xff] %v16207_v2  ;;  %v16209_v59 = vpop.xlane.xlu1 %9242  ;;  %7791 = vmax.xlane.f32.xlu0 %v7790_v32  ;;  %v7796_v14 = vsel %vm7609_vm2, %v16207_v2, -inf }
 0x280   : > { %18889 = vst [vmem:[#allocation149_spill] sm:$0xff] %v16209_v59  ;;  %v16211_v37 = vpop.xlane.xlu0 %9239 }
 0x281   : > { %18890 = vst [vmem:[#allocation150_spill] sm:$0xff] %v16211_v37 }
 0x282   : > { %7800 = vmax.xlane.f32.xlu1 %v7799_v45 }
 0x283   : > { %v16217_v23 = vpop.xlane.xlu1 %9248  ;;  %7797 = vmax.xlane.f32.xlu0 %v7796_v14  ;;  %v16219_v48 = vpop.f32.mrb[160].mxu0 }
 0x284   : > { %18891 = vst [vmem:[#allocation151_spill] sm:$0xff] %v16217_v23  ;;  %18892 = vst [vmem:[#allocation152_spill] sm:$0xff] %v16219_v48  ;;  %v16221_v17 = vpop.xlane.xlu0 %9245  ;;  %v16223_v11 = vpop.f32.mrb[161].mxu0  ;;  %v7805_v32 = vsel %vm7609_vm2, %v16219_v48, -inf }
 0x285   : > { %18893 = vst [vmem:[#allocation153_spill] sm:$0xff] %v16221_v17  ;;  %18894 = vst [vmem:[#allocation154_spill] sm:$0xff] %v16223_v11  ;;  %v7802_v37 = vsel %vm7609_vm2, %v16223_v11, -inf  ;;  %v16229_v59 = vpop.f32.mrb[160].mxu1 }
 0x286   : > { %18895 = vst [vmem:[#allocation155_spill] sm:$0xff] %v16229_v59  ;;  %7806 = vmax.xlane.f32.xlu1 %v7805_v32  ;;  %v16231_v45 = vpop.f32.mrb[161].mxu1  ;;  %v7811_v17 = vsel %vm7609_vm2, %v16229_v59, -inf }
 0x287   : > { %18896 = vst [vmem:[#allocation156_spill] sm:$0xff] %v16231_v45  ;;  %v16233_v2 = vpop.xlane.xlu1 %9254  ;;  %7803 = vmax.xlane.f32.xlu0 %v7802_v37  ;;  %v7808_v23 = vsel %vm7609_vm2, %v16231_v45, -inf }
 0x288   : > { %18897 = vst [vmem:[#allocation157_spill] sm:$0xff] %v16233_v2  ;;  %v16235_v14 = vpop.xlane.xlu0 %9251 }
 0x289   : > { %18898 = vst [vmem:[#allocation158_spill] sm:$0xff] %v16235_v14 }
 0x28a   : > { %7812 = vmax.xlane.f32.xlu1 %v7811_v17 }
 0x28b   : > { %v16241_v48 = vpop.xlane.xlu1 %9260  ;;  %7809 = vmax.xlane.f32.xlu0 %v7808_v23  ;;  %v16243_v11 = vpop.f32.mrb[162].mxu0 }
 0x28c   : > { %18899 = vst [vmem:[#allocation159_spill] sm:$0xff] %v16241_v48  ;;  %18900 = vst [vmem:[#allocation160_spill] sm:$0xff] %v16243_v11  ;;  %v16245_v32 = vpop.xlane.xlu0 %9257  ;;  %v16247_v7 = vpop.f32.mrb[163].mxu0  ;;  %v7817_v37 = vsel %vm7609_vm2, %v16243_v11, -inf }
 0x28d   : > { %18901 = vst [vmem:[#allocation161_spill] sm:$0xff] %v16245_v32  ;;  %18902 = vst [vmem:[#allocation162_spill] sm:$0xff] %v16247_v7  ;;  %v7814_v14 = vsel %vm7609_vm2, %v16247_v7, -inf  ;;  %v16253_v2 = vpop.f32.mrb[162].mxu1 }
 0x28e   : > { %18903 = vst [vmem:[#allocation163_spill] sm:$0xff] %v16253_v2  ;;  %7818 = vmax.xlane.f32.xlu1 %v7817_v37  ;;  %v16255_v17 = vpop.f32.mrb[163].mxu1  ;;  %v7823_v32 = vsel %vm7609_vm2, %v16253_v2, -inf }
 0x28f   : > { %18904 = vst [vmem:[#allocation164_spill] sm:$0xff] %v16255_v17  ;;  %v16257_v45 = vpop.xlane.xlu1 %9266  ;;  %7815 = vmax.xlane.f32.xlu0 %v7814_v14  ;;  %v7820_v48 = vsel %vm7609_vm2, %v16255_v17, -inf }
 0x290   : > { %18905 = vst [vmem:[#allocation165_spill] sm:$0xff] %v16257_v45  ;;  %v16259_v23 = vpop.xlane.xlu0 %9263 }
 0x291   : > { %18906 = vst [vmem:[#allocation166_spill] sm:$0xff] %v16259_v23 }
 0x292   : > { %7824 = vmax.xlane.f32.xlu1 %v7823_v32 }
 0x293   : > { %v16265_v11 = vpop.xlane.xlu1 %7620  ;;  %7821 = vmax.xlane.f32.xlu0 %v7820_v48  ;;  %v16267_v7 = vpop.f32.mrb[164].mxu0 }
 0x294   : > { %18907 = vst [vmem:[#allocation167_spill] sm:$0xff] %v16265_v11  ;;  %18908 = vst [vmem:[#allocation168_spill] sm:$0xff] %v16267_v7  ;;  %v7997_v37 = vsub.f32 %v15751_v22, %v16265_v11  ;;  %v16271_v59 = vpop.xlane.xlu0 %7614  ;;  %v16273_v14 = vpop.f32.mrb[165].mxu0  ;;  %v7829_v23 = vsel %vm7609_vm2, %v16267_v7, -inf }
 0x295   : > { %18909 = vst [vmem:[#allocation169_spill] sm:$0xff] %v16271_v59  ;;  %18910 = vst [vmem:[#allocation170_spill] sm:$0xff] %v16273_v14  ;;  %v7995_v32 = vsub.f32 %v15742_v46, %v16271_v59  ;;  %v7826_v45 = vsel %vm7609_vm2, %v16273_v14, -inf  ;;  %v16281_v17 = vpop.f32.mrb[164].mxu1 }
 0x296   : > { %18911 = vst [vmem:[#allocation171_spill] sm:$0xff] %v16281_v17  ;;  %7830 = vmax.xlane.f32.xlu1 %v7829_v23  ;;  %v16283_v48 = vpop.f32.mrb[165].mxu1  ;;  %v8128_v21 = vmul.f32 1.442695, %v7997_v37  ;;  %v7835_v14 = vsel %vm7609_vm2, %v16281_v17, -inf }
 0x297   : > { %18912 = vst [vmem:[#allocation172_spill] sm:$0xff] %v16283_v48  ;;  %v8124_v2 = vmul.f32 1.442695, %v7995_v32  ;;  %v16285_v22 = vpop.xlane.xlu1 %7617  ;;  %7827 = vmax.xlane.f32.xlu0 %v7826_v45  ;;  %v7832_v23 = vsel %vm7609_vm2, %v16283_v48, -inf }
 0x298   : > { %18913 = vst [vmem:[#allocation173_spill] sm:$0xff] %v16285_v22  ;;  %v7996_v8 = vsub.f32 %v15764_v57, %v16285_v22  ;;  %v16289_v7 = vpop.xlane.xlu0 %7611 }
 0x299   : > { %18914 = vst [vmem:[#allocation174_spill] sm:$0xff] %v16289_v7  ;;  %v7994_v46 = vsub.f32 %v15766_v31, %v16289_v7  ;;  %12709 = vpow2.f32 %v8124_v2 }
 0x29a   : > { %7836 = vmax.xlane.f32.xlu1 %v7835_v14  ;;  %12711 = vpow2.f32 %v8128_v21  ;;  %v8126_v57 = vmul.f32 1.442695, %v7996_v8 }
 0x29b   : > { %v8122_v32 = vmul.f32 1.442695, %v7994_v46  ;;  %v16297_v59 = vpop.xlane.xlu1 %7626  ;;  %7833 = vmax.xlane.f32.xlu0 %v7832_v23  ;;  %v16299_v45 = vpop.f32.mrb[166].mxu0 }
 0x29c   : > { %18915 = vst [vmem:[#allocation175_spill] sm:$0xff] %v16297_v59  ;;  %18916 = vst [vmem:[#allocation176_spill] sm:$0xff] %v16299_v45  ;;  %v16301_v37 = vpop.xlane.xlu0 %7623  ;;  %v16303_v22 = vpop.f32.mrb[167].mxu0  ;;  %v7841_v31 = vsel %vm7609_vm2, %v16299_v45, -inf  ;;  %v7999_v21 = vsub.f32 %v15791_v18, %v16297_v59 }
 0x29d   : > { %18917 = vst [vmem:[#allocation177_spill] sm:$0xff] %v16301_v37  ;;  %18918 = vst [vmem:[#allocation178_spill] sm:$0xff] %v16303_v22  ;;  %v7838_v2 = vsel %vm7609_vm2, %v16303_v22, -inf  ;;  %v16309_v14 = vpop.f32.mrb[166].mxu1  ;;  %12713 = vpow2.f32 %v8122_v32  ;;  %v7998_v32 = vsub.f32 %v15797_v10, %v16301_v37 }
 0x29e   : > { %18919 = vst [vmem:[#allocation179_spill] sm:$0xff] %v16309_v14  ;;  %7842 = vmax.xlane.f32.xlu1 %v7841_v31  ;;  %v16311_v46 = vpop.f32.mrb[167].mxu1  ;;  %12715 = vpow2.f32 %v8126_v57  ;;  %v7847_v45 = vsel %vm7609_vm2, %v16309_v14, -inf  ;;  %v8132_v48 = vmul.f32 1.442695, %v7999_v21 }
 0x29f   : > { %18920 = vst [vmem:[#allocation180_spill] sm:$0xff] %v16311_v46  ;;  %v16313_v23 = vpop.xlane.xlu1 %7632  ;;  %7839 = vmax.xlane.f32.xlu0 %v7838_v2  ;;  %v7844_v22 = vsel %vm7609_vm2, %v16311_v46, -inf }
 0x2a0   : > { %18921 = vst [vmem:[#allocation181_spill] sm:$0xff] %v16313_v23  ;;  %v16317_v8 = vpop.xlane.xlu0 %7629  ;;  %v8001_v18 = vsub.f32 %v15808_v0, %v16313_v23  ;;  %12717 = vpow2.f32 %v8132_v48 }
 0x2a1   : > { %18922 = vst [vmem:[#allocation182_spill] sm:$0xff] %v16317_v8  ;;  %v8000_v0 = vsub.f32 %v15813_v39, %v16317_v8 }
 0x2a2   : > { %7848 = vmax.xlane.f32.xlu1 %v7847_v45  ;;  %v8136_v21 = vmul.f32 1.442695, %v8001_v18 }
 0x2a3   : > { %v16325_v31 = vpop.xlane.xlu1 %7638  ;;  %7845 = vmax.xlane.f32.xlu0 %v7844_v22  ;;  %v16327_v2 = vpop.f32.mrb[168].mxu0  ;;  %v8130_v22 = vmul.f32 1.442695, %v7998_v32  ;;  %v8134_v48 = vmul.f32 1.442695, %v8000_v0 }
 0x2a4   : > { %18923 = vst [vmem:[#allocation183_spill] sm:$0xff] %v16325_v31  ;;  %18924 = vst [vmem:[#allocation184_spill] sm:$0xff] %v16327_v2  ;;  %v12710_v57 = vpop.eup %12709  ;;  %v16331_v17 = vpop.xlane.xlu0 %7635 }
 0x2a5   : > { %18925 = vst [vmem:[#allocation185_spill] sm:$0xff] %v16331_v17  ;;  %v16333_v14 = vpop.f32.mrb[169].mxu0  ;;  %v8381_v45 = vsel %vm7609_vm2, %v12710_v57, 0.0  ;;  %v16336_v46 = vpop.f32.mrb[168].mxu1  ;;  %12719 = vpow2.f32 %v8130_v22 }
 0x2a6   : > { %18926 = vst [vmem:[#allocation186_spill] sm:$0xff] %v16333_v14  ;;  %18927 = vst [vmem:[#allocation187_spill] sm:$0xff] %v16336_v46  ;;  %v12712_v59 = vpop.eup %12711  ;;  %8382 = vadd.xlane.f32.xlu1 %v8381_v45  ;;  %v16338_v10 = vpop.f32.mrb[169].mxu1  ;;  %12721 = vpow2.f32 %v8136_v21  ;;  %v8003_v21 = vsub.f32 %v15835_v63, %v16325_v31 }
 0x2a7   : > { %18928 = vst [vmem:[#allocation188_spill] sm:$0xff] %v16338_v10  ;;  %v16340_v37 = vpop.xlane.xlu1 %7644  ;;  %v12714_v7 = vpop.eup %12713  ;;  %v8387_v57 = vsel %vm7609_vm2, %v12712_v59, 0.0  ;;  %12723 = vpow2.f32 %v8134_v48 }
 0x2a8   : > { %18929 = vst [vmem:[#allocation189_spill] sm:$0xff] %v16340_v37  ;;  %v16344_v23 = vpop.xlane.xlu0 %7641  ;;  %v8378_v38 = vsel %vm7609_vm2, %v12714_v7, 0.0  ;;  %v12716_v11 = vpop.eup %12715  ;;  %v7853_v7 = vsel %vm7609_vm2, %v16327_v2, -inf  ;;  %v8140_v8 = vmul.f32 1.442695, %v8003_v21  ;;  %v8005_v63 = vsub.f32 %v15852_v5, %v16340_v37 }
 0x2a9   : > { %18930 = vst [vmem:[#allocation190_spill] sm:$0xff] %v16344_v23  ;;  %8379 = vadd.xlane.f32.xlu0 %v8378_v38  ;;  %v8384_v39 = vsel %vm7609_vm2, %v12716_v11, 0.0  ;;  %v7850_v11 = vsel %vm7609_vm2, %v16333_v14, -inf  ;;  %v8004_v37 = vsub.f32 %v15857_v49, %v16344_v23 }
 0x2aa   : > { %8388 = vadd.xlane.f32.xlu1 %v8387_v57  ;;  %v7859_v57 = vsel %vm7609_vm2, %v16336_v46, -inf  ;;  %v12718_v2 = vpop.eup %12717  ;;  %12725 = vpow2.f32 %v8140_v8  ;;  %v8144_v5 = vmul.f32 1.442695, %v8005_v63 }
 0x2ab   : > { %v16348_v45 = vpop.xlane.xlu1 %7650  ;;  %v16350_v32 = vpop.f32.mrb[170].mxu0  ;;  %v8142_v8 = vmul.f32 1.442695, %v8004_v37 }
 0x2ac   : > { %18931 = vst [vmem:[#allocation191_spill] sm:$0xff] %v16348_v45  ;;  %18932 = vst [vmem:[#allocation192_spill] sm:$0xff] %v16350_v32  ;;  %v16352_v18 = vpop.xlane.xlu0 %7647  ;;  %v16354_v40 = vpop.f32.mrb[171].mxu0  ;;  %v8007_v37 = vsub.f32 %v15879_v41, %v16348_v45 }
 0x2ad   : > { %18933 = vst [vmem:[#allocation193_spill] sm:$0xff] %v16352_v18  ;;  %18934 = vst [vmem:[#allocation194_spill] sm:$0xff] %v16354_v40  ;;  %v16359_v59 = vpop.f32.mrb[170].mxu1  ;;  %8385 = vadd.xlane.f32.xlu0 %v8384_v39  ;;  %v8002_v39 = vsub.f32 %v15841_v3, %v16331_v17 }
 0x2ae   : > { %18935 = vst [vmem:[#allocation195_spill] sm:$0xff] %v16359_v59  ;;  %7854 = vmax.xlane.f32.xlu1 %v7853_v7  ;;  %v16361_v38 = vpop.f32.mrb[171].mxu1  ;;  %v8148_v23 = vmul.f32 1.442695, %v8007_v37 }
 0x2af   : > { %18936 = vst [vmem:[#allocation196_spill] sm:$0xff] %v16361_v38  ;;  %v16363_v22 = vpop.xlane.xlu1 %7656  ;;  %v12720_v27 = vpop.eup %12719  ;;  %v8138_v21 = vmul.f32 1.442695, %v8002_v39 }
 0x2b0   : > { %18937 = vst [vmem:[#allocation197_spill] sm:$0xff] %v16363_v22  ;;  %v16367_v0 = vpop.xlane.xlu0 %7653  ;;  %v12722_v3 = vpop.eup %12721  ;;  %v8009_v41 = vsub.f32 %v15896_v52, %v16363_v22 }
 0x2b1   : > { %18938 = vst [vmem:[#allocation198_spill] sm:$0xff] %v16367_v0  ;;  %7851 = vmax.xlane.f32.xlu0 %v7850_v11  ;;  %v7856_v11 = vsel %vm7609_vm2, %v16338_v10, -inf  ;;  %v8390_v10 = vsel %vm7609_vm2, %v12720_v27, 0.0  ;;  %v12724_v24 = vpop.eup %12723  ;;  %12727 = vpow2.f32 %v8138_v21  ;;  %v7865_v27 = vsel %vm7609_vm2, %v16350_v32, -inf }
 0x2b2   : > { %7860 = vmax.xlane.f32.xlu1 %v7859_v57  ;;  %v8393_v57 = vsel %vm7609_vm2, %v12718_v2, 0.0  ;;  %v8399_v2 = vsel %vm7609_vm2, %v12722_v3, 0.0  ;;  %12729 = vpow2.f32 %v8144_v5  ;;  %v8396_v49 = vsel %vm7609_vm2, %v12724_v24, 0.0 }
 0x2b3   : > { %v16375_v7 = vpop.xlane.xlu1 %7662  ;;  %v16377_v48 = vpop.f32.mrb[172].mxu0  ;;  %12731 = vpow2.f32 %v8142_v8  ;;  %v7862_v24 = vsel %vm7609_vm2, %v16354_v40, -inf  ;;  %v8152_v52 = vmul.f32 1.442695, %v8009_v41  ;;  %v8008_v22 = vsub.f32 %v15901_v16, %v16367_v0 }
 0x2b4   : > { %18939 = vst [vmem:[#allocation199_spill] sm:$0xff] %v16375_v7  ;;  %18940 = vst [vmem:[#allocation200_spill] sm:$0xff] %v16377_v48  ;;  %v16381_v31 = vpop.xlane.xlu0 %7659  ;;  %v16383_v14 = vpop.f32.mrb[173].mxu0  ;;  %12733 = vpow2.f32 %v8148_v23 }
 0x2b5   : > { %18941 = vst [vmem:[#allocation201_spill] sm:$0xff] %v16381_v31  ;;  %18942 = vst [vmem:[#allocation202_spill] sm:$0xff] %v16383_v14  ;;  %v16388_v46 = vpop.f32.mrb[172].mxu1  ;;  %7857 = vmax.xlane.f32.xlu0 %v7856_v11  ;;  %v12726_v32 = vpop.eup %12725  ;;  %v8150_v23 = vmul.f32 1.442695, %v8008_v22  ;;  %v8011_v22 = vsub.f32 %v15923_v50, %v16375_v7 }
 0x2b6   : > { %18943 = vst [vmem:[#allocation203_spill] sm:$0xff] %v16388_v46  ;;  %8394 = vadd.xlane.f32.xlu1 %v8393_v57  ;;  %v16390_v17 = vpop.f32.mrb[173].mxu1 }
 0x2b7   : > { %18944 = vst [vmem:[#allocation204_spill] sm:$0xff] %v16390_v17  ;;  %v16392_v19 = vpop.xlane.xlu1 %7668  ;;  %v8156_v0 = vmul.f32 1.442695, %v8011_v22 }
 0x2b8   : > { %18945 = vst [vmem:[#allocation205_spill] sm:$0xff] %v16392_v19  ;;  %v16396_v44 = vpop.xlane.xlu0 %7665  ;;  %v8013_v50 = vsub.f32 %v15937_v47, %v16392_v19 }
 0x2b9   : > { %18946 = vst [vmem:[#allocation206_spill] sm:$0xff] %v16396_v44  ;;  %8391 = vadd.xlane.f32.xlu0 %v8390_v10 }
 0x2ba   : > { %8400 = vadd.xlane.f32.xlu1 %v8399_v2  ;;  %v7871_v2 = vsel %vm7609_vm2, %v16359_v59, -inf }
 0x2bb   : > { %v16400_v11 = vpop.xlane.xlu1 %7674  ;;  %v16402_v39 = vpop.f32.mrb[174].mxu0 }
 0x2bc   : > { %18947 = vst [vmem:[#allocation207_spill] sm:$0xff] %v16402_v39  ;;  %v16404_v63 = vpop.xlane.xlu0 %7671  ;;  %v16406_v57 = vpop.f32.mrb[175].mxu0 }
 0x2bd   : > { %18948 = vst [vmem:[#allocation208_spill] sm:$0xff] %v16406_v57  ;;  %v16411_v3 = vpop.f32.mrb[174].mxu1  ;;  %8397 = vadd.xlane.f32.xlu0 %v8396_v49  ;;  %v8006_v49 = vsub.f32 %v15885_v51, %v16352_v18  ;;  %v12728_v30 = vpop.eup %12727 }
 0x2be   : > { %18949 = vst [vmem:[#allocation209_spill] sm:$0xff] %v16411_v3  ;;  %7866 = vmax.xlane.f32.xlu1 %v7865_v27  ;;  %v16413_v10 = vpop.f32.mrb[175].mxu1  ;;  %v12730_v51 = vpop.eup %12729 }
 0x2bf   : > { %18950 = vst [vmem:[#allocation210_spill] sm:$0xff] %v16413_v10  ;;  %v16415_v21 = vpop.xlane.xlu1 %7680  ;;  %v8146_v37 = vmul.f32 1.442695, %v8006_v49  ;;  %v12732_v56 = vpop.eup %12731 }
 0x2c0   : > { %v16419_v5 = vpop.xlane.xlu0 %7677  ;;  %v8408_v16 = vsel %vm7609_vm2, %v12732_v56, 0.0  ;;  %v7874_v56 = vsel %vm7609_vm2, %v16383_v14, -inf }
 0x2c1   : > { %7863 = vmax.xlane.f32.xlu0 %v7862_v24  ;;  %v7868_v24 = vsel %vm7609_vm2, %v16361_v38, -inf  ;;  %v8402_v38 = vsel %vm7609_vm2, %v12728_v30, 0.0  ;;  %12735 = vpow2.f32 %v8146_v37  ;;  %v7877_v30 = vsel %vm7609_vm2, %v16377_v48, -inf  ;;  %v12734_v48 = vpop.eup %12733 }
 0x2c2   : > { %7872 = vmax.xlane.f32.xlu1 %v7871_v2  ;;  %v8405_v2 = vsel %vm7609_vm2, %v12726_v32, 0.0  ;;  %v8411_v32 = vsel %vm7609_vm2, %v12730_v51, 0.0  ;;  %12737 = vpow2.f32 %v8152_v52 }
 0x2c3   : > { %v16427_v27 = vpop.xlane.xlu1 %7686  ;;  %v16429_v8 = vpop.f32.mrb[176].mxu0  ;;  %12739 = vpow2.f32 %v8150_v23 }
 0x2c4   : > { %18951 = vst [vmem:[#allocation211_spill] sm:$0xff] %v16429_v8  ;;  %v16433_v45 = vpop.xlane.xlu0 %7683  ;;  %v16435_v40 = vpop.f32.mrb[177].mxu0  ;;  %12741 = vpow2.f32 %v8156_v0 }
 0x2c5   : > { %18952 = vst [vmem:[#allocation212_spill] sm:$0xff] %v16435_v40  ;;  %v16440_v59 = vpop.f32.mrb[176].mxu1  ;;  %7869 = vmax.xlane.f32.xlu0 %v7868_v24 }
 0x2c6   : > { %18953 = vst [vmem:[#allocation213_spill] sm:$0xff] %v16440_v59  ;;  %8406 = vadd.xlane.f32.xlu1 %v8405_v2  ;;  %v16442_v18 = vpop.f32.mrb[177].mxu1 }
 0x2c7   : > { %18954 = vst [vmem:[#allocation214_spill] sm:$0xff] %v16442_v18  ;;  %v16444_v28 = vpop.xlane.xlu1 %7692 }
 0x2c8   : > { %v16448_v55 = vpop.xlane.xlu0 %7689 }
 0x2c9   : > { %8403 = vadd.xlane.f32.xlu0 %v8402_v38 }
 0x2ca   : > { %8412 = vadd.xlane.f32.xlu1 %v8411_v32  ;;  %v7883_v32 = vsel %vm7609_vm2, %v16388_v46, -inf }
 0x2cb   : > { %v16452_v24 = vpop.xlane.xlu1 %7698  ;;  %v16454_v49 = vpop.f32.mrb[178].mxu0 }
 0x2cc   : > { %18955 = vst [vmem:[#allocation215_spill] sm:$0xff] %v16454_v49  ;;  %v16456_v41 = vpop.xlane.xlu0 %7695  ;;  %v16458_v2 = vpop.f32.mrb[179].mxu0 }
 0x2cd   : > { %18956 = vst [vmem:[#allocation216_spill] sm:$0xff] %v16458_v2  ;;  %v16463_v51 = vpop.f32.mrb[178].mxu1  ;;  %8409 = vadd.xlane.f32.xlu0 %v8408_v16  ;;  %v8010_v16 = vsub.f32 %v15929_v4, %v16381_v31  ;;  %v7880_v4 = vsel %vm7609_vm2, %v16390_v17, -inf  ;;  %v8417_v31 = vsel %vm7609_vm2, %v12734_v48, 0.0 }
 0x2ce   : > { %18957 = vst [vmem:[#allocation217_spill] sm:$0xff] %v16463_v51  ;;  %7878 = vmax.xlane.f32.xlu1 %v7877_v30  ;;  %v16465_v38 = vpop.f32.mrb[179].mxu1 }
 0x2cf   : > { %18958 = vst [vmem:[#allocation218_spill] sm:$0xff] %v16465_v38  ;;  %v16467_v37 = vpop.xlane.xlu1 %7704  ;;  %v8154_v14 = vmul.f32 1.442695, %v8010_v16 }
 0x2d0   : > { %v16471_v52 = vpop.xlane.xlu0 %7701 }
 0x2d1   : > { %7875 = vmax.xlane.f32.xlu0 %v7874_v56  ;;  %v12736_v56 = vpop.eup %12735  ;;  %12743 = vpow2.f32 %v8154_v14  ;;  %v7889_v14 = vsel %vm7609_vm2, %v16402_v39, -inf }
 0x2d2   : > { %7884 = vmax.xlane.f32.xlu1 %v7883_v32  ;;  %v8012_v32 = vsub.f32 %v15939_v15, %v16396_v44 }
 0x2d3   : > { %v16479_v30 = vpop.xlane.xlu1 %7710  ;;  %v16481_v23 = vpop.f32.mrb[180].mxu0 }
 0x2d4   : > { %18959 = vst [vmem:[#allocation219_spill] sm:$0xff] %v16479_v30  ;;  %18960 = vst [vmem:[#allocation220_spill] sm:$0xff] %v16481_v23  ;;  %v16487_v7 = vpop.xlane.xlu0 %7707  ;;  %v16489_v46 = vpop.f32.mrb[181].mxu0  ;;  %v8160_v30 = vmul.f32 1.442695, %v8013_v50 }
 0x2d5   : > { %18961 = vst [vmem:[#allocation221_spill] sm:$0xff] %v16487_v7  ;;  %18962 = vst [vmem:[#allocation222_spill] sm:$0xff] %v16489_v46  ;;  %v16496_v22 = vpop.f32.mrb[180].mxu1  ;;  %v12738_v23 = vpop.eup %12737  ;;  %7881 = vmax.xlane.f32.xlu0 %v7880_v4  ;;  %v8158_v15 = vmul.f32 1.442695, %v8012_v32 }
 0x2d6   : > { %18963 = vst [vmem:[#allocation223_spill] sm:$0xff] %v16496_v22  ;;  %8418 = vadd.xlane.f32.xlu1 %v8417_v31  ;;  %v16498_v47 = vpop.f32.mrb[181].mxu1  ;;  %v8414_v31 = vsel %vm7609_vm2, %v12736_v56, 0.0  ;;  %v8423_v4 = vsel %vm7609_vm2, %v12738_v23, 0.0  ;;  %v12740_v16 = vpop.eup %12739  ;;  %12745 = vpow2.f32 %v8160_v30 }
 0x2d7   : > { %18964 = vst [vmem:[#allocation224_spill] sm:$0xff] %v16498_v47  ;;  %v16500_v19 = vpop.xlane.xlu1 %7716  ;;  %v8420_v56 = vsel %vm7609_vm2, %v12740_v16, 0.0  ;;  %12747 = vpow2.f32 %v8158_v15  ;;  %v12742_v39 = vpop.eup %12741  ;;  %v8017_v16 = vsub.f32 %v15965_v42, %v16415_v21 }
 0x2d8   : > { %v16506_v7 = vpop.xlane.xlu0 %7713 }
 0x2d9   : > { %8415 = vadd.xlane.f32.xlu0 %v8414_v31  ;;  %v8168_v54 = vmul.f32 1.442695, %v8017_v16 }
 0x2da   : > { %8424 = vadd.xlane.f32.xlu1 %v8423_v4  ;;  %v8015_v4 = vsub.f32 %v15955_v60, %v16400_v11  ;;  %v8014_v60 = vsub.f32 %v15959_v13, %v16404_v63  ;;  %v7892_v13 = vsel %vm7609_vm2, %v16413_v10, -inf }
 0x2db   : > { %v16512_v0 = vpop.xlane.xlu1 %7722  ;;  %v16514_v50 = vpop.f32.mrb[182].mxu0 }
 0x2dc   : > { %18965 = vst [vmem:[#allocation225_spill] sm:$0xff] %v16514_v50  ;;  %v16518_v44 = vpop.xlane.xlu0 %7719  ;;  %v16520_v48 = vpop.f32.mrb[183].mxu0 }
 0x2dd   : > { %18966 = vst [vmem:[#allocation226_spill] sm:$0xff] %v16520_v48  ;;  %v16527_v31 = vpop.f32.mrb[182].mxu1  ;;  %8421 = vadd.xlane.f32.xlu0 %v8420_v56  ;;  %v7886_v56 = vsel %vm7609_vm2, %v16406_v57, -inf  ;;  %v8162_v57 = vmul.f32 1.442695, %v8014_v60 }
 0x2de   : > { %18967 = vst [vmem:[#allocation227_spill] sm:$0xff] %v16527_v31  ;;  %7890 = vmax.xlane.f32.xlu1 %v7889_v14  ;;  %v16529_v30 = vpop.f32.mrb[183].mxu1  ;;  %v7895_v14 = vsel %vm7609_vm2, %v16411_v3, -inf }
 0x2df   : > { %18968 = vst [vmem:[#allocation228_spill] sm:$0xff] %v16529_v30  ;;  %v16531_v32 = vpop.xlane.xlu1 %7728 }
 0x2e0   : > { %18969 = vst [vmem:[#allocation229_spill] sm:$0xff] %v16531_v32  ;;  %v16537_v17 = vpop.xlane.xlu0 %7725  ;;  %v8164_v32 = vmul.f32 1.442695, %v8015_v4 }
 0x2e1   : > { %18970 = vst [vmem:[#allocation230_spill] sm:$0xff] %v16537_v17  ;;  %7887 = vmax.xlane.f32.xlu0 %v7886_v56  ;;  %v12744_v56 = vpop.eup %12743 }
 0x2e2   : > { %7896 = vmax.xlane.f32.xlu1 %v7895_v14  ;;  %v12746_v6 = vpop.eup %12745  ;;  %12749 = vpow2.f32 %v8164_v32  ;;  %v8016_v14 = vsub.f32 %v15967_v20, %v16419_v5 }
 0x2e3   : > { %v16547_v15 = vpop.xlane.xlu1 %7734  ;;  %v16549_v23 = vpop.f32.mrb[184].mxu0  ;;  %12751 = vpow2.f32 %v8162_v57  ;;  %v7901_v57 = vsel %vm7609_vm2, %v16429_v8, -inf }
 0x2e4   : > { %18971 = vst [vmem:[#allocation231_spill] sm:$0xff] %v16547_v15  ;;  %18972 = vst [vmem:[#allocation232_spill] sm:$0xff] %v16549_v23  ;;  %v16555_v17 = vpop.xlane.xlu0 %7731  ;;  %v16557_v3 = vpop.f32.mrb[185].mxu0  ;;  %v8429_v23 = vsel %vm7609_vm2, %v12742_v39, 0.0  ;;  %12753 = vpow2.f32 %v8168_v54  ;;  %v8166_v20 = vmul.f32 1.442695, %v8016_v14 }
 0x2e5   : > { %18973 = vst [vmem:[#allocation233_spill] sm:$0xff] %v16555_v17  ;;  %18974 = vst [vmem:[#allocation234_spill] sm:$0xff] %v16557_v3  ;;  %v16564_v4 = vpop.f32.mrb[184].mxu1  ;;  %7893 = vmax.xlane.f32.xlu0 %v7892_v13  ;;  %v8435_v13 = vsel %vm7609_vm2, %v12746_v6, 0.0  ;;  %v12748_v60 = vpop.eup %12747 }
 0x2e6   : > { %18975 = vst [vmem:[#allocation235_spill] sm:$0xff] %v16564_v4  ;;  %8430 = vadd.xlane.f32.xlu1 %v8429_v23  ;;  %v16566_v42 = vpop.f32.mrb[185].mxu1  ;;  %v8426_v23 = vsel %vm7609_vm2, %v12744_v56, 0.0  ;;  %v8432_v56 = vsel %vm7609_vm2, %v12748_v60, 0.0  ;;  %12755 = vpow2.f32 %v8166_v20  ;;  %v18986_v20 = vld [vmem:[#allocation84_spill] sm:$0xff]  ;;  %v8021_v60 = vsub.f32 %v18989_v43, %v16444_v28 }
 0x2e7   : > { %18976 = vst [vmem:[#allocation236_spill] sm:$0xff] %v16566_v42  ;;  %v16568_v15 = vpop.xlane.xlu1 %7740 }
 0x2e8   : > { %18977 = vst [vmem:[#allocation237_spill] sm:$0xff] %v16568_v15  ;;  %v16574_v17 = vpop.xlane.xlu0 %7737 }
 0x2e9   : > { %8427 = vadd.xlane.f32.xlu0 %v8426_v23 }
 0x2ea   : > { %8436 = vadd.xlane.f32.xlu1 %v8435_v13  ;;  %v8019_v13 = vsub.f32 %v15979_v25, %v16427_v27  ;;  %v8018_v25 = vsub.f32 %v18986_v20, %v16433_v45  ;;  %v7904_v20 = vsel %vm7609_vm2, %v16442_v18, -inf }
 0x2eb   : > { %v16580_v32 = vpop.xlane.xlu1 %7746  ;;  %v16582_v16 = vpop.f32.mrb[186].mxu0 }
 0x2ec   : > { %18978 = vst [vmem:[#allocation238_spill] sm:$0xff] %v16580_v32  ;;  %18979 = vst [vmem:[#allocation239_spill] sm:$0xff] %v16582_v16  ;;  %v16586_v15 = vpop.xlane.xlu0 %7743  ;;  %v16588_v39 = vpop.f32.mrb[187].mxu0 }
 0x2ed   : > { %18980 = vst [vmem:[#allocation240_spill] sm:$0xff] %v16586_v15  ;;  %18981 = vst [vmem:[#allocation241_spill] sm:$0xff] %v16588_v39  ;;  %v16595_v23 = vpop.f32.mrb[186].mxu1  ;;  %8433 = vadd.xlane.f32.xlu0 %v8432_v56  ;;  %v7898_v56 = vsel %vm7609_vm2, %v16435_v40, -inf  ;;  %v12750_v8 = vpop.eup %12749  ;;  %v8170_v40 = vmul.f32 1.442695, %v8018_v25 }
 0x2ee   : > { %18982 = vst [vmem:[#allocation242_spill] sm:$0xff] %v16595_v23  ;;  %7902 = vmax.xlane.f32.xlu1 %v7901_v57  ;;  %v16597_v54 = vpop.f32.mrb[187].mxu1  ;;  %v7907_v57 = vsel %vm7609_vm2, %v16440_v59, -inf }
 0x2ef   : > { %18983 = vst [vmem:[#allocation243_spill] sm:$0xff] %v16597_v54  ;;  %v16599_v14 = vpop.xlane.xlu1 %7752 }
 0x2f0   : > { %18984 = vst [vmem:[#allocation244_spill] sm:$0xff] %v16599_v14  ;;  %v16605_v10 = vpop.xlane.xlu0 %7749  ;;  %v8172_v14 = vmul.f32 1.442695, %v8019_v13 }
 0x2f1   : > { %18985 = vst [vmem:[#allocation245_spill] sm:$0xff] %v16605_v10  ;;  %7899 = vmax.xlane.f32.xlu0 %v7898_v56  ;;  %v12752_v56 = vpop.eup %12751  ;;  %v18997_v10 = vld [vmem:[#allocation86_spill] sm:$0xff] }
 0x2f2   : > { %7908 = vmax.xlane.f32.xlu1 %v7907_v57  ;;  %v12754_v35 = vpop.eup %12753  ;;  %12757 = vpow2.f32 %v8172_v14  ;;  %v8020_v15 = vsub.f32 %v18997_v10, %v16448_v55 }
 0x2f3   : > { %v16615_v54 = vpop.xlane.xlu1 %7758  ;;  %v16617_v6 = vpop.f32.mrb[188].mxu0  ;;  %12759 = vpow2.f32 %v8170_v40  ;;  %v7913_v40 = vsel %vm7609_vm2, %v16454_v49, -inf  ;;  %v19027_v49 = vld [vmem:[#allocation3_spill] sm:$0xff] }
 0x2f4   : > { %18987 = vst [vmem:[#allocation84_spill] sm:$0xff] %v16615_v54  ;;  %18988 = vst [vmem:[#allocation246_spill] sm:$0xff] %v16617_v6  ;;  %v16623_v1 = vpop.xlane.xlu0 %7755  ;;  %v16625_v59 = vpop.f32.mrb[189].mxu0  ;;  %v8441_v6 = vsel %vm7609_vm2, %v12750_v8, 0.0  ;;  %v8174_v10 = vmul.f32 1.442695, %v8020_v15 }
 0x2f5   : > { %18991 = vst [vmem:[#allocation85_spill] sm:$0xff] %v16623_v1  ;;  %18992 = vst [vmem:[#allocation247_spill] sm:$0xff] %v16625_v59  ;;  %v16632_v13 = vpop.f32.mrb[188].mxu1  ;;  %7905 = vmax.xlane.f32.xlu0 %v7904_v20  ;;  %v8176_v59 = vmul.f32 1.442695, %v8021_v60  ;;  %v8447_v20 = vsel %vm7609_vm2, %v12754_v35, 0.0  ;;  %v12756_v25 = vpop.eup %12755 }
 0x2f6   : > { %18994 = vst [vmem:[#allocation248_spill] sm:$0xff] %v16632_v13  ;;  %8442 = vadd.xlane.f32.xlu1 %v8441_v6  ;;  %v16634_v43 = vpop.f32.mrb[189].mxu1  ;;  %v8438_v6 = vsel %vm7609_vm2, %v12752_v56, 0.0  ;;  %v19009_v15 = vld [vmem:[#allocation167_spill] sm:$0xff]  ;;  %v19025_v8 = vld [vmem:[#allocation5_spill] sm:$0xff] }
 0x2f7   : > { %18995 = vst [vmem:[#allocation249_spill] sm:$0xff] %v16634_v43  ;;  %v16636_v54 = vpop.xlane.xlu1 %7764  ;;  %12761 = vpow2.f32 %v8176_v59 }
 0x2f8   : > { %18996 = vst [vmem:[#allocation250_spill] sm:$0xff] %v16636_v54  ;;  %v16642_v57 = vpop.xlane.xlu0 %7761  ;;  %v19010_v54 = vld [vmem:[#allocation4_spill] sm:$0xff]  ;;  %12763 = vpow2.f32 %v8174_v10  ;;  %v19017_v10 = vld [vmem:[#allocation2_spill] sm:$0xff] }
 0x2f9   : > { %18999 = vst [vmem:[#allocation86_spill] sm:$0xff] %v16642_v57  ;;  %8439 = vadd.xlane.f32.xlu0 %v8438_v6  ;;  %v8444_v6 = vsel %vm7609_vm2, %v12756_v25, 0.0 }
 0x2fa   : > { %8448 = vadd.xlane.f32.xlu1 %v8447_v20 }
 0x2fb   : > { %v16648_v14 = vpop.xlane.xlu1 %7770  ;;  %v16650_v60 = vpop.f32.mrb[190].mxu0 }
 0x2fc   : > { %19001 = vst [vmem:[#allocation251_spill] sm:$0xff] %v16648_v14  ;;  %19002 = vst [vmem:[#allocation252_spill] sm:$0xff] %v16650_v60  ;;  %v16654_v1 = vpop.xlane.xlu0 %7767  ;;  %v16656_v13 = vpop.f32.mrb[191].mxu0  ;;  %v9277_v60 = vsub.f32 %v19010_v54, %v19009_v15  ;;  %v7919_v54 = vsel %vm7609_vm2, %v16463_v51, -inf }
 0x2fd   : > { %19004 = vst [vmem:[#allocation253_spill] sm:$0xff] %v16654_v1  ;;  %19005 = vst [vmem:[#allocation254_spill] sm:$0xff] %v16656_v13  ;;  %v16663_v20 = vpop.f32.mrb[190].mxu1  ;;  %8445 = vadd.xlane.f32.xlu0 %v8444_v6  ;;  %v19012_v13 = vld [vmem:[#allocation90_spill] sm:$0xff]  ;;  %v12758_v15 = vpop.eup %12757  ;;  %v19018_v1 = vld [vmem:[#allocation92_spill] sm:$0xff] }
 0x2fe   : > { %19007 = vst [vmem:[#allocation255_spill] sm:$0xff] %v16663_v20  ;;  %7914 = vmax.xlane.f32.xlu1 %v7913_v40  ;;  %v16665_v59 = vpop.f32.mrb[191].mxu1  ;;  %v8023_v35 = vsub.f32 %v19012_v13, %v16452_v24  ;;  %v7910_v40 = vsel %vm7609_vm2, %v16458_v2, -inf  ;;  %v9408_v13 = vmul.f32 1.442695, %v9277_v60  ;;  %v19020_v6 = vld [vmem:[#allocation93_spill] sm:$0xff]  ;;  %v12760_v57 = vpop.eup %12759 }
 0x2ff   : > { %19008 = vst [vmem:[#allocation256_spill] sm:$0xff] %v16665_v59  ;;  %v16669_v14 = vpop.xlane.xlu1 %7776  ;;  %v19016_v59 = vld [vmem:[#allocation169_spill] sm:$0xff]  ;;  %v7916_v60 = vsel %vm7609_vm2, %v16465_v38, -inf  ;;  %v19029_v38 = vld [vmem:[#allocation94_spill] sm:$0xff] }
 0x300   : > { %19011 = vst [vmem:[#allocation167_spill] sm:$0xff] %v16669_v14  ;;  %v16675_v56 = vpop.xlane.xlu0 %7773  ;;  %v9275_v20 = vsub.f32 %v19017_v10, %v19016_v59  ;;  %v8022_v14 = vsub.f32 %v19018_v1, %v16456_v41  ;;  %v8180_v18 = vmul.f32 1.442695, %v8023_v35  ;;  %v8453_v1 = vsel %vm7609_vm2, %v12758_v15, 0.0  ;;  %v19024_v35 = vld [vmem:[#allocation173_spill] sm:$0xff]  ;;  %v19038_v15 = vld [vmem:[#allocation8_spill] sm:$0xff] }
 0x301   : > { %19014 = vst [vmem:[#allocation4_spill] sm:$0xff] %v16675_v56  ;;  %7911 = vmax.xlane.f32.xlu0 %v7910_v40  ;;  %v8025_v56 = vsub.f32 %v19020_v6, %v16467_v37  ;;  %v9276_v43 = vsub.f32 %v19025_v8, %v19024_v35  ;;  %12765 = vpow2.f32 %v9408_v13  ;;  %v19026_v6 = vld [vmem:[#allocation174_spill] sm:$0xff]  ;;  %v19032_v8 = vld [vmem:[#allocation175_spill] sm:$0xff]  ;;  %v19034_v13 = vld [vmem:[#allocation140_spill] sm:$0xff] }
 0x302   : > { %7920 = vmax.xlane.f32.xlu1 %v7919_v54  ;;  %v12762_v54 = vpop.eup %12761  ;;  %v9404_v10 = vmul.f32 1.442695, %v9275_v20  ;;  %v8178_v2 = vmul.f32 1.442695, %v8022_v14  ;;  %12767 = vpow2.f32 %v8180_v18  ;;  %v19041_v35 = vld [vmem:[#allocation9_spill] sm:$0xff] }
 0x303   : > { %v16687_v25 = vpop.xlane.xlu1 %7782  ;;  %v8184_v40 = vmul.f32 1.442695, %v8025_v56  ;;  %v8459_v14 = vsel %vm7609_vm2, %v12762_v54, 0.0  ;;  %v12764_v18 = vpop.eup %12763  ;;  %v9406_v56 = vmul.f32 1.442695, %v9276_v43  ;;  %v19049_v43 = vld [vmem:[#allocation11_spill] sm:$0xff] }
 0x304   : > { %19019 = vst [vmem:[#allocation90_spill] sm:$0xff] %v16687_v25  ;;  %v16693_v51 = vpop.xlane.xlu0 %7779  ;;  %v9274_v25 = vsub.f32 %v19027_v49, %v19026_v6  ;;  %v8450_v49 = vsel %vm7609_vm2, %v12760_v57, 0.0  ;;  %12769 = vpow2.f32 %v9404_v10  ;;  %v19035_v6 = vld [vmem:[#allocation177_spill] sm:$0xff]  ;;  %v19042_v10 = vld [vmem:[#allocation144_spill] sm:$0xff] }
 0x305   : > { %19022 = vst [vmem:[#allocation169_spill] sm:$0xff] %v16693_v51  ;;  %7917 = vmax.xlane.f32.xlu0 %v7916_v60  ;;  %v8024_v51 = vsub.f32 %v19029_v38, %v16471_v52  ;;  %v19033_v60 = vld [vmem:[#allocation6_spill] sm:$0xff]  ;;  %v19036_v38 = vld [vmem:[#allocation7_spill] sm:$0xff]  ;;  %12771 = vpow2.f32 %v8178_v2 }
 0x306   : > { %8454 = vadd.xlane.f32.xlu1 %v8453_v1  ;;  %v9279_v1 = vsub.f32 %v19033_v60, %v19032_v8  ;;  %v9278_v53 = vsub.f32 %v19036_v38, %v19035_v6  ;;  %v9402_v20 = vmul.f32 1.442695, %v9274_v25  ;;  %v19040_v60 = vld [vmem:[#allocation182_spill] sm:$0xff]  ;;  %12773 = vpow2.f32 %v8184_v40  ;;  %v19046_v38 = vld [vmem:[#allocation183_spill] sm:$0xff] }
 0x307   : > { %v16704_v32 = vpop.xlane.xlu1 %7788  ;;  %v9280_v57 = vsub.f32 %v19041_v35, %v19040_v60  ;;  %v8182_v54 = vmul.f32 1.442695, %v8024_v51  ;;  %12775 = vpow2.f32 %v9406_v56  ;;  %v19047_v35 = vld [vmem:[#allocation10_spill] sm:$0xff]  ;;  %v19048_v60 = vld [vmem:[#allocation185_spill] sm:$0xff] }
 0x308   : > { %19028 = vst [vmem:[#allocation2_spill] sm:$0xff] %v16704_v32  ;;  %v16710_v59 = vpop.xlane.xlu0 %7785  ;;  %v19037_v32 = vld [vmem:[#allocation181_spill] sm:$0xff]  ;;  %v9412_v6 = vmul.f32 1.442695, %v9279_v1  ;;  %v9283_v40 = vsub.f32 %v19047_v35, %v19046_v38  ;;  %12777 = vpow2.f32 %v9402_v20  ;;  %v9282_v1 = vsub.f32 %v19049_v43, %v19048_v60 }
 0x309   : > { %19031 = vst [vmem:[#allocation92_spill] sm:$0xff] %v16710_v59  ;;  %8451 = vadd.xlane.f32.xlu0 %v8450_v49  ;;  %v9281_v23 = vsub.f32 %v19038_v15, %v19037_v32  ;;  %v19045_v32 = vld [vmem:[#allocation220_spill] sm:$0xff]  ;;  %v9410_v15 = vmul.f32 1.442695, %v9278_v53  ;;  %v9414_v25 = vmul.f32 1.442695, %v9280_v57  ;;  %12779 = vpow2.f32 %v8182_v54 }
 0x30a   : > { %8460 = vadd.xlane.f32.xlu1 %v8459_v14  ;;  %v8456_v14 = vsel %vm7609_vm2, %v12764_v18, 0.0  ;;  %v7925_v2 = vsel %vm7609_vm2, %v19045_v32, -inf  ;;  %12781 = vpow2.f32 %v9412_v6  ;;  %v7931_v20 = vsel %vm7609_vm2, %v16496_v22, -inf  ;;  %v19054_v54 = vld [vmem:[#allocation189_spill] sm:$0xff]  ;;  %v19067_v22 = vld [vmem:[#allocation15_spill] sm:$0xff] }
 0x30b   : > { %v16722_v8 = vpop.xlane.xlu1 %7794  ;;  %v9416_v51 = vmul.f32 1.442695, %v9281_v23  ;;  %v16745_v53 = vpop.eup %12765  ;;  %v7922_v23 = vsel %vm7609_vm2, %v16489_v46, -inf  ;;  %12783 = vpow2.f32 %v9410_v15  ;;  %v9420_v57 = vmul.f32 1.442695, %v9283_v40 }
 0x30c   : > { %19039 = vst [vmem:[#allocation93_spill] sm:$0xff] %v16722_v8  ;;  %v16728_v59 = vpop.xlane.xlu0 %7791  ;;  %v12768_v43 = vpop.eup %12767  ;;  %v9418_v35 = vmul.f32 1.442695, %v9282_v1 }
 0x30d   : > { %19043 = vst [vmem:[#allocation173_spill] sm:$0xff] %v16728_v59  ;;  %8457 = vadd.xlane.f32.xlu0 %v8456_v14  ;;  %12785 = vpow2.f32 %v9416_v51  ;;  %v19057_v14 = vld [vmem:[#allocation219_spill] sm:$0xff] }
 0x30e   : > { %7926 = vmax.xlane.f32.xlu1 %v7925_v2  ;;  %v19055_v2 = vld [vmem:[#allocation12_spill] sm:$0xff]  ;;  %v16757_v60 = vpop.eup %12769  ;;  %12787 = vpow2.f32 %v9414_v25  ;;  %v19058_v59 = vsub.f32 %v16027_v34, %v19057_v14  ;;  %v8465_v25 = vsel %vm7609_vm2, %v12768_v43, 0.0  ;;  %v19071_v43 = vsub.f32 %v16037_v29, %v16500_v19  ;;  %v19075_v29 = vld [vmem:[#allocation197_spill] sm:$0xff] }
 0x30f   : > { %v16739_v8 = vpop.xlane.xlu1 %7800  ;;  %v9285_v38 = vsub.f32 %v19055_v2, %v19054_v54  ;;  %v19061_v54 = vld [vmem:[#allocation190_spill] sm:$0xff]  ;;  %v7928_v2 = vsel %vm7609_vm2, %v16498_v47, -inf  ;;  %12789 = vpow2.f32 %v9420_v57 }
 0x310   : > { %19050 = vst [vmem:[#allocation5_spill] sm:$0xff] %v16739_v8  ;;  %v16743_v32 = vpop.xlane.xlu0 %7797  ;;  %v8188_v46 = vmul.f32 1.442695, %v19058_v59  ;;  %v19064_v59 = vld [vmem:[#allocation191_spill] sm:$0xff]  ;;  %v19065_v8 = vld [vmem:[#allocation14_spill] sm:$0xff]  ;;  %12791 = vpow2.f32 %v9418_v35 }
 0x311   : > { %19052 = vst [vmem:[#allocation174_spill] sm:$0xff] %v16743_v32  ;;  %7923 = vmax.xlane.f32.xlu0 %v7922_v23  ;;  %v12772_v32 = vpop.eup %12771  ;;  %v19062_v23 = vld [vmem:[#allocation13_spill] sm:$0xff]  ;;  %v9424_v34 = vmul.f32 1.442695, %v9285_v38  ;;  %v9287_v15 = vsub.f32 %v19065_v8, %v19064_v59  ;;  %v8192_v57 = vmul.f32 1.442695, %v19071_v43 }
 0x312   : > { %7932 = vmax.xlane.f32.xlu1 %v7931_v20  ;;  %v9284_v20 = vsub.f32 %v19062_v23, %v19061_v54  ;;  %v12774_v56 = vpop.eup %12773  ;;  %v19068_v23 = vld [vmem:[#allocation221_spill] sm:$0xff]  ;;  %12793 = vpow2.f32 %v8188_v46  ;;  %v19076_v43 = vld [vmem:[#allocation16_spill] sm:$0xff]  ;;  %v19077_v8 = vld [vmem:[#allocation198_spill] sm:$0xff] }
 0x313   : > { %v16755_v6 = vpop.xlane.xlu1 %7806  ;;  %v19069_v1 = vsub.f32 %v16031_v58, %v19068_v23  ;;  %v16782_v47 = vpop.eup %12775  ;;  %12795 = vpow2.f32 %v9424_v34  ;;  %v9428_v59 = vmul.f32 1.442695, %v9287_v15  ;;  %v9289_v18 = vsub.f32 %v19076_v43, %v19075_v29 }
 0x314   : > { %19056 = vst [vmem:[#allocation3_spill] sm:$0xff] %v16755_v6  ;;  %v16764_v40 = vpop.xlane.xlu0 %7803  ;;  %v19066_v6 = vld [vmem:[#allocation193_spill] sm:$0xff]  ;;  %v19082_v15 = vsub.f32 %v16039_v33, %v16506_v7 }
 0x315   : > { %19060 = vst [vmem:[#allocation94_spill] sm:$0xff] %v16764_v40  ;;  %7929 = vmax.xlane.f32.xlu0 %v7928_v2  ;;  %v9286_v54 = vsub.f32 %v19067_v22, %v19066_v6  ;;  %v8186_v40 = vmul.f32 1.442695, %v19069_v1  ;;  %v16791_v2 = vpop.eup %12777  ;;  %v9422_v22 = vmul.f32 1.442695, %v9284_v20  ;;  %v8462_v1 = vsel %vm7609_vm2, %v12772_v32, 0.0 }
 0x316   : > { %8466 = vadd.xlane.f32.xlu1 %v8465_v25  ;;  %v8471_v25 = vsel %vm7609_vm2, %v12774_v56, 0.0  ;;  %v12780_v46 = vpop.eup %12779  ;;  %v19078_v20 = vld [vmem:[#allocation17_spill] sm:$0xff]  ;;  %v19080_v56 = vld [vmem:[#allocation199_spill] sm:$0xff]  ;;  %v9432_v33 = vmul.f32 1.442695, %v9289_v18 }
 0x317   : > { %v16780_v51 = vpop.xlane.xlu1 %7812  ;;  %v16799_v38 = vpop.eup %12781  ;;  %v9288_v49 = vsub.f32 %v19078_v20, %v19077_v8  ;;  %12797 = vpow2.f32 %v8186_v40  ;;  %v8468_v20 = vsel %vm7609_vm2, %v12780_v46, 0.0 }
 0x318   : > { %19070 = vst [vmem:[#allocation175_spill] sm:$0xff] %v16780_v51  ;;  %v16789_v35 = vpop.xlane.xlu0 %7809  ;;  %v9426_v51 = vmul.f32 1.442695, %v9286_v54  ;;  %v16805_v32 = vpop.eup %12783  ;;  %12799 = vpow2.f32 %v8192_v57  ;;  %v7937_v57 = vsel %vm7609_vm2, %v16514_v50, -inf  ;;  %v19091_v50 = vld [vmem:[#allocation163_spill] sm:$0xff] }
 0x319   : > { %19073 = vst [vmem:[#allocation6_spill] sm:$0xff] %v16789_v35  ;;  %8463 = vadd.xlane.f32.xlu0 %v8462_v1  ;;  %v19081_v35 = vld [vmem:[#allocation18_spill] sm:$0xff]  ;;  %v8190_v1 = vmul.f32 1.442695, %v19082_v15  ;;  %v16816_v43 = vpop.eup %12785  ;;  %12801 = vpow2.f32 %v9422_v22  ;;  %v19087_v15 = vld [vmem:[#allocation19_spill] sm:$0xff]  ;;  %v19088_v22 = vld [vmem:[#allocation205_spill] sm:$0xff] }
 0x31a   : > { %8472 = vadd.xlane.f32.xlu1 %v8471_v25  ;;  %v9291_v34 = vsub.f32 %v19081_v35, %v19080_v56  ;;  %v16823_v35 = vpop.eup %12787  ;;  %12803 = vpow2.f32 %v9428_v59  ;;  %v19086_v56 = vld [vmem:[#allocation201_spill] sm:$0xff]  ;;  %v19089_v25 = vld [vmem:[#allocation20_spill] sm:$0xff] }
 0x31b   : > { %v16803_v6 = vpop.xlane.xlu1 %7818  ;;  %v9290_v29 = vsub.f32 %v19087_v15, %v19086_v56  ;;  %12805 = vpow2.f32 %v9426_v51  ;;  %v9293_v58 = vsub.f32 %v19089_v25, %v19088_v22  ;;  %v16831_v46 = vpop.eup %12789  ;;  %v7934_v25 = vsel %vm7609_vm2, %v16520_v48, -inf  ;;  %v19096_v22 = vld [vmem:[#allocation22_spill] sm:$0xff] }
 0x31c   : > { %19079 = vst [vmem:[#allocation140_spill] sm:$0xff] %v16803_v6  ;;  %v16814_v54 = vpop.xlane.xlu0 %7815  ;;  %v9430_v6 = vmul.f32 1.442695, %v9288_v49  ;;  %12807 = vpow2.f32 %v8190_v1  ;;  %v16837_v40 = vpop.eup %12791  ;;  %v19095_v49 = vld [vmem:[#allocation164_spill] sm:$0xff]  ;;  %v9295_v59 = vsub.f32 %v19096_v22, %v16400_v11  ;;  %v19098_v56 = vsub.f32 %v16051_v61, %v16512_v0  ;;  %v19102_v61 = vld [vmem:[#allocation23_spill] sm:$0xff] }
 0x31d   : > { %19084 = vst [vmem:[#allocation177_spill] sm:$0xff] %v16814_v54  ;;  %8469 = vadd.xlane.f32.xlu0 %v8468_v20  ;;  %v9436_v54 = vmul.f32 1.442695, %v9291_v34  ;;  %v19093_v20 = vld [vmem:[#allocation206_spill] sm:$0xff]  ;;  %v7943_v34 = vsel %vm7609_vm2, %v16527_v31, -inf  ;;  %v12794_v1 = vpop.eup %12793  ;;  %12809 = vpow2.f32 %v9432_v33  ;;  %v19099_v31 = vld [vmem:[#allocation168_spill] sm:$0xff] }
 0x31e   : > { %7938 = vmax.xlane.f32.xlu1 %v7937_v57  ;;  %v19094_v57 = vld [vmem:[#allocation21_spill] sm:$0xff]  ;;  %v9434_v15 = vmul.f32 1.442695, %v9290_v29  ;;  %12811 = vpow2.f32 %v9430_v6  ;;  %v8196_v48 = vmul.f32 1.442695, %v19098_v56  ;;  %v9294_v56 = vsub.f32 %v19102_v61, %v16404_v63 }
 0x31f   : > { %v16829_v8 = vpop.xlane.xlu1 %7824  ;;  %v9292_v51 = vsub.f32 %v19094_v57, %v19093_v20  ;;  %v16851_v57 = vpop.eup %12795  ;;  %12813 = vpow2.f32 %v9436_v54  ;;  %v9444_v22 = vmul.f32 1.442695, %v9295_v59  ;;  %v19104_v6 = vsub.f32 %v16055_v36, %v16518_v44  ;;  %v19106_v59 = vld [vmem:[#allocation229_spill] sm:$0xff] }
 0x320   : > { %19090 = vst [vmem:[#allocation7_spill] sm:$0xff] %v16829_v8  ;;  %v16835_v18 = vpop.xlane.xlu0 %7821  ;;  %v9440_v8 = vmul.f32 1.442695, %v9293_v58  ;;  %v7940_v58 = vsel %vm7609_vm2, %v16529_v30, -inf  ;;  %12815 = vpow2.f32 %v9434_v15  ;;  %v19107_v63 = vsub.f32 %v16061_v9, %v19106_v59  ;;  %v19111_v9 = vld [vmem:[#allocation25_spill] sm:$0xff] }
 0x321   : > { %19092 = vst [vmem:[#allocation181_spill] sm:$0xff] %v16835_v18  ;;  %7935 = vmax.xlane.f32.xlu0 %v7934_v25  ;;  %v12798_v18 = vpop.eup %12797  ;;  %v9438_v11 = vmul.f32 1.442695, %v9292_v51  ;;  %v19103_v51 = vld [vmem:[#allocation24_spill] sm:$0xff]  ;;  %v8194_v30 = vmul.f32 1.442695, %v19104_v6 }
 0x322   : > { %7944 = vmax.xlane.f32.xlu1 %v7943_v34  ;;  %v8477_v34 = vsel %vm7609_vm2, %v12794_v1, 0.0  ;;  %v12800_v54 = vpop.eup %12799  ;;  %12817 = vpow2.f32 %v9440_v8  ;;  %v8200_v15 = vmul.f32 1.442695, %v19107_v63  ;;  %v8474_v6 = vsel %vm7609_vm2, %v12798_v18, 0.0  ;;  %v19114_v18 = vld [vmem:[#allocation27_spill] sm:$0xff] }
 0x323   : > { %v16849_v20 = vpop.xlane.xlu1 %7830  ;;  %v16867_v33 = vpop.eup %12801  ;;  %12819 = vpow2.f32 %v8196_v48  ;;  %v9442_v25 = vmul.f32 1.442695, %v9294_v56  ;;  %v9296_v63 = vsub.f32 %v19111_v9, %v16419_v5  ;;  %v19116_v56 = vld [vmem:[#allocation230_spill] sm:$0xff] }
 0x324   : > { %19097 = vst [vmem:[#allocation8_spill] sm:$0xff] %v16849_v20  ;;  %v16858_v29 = vpop.xlane.xlu0 %7827  ;;  %v9297_v20 = vsub.f32 %v19103_v51, %v16415_v21  ;;  %v16876_v1 = vpop.eup %12803  ;;  %12821 = vpow2.f32 %v9438_v11  ;;  %v8483_v51 = vsel %vm7609_vm2, %v12800_v54, 0.0  ;;  %v9298_v54 = vsub.f32 %v19114_v18, %v16433_v45 }
 0x325   : > { %19100 = vst [vmem:[#allocation182_spill] sm:$0xff] %v16858_v29  ;;  %7941 = vmax.xlane.f32.xlu0 %v7940_v58  ;;  %v16885_v61 = vpop.eup %12805  ;;  %12823 = vpow2.f32 %v9444_v22  ;;  %v19115_v22 = vld [vmem:[#allocation103_spill] sm:$0xff] }
 0x326   : > { %8478 = vadd.xlane.f32.xlu1 %v8477_v34  ;;  %v12808_v48 = vpop.eup %12807  ;;  %v9448_v34 = vmul.f32 1.442695, %v9297_v20  ;;  %12825 = vpow2.f32 %v8194_v30 }
 0x327   : > { %v16874_v29 = vpop.xlane.xlu1 %7836  ;;  %v16897_v21 = vpop.eup %12809  ;;  %12827 = vpow2.f32 %v8200_v15  ;;  %v8480_v45 = vsel %vm7609_vm2, %v12808_v48, 0.0  ;;  %v19122_v15 = vld [vmem:[#allocation232_spill] sm:$0xff] }
 0x328   : > { %19105 = vst [vmem:[#allocation9_spill] sm:$0xff] %v16874_v29  ;;  %v16883_v8 = vpop.xlane.xlu0 %7833  ;;  %v19112_v29 = vld [vmem:[#allocation26_spill] sm:$0xff]  ;;  %v7949_v18 = vsel %vm7609_vm2, %v19122_v15, -inf  ;;  %12829 = vpow2.f32 %v9442_v25 }
 0x329   : > { %19109 = vst [vmem:[#allocation144_spill] sm:$0xff] %v16883_v8  ;;  %8475 = vadd.xlane.f32.xlu0 %v8474_v6  ;;  %v9299_v58 = vsub.f32 %v19112_v29, %v16427_v27  ;;  %v19117_v8 = vsub.f32 %v19115_v22, %v19116_v56  ;;  %v19120_v27 = vld [vmem:[#allocation28_spill] sm:$0xff]  ;;  %12831 = vpow2.f32 %v9448_v34  ;;  %v7955_v34 = vsel %vm7609_vm2, %v16564_v4, -inf  ;;  %v19133_v4 = vld [vmem:[#allocation29_spill] sm:$0xff] }
 0x32a   : > { %8484 = vadd.xlane.f32.xlu1 %v8483_v51  ;;  %v16908_v51 = vpop.eup %12811  ;;  %v9301_v30 = vsub.f32 %v19120_v27, %v16444_v28  ;;  %v9450_v28 = vmul.f32 1.442695, %v9298_v54  ;;  %v19128_v54 = vld [vmem:[#allocation231_spill] sm:$0xff] }
 0x32b   : > { %v16895_v11 = vpop.xlane.xlu1 %7842  ;;  %v8198_v36 = vmul.f32 1.442695, %v19117_v8  ;;  %v16917_v22 = vpop.eup %12813  ;;  %v9446_v8 = vmul.f32 1.442695, %v9296_v63  ;;  %v9452_v6 = vmul.f32 1.442695, %v9299_v58 }
 0x32c   : > { %19113 = vst [vmem:[#allocation183_spill] sm:$0xff] %v16895_v11  ;;  %v16906_v20 = vpop.xlane.xlu0 %7839  ;;  %v16921_v5 = vpop.eup %12815  ;;  %v7946_v58 = vsel %vm7609_vm2, %v16557_v3, -inf }
 0x32d   : > { %19119 = vst [vmem:[#allocation10_spill] sm:$0xff] %v16906_v20  ;;  %8481 = vadd.xlane.f32.xlu0 %v8480_v45  ;;  %12833 = vpow2.f32 %v8198_v36  ;;  %v16927_v15 = vpop.eup %12817  ;;  %v9456_v20 = vmul.f32 1.442695, %v9301_v30  ;;  %v19127_v36 = vld [vmem:[#allocation107_spill] sm:$0xff]  ;;  %v19130_v30 = vld [vmem:[#allocation233_spill] sm:$0xff] }
 0x32e   : > { %7950 = vmax.xlane.f32.xlu1 %v7949_v18  ;;  %v12820_v45 = vpop.eup %12819  ;;  %12835 = vpow2.f32 %v9446_v8  ;;  %v19129_v18 = vsub.f32 %v19127_v36, %v19128_v54  ;;  %v19131_v63 = vsub.f32 %v16079_v62, %v19130_v30  ;;  %v9300_v8 = vsub.f32 %v19133_v4, %v16448_v55  ;;  %v19135_v62 = vld [vmem:[#allocation31_spill] sm:$0xff]  ;;  %v19136_v55 = vld [vmem:[#allocation237_spill] sm:$0xff] }
 0x32f   : > { %v16919_v11 = vpop.xlane.xlu1 %7848  ;;  %12837 = vpow2.f32 %v9452_v6  ;;  %v19134_v6 = vld [vmem:[#allocation30_spill] sm:$0xff]  ;;  %v19137_v4 = vsub.f32 %v16085_v26, %v19136_v55  ;;  %v19141_v26 = vld [vmem:[#allocation33_spill] sm:$0xff] }
 0x330   : > { %19123 = vst [vmem:[#allocation185_spill] sm:$0xff] %v16919_v11  ;;  %v16925_v9 = vpop.xlane.xlu0 %7845  ;;  %v8204_v48 = vmul.f32 1.442695, %v19129_v18  ;;  %v16938_v11 = vpop.eup %12821  ;;  %12839 = vpow2.f32 %v9450_v28  ;;  %v9303_v18 = vsub.f32 %v19134_v6, %v16452_v24  ;;  %v9302_v28 = vsub.f32 %v19135_v62, %v16456_v41  ;;  %v19140_v24 = vld [vmem:[#allocation32_spill] sm:$0xff] }
 0x331   : > { %19125 = vst [vmem:[#allocation11_spill] sm:$0xff] %v16925_v9  ;;  %7947 = vmax.xlane.f32.xlu0 %v7946_v58  ;;  %v8202_v9 = vmul.f32 1.442695, %v19131_v63  ;;  %v16943_v3 = vpop.eup %12823  ;;  %12841 = vpow2.f32 %v9456_v20  ;;  %v7952_v58 = vsel %vm7609_vm2, %v16566_v42, -inf  ;;  %v8208_v20 = vmul.f32 1.442695, %v19137_v4 }
 0x332   : > { %7956 = vmax.xlane.f32.xlu1 %v7955_v34  ;;  %19132 = vst [vmem:[#allocation189_spill] sm:$0xff] %v16943_v3  ;;  %v12826_v27 = vpop.eup %12825  ;;  %v8489_v34 = vsel %vm7609_vm2, %v12820_v45, 0.0  ;;  %12843 = vpow2.f32 %v8204_v48  ;;  %v9454_v45 = vmul.f32 1.442695, %v9300_v8  ;;  %v9305_v48 = vsub.f32 %v19140_v24, %v16467_v37 }
 0x333   : > { %v8383_v25 = vpop.xlane.xlu1 %8382  ;;  %v12828_v36 = vpop.eup %12827  ;;  %12845 = vpow2.f32 %v8202_v9  ;;  %v9304_v6 = vsub.f32 %v19141_v26, %v16471_v52  ;;  %v9458_v8 = vmul.f32 1.442695, %v9302_v28  ;;  %v19146_v52 = vld [vmem:[#allocation184_spill] sm:$0xff] }
 0x334   : > { %v16957_v42 = vpop.eup %12829  ;;  %12847 = vrcp.f32 %v8383_v25  ;;  %v8495_v41 = vsel %vm7609_vm2, %v12828_v36, 0.0  ;;  %v19142_v25 = vld [vmem:[#allocation34_spill] sm:$0xff]  ;;  %v9464_v28 = vmul.f32 1.442695, %v9305_v48 }
 0x335   : > { %7953 = vmax.xlane.f32.xlu0 %v7952_v58  ;;  %19138 = vst [vmem:[#allocation12_spill] sm:$0xff] %v16957_v42  ;;  %v16959_v29 = vpop.eup %12831  ;;  %v8486_v58 = vsel %vm7609_vm2, %v12826_v27, 0.0  ;;  %v9307_v62 = vsub.f32 %v19142_v25, %v19057_v14  ;;  %v19145_v27 = vsub.f32 %v16087_v12, %v16574_v17  ;;  %v19149_v12 = vld [vmem:[#allocation35_spill] sm:$0xff] }
 0x336   : > { %8490 = vadd.xlane.f32.xlu1 %v8489_v34  ;;  %v8380_v63 = vpop.xlane.xlu0 %8379  ;;  %19139 = vst [vmem:[#allocation219_spill] sm:$0xff] %v16959_v29  ;;  %v9460_v34 = vmul.f32 1.442695, %v9303_v18 }
 0x337   : > { %v8389_v3 = vpop.xlane.xlu1 %8388  ;;  %12849 = vrcp.f32 %v8380_v63  ;;  %v12834_v9 = vpop.eup %12833  ;;  %v8206_v36 = vmul.f32 1.442695, %v19145_v27  ;;  %v9468_v25 = vmul.f32 1.442695, %v9307_v62 }
 0x338   : > { %12851 = vrcp.f32 %v8389_v3  ;;  %v16971_v63 = vpop.eup %12835  ;;  %v8492_v14 = vsel %vm7609_vm2, %v12834_v9, 0.0 }
 0x339   : > { %8487 = vadd.xlane.f32.xlu0 %v8486_v58  ;;  %12853 = vpow2.f32 %v8208_v20  ;;  %19144 = vst [vmem:[#allocation13_spill] sm:$0xff] %v16971_v63  ;;  %v16978_v18 = vpop.eup %12837  ;;  %v7961_v20 = vsel %vm7609_vm2, %v16582_v16, -inf  ;;  %v9462_v58 = vmul.f32 1.442695, %v9304_v6  ;;  %v19159_v16 = vld [vmem:[#allocation238_spill] sm:$0xff] }
 0x33a   : > { %8496 = vadd.xlane.f32.xlu1 %v8495_v41  ;;  %v8386_v4 = vpop.xlane.xlu0 %8385  ;;  %19147 = vst [vmem:[#allocation191_spill] sm:$0xff] %v16978_v18  ;;  %v16983_v24 = vpop.eup %12839  ;;  %v9306_v41 = vsub.f32 %v19149_v12, %v19068_v23  ;;  %v7958_v23 = vsel %vm7609_vm2, %v16588_v39, -inf  ;;  %v19158_v39 = vld [vmem:[#allocation112_spill] sm:$0xff] }
 0x33b   : > { %v16969_v37 = vpop.xlane.xlu1 %7854  ;;  %12855 = vrcp.f32 %v8386_v4  ;;  %19148 = vst [vmem:[#allocation14_spill] sm:$0xff] %v16983_v24  ;;  %v16987_v26 = vpop.eup %12841  ;;  %v19153_v4 = vld [vmem:[#allocation186_spill] sm:$0xff] }
 0x33c   : > { %19143 = vst [vmem:[#allocation190_spill] sm:$0xff] %v16969_v37  ;;  %12857 = vpow2.f32 %v9454_v45  ;;  %19150 = vst [vmem:[#allocation193_spill] sm:$0xff] %v16987_v26  ;;  %v12844_v9 = vpop.eup %12843 }
 0x33d   : > { %12859 = vpow2.f32 %v9460_v34  ;;  %8493 = vadd.xlane.f32.xlu0 %v8492_v14  ;;  %v12846_v3 = vpop.eup %12845  ;;  %v19155_v14 = vld [vmem:[#allocation242_spill] sm:$0xff]  ;;  %v8501_v42 = vsel %vm7609_vm2, %v12844_v9, 0.0  ;;  %v13486_v9 = vld [vmem:[%s13847_s17 + $0x18] sm:$0xff] }
 0x33e   : > { %7962 = vmax.xlane.f32.xlu1 %v7961_v20  ;;  %12861 = vpow2.f32 %v9458_v8  ;;  %v16989_v45 = vpop.xlane.xlu0 %7851  ;;  %v7967_v8 = vsel %vm7609_vm2, %v19155_v14, -inf  ;;  %v12848_v62 = vpop.eup %12847  ;;  %v9466_v20 = vmul.f32 1.442695, %v9306_v41  ;;  %v19160_v14 = vsub.f32 %v19158_v39, %v19159_v16  ;;  %v13484_v34 = vld [vmem:[%s13847_s17] sm:$0xff] }
 0x33f   : > { %19151 = vst [vmem:[#allocation15_spill] sm:$0xff] %v16989_v45  ;;  %v16991_v48 = vpop.xlane.xlu1 %7860  ;;  %12863 = vpow2.f32 %v8206_v36  ;;  %v19156_v36 = vld [vmem:[#allocation36_spill] sm:$0xff]  ;;  %v9787_v24 = vmul.f32 %v12848_v62, %v16757_v60 }
 0x340   : > { %19152 = vst [vmem:[#allocation221_spill] sm:$0xff] %v16991_v48  ;;  %12865 = vpow2.f32 %v9464_v28  ;;  %v9309_v12 = vsub.f32 %v19156_v36, %v16500_v19  ;;  %v19157_v28 = vld [vmem:[#allocation37_spill] sm:$0xff]  ;;  %v8212_v26 = vmul.f32 1.442695, %v19160_v14  ;;  %v19162_v19 = vld [vmem:[#allocation114_spill] sm:$0xff]  ;;  %v19168_v60 = vld [vmem:[#allocation244_spill] sm:$0xff] }
 0x341   : > { %12867 = vpow2.f32 %v9462_v58  ;;  %7959 = vmax.xlane.f32.xlu0 %v7958_v23  ;;  %v12850_v6 = vpop.eup %12849  ;;  %v9308_v27 = vsub.f32 %v19157_v28, %v16506_v7  ;;  %v19163_v23 = vld [vmem:[#allocation240_spill] sm:$0xff]  ;;  %v13481_v28 = vld [vmem:[%s13853_s20 + $0x8] sm:$0xff] }
 0x342   : > { %7968 = vmax.xlane.f32.xlu1 %v7967_v8  ;;  %12869 = vpow2.f32 %v9468_v25  ;;  %v17009_v58 = vpop.xlane.xlu0 %7857  ;;  %v12852_v18 = vpop.eup %12851  ;;  %v19164_v8 = vsub.f32 %v19162_v19, %v19163_v23  ;;  %v9786_v7 = vmul.f32 %v12850_v6, %v16791_v2  ;;  %v19166_v25 = vld [vmem:[#allocation243_spill] sm:$0xff]  ;;  %v9915_v19 = vmul.f32 %v13481_v28, %v9787_v24 }
 0x343   : > { %19161 = vst [vmem:[#allocation197_spill] sm:$0xff] %v17009_v58  ;;  %v8395_v41 = vpop.xlane.xlu1 %8394  ;;  %v7964_v14 = vsel %vm7609_vm2, %v19166_v25, -inf  ;;  %v12854_v62 = vpop.eup %12853  ;;  %v9789_v29 = vmul.f32 %v12852_v18, %v16745_v53  ;;  %12871 = vpow2.f32 %v9466_v20  ;;  %v19167_v6 = vld [vmem:[#allocation115_spill] sm:$0xff]  ;;  %v13483_v25 = vld [vmem:[%s13853_s20] sm:$0xff]  ;;  %v13485_v53 = vld [vmem:[%s13853_s20 + $0x18] sm:$0xff] }
 0x344   : > { %v8210_v36 = vmul.f32 1.442695, %v19164_v8  ;;  %v13482_v8 = vld [vmem:[%s13847_s17 + $0x8] sm:$0xff]  ;;  %v19169_v58 = vsub.f32 %v19167_v6, %v19168_v60  ;;  %v9914_v48 = vmul.f32 %v13483_v25, %v9786_v7  ;;  %v10170_v28 = vmul.f32 %v13484_v34, %v9786_v7  ;;  %10043 = vst [vmem:[%s17018_s8 + $0x8] sm:$0xff] %v9915_v19  ;;  %v13488_v19 = vld [vmem:[%s13847_s17 + $0x10] sm:$0xff] }
 0x345   : > { %v10171_v63 = vmul.f32 %v13482_v8, %v9787_v24  ;;  %v12856_v2 = vpop.eup %12855  ;;  %7965 = vmax.xlane.f32.xlu0 %v7964_v14  ;;  %12873 = vpow2.f32 %v8212_v26  ;;  %v9917_v18 = vmul.f32 %v13485_v53, %v9789_v29  ;;  %v10173_v20 = vmul.f32 %v13486_v9, %v9789_v29  ;;  %v13487_v29 = vld [vmem:[%s13853_s20 + $0x10] sm:$0xff] }
 0x346   : > { %v8216_v39 = vmul.f32 1.442695, %v19169_v58  ;;  %8502 = vadd.xlane.f32.xlu1 %v8501_v42  ;;  %v17040_v24 = vpop.eup %12857  ;;  %v9788_v58 = vmul.f32 %v12856_v2, %v16782_v47  ;;  %v8392_v34 = vpop.xlane.xlu0 %8391  ;;  %v19172_v42 = vld [vmem:[#allocation38_spill] sm:$0xff]  ;;  %12875 = vpow2.f32 %v8210_v36  ;;  %10042 = vst [vmem:[%s17018_s8] sm:$0xff] %v9914_v48  ;;  %10298 = vst [vmem:[%s17024_s12] sm:$0xff] %v10170_v28  ;;  %v8507_v2 = vsel %vm7609_vm2, %v12854_v62, 0.0  ;;  %v19174_v48 = vld [vmem:[#allocation39_spill] sm:$0xff] }
 0x347   : > { %19170 = vst [vmem:[#allocation16_spill] sm:$0xff] %v17040_v24  ;;  %10299 = vst [vmem:[%s17024_s12 + $0x8] sm:$0xff] %v10171_v63  ;;  %v8401_v7 = vpop.xlane.xlu1 %8400  ;;  %v17047_v25 = vpop.eup %12859  ;;  %v9311_v14 = vsub.f32 %v19172_v42, %v16512_v0  ;;  %v8498_v63 = vsel %vm7609_vm2, %v12846_v3, 0.0  ;;  %12877 = vrcp.f32 %v8395_v41  ;;  %v9472_v0 = vmul.f32 1.442695, %v9309_v12  ;;  %v19176_v53 = vld [vmem:[#allocation40_spill] sm:$0xff] }
 0x348   : > { %19171 = vst [vmem:[#allocation198_spill] sm:$0xff] %v17047_v25  ;;  %v17054_v26 = vpop.eup %12861  ;;  %10045 = vst [vmem:[%s17018_s8 + $0x18] sm:$0xff] %v9917_v18  ;;  %v9916_v47 = vmul.f32 %v13487_v29, %v9788_v58  ;;  %v10172_v8 = vmul.f32 %v13488_v19, %v9788_v58  ;;  %v9310_v36 = vsub.f32 %v19174_v48, %v16518_v44  ;;  %12879 = vpow2.f32 %v8216_v39  ;;  %v19178_v12 = vld [vmem:[#allocation41_spill] sm:$0xff]  ;;  %v19179_v39 = vld [vmem:[#allocation116_spill] sm:$0xff] }
 0x349   : > { %19173 = vst [vmem:[#allocation17_spill] sm:$0xff] %v17054_v26  ;;  %10301 = vst [vmem:[%s17024_s12 + $0x18] sm:$0xff] %v10173_v20  ;;  %v12864_v6 = vpop.eup %12863  ;;  %8499 = vadd.xlane.f32.xlu0 %v8498_v63  ;;  %v9470_v28 = vmul.f32 1.442695, %v9308_v27  ;;  %v9313_v18 = vsub.f32 %v19176_v53, %v19106_v59  ;;  %12881 = vrcp.f32 %v8392_v34  ;;  %v9312_v44 = vsub.f32 %v19178_v12, %v19116_v56  ;;  %v19180_v20 = vld [vmem:[#allocation245_spill] sm:$0xff]  ;;  %v19182_v27 = vld [vmem:[#allocation192_spill] sm:$0xff] }
 0x34a   : > { %8508 = vadd.xlane.f32.xlu1 %v8507_v2  ;;  %v17063_v3 = vpop.eup %12865  ;;  %10044 = vst [vmem:[%s17018_s8 + $0x10] sm:$0xff] %v9916_v47  ;;  %10300 = vst [vmem:[%s17024_s12 + $0x10] sm:$0xff] %v10172_v8  ;;  %v8398_v41 = vpop.xlane.xlu0 %8397  ;;  %v19181_v58 = vsub.f32 %v19179_v39, %v19180_v20  ;;  %12883 = vrcp.f32 %v8401_v7  ;;  %v9476_v29 = vmul.f32 1.442695, %v9311_v14  ;;  %v8504_v34 = vsel %vm7609_vm2, %v12864_v6, 0.0  ;;  %v19184_v47 = vld [vmem:[#allocation246_spill] sm:$0xff] }
 0x34b   : > { %19175 = vst [vmem:[#allocation199_spill] sm:$0xff] %v17063_v3  ;;  %v17069_v9 = vpop.xlane.xlu1 %7866  ;;  %v17071_v62 = vpop.eup %12867  ;;  %12885 = vrcp.f32 %v8398_v41  ;;  %v7973_v19 = vsel %vm7609_vm2, %v19184_v47, -inf  ;;  %v9474_v8 = vmul.f32 1.442695, %v9310_v36  ;;  %v9480_v56 = vmul.f32 1.442695, %v9313_v18 }
 0x34c   : > { %19177 = vst [vmem:[#allocation18_spill] sm:$0xff] %v17071_v62  ;;  %v8214_v42 = vmul.f32 1.442695, %v19181_v58  ;;  %v17080_v59 = vpop.eup %12869  ;;  %12887 = vpow2.f32 %v9472_v0  ;;  %v9478_v53 = vmul.f32 1.442695, %v9312_v44  ;;  %v19186_v14 = vld [vmem:[#allocation194_spill] sm:$0xff] }
 0x34d   : > { %19183 = vst [vmem:[#allocation201_spill] sm:$0xff] %v17080_v59  ;;  %8505 = vadd.xlane.f32.xlu0 %v8504_v34  ;;  %12889 = vpow2.f32 %v9470_v28  ;;  %v17089_v48 = vpop.eup %12871  ;;  %v19187_v41 = vld [vmem:[#allocation195_spill] sm:$0xff]  ;;  %v19188_v36 = vld [vmem:[#allocation120_spill] sm:$0xff]  ;;  %v19193_v12 = vld [vmem:[#allocation42_spill] sm:$0xff] }
 0x34e   : > { %7974 = vmax.xlane.f32.xlu1 %v7973_v19  ;;  %v17085_v2 = vpop.xlane.xlu0 %7863  ;;  %19185 = vst [vmem:[#allocation19_spill] sm:$0xff] %v17089_v48  ;;  %12891 = vpow2.f32 %v8214_v42  ;;  %v19189_v39 = vld [vmem:[#allocation84_spill] sm:$0xff]  ;;  %v19191_v58 = vld [vmem:[#allocation247_spill] sm:$0xff]  ;;  %v19194_v6 = vld [vmem:[#allocation122_spill] sm:$0xff] }
 0x34f   : > { %v17087_v7 = vpop.xlane.xlu1 %7872  ;;  %v12874_v0 = vpop.eup %12873  ;;  %12893 = vpow2.f32 %v9476_v29  ;;  %v19190_v28 = vsub.f32 %v19188_v36, %v19189_v39  ;;  %v7970_v34 = vsel %vm7609_vm2, %v19191_v58, -inf  ;;  %v19192_v19 = vld [vmem:[#allocation248_spill] sm:$0xff]  ;;  %v9315_v29 = vsub.f32 %v19193_v12, %v19128_v54  ;;  %v19195_v47 = vld [vmem:[#allocation85_spill] sm:$0xff]  ;;  %v19200_v62 = vld [vmem:[#allocation123_spill] sm:$0xff] }
 0x350   : > { %v7979_v63 = vsel %vm7609_vm2, %v19192_v19, -inf  ;;  %v12876_v44 = vpop.eup %12875  ;;  %12895 = vpow2.f32 %v9474_v8  ;;  %v19196_v36 = vsub.f32 %v19194_v6, %v19195_v47  ;;  %v8513_v12 = vsel %vm7609_vm2, %v12874_v0, 0.0  ;;  %v13489_v25 = vld [vmem:[%s13853_s20 + $0x28] sm:$0xff] }
 0x351   : > { %v8220_v18 = vmul.f32 1.442695, %v19190_v28  ;;  %7971 = vmax.xlane.f32.xlu0 %v7970_v34  ;;  %v12878_v42 = vpop.eup %12877  ;;  %12897 = vpow2.f32 %v9480_v56  ;;  %v19199_v56 = vld [vmem:[#allocation249_spill] sm:$0xff]  ;;  %v19203_v0 = vld [vmem:[#allocation43_spill] sm:$0xff] }
 0x352   : > { %7980 = vmax.xlane.f32.xlu1 %v7979_v63  ;;  %v8218_v28 = vmul.f32 1.442695, %v19196_v36  ;;  %v17107_v48 = vpop.xlane.xlu0 %7869  ;;  %v12880_v59 = vpop.eup %12879  ;;  %12899 = vpow2.f32 %v9478_v53  ;;  %v9791_v8 = vmul.f32 %v12878_v42, %v16799_v38  ;;  %v19198_v63 = vld [vmem:[#allocation196_spill] sm:$0xff]  ;;  %v7976_v54 = vsel %vm7609_vm2, %v19199_v56, -inf  ;;  %v19201_v36 = vld [vmem:[#allocation250_spill] sm:$0xff]  ;;  %v13490_v38 = vld [vmem:[%s13847_s17 + $0x28] sm:$0xff] }
 0x353   : > { %19197 = vst [vmem:[#allocation205_spill] sm:$0xff] %v17107_v48  ;;  %v8407_v58 = vpop.xlane.xlu1 %8406  ;;  %v12882_v19 = vpop.eup %12881  ;;  %12901 = vpow2.f32 %v8220_v18  ;;  %v19202_v3 = vsub.f32 %v19200_v62, %v19201_v36  ;;  %v9484_v56 = vmul.f32 1.442695, %v9315_v29  ;;  %v9314_v24 = vsub.f32 %v19203_v0, %v19130_v30  ;;  %v19206_v0 = vld [vmem:[#allocation44_spill] sm:$0xff] }
 0x354   : > { %v12884_v6 = vpop.eup %12883  ;;  %v9919_v53 = vmul.f32 %v13489_v25, %v9791_v8  ;;  %v10175_v42 = vmul.f32 %v13490_v38, %v9791_v8  ;;  %v9790_v18 = vmul.f32 %v12882_v19, %v16805_v32  ;;  %12903 = vpow2.f32 %v8218_v28  ;;  %v13491_v8 = vld [vmem:[%s13853_s20 + $0x20] sm:$0xff] }
 0x355   : > { %v8224_v26 = vmul.f32 1.442695, %v19202_v3  ;;  %7977 = vmax.xlane.f32.xlu0 %v7976_v54  ;;  %v12886_v34 = vpop.eup %12885  ;;  %v9793_v3 = vmul.f32 %v12884_v6, %v16816_v43  ;;  %v13492_v19 = vld [vmem:[%s13847_s17 + $0x20] sm:$0xff]  ;;  %12905 = vrcp.f32 %v8407_v58  ;;  %v13493_v43 = vld [vmem:[%s13853_s20 + $0x38] sm:$0xff]  ;;  %v8519_v38 = vsel %vm7609_vm2, %v12880_v59, 0.0 }
 0x356   : > { %8514 = vadd.xlane.f32.xlu1 %v8513_v12  ;;  %v8404_v62 = vpop.xlane.xlu0 %8403  ;;  %v17124_v48 = vpop.eup %12887  ;;  %10047 = vst [vmem:[%s17018_s8 + $0x28] sm:$0xff] %v9919_v53  ;;  %10303 = vst [vmem:[%s17024_s12 + $0x28] sm:$0xff] %v10175_v42  ;;  %v9918_v32 = vmul.f32 %v13491_v8, %v9790_v18  ;;  %v10174_v29 = vmul.f32 %v13492_v19, %v9790_v18  ;;  %v9792_v54 = vmul.f32 %v12886_v34, %v16823_v35  ;;  %v13494_v12 = vld [vmem:[%s13847_s17 + $0x38] sm:$0xff]  ;;  %v13495_v35 = vld [vmem:[%s13853_s20 + $0x30] sm:$0xff] }
 0x357   : > { %v8413_v25 = vpop.xlane.xlu1 %8412  ;;  %19204 = vst [vmem:[#allocation20_spill] sm:$0xff] %v17124_v48  ;;  %v17131_v30 = vpop.eup %12889  ;;  %v9921_v28 = vmul.f32 %v13493_v43, %v9793_v3  ;;  %v10177_v6 = vmul.f32 %v13494_v12, %v9793_v3  ;;  %v8510_v53 = vsel %vm7609_vm2, %v12876_v44, 0.0  ;;  %v9317_v18 = vsub.f32 %v19206_v0, %v19136_v55  ;;  %v13496_v34 = vld [vmem:[%s13847_s17 + $0x30] sm:$0xff]  ;;  %v19209_v19 = vld [vmem:[#allocation86_spill] sm:$0xff]  ;;  %v19214_v12 = vld [vmem:[#allocation251_spill] sm:$0xff] }
 0x358   : > { %19205 = vst [vmem:[#allocation163_spill] sm:$0xff] %v17131_v30  ;;  %v12892_v42 = vpop.eup %12891  ;;  %12907 = vpow2.f32 %v8224_v26  ;;  %10046 = vst [vmem:[%s17018_s8 + $0x20] sm:$0xff] %v9918_v32  ;;  %v9920_v58 = vmul.f32 %v13495_v35, %v9792_v54  ;;  %v10176_v8 = vmul.f32 %v13496_v34, %v9792_v54  ;;  %v19208_v44 = vld [vmem:[#allocation124_spill] sm:$0xff] }
 0x359   : > { %10302 = vst [vmem:[%s17024_s12 + $0x20] sm:$0xff] %v10174_v29  ;;  %8511 = vadd.xlane.f32.xlu0 %v8510_v53  ;;  %v17143_v3 = vpop.eup %12893  ;;  %v19210_v59 = vsub.f32 %v19208_v44, %v19209_v19  ;;  %10049 = vst [vmem:[%s17018_s8 + $0x38] sm:$0xff] %v9921_v28  ;;  %12909 = vrcp.f32 %v8404_v62  ;;  %v19213_v29 = vld [vmem:[#allocation128_spill] sm:$0xff]  ;;  %v9482_v28 = vmul.f32 1.442695, %v9314_v24  ;;  %v8516_v62 = vsel %vm7609_vm2, %v12892_v42, 0.0 }
 0x35a   : > { %8520 = vadd.xlane.f32.xlu1 %v8519_v38  ;;  %19207 = vst [vmem:[#allocation206_spill] sm:$0xff] %v17143_v3  ;;  %10305 = vst [vmem:[%s17024_s12 + $0x38] sm:$0xff] %v10177_v6  ;;  %v8410_v55 = vpop.xlane.xlu0 %8409  ;;  %v17152_v32 = vpop.eup %12895  ;;  %v19215_v0 = vsub.f32 %v19213_v29, %v19214_v12  ;;  %12911 = vrcp.f32 %v8413_v25  ;;  %v19218_v6 = vld [vmem:[#allocation252_spill] sm:$0xff]  ;;  %v19220_v25 = vld [vmem:[#allocation130_spill] sm:$0xff] }
 0x35b   : > { %v8222_v43 = vmul.f32 1.442695, %v19210_v59  ;;  %v17150_v26 = vpop.xlane.xlu1 %7878  ;;  %19212 = vst [vmem:[#allocation164_spill] sm:$0xff] %v17152_v32  ;;  %10048 = vst [vmem:[%s17018_s8 + $0x30] sm:$0xff] %v9920_v58  ;;  %v17161_v35 = vpop.eup %12897  ;;  %12913 = vrcp.f32 %v8410_v55  ;;  %v7985_v34 = vsel %vm7609_vm2, %v19218_v6, -inf  ;;  %v19225_v42 = vld [vmem:[#allocation131_spill] sm:$0xff] }
 0x35c   : > { %19211 = vst [vmem:[#allocation21_spill] sm:$0xff] %v17150_v26  ;;  %v8228_v54 = vmul.f32 1.442695, %v19215_v0  ;;  %10304 = vst [vmem:[%s17024_s12 + $0x30] sm:$0xff] %v10176_v8  ;;  %v17166_v44 = vpop.eup %12899  ;;  %12915 = vpow2.f32 %v9484_v56  ;;  %v9488_v59 = vmul.f32 1.442695, %v9317_v18 }
 0x35d   : > { %19217 = vst [vmem:[#allocation22_spill] sm:$0xff] %v17161_v35  ;;  %19219 = vst [vmem:[#allocation168_spill] sm:$0xff] %v17166_v44  ;;  %8517 = vadd.xlane.f32.xlu0 %v8516_v62  ;;  %v12902_v58 = vpop.eup %12901  ;;  %12917 = vpow2.f32 %v8222_v43  ;;  %v19221_v8 = vld [vmem:[#allocation253_spill] sm:$0xff]  ;;  %v19226_v55 = vld [vmem:[#allocation167_spill] sm:$0xff] }
 0x35e   : > { %7986 = vmax.xlane.f32.xlu1 %v7985_v34  ;;  %v19222_v29 = vsub.f32 %v19220_v25, %v19221_v8  ;;  %v17171_v38 = vpop.xlane.xlu0 %7875  ;;  %12919 = vpow2.f32 %v8228_v54  ;;  %v19227_v6 = vsub.f32 %v19225_v42, %v19226_v55  ;;  %v12904_v43 = vpop.eup %12903  ;;  %v19230_v44 = vld [vmem:[#allocation254_spill] sm:$0xff]  ;;  %v19232_v54 = vld [vmem:[#allocation45_spill] sm:$0xff]  ;;  %v19234_v30 = vld [vmem:[#allocation4_spill] sm:$0xff] }
 0x35f   : > { %19223 = vst [vmem:[#allocation23_spill] sm:$0xff] %v17171_v38  ;;  %v17173_v24 = vpop.xlane.xlu1 %7884  ;;  %12921 = vpow2.f32 %v9482_v28  ;;  %v7982_v25 = vsel %vm7609_vm2, %v19230_v44, -inf  ;;  %v12906_v3 = vpop.eup %12905  ;;  %v9316_v42 = vsub.f32 %v19232_v54, %v16574_v17  ;;  %v19236_v28 = vld [vmem:[#allocation136_spill] sm:$0xff]  ;;  %v19237_v34 = vld [vmem:[#allocation90_spill] sm:$0xff]  ;;  %v19240_v54 = vld [vmem:[#allocation169_spill] sm:$0xff] }
 0x360   : > { %v8226_v0 = vmul.f32 1.442695, %v19222_v29  ;;  %19224 = vst [vmem:[#allocation24_spill] sm:$0xff] %v17173_v24  ;;  %v8232_v35 = vmul.f32 1.442695, %v19227_v6  ;;  %v19231_v29 = vld [vmem:[#allocation255_spill] sm:$0xff]  ;;  %12923 = vpow2.f32 %v9488_v59  ;;  %v19238_v44 = vsub.f32 %v19236_v28, %v19237_v34 }
 0x361   : > { %v7991_v32 = vsel %vm7609_vm2, %v19231_v29, -inf  ;;  %v19233_v6 = vld [vmem:[#allocation132_spill] sm:$0xff]  ;;  %7983 = vmax.xlane.f32.xlu0 %v7982_v25  ;;  %v9795_v29 = vmul.f32 %v12906_v3, %v16831_v46  ;;  %v19239_v17 = vld [vmem:[#allocation138_spill] sm:$0xff]  ;;  %v19244_v28 = vld [vmem:[#allocation139_spill] sm:$0xff] }
 0x362   : > { %v19235_v48 = vsub.f32 %v19233_v6, %v19234_v30  ;;  %7992 = vmax.xlane.f32.xlu1 %v7991_v32  ;;  %12925 = vpow2.f32 %v8226_v0  ;;  %v8236_v24 = vmul.f32 1.442695, %v19238_v44  ;;  %v17195_v62 = vpop.xlane.xlu0 %7881  ;;  %v12908_v38 = vpop.eup %12907  ;;  %v19241_v6 = vsub.f32 %v19239_v17, %v19240_v54  ;;  %v19243_v32 = vld [vmem:[#allocation256_spill] sm:$0xff]  ;;  %v19245_v44 = vld [vmem:[#allocation2_spill] sm:$0xff]  ;;  %v13497_v3 = vld [vmem:[%s13853_s20 + $0x48] sm:$0xff] }
 0x363   : > { %v8419_v59 = vpop.xlane.xlu1 %8418  ;;  %12927 = vpow2.f32 %v8232_v35  ;;  %v7988_v0 = vsel %vm7609_vm2, %v19243_v32, -inf  ;;  %v12910_v56 = vpop.eup %12909  ;;  %v19246_v34 = vsub.f32 %v19244_v28, %v19245_v44  ;;  %v9923_v26 = vmul.f32 %v13497_v3, %v9795_v29  ;;  %v13498_v35 = vld [vmem:[%s13847_s17 + $0x48] sm:$0xff]  ;;  %v19247_v28 = vld [vmem:[#allocation46_spill] sm:$0xff] }
 0x364   : > { %v8230_v18 = vmul.f32 1.442695, %v19235_v48  ;;  %v8234_v30 = vmul.f32 1.442695, %v19241_v6  ;;  %v19242_v48 = vld [vmem:[#allocation204_spill] sm:$0xff]  ;;  %v10179_v53 = vmul.f32 %v13498_v35, %v9795_v29  ;;  %v8525_v17 = vsel %vm7609_vm2, %v12902_v58, 0.0  ;;  %v12912_v6 = vpop.eup %12911 }
 0x365   : > { %v8240_v46 = vmul.f32 1.442695, %v19246_v34  ;;  %v9486_v54 = vmul.f32 1.442695, %v9316_v42  ;;  %v9794_v25 = vmul.f32 %v12910_v56, %v16837_v40  ;;  %7989 = vmax.xlane.f32.xlu0 %v7988_v0  ;;  %v12914_v32 = vpop.eup %12913  ;;  %v9319_v34 = vsub.f32 %v19247_v28, %v19159_v16  ;;  %10051 = vst [vmem:[%s17018_s8 + $0x48] sm:$0xff] %v9923_v26  ;;  %v13499_v40 = vld [vmem:[%s13853_s20 + $0x40] sm:$0xff] }
 0x366   : > { %12929 = vpow2.f32 %v8230_v18  ;;  %8526 = vadd.xlane.f32.xlu1 %v8525_v17  ;;  %10307 = vst [vmem:[%s17024_s12 + $0x48] sm:$0xff] %v10179_v53  ;;  %v9797_v58 = vmul.f32 %v12912_v6, %v16851_v57  ;;  %v8416_v29 = vpop.xlane.xlu0 %8415  ;;  %v8522_v18 = vsel %vm7609_vm2, %v12904_v43, 0.0  ;;  %v17217_v3 = vpop.eup %12915  ;;  %v13500_v16 = vld [vmem:[%s13847_s17 + $0x40] sm:$0xff]  ;;  %v9796_v26 = vmul.f32 %v12914_v32, %v16867_v33  ;;  %v13501_v57 = vld [vmem:[%s13853_s20 + $0x58] sm:$0xff]  ;;  %v19249_v6 = vld [vmem:[#allocation47_spill] sm:$0xff] }
 0x367   : > { %12931 = vpow2.f32 %v8236_v24  ;;  %v8425_v42 = vpop.xlane.xlu1 %8424  ;;  %19248 = vst [vmem:[#allocation229_spill] sm:$0xff] %v17217_v3  ;;  %v9922_v56 = vmul.f32 %v13499_v40, %v9794_v25  ;;  %v10178_v24 = vmul.f32 %v13500_v16, %v9794_v25  ;;  %v12918_v53 = vpop.eup %12917  ;;  %v13502_v35 = vld [vmem:[%s13847_s17 + $0x58] sm:$0xff]  ;;  %v8531_v17 = vsel %vm7609_vm2, %v12908_v38, 0.0  ;;  %v13503_v40 = vld [vmem:[%s13853_s20 + $0x50] sm:$0xff] }
 0x368   : > { %12933 = vpow2.f32 %v8234_v30  ;;  %v9925_v0 = vmul.f32 %v13501_v57, %v9797_v58  ;;  %v10181_v43 = vmul.f32 %v13502_v35, %v9797_v58  ;;  %v12920_v30 = vpop.eup %12919  ;;  %v9318_v28 = vsub.f32 %v19249_v6, %v19163_v23  ;;  %v13504_v33 = vld [vmem:[%s13847_s17 + $0x50] sm:$0xff]  ;;  %v19254_v57 = vld [vmem:[#allocation93_spill] sm:$0xff] }
 0x369   : > { %12935 = vpow2.f32 %v8240_v46  ;;  %10050 = vst [vmem:[%s17018_s8 + $0x40] sm:$0xff] %v9922_v56  ;;  %10306 = vst [vmem:[%s17024_s12 + $0x40] sm:$0xff] %v10178_v24  ;;  %v9924_v25 = vmul.f32 %v13503_v40, %v9796_v26  ;;  %v10180_v32 = vmul.f32 %v13504_v33, %v9796_v26  ;;  %8523 = vadd.xlane.f32.xlu0 %v8522_v18  ;;  %v17231_v46 = vpop.eup %12921  ;;  %v19251_v58 = vld [vmem:[#allocation92_spill] sm:$0xff]  ;;  %v19256_v18 = vld [vmem:[#allocation207_spill] sm:$0xff] }
 0x36a   : > { %12937 = vrcp.f32 %v8419_v59  ;;  %8532 = vadd.xlane.f32.xlu1 %v8531_v17  ;;  %19250 = vst [vmem:[#allocation25_spill] sm:$0xff] %v17231_v46  ;;  %v19252_v38 = vsub.f32 %v19034_v13, %v19251_v58  ;;  %10053 = vst [vmem:[%s17018_s8 + $0x58] sm:$0xff] %v9925_v0  ;;  %v8422_v23 = vpop.xlane.xlu0 %8421  ;;  %v17240_v24 = vpop.eup %12923  ;;  %v19255_v26 = vsub.f32 %v19042_v10, %v19254_v57  ;;  %v9492_v17 = vmul.f32 1.442695, %v9319_v34  ;;  %v19257_v10 = vld [vmem:[#allocation146_spill] sm:$0xff]  ;;  %v19258_v40 = vld [vmem:[#allocation173_spill] sm:$0xff] }
 0x36b   : > { %10309 = vst [vmem:[%s17024_s12 + $0x58] sm:$0xff] %v10181_v43  ;;  %12939 = vrcp.f32 %v8416_v29  ;;  %v17238_v56 = vpop.xlane.xlu1 %7890  ;;  %19253 = vst [vmem:[#allocation26_spill] sm:$0xff] %v17240_v24  ;;  %v8528_v29 = vsel %vm7609_vm2, %v12918_v53, 0.0  ;;  %v8537_v0 = vsel %vm7609_vm2, %v12920_v30, 0.0  ;;  %v9490_v6 = vmul.f32 1.442695, %v9318_v28 }
 0x36c   : > { %v8238_v16 = vmul.f32 1.442695, %v19252_v38  ;;  %v8244_v59 = vmul.f32 1.442695, %v19255_v26  ;;  %10052 = vst [vmem:[%s17018_s8 + $0x50] sm:$0xff] %v9924_v25  ;;  %10308 = vst [vmem:[%s17024_s12 + $0x50] sm:$0xff] %v10180_v32  ;;  %12941 = vrcp.f32 %v8425_v42  ;;  %v12926_v13 = vpop.eup %12925  ;;  %v19259_v25 = vsub.f32 %v19257_v10, %v19258_v40 }
 0x36d   : > { %12943 = vrcp.f32 %v8422_v23  ;;  %v12928_v43 = vpop.eup %12927  ;;  %8529 = vadd.xlane.f32.xlu0 %v8528_v29  ;;  %v19261_v38 = vld [vmem:[#allocation147_spill] sm:$0xff]  ;;  %v19262_v53 = vld [vmem:[#allocation5_spill] sm:$0xff]  ;;  %v19267_v24 = vld [vmem:[#allocation148_spill] sm:$0xff] }
 0x36e   : > { %12945 = vpow2.f32 %v9486_v54  ;;  %8538 = vadd.xlane.f32.xlu1 %v8537_v0  ;;  %v8242_v42 = vmul.f32 1.442695, %v19259_v25  ;;  %v17254_v33 = vpop.xlane.xlu0 %7887  ;;  %v19263_v23 = vsub.f32 %v19261_v38, %v19262_v53  ;;  %v19264_v54 = vld [vmem:[#allocation208_spill] sm:$0xff]  ;;  %v19265_v26 = vld [vmem:[#allocation209_spill] sm:$0xff]  ;;  %v8534_v0 = vsel %vm7609_vm2, %v12926_v13, 0.0  ;;  %v19268_v38 = vld [vmem:[#allocation174_spill] sm:$0xff] }
 0x36f   : > { %12947 = vpow2.f32 %v8238_v16  ;;  %v17256_v32 = vpop.xlane.xlu1 %7896  ;;  %v8543_v10 = vsel %vm7609_vm2, %v12928_v43, 0.0  ;;  %v19270_v16 = vld [vmem:[#allocation152_spill] sm:$0xff]  ;;  %v19271_v46 = vld [vmem:[#allocation3_spill] sm:$0xff] }
 0x370   : > { %19260 = vst [vmem:[#allocation27_spill] sm:$0xff] %v17256_v32  ;;  %v12930_v34 = vpop.eup %12929  ;;  %12949 = vpow2.f32 %v8244_v59  ;;  %v8248_v30 = vmul.f32 1.442695, %v19263_v23  ;;  %v19266_v59 = vld [vmem:[#allocation48_spill] sm:$0xff]  ;;  %v19269_v23 = vsub.f32 %v19267_v24, %v19268_v38  ;;  %v19279_v38 = vld [vmem:[#allocation155_spill] sm:$0xff] }
 0x371   : > { %v12932_v29 = vpop.eup %12931  ;;  %12951 = vpow2.f32 %v9492_v17  ;;  %v9321_v35 = vsub.f32 %v19266_v59, %v19168_v60  ;;  %8535 = vadd.xlane.f32.xlu0 %v8534_v0  ;;  %v19272_v17 = vsub.f32 %v19270_v16, %v19271_v46  ;;  %v19275_v60 = vld [vmem:[#allocation154_spill] sm:$0xff]  ;;  %v19280_v16 = vld [vmem:[#allocation175_spill] sm:$0xff]  ;;  %v8540_v44 = vsel %vm7609_vm2, %v12930_v34, 0.0 }
 0x372   : > { %v12934_v25 = vpop.eup %12933  ;;  %12953 = vpow2.f32 %v9490_v6  ;;  %v8246_v53 = vmul.f32 1.442695, %v19269_v23  ;;  %8544 = vadd.xlane.f32.xlu1 %v8543_v10  ;;  %v17275_v13 = vpop.xlane.xlu0 %7893  ;;  %v19274_v6 = vld [vmem:[#allocation49_spill] sm:$0xff]  ;;  %v19276_v59 = vld [vmem:[#allocation94_spill] sm:$0xff] }
 0x373   : > { %v12936_v28 = vpop.eup %12935  ;;  %12955 = vpow2.f32 %v8242_v42  ;;  %v8252_v3 = vmul.f32 1.442695, %v19272_v17  ;;  %19273 = vst [vmem:[#allocation103_spill] sm:$0xff] %v17275_v13  ;;  %v8431_v43 = vpop.xlane.xlu1 %8430  ;;  %v19277_v24 = vsub.f32 %v19275_v60, %v19276_v59  ;;  %v19278_v0 = vld [vmem:[#allocation210_spill] sm:$0xff]  ;;  %v19281_v17 = vsub.f32 %v19279_v38, %v19280_v16 }
 0x374   : > { %v12938_v40 = vpop.eup %12937  ;;  %12957 = vpow2.f32 %v8248_v30  ;;  %v8549_v30 = vsel %vm7609_vm2, %v12932_v29, 0.0  ;;  %v9496_v32 = vmul.f32 1.442695, %v9321_v35  ;;  %v19282_v42 = vld [vmem:[#allocation50_spill] sm:$0xff] }
 0x375   : > { %v8250_v23 = vmul.f32 1.442695, %v19277_v24  ;;  %v12940_v10 = vpop.eup %12939  ;;  %v8256_v46 = vmul.f32 1.442695, %v19281_v17  ;;  %v9799_v58 = vmul.f32 %v12938_v40, %v16876_v1  ;;  %12959 = vpow2.f32 %v8246_v53  ;;  %8541 = vadd.xlane.f32.xlu0 %v8540_v44  ;;  %v13505_v17 = vld [vmem:[%s13853_s20 + $0x68] sm:$0xff]  ;;  %v13507_v44 = vld [vmem:[%s13853_s20 + $0x60] sm:$0xff] }
 0x376   : > { %v12942_v57 = vpop.eup %12941  ;;  %v9798_v60 = vmul.f32 %v12940_v10, %v16885_v61  ;;  %8550 = vadd.xlane.f32.xlu1 %v8549_v30  ;;  %v8546_v24 = vsel %vm7609_vm2, %v12934_v25, 0.0  ;;  %12961 = vpow2.f32 %v8252_v3  ;;  %v13506_v40 = vld [vmem:[%s13847_s17 + $0x68] sm:$0xff]  ;;  %v8428_v53 = vpop.xlane.xlu0 %8427  ;;  %v13508_v3 = vld [vmem:[%s13847_s17 + $0x60] sm:$0xff]  ;;  %v9323_v16 = vsub.f32 %v19282_v42, %v19189_v39 }
 0x377   : > { %v12944_v38 = vpop.eup %12943  ;;  %v9927_v1 = vmul.f32 %v13505_v17, %v9799_v58  ;;  %v10183_v34 = vmul.f32 %v13506_v40, %v9799_v58  ;;  %v9801_v35 = vmul.f32 %v12942_v57, %v16897_v21  ;;  %v8437_v29 = vpop.xlane.xlu1 %8436  ;;  %12963 = vpow2.f32 %v8250_v23  ;;  %v13509_v21 = vld [vmem:[%s13853_s20 + $0x78] sm:$0xff] }
 0x378   : > { %v17295_v61 = vpop.eup %12945  ;;  %v9926_v25 = vmul.f32 %v13507_v44, %v9798_v60  ;;  %v10182_v10 = vmul.f32 %v13508_v3, %v9798_v60  ;;  %v9800_v30 = vmul.f32 %v12944_v38, %v16908_v51  ;;  %12965 = vpow2.f32 %v8256_v46  ;;  %v13510_v57 = vld [vmem:[%s13847_s17 + $0x78] sm:$0xff]  ;;  %v13511_v51 = vld [vmem:[%s13853_s20 + $0x70] sm:$0xff] }
 0x379   : > { %v12948_v17 = vpop.eup %12947  ;;  %10055 = vst [vmem:[%s17018_s8 + $0x68] sm:$0xff] %v9927_v1  ;;  %10311 = vst [vmem:[%s17024_s12 + $0x68] sm:$0xff] %v10183_v34  ;;  %v9929_v58 = vmul.f32 %v13509_v21, %v9801_v35  ;;  %v10185_v40 = vmul.f32 %v13510_v57, %v9801_v35  ;;  %v8555_v23 = vsel %vm7609_vm2, %v12936_v28, 0.0  ;;  %v13512_v46 = vld [vmem:[%s13847_s17 + $0x70] sm:$0xff]  ;;  %12967 = vrcp.f32 %v8431_v43  ;;  %8547 = vadd.xlane.f32.xlu0 %v8546_v24  ;;  %v19284_v35 = vld [vmem:[#allocation6_spill] sm:$0xff] }
 0x37a   : > { %v12950_v44 = vpop.eup %12949  ;;  %10054 = vst [vmem:[%s17018_s8 + $0x60] sm:$0xff] %v9926_v25  ;;  %10310 = vst [vmem:[%s17024_s12 + $0x60] sm:$0xff] %v10182_v10  ;;  %v9928_v60 = vmul.f32 %v13511_v51, %v9800_v30  ;;  %v10184_v38 = vmul.f32 %v13512_v46, %v9800_v30  ;;  %8556 = vadd.xlane.f32.xlu1 %v8555_v23  ;;  %v19283_v34 = vld [vmem:[#allocation156_spill] sm:$0xff]  ;;  %12969 = vrcp.f32 %v8428_v53  ;;  %v8434_v39 = vpop.xlane.xlu0 %8433  ;;  %v8552_v53 = vsel %vm7609_vm2, %v12948_v17, 0.0  ;;  %v19291_v46 = vld [vmem:[#allocation162_spill] sm:$0xff] }
 0x37b   : > { %v17311_v1 = vpop.eup %12951  ;;  %v19285_v28 = vsub.f32 %v19283_v34, %v19284_v35  ;;  %10057 = vst [vmem:[%s17018_s8 + $0x78] sm:$0xff] %v9929_v58  ;;  %10313 = vst [vmem:[%s17024_s12 + $0x78] sm:$0xff] %v10185_v40  ;;  %v17318_v42 = vpop.xlane.xlu1 %7902  ;;  %v19287_v10 = vld [vmem:[#allocation160_spill] sm:$0xff]  ;;  %12971 = vrcp.f32 %v8437_v29  ;;  %v19290_v57 = vsub.f32 %v19274_v6, %v19180_v20  ;;  %v8561_v58 = vsel %vm7609_vm2, %v12950_v44, 0.0  ;;  %v19296_v6 = vld [vmem:[#allocation51_spill] sm:$0xff] }
 0x37c   : > { %19286 = vst [vmem:[#allocation230_spill] sm:$0xff] %v17318_v42  ;;  %v17320_v25 = vpop.eup %12953  ;;  %v19288_v21 = vld [vmem:[#allocation140_spill] sm:$0xff]  ;;  %10056 = vst [vmem:[%s17018_s8 + $0x70] sm:$0xff] %v9928_v60  ;;  %12973 = vrcp.f32 %v8434_v39  ;;  %v9500_v51 = vmul.f32 1.442695, %v9323_v16  ;;  %v19292_v60 = vld [vmem:[#allocation177_spill] sm:$0xff]  ;;  %v9322_v17 = vsub.f32 %v19296_v6, %v19195_v47 }
 0x37d   : > { %v8254_v3 = vmul.f32 1.442695, %v19285_v28  ;;  %v19289_v30 = vsub.f32 %v19287_v10, %v19288_v21  ;;  %10312 = vst [vmem:[%s17024_s12 + $0x70] sm:$0xff] %v10184_v38  ;;  %v12956_v24 = vpop.eup %12955  ;;  %v9494_v23 = vmul.f32 1.442695, %v19290_v57  ;;  %12975 = vpow2.f32 %v9496_v32  ;;  %8553 = vadd.xlane.f32.xlu0 %v8552_v53  ;;  %v19297_v44 = vld [vmem:[#allocation7_spill] sm:$0xff] }
 0x37e   : > { %v12958_v40 = vpop.eup %12957  ;;  %8562 = vadd.xlane.f32.xlu1 %v8561_v58  ;;  %v19293_v38 = vsub.f32 %v19291_v46, %v19292_v60  ;;  %v17335_v34 = vpop.xlane.xlu0 %7899  ;;  %v19298_v32 = vsub.f32 %v19091_v50, %v19297_v44  ;;  %v19299_v57 = vld [vmem:[#allocation181_spill] sm:$0xff]  ;;  %v17354_v6 = vmul.f32 1.442695, %v9322_v17 }
 0x37f   : > { %v8260_v43 = vmul.f32 1.442695, %v19289_v30  ;;  %12977 = vpow2.f32 %v8254_v3  ;;  %19294 = vst [vmem:[#allocation28_spill] sm:$0xff] %v17335_v34  ;;  %v17337_v28 = vpop.xlane.xlu1 %7908  ;;  %v12960_v20 = vpop.eup %12959  ;;  %v8558_v3 = vsel %vm7609_vm2, %v12956_v24, 0.0  ;;  %v8567_v10 = vsel %vm7609_vm2, %v12958_v40, 0.0  ;;  %v19304_v40 = vld [vmem:[#allocation170_spill] sm:$0xff] }
 0x380   : > { %v8258_v29 = vmul.f32 1.442695, %v19293_v38  ;;  %19295 = vst [vmem:[#allocation107_spill] sm:$0xff] %v17337_v28  ;;  %v8264_v16 = vmul.f32 1.442695, %v19298_v32  ;;  %v12962_v39 = vpop.eup %12961  ;;  %v19300_v53 = vsub.f32 %v19095_v49, %v19299_v57 }
 0x381   : > { %12979 = vpow2.f32 %v8260_v43  ;;  %v12964_v30 = vpop.eup %12963  ;;  %8559 = vadd.xlane.f32.xlu0 %v8558_v3  ;;  %v19301_v43 = vld [vmem:[#allocation8_spill] sm:$0xff] }
 0x382   : > { %12981 = vpow2.f32 %v9494_v23  ;;  %v8262_v58 = vmul.f32 1.442695, %v19300_v53  ;;  %8568 = vadd.xlane.f32.xlu1 %v8567_v10  ;;  %v12966_v47 = vpop.eup %12965  ;;  %v19302_v50 = vsub.f32 %v19099_v31, %v19301_v43  ;;  %v17352_v38 = vpop.xlane.xlu0 %7905  ;;  %v19307_v10 = vld [vmem:[#allocation171_spill] sm:$0xff]  ;;  %v19308_v53 = vld [vmem:[#allocation9_spill] sm:$0xff]  ;;  %v8573_v43 = vsel %vm7609_vm2, %v12962_v39, 0.0 }
 0x383   : > { %12983 = vpow2.f32 %v9500_v51  ;;  %19303 = vst [vmem:[#allocation231_spill] sm:$0xff] %v17352_v38  ;;  %v8443_v23 = vpop.xlane.xlu1 %8442  ;;  %v12968_v24 = vpop.eup %12967  ;;  %v19305_v51 = vld [vmem:[#allocation182_spill] sm:$0xff]  ;;  %v13514_v39 = vld [vmem:[%s13847_s17 + $0x88] sm:$0xff] }
 0x384   : > { %12985 = vpow2.f32 %v8258_v29  ;;  %v8268_v46 = vmul.f32 1.442695, %v19302_v50  ;;  %v19306_v32 = vsub.f32 %v19304_v40, %v19305_v51  ;;  %v12970_v3 = vpop.eup %12969  ;;  %v19309_v29 = vsub.f32 %v19307_v10, %v19308_v53 }
 0x385   : > { %12987 = vpow2.f32 %v8264_v16  ;;  %v9803_v31 = vmul.f32 %v12968_v24, %v16917_v22  ;;  %v8564_v50 = vsel %vm7609_vm2, %v12960_v20, 0.0  ;;  %v12972_v17 = vpop.eup %12971  ;;  %v19310_v16 = vld [vmem:[#allocation52_spill] sm:$0xff]  ;;  %v9802_v40 = vmul.f32 %v12970_v3, %v16921_v5  ;;  %v13513_v22 = vld [vmem:[%s13853_s20 + $0x88] sm:$0xff] }
 0x386   : > { %v8266_v49 = vmul.f32 1.442695, %v19306_v32  ;;  %v8272_v57 = vmul.f32 1.442695, %v19309_v29  ;;  %v9325_v44 = vsub.f32 %v19310_v16, %v19201_v36  ;;  %12989 = vpow2.f32 %v8262_v58  ;;  %8565 = vadd.xlane.f32.xlu0 %v8564_v50  ;;  %8574 = vadd.xlane.f32.xlu1 %v8573_v43  ;;  %v12974_v10 = vpop.eup %12973  ;;  %v8440_v58 = vpop.xlane.xlu0 %8439  ;;  %v13515_v43 = vld [vmem:[%s13853_s20 + $0x80] sm:$0xff] }
 0x387   : > { %v8570_v32 = vsel %vm7609_vm2, %v12964_v30, 0.0  ;;  %12991 = vpow2.f32 %v8268_v46  ;;  %v9931_v20 = vmul.f32 %v13513_v22, %v9803_v31  ;;  %v10187_v24 = vmul.f32 %v13514_v39, %v9803_v31  ;;  %v8449_v29 = vpop.xlane.xlu1 %8448  ;;  %v17372_v5 = vpop.eup %12975  ;;  %v13516_v46 = vld [vmem:[%s13847_s17 + $0x80] sm:$0xff] }
 0x388   : > { %v9805_v36 = vmul.f32 %v12972_v17, %v16927_v15  ;;  %12993 = vpow2.f32 %v8266_v49  ;;  %v9930_v30 = vmul.f32 %v13515_v43, %v9802_v40  ;;  %v10186_v3 = vmul.f32 %v13516_v46, %v9802_v40  ;;  %v13517_v15 = vld [vmem:[%s13853_s20 + $0x98] sm:$0xff] }
 0x389   : > { %v9804_v50 = vmul.f32 %v12974_v10, %v16938_v11  ;;  %v12978_v16 = vpop.eup %12977  ;;  %12995 = vpow2.f32 %v8272_v57  ;;  %10059 = vst [vmem:[%s17018_s8 + $0x88] sm:$0xff] %v9931_v20  ;;  %10315 = vst [vmem:[%s17024_s12 + $0x88] sm:$0xff] %v10187_v24  ;;  %v13518_v17 = vld [vmem:[%s13847_s17 + $0x98] sm:$0xff]  ;;  %v8579_v49 = vsel %vm7609_vm2, %v12966_v47, 0.0  ;;  %v13519_v11 = vld [vmem:[%s13853_s20 + $0x90] sm:$0xff] }
 0x38a   : > { %v9933_v31 = vmul.f32 %v13517_v15, %v9805_v36  ;;  %v10189_v22 = vmul.f32 %v13518_v17, %v9805_v36  ;;  %v19311_v43 = vld [vmem:[#allocation53_spill] sm:$0xff]  ;;  %10058 = vst [vmem:[%s17018_s8 + $0x80] sm:$0xff] %v9930_v30  ;;  %10314 = vst [vmem:[%s17024_s12 + $0x80] sm:$0xff] %v10186_v3  ;;  %v13520_v57 = vld [vmem:[%s13847_s17 + $0x90] sm:$0xff]  ;;  %12997 = vrcp.f32 %v8443_v23  ;;  %8571 = vadd.xlane.f32.xlu0 %v8570_v32  ;;  %8580 = vadd.xlane.f32.xlu1 %v8579_v49 }
 0x38b   : > { %v12980_v39 = vpop.eup %12979  ;;  %v9324_v53 = vsub.f32 %v19311_v43, %v19209_v19  ;;  %v9932_v40 = vmul.f32 %v13519_v11, %v9804_v50  ;;  %v10188_v10 = vmul.f32 %v13520_v57, %v9804_v50  ;;  %v19312_v24 = vld [vmem:[#allocation172_spill] sm:$0xff]  ;;  %12999 = vrcp.f32 %v8440_v58  ;;  %v8446_v19 = vpop.xlane.xlu0 %8445  ;;  %v19317_v17 = vld [vmem:[#allocation183_spill] sm:$0xff]  ;;  %v19319_v11 = vld [vmem:[#allocation178_spill] sm:$0xff] }
 0x38c   : > { %v17388_v20 = vpop.eup %12981  ;;  %v19313_v36 = vld [vmem:[#allocation144_spill] sm:$0xff]  ;;  %10061 = vst [vmem:[%s17018_s8 + $0x98] sm:$0xff] %v9933_v31  ;;  %10317 = vst [vmem:[%s17024_s12 + $0x98] sm:$0xff] %v10189_v22  ;;  %v17395_v30 = vpop.xlane.xlu1 %7914  ;;  %13001 = vrcp.f32 %v8449_v29  ;;  %v9504_v49 = vmul.f32 1.442695, %v9325_v44  ;;  %v8576_v43 = vsel %vm7609_vm2, %v12978_v16, 0.0 }
 0x38d   : > { %v19314_v47 = vsub.f32 %v19312_v24, %v19313_v36  ;;  %19315 = vst [vmem:[#allocation233_spill] sm:$0xff] %v17395_v30  ;;  %v17397_v3 = vpop.eup %12983  ;;  %v19316_v15 = vld [vmem:[#allocation176_spill] sm:$0xff]  ;;  %10060 = vst [vmem:[%s17018_s8 + $0x90] sm:$0xff] %v9932_v40  ;;  %13003 = vrcp.f32 %v8446_v19  ;;  %v8585_v31 = vsel %vm7609_vm2, %v12980_v39, 0.0  ;;  %v9502_v22 = vmul.f32 1.442695, %v9324_v53 }
 0x38e   : > { %v19318_v50 = vsub.f32 %v19316_v15, %v19317_v17  ;;  %10316 = vst [vmem:[%s17024_s12 + $0x90] sm:$0xff] %v10188_v10  ;;  %v12986_v32 = vpop.eup %12985  ;;  %13005 = vpow2.f32 %v17354_v6  ;;  %8577 = vadd.xlane.f32.xlu0 %v8576_v43  ;;  %8586 = vadd.xlane.f32.xlu1 %v8585_v31  ;;  %v19320_v57 = vld [vmem:[#allocation10_spill] sm:$0xff]  ;;  %v19322_v16 = vld [vmem:[#allocation179_spill] sm:$0xff]  ;;  %v19326_v31 = vld [vmem:[#allocation180_spill] sm:$0xff] }
 0x38f   : > { %v8270_v46 = vmul.f32 1.442695, %v19314_v47  ;;  %v12988_v58 = vpop.eup %12987  ;;  %v19321_v24 = vsub.f32 %v19319_v11, %v19320_v57  ;;  %v17410_v10 = vpop.xlane.xlu0 %7911  ;;  %v19323_v47 = vld [vmem:[#allocation185_spill] sm:$0xff]  ;;  %v8582_v6 = vsel %vm7609_vm2, %v12986_v32, 0.0  ;;  %v19327_v11 = vld [vmem:[#allocation11_spill] sm:$0xff]  ;;  %v19339_v36 = vld [vmem:[#allocation56_spill] sm:$0xff] }
 0x390   : > { %v8276_v23 = vmul.f32 1.442695, %v19318_v50  ;;  %v17412_v29 = vpop.xlane.xlu1 %7920  ;;  %v12990_v44 = vpop.eup %12989  ;;  %v19324_v39 = vsub.f32 %v19322_v16, %v19323_v47  ;;  %v8591_v53 = vsel %vm7609_vm2, %v12988_v58, 0.0  ;;  %v19325_v50 = vld [vmem:[#allocation54_spill] sm:$0xff]  ;;  %v9329_v51 = vsub.f32 %v19339_v36, %v19226_v55 }
 0x391   : > { %13007 = vpow2.f32 %v8270_v46  ;;  %v8274_v40 = vmul.f32 1.442695, %v19321_v24  ;;  %v12992_v15 = vpop.eup %12991  ;;  %v9327_v43 = vsub.f32 %v19325_v50, %v19214_v12  ;;  %v19328_v24 = vsub.f32 %v19326_v31, %v19327_v11  ;;  %v19332_v50 = vld [vmem:[#allocation187_spill] sm:$0xff] }
 0x392   : > { %13009 = vpow2.f32 %v8276_v23  ;;  %v8280_v19 = vmul.f32 1.442695, %v19324_v39  ;;  %v12994_v46 = vpop.eup %12993  ;;  %8583 = vadd.xlane.f32.xlu0 %v8582_v6  ;;  %8592 = vadd.xlane.f32.xlu1 %v8591_v53  ;;  %v19331_v12 = vsub.f32 %v19153_v4, %v16989_v45  ;;  %v8597_v11 = vsel %vm7609_vm2, %v12992_v15, 0.0 }
 0x393   : > { %13011 = vpow2.f32 %v9504_v49  ;;  %v8278_v57 = vmul.f32 1.442695, %v19328_v24  ;;  %v12996_v23 = vpop.eup %12995  ;;  %v19329_v49 = vsub.f32 %v19146_v52, %v16969_v37  ;;  %v17427_v32 = vpop.xlane.xlu0 %7917  ;;  %v19335_v24 = vld [vmem:[#allocation189_spill] sm:$0xff]  ;;  %v8588_v37 = vsel %vm7609_vm2, %v12990_v44, 0.0  ;;  %v13522_v44 = vld [vmem:[%s13847_s17 + $0xa8] sm:$0xff] }
 0x394   : > { %13013 = vpow2.f32 %v9502_v22  ;;  %v8455_v58 = vpop.xlane.xlu1 %8454  ;;  %v12998_v39 = vpop.eup %12997  ;;  %v19330_v22 = vld [vmem:[#allocation55_spill] sm:$0xff]  ;;  %v8282_v6 = vmul.f32 1.442695, %v19331_v12  ;;  %v9508_v47 = vmul.f32 1.442695, %v9327_v43  ;;  %v8594_v12 = vsel %vm7609_vm2, %v12994_v46, 0.0 }
 0x395   : > { %13015 = vpow2.f32 %v8274_v40  ;;  %v8284_v16 = vmul.f32 1.442695, %v19329_v49  ;;  %v13000_v53 = vpop.eup %12999  ;;  %v19333_v40 = vld [vmem:[#allocation221_spill] sm:$0xff]  ;;  %v9807_v49 = vmul.f32 %v12998_v39, %v19335_v24  ;;  %v19337_v24 = vld [vmem:[#allocation219_spill] sm:$0xff] }
 0x396   : > { %13017 = vpow2.f32 %v8280_v19  ;;  %v19334_v31 = vsub.f32 %v19332_v50, %v19333_v40  ;;  %v13002_v17 = vpop.eup %13001  ;;  %v19336_v19 = vld [vmem:[#allocation12_spill] sm:$0xff]  ;;  %8589 = vadd.xlane.f32.xlu0 %v8588_v37  ;;  %8598 = vadd.xlane.f32.xlu1 %v8597_v11  ;;  %v13523_v37 = vld [vmem:[%s13853_s20 + $0xa0] sm:$0xff] }
 0x397   : > { %13019 = vpow2.f32 %v8278_v57  ;;  %v9806_v4 = vmul.f32 %v13000_v53, %v19336_v19  ;;  %v13004_v50 = vpop.eup %13003  ;;  %v10191_v15 = vmul.f32 %v13522_v44, %v9807_v49  ;;  %v9809_v43 = vmul.f32 %v13002_v17, %v19337_v24  ;;  %v8452_v57 = vpop.xlane.xlu0 %8451  ;;  %v13524_v11 = vld [vmem:[%s13847_s17 + $0xa0] sm:$0xff]  ;;  %v19338_v19 = vld [vmem:[#allocation13_spill] sm:$0xff] }
 0x398   : > { %v8288_v52 = vmul.f32 1.442695, %v19334_v31  ;;  %13021 = vpow2.f32 %v8284_v16  ;;  %v13521_v31 = vld [vmem:[%s13853_s20 + $0xa8] sm:$0xff]  ;;  %v8461_v40 = vpop.xlane.xlu1 %8460  ;;  %v17445_v53 = vpop.eup %13005  ;;  %v13525_v17 = vld [vmem:[%s13853_s20 + $0xb8] sm:$0xff] }
 0x399   : > { %v9935_v39 = vmul.f32 %v13521_v31, %v9807_v49  ;;  %13023 = vpow2.f32 %v8282_v6  ;;  %v9934_v46 = vmul.f32 %v13523_v37, %v9806_v4  ;;  %v10190_v16 = vmul.f32 %v13524_v11, %v9806_v4  ;;  %10319 = vst [vmem:[%s17024_s12 + $0xa8] sm:$0xff] %v10191_v15  ;;  %v13526_v44 = vld [vmem:[%s13847_s17 + $0xb8] sm:$0xff]  ;;  %v13527_v4 = vld [vmem:[%s13853_s20 + $0xb0] sm:$0xff] }
 0x39a   : > { %v9808_v31 = vmul.f32 %v13004_v50, %v19338_v19  ;;  %13025 = vpow2.f32 %v8288_v52  ;;  %v9937_v49 = vmul.f32 %v13525_v17, %v9809_v43  ;;  %v10193_v24 = vmul.f32 %v13526_v44, %v9809_v43  ;;  %v13528_v52 = vld [vmem:[%s13847_s17 + $0xb0] sm:$0xff]  ;;  %8595 = vadd.xlane.f32.xlu0 %v8594_v12  ;;  %v19341_v11 = vld [vmem:[#allocation197_spill] sm:$0xff] }
 0x39b   : > { %v13008_v45 = vpop.eup %13007  ;;  %10063 = vst [vmem:[%s17018_s8 + $0xa8] sm:$0xff] %v9935_v39  ;;  %v8603_v6 = vsel %vm7609_vm2, %v12996_v23, 0.0  ;;  %10062 = vst [vmem:[%s17018_s8 + $0xa0] sm:$0xff] %v9934_v46  ;;  %13027 = vrcp.f32 %v8455_v58  ;;  %v19340_v43 = vld [vmem:[#allocation188_spill] sm:$0xff]  ;;  %v8458_v55 = vpop.xlane.xlu0 %8457 }
 0x39c   : > { %v13010_v37 = vpop.eup %13009  ;;  %10318 = vst [vmem:[%s17024_s12 + $0xa0] sm:$0xff] %v10190_v16  ;;  %v9936_v50 = vmul.f32 %v13527_v4, %v9808_v31  ;;  %v10192_v39 = vmul.f32 %v13528_v52, %v9808_v31  ;;  %8604 = vadd.xlane.f32.xlu1 %v8603_v6  ;;  %v19342_v23 = vsub.f32 %v19340_v43, %v19341_v11  ;;  %10065 = vst [vmem:[%s17018_s8 + $0xb8] sm:$0xff] %v9937_v49  ;;  %v17468_v36 = vpop.xlane.xlu1 %7926 }
 0x39d   : > { %v17461_v15 = vpop.eup %13011  ;;  %10321 = vst [vmem:[%s17024_s12 + $0xb8] sm:$0xff] %v10193_v24  ;;  %13029 = vrcp.f32 %v8452_v57  ;;  %19343 = vst [vmem:[#allocation29_spill] sm:$0xff] %v17468_v36  ;;  %v19344_v16 = vsub.f32 %v19182_v27, %v17069_v9  ;;  %v19345_v31 = vsub.f32 %v19330_v22, %v19221_v8  ;;  %v8600_v57 = vsel %vm7609_vm2, %v13008_v45, 0.0 }
 0x39e   : > { %v8286_v19 = vmul.f32 1.442695, %v19342_v23  ;;  %v17470_v46 = vpop.eup %13013  ;;  %10064 = vst [vmem:[%s17018_s8 + $0xb0] sm:$0xff] %v9936_v50  ;;  %10320 = vst [vmem:[%s17024_s12 + $0xb0] sm:$0xff] %v10192_v39  ;;  %13031 = vrcp.f32 %v8461_v40  ;;  %v8609_v49 = vsel %vm7609_vm2, %v13010_v37, 0.0  ;;  %8601 = vadd.xlane.f32.xlu0 %v8600_v57  ;;  %v19346_v27 = vsub.f32 %v19186_v14, %v17085_v2  ;;  %v19350_v14 = vld [vmem:[#allocation205_spill] sm:$0xff] }
 0x39f   : > { %v8292_v58 = vmul.f32 1.442695, %v19344_v16  ;;  %v13016_v12 = vpop.eup %13015  ;;  %v9506_v17 = vmul.f32 1.442695, %v19345_v31  ;;  %13033 = vrcp.f32 %v8458_v55  ;;  %v9512_v24 = vmul.f32 1.442695, %v9329_v51  ;;  %v17485_v6 = vpop.xlane.xlu0 %7923 }
 0x3a0   : > { %v13018_v44 = vpop.eup %13017  ;;  %13035 = vpow2.f32 %v9508_v47  ;;  %8610 = vadd.xlane.f32.xlu1 %v8609_v49  ;;  %v8290_v40 = vmul.f32 1.442695, %v19346_v27  ;;  %19347 = vst [vmem:[#allocation30_spill] sm:$0xff] %v17485_v6  ;;  %v17487_v4 = vpop.xlane.xlu1 %7932  ;;  %v19349_v45 = vsub.f32 %v19187_v41, %v17087_v7  ;;  %v8606_v51 = vsel %vm7609_vm2, %v13016_v12, 0.0  ;;  %v19352_v23 = vld [vmem:[#allocation200_spill] sm:$0xff]  ;;  %v19356_v31 = vld [vmem:[#allocation202_spill] sm:$0xff] }
 0x3a1   : > { %13037 = vpow2.f32 %v8286_v19  ;;  %19348 = vst [vmem:[#allocation31_spill] sm:$0xff] %v17487_v4  ;;  %v13020_v8 = vpop.eup %13019  ;;  %v8615_v47 = vsel %vm7609_vm2, %v13018_v44, 0.0  ;;  %v19351_v52 = vsub.f32 %v19198_v63, %v19350_v14  ;;  %v19353_v19 = vld [vmem:[#allocation21_spill] sm:$0xff]  ;;  %v19359_v44 = vld [vmem:[#allocation203_spill] sm:$0xff] }
 0x3a2   : > { %13039 = vpow2.f32 %v8292_v58  ;;  %v8296_v22 = vmul.f32 1.442695, %v19349_v45  ;;  %v13022_v37 = vpop.eup %13021  ;;  %8607 = vadd.xlane.f32.xlu0 %v8606_v51  ;;  %v19354_v41 = vsub.f32 %v19352_v23, %v19353_v19  ;;  %v19362_v45 = vld [vmem:[#allocation191_spill] sm:$0xff] }
 0x3a3   : > { %13041 = vpow2.f32 %v9506_v17  ;;  %v13024_v50 = vpop.eup %13023  ;;  %v8294_v39 = vmul.f32 1.442695, %v19351_v52  ;;  %v17500_v16 = vpop.xlane.xlu0 %7929  ;;  %v19357_v17 = vld [vmem:[#allocation23_spill] sm:$0xff]  ;;  %v8621_v52 = vsel %vm7609_vm2, %v13022_v37, 0.0 }
 0x3a4   : > { %13043 = vpow2.f32 %v9512_v24  ;;  %8616 = vadd.xlane.f32.xlu1 %v8615_v47  ;;  %v13026_v43 = vpop.eup %13025  ;;  %v8300_v55 = vmul.f32 1.442695, %v19354_v41  ;;  %19355 = vst [vmem:[#allocation237_spill] sm:$0xff] %v17500_v16  ;;  %v8467_v58 = vpop.xlane.xlu1 %8466  ;;  %v19358_v57 = vsub.f32 %v19356_v31, %v19357_v17  ;;  %v19360_v24 = vld [vmem:[#allocation24_spill] sm:$0xff]  ;;  %v8612_v47 = vsel %vm7609_vm2, %v13020_v8, 0.0  ;;  %v19365_v31 = vld [vmem:[#allocation14_spill] sm:$0xff] }
 0x3a5   : > { %13045 = vpow2.f32 %v8290_v40  ;;  %v13028_v12 = vpop.eup %13027  ;;  %v19361_v27 = vsub.f32 %v19359_v44, %v19360_v24  ;;  %v19363_v41 = vld [vmem:[#allocation4_spill] sm:$0xff]  ;;  %v8618_v44 = vsel %vm7609_vm2, %v13024_v50, 0.0  ;;  %v13530_v37 = vld [vmem:[%s13847_s17 + $0xc8] sm:$0xff]  ;;  %v19366_v24 = vld [vmem:[#allocation193_spill] sm:$0xff] }
 0x3a6   : > { %13047 = vpow2.f32 %v8296_v22  ;;  %v8298_v49 = vmul.f32 1.442695, %v19358_v57  ;;  %v9811_v51 = vmul.f32 %v13028_v12, %v19362_v45  ;;  %v19364_v22 = vld [vmem:[#allocation59_spill] sm:$0xff]  ;;  %8613 = vadd.xlane.f32.xlu0 %v8612_v47  ;;  %v13531_v47 = vld [vmem:[%s13853_s20 + $0xc0] sm:$0xff] }
 0x3a7   : > { %v13030_v63 = vpop.eup %13029  ;;  %v8304_v40 = vmul.f32 1.442695, %v19361_v27  ;;  %v9328_v19 = vsub.f32 %v19364_v22, %v19363_v41  ;;  %13049 = vpow2.f32 %v8294_v39  ;;  %v13529_v12 = vld [vmem:[%s13853_s20 + $0xc8] sm:$0xff]  ;;  %v8464_v39 = vpop.xlane.xlu0 %8463 }
 0x3a8   : > { %v13032_v23 = vpop.eup %13031  ;;  %v9810_v57 = vmul.f32 %v13030_v63, %v19365_v31  ;;  %8622 = vadd.xlane.f32.xlu1 %v8621_v52  ;;  %13051 = vpow2.f32 %v8300_v55  ;;  %v9939_v8 = vmul.f32 %v13529_v12, %v9811_v51  ;;  %v10195_v45 = vmul.f32 %v13530_v37, %v9811_v51  ;;  %v8473_v22 = vpop.xlane.xlu1 %8472  ;;  %v13532_v55 = vld [vmem:[%s13847_s17 + $0xc0] sm:$0xff]  ;;  %v19367_v31 = vld [vmem:[#allocation16_spill] sm:$0xff] }
 0x3a9   : > { %v13034_v27 = vpop.eup %13033  ;;  %v9813_v41 = vmul.f32 %v13032_v23, %v19366_v24  ;;  %13053 = vpow2.f32 %v8298_v49  ;;  %v13533_v24 = vld [vmem:[%s13853_s20 + $0xd8] sm:$0xff]  ;;  %v8627_v49 = vsel %vm7609_vm2, %v13026_v43, 0.0  ;;  %v9510_v14 = vmul.f32 1.442695, %v9328_v19 }
 0x3aa   : > { %v17518_v63 = vpop.eup %13035  ;;  %v9938_v50 = vmul.f32 %v13531_v47, %v9810_v57  ;;  %v10194_v52 = vmul.f32 %v13532_v55, %v9810_v57  ;;  %v9812_v12 = vmul.f32 %v13034_v27, %v19367_v31  ;;  %13055 = vpow2.f32 %v8304_v40  ;;  %10067 = vst [vmem:[%s17018_s8 + $0xc8] sm:$0xff] %v9939_v8  ;;  %10323 = vst [vmem:[%s17024_s12 + $0xc8] sm:$0xff] %v10195_v45  ;;  %v13534_v23 = vld [vmem:[%s13847_s17 + $0xd8] sm:$0xff]  ;;  %v13535_v57 = vld [vmem:[%s13853_s20 + $0xd0] sm:$0xff] }
 0x3ab   : > { %v13038_v17 = vpop.eup %13037  ;;  %v9941_v51 = vmul.f32 %v13533_v24, %v9813_v41  ;;  %v10197_v37 = vmul.f32 %v13534_v23, %v9813_v41  ;;  %v13536_v55 = vld [vmem:[%s13847_s17 + $0xd0] sm:$0xff]  ;;  %13057 = vrcp.f32 %v8467_v58  ;;  %8619 = vadd.xlane.f32.xlu0 %v8618_v44  ;;  %v19368_v45 = vsub.f32 %v19242_v48, %v17195_v62  ;;  %v8470_v43 = vpop.xlane.xlu0 %8469  ;;  %v19371_v31 = vld [vmem:[#allocation211_spill] sm:$0xff] }
 0x3ac   : > { %v13040_v47 = vpop.eup %13039  ;;  %10066 = vst [vmem:[%s17018_s8 + $0xc0] sm:$0xff] %v9938_v50  ;;  %10322 = vst [vmem:[%s17024_s12 + $0xc0] sm:$0xff] %v10194_v52  ;;  %v9940_v27 = vmul.f32 %v13535_v57, %v9812_v12  ;;  %v10196_v40 = vmul.f32 %v13536_v55, %v9812_v12  ;;  %8628 = vadd.xlane.f32.xlu1 %v8627_v49  ;;  %13059 = vrcp.f32 %v8464_v39  ;;  %v17539_v19 = vpop.xlane.xlu1 %7938  ;;  %v8624_v12 = vsel %vm7609_vm2, %v13038_v17, 0.0 }
 0x3ad   : > { %v17532_v8 = vpop.eup %13041  ;;  %v8302_v41 = vmul.f32 1.442695, %v19368_v45  ;;  %10069 = vst [vmem:[%s17018_s8 + $0xd8] sm:$0xff] %v9941_v51  ;;  %10325 = vst [vmem:[%s17024_s12 + $0xd8] sm:$0xff] %v10197_v37  ;;  %v19370_v52 = vsub.f32 %v19256_v18, %v17238_v56  ;;  %13061 = vrcp.f32 %v8473_v22  ;;  %v8091_v48 = vsub.f32 %v19371_v31, %v17318_v42  ;;  %v19373_v18 = vld [vmem:[#allocation212_spill] sm:$0xff]  ;;  %v19374_v22 = vld [vmem:[#allocation27_spill] sm:$0xff] }
 0x3ae   : > { %19369 = vst [vmem:[#allocation32_spill] sm:$0xff] %v17539_v19  ;;  %v17541_v50 = vpop.eup %13043  ;;  %10068 = vst [vmem:[%s17018_s8 + $0xd0] sm:$0xff] %v9940_v27  ;;  %13063 = vrcp.f32 %v8470_v43  ;;  %v8633_v39 = vsel %vm7609_vm2, %v13040_v47, 0.0  ;;  %v19372_v51 = vsub.f32 %v19264_v54, %v17254_v33  ;;  %v8090_v37 = vsub.f32 %v19373_v18, %v17335_v34  ;;  %v19377_v45 = vld [vmem:[#allocation213_spill] sm:$0xff]  ;;  %v19378_v31 = vld [vmem:[#allocation90_spill] sm:$0xff] }
 0x3af   : > { %v8308_v58 = vmul.f32 1.442695, %v19370_v52  ;;  %10324 = vst [vmem:[%s17024_s12 + $0xd0] sm:$0xff] %v10196_v40  ;;  %v13046_v44 = vpop.eup %13045  ;;  %13065 = vpow2.f32 %v9510_v14  ;;  %8625 = vadd.xlane.f32.xlu0 %v8624_v12  ;;  %v19375_v49 = vsub.f32 %v19265_v26, %v19374_v22  ;;  %v17560_v27 = vpop.xlane.xlu0 %7935  ;;  %v19376_v54 = vsub.f32 %v19278_v0, %v17275_v13  ;;  %v19379_v12 = vld [vmem:[#allocation60_spill] sm:$0xff] }
 0x3b0   : > { %v13048_v24 = vpop.eup %13047  ;;  %v8306_v23 = vmul.f32 1.442695, %v19372_v51  ;;  %8634 = vadd.xlane.f32.xlu1 %v8633_v39  ;;  %13067 = vpow2.f32 %v8302_v41  ;;  %v17562_v17 = vpop.xlane.xlu1 %7944  ;;  %v8316_v40 = vmul.f32 1.442695, %v8091_v48  ;;  %v8093_v43 = vsub.f32 %v19377_v45, %v17337_v28  ;;  %v19385_v28 = vld [vmem:[#allocation18_spill] sm:$0xff] }
 0x3b1   : > { %v8312_v57 = vmul.f32 1.442695, %v19375_v49  ;;  %v13050_v47 = vpop.eup %13049  ;;  %13069 = vpow2.f32 %v8308_v58  ;;  %v8310_v14 = vmul.f32 1.442695, %v19376_v54  ;;  %v8630_v41 = vsel %vm7609_vm2, %v13046_v44, 0.0  ;;  %v19380_v54 = vld [vmem:[#allocation198_spill] sm:$0xff] }
 0x3b2   : > { %v13052_v55 = vpop.eup %13051  ;;  %v8639_v26 = vsel %vm7609_vm2, %v13048_v24, 0.0  ;;  %v9331_v39 = vsub.f32 %v19379_v12, %v19378_v31  ;;  %13071 = vpow2.f32 %v8306_v23  ;;  %v8314_v51 = vmul.f32 1.442695, %v8090_v37  ;;  %v19382_v31 = vld [vmem:[#allocation214_spill] sm:$0xff] }
 0x3b3   : > { %v13054_v52 = vpop.eup %13053  ;;  %8631 = vadd.xlane.f32.xlu0 %v8630_v41  ;;  %13073 = vpow2.f32 %v8312_v57  ;;  %v17573_v0 = vpop.xlane.xlu0 %7941  ;;  %v8636_v44 = vsel %vm7609_vm2, %v13050_v47, 0.0  ;;  %v8320_v24 = vmul.f32 1.442695, %v8093_v43  ;;  %v8645_v23 = vsel %vm7609_vm2, %v13052_v55, 0.0  ;;  %v19381_v57 = vld [vmem:[#allocation17_spill] sm:$0xff]  ;;  %v13537_v43 = vld [vmem:[%s13853_s20 + $0xe8] sm:$0xff] }
 0x3b4   : > { %8640 = vadd.xlane.f32.xlu1 %v8639_v26  ;;  %v13056_v58 = vpop.eup %13055  ;;  %v8479_v48 = vpop.xlane.xlu1 %8478  ;;  %13075 = vpow2.f32 %v8310_v14  ;;  %v9516_v41 = vmul.f32 1.442695, %v9331_v39  ;;  %v8642_v14 = vsel %vm7609_vm2, %v13054_v52, 0.0  ;;  %v13538_v55 = vld [vmem:[%s13847_s17 + $0xe8] sm:$0xff] }
 0x3b5   : > { %v13058_v18 = vpop.eup %13057  ;;  %13077 = vpow2.f32 %v8316_v40  ;;  %v8092_v40 = vsub.f32 %v19382_v31, %v17352_v38  ;;  %v19384_v52 = vld [vmem:[#allocation215_spill] sm:$0xff]  ;;  %v13540_v38 = vld [vmem:[%s13847_s17 + $0xe0] sm:$0xff] }
 0x3b6   : > { %v13060_v49 = vpop.eup %13059  ;;  %v9815_v45 = vmul.f32 %v13058_v18, %v19380_v54  ;;  %13079 = vpow2.f32 %v8314_v51  ;;  %v19383_v51 = vld [vmem:[#allocation199_spill] sm:$0xff] }
 0x3b7   : > { %v13062_v37 = vpop.eup %13061  ;;  %v9814_v26 = vmul.f32 %v13060_v49, %v19381_v57  ;;  %8637 = vadd.xlane.f32.xlu0 %v8636_v44  ;;  %v8476_v49 = vpop.xlane.xlu0 %8475  ;;  %v13539_v57 = vld [vmem:[%s13853_s20 + $0xe0] sm:$0xff]  ;;  %13081 = vpow2.f32 %v8320_v24  ;;  %v13544_v24 = vld [vmem:[%s13847_s17 + $0xf0] sm:$0xff] }
 0x3b8   : > { %8646 = vadd.xlane.f32.xlu1 %v8645_v23  ;;  %v13064_v47 = vpop.eup %13063  ;;  %v9943_v12 = vmul.f32 %v13537_v43, %v9815_v45  ;;  %v10199_v39 = vmul.f32 %v13538_v55, %v9815_v45  ;;  %v9817_v18 = vmul.f32 %v13062_v37, %v19383_v51  ;;  %v8485_v44 = vpop.xlane.xlu1 %8484  ;;  %v8095_v23 = vsub.f32 %v19384_v52, %v17395_v30  ;;  %v13541_v37 = vld [vmem:[%s13853_s20 + $0xf8] sm:$0xff]  ;;  %v19386_v30 = vld [vmem:[#allocation216_spill] sm:$0xff] }
 0x3b9   : > { %v17585_v54 = vpop.eup %13065  ;;  %v9942_v31 = vmul.f32 %v13539_v57, %v9814_v26  ;;  %v10198_v43 = vmul.f32 %v13540_v38, %v9814_v26  ;;  %v9816_v34 = vmul.f32 %v13064_v47, %v19385_v28  ;;  %v13542_v51 = vld [vmem:[%s13847_s17 + $0xf8] sm:$0xff]  ;;  %v8651_v52 = vsel %vm7609_vm2, %v13056_v58, 0.0  ;;  %v13543_v28 = vld [vmem:[%s13853_s20 + $0xf0] sm:$0xff] }
 0x3ba   : > { %v13068_v45 = vpop.eup %13067  ;;  %10071 = vst [vmem:[%s17018_s8 + $0xe8] sm:$0xff] %v9943_v12  ;;  %10327 = vst [vmem:[%s17024_s12 + $0xe8] sm:$0xff] %v10199_v39  ;;  %v9945_v55 = vmul.f32 %v13541_v37, %v9817_v18  ;;  %v10201_v42 = vmul.f32 %v13542_v51, %v9817_v18  ;;  %v8094_v13 = vsub.f32 %v19386_v30, %v17410_v10  ;;  %13083 = vrcp.f32 %v8479_v48  ;;  %v19387_v12 = vld [vmem:[#allocation217_spill] sm:$0xff]  ;;  %v19390_v48 = vld [vmem:[#allocation220_spill] sm:$0xff] }
 0x3bb   : > { %v13070_v57 = vpop.eup %13069  ;;  %10070 = vst [vmem:[%s17018_s8 + $0xe0] sm:$0xff] %v9942_v31  ;;  %10326 = vst [vmem:[%s17024_s12 + $0xe0] sm:$0xff] %v10198_v43  ;;  %v9944_v38 = vmul.f32 %v13543_v28, %v9816_v34  ;;  %v10200_v26 = vmul.f32 %v13544_v24, %v9816_v34  ;;  %8643 = vadd.xlane.f32.xlu0 %v8642_v14  ;;  %v8318_v47 = vmul.f32 1.442695, %v8092_v40  ;;  %13085 = vrcp.f32 %v8476_v49  ;;  %v8482_v58 = vpop.xlane.xlu0 %8481  ;;  %v19389_v43 = vld [vmem:[#allocation218_spill] sm:$0xff] }
 0x3bc   : > { %8652 = vadd.xlane.f32.xlu1 %v8651_v52  ;;  %v8097_v39 = vsub.f32 %v19387_v12, %v17412_v29  ;;  %10073 = vst [vmem:[%s17018_s8 + $0xf8] sm:$0xff] %v9945_v55  ;;  %10329 = vst [vmem:[%s17024_s12 + $0xf8] sm:$0xff] %v10201_v42  ;;  %v17607_v30 = vpop.xlane.xlu1 %7950  ;;  %v13072_v18 = vpop.eup %13071  ;;  %v8324_v31 = vmul.f32 1.442695, %v8095_v23  ;;  %v8096_v37 = vsub.f32 %v19389_v43, %v17427_v32  ;;  %13087 = vrcp.f32 %v8485_v44  ;;  %v19391_v23 = vld [vmem:[#allocation222_spill] sm:$0xff]  ;;  %v19396_v43 = vld [vmem:[#allocation61_spill] sm:$0xff] }
 0x3bd   : > { %19388 = vst [vmem:[#allocation33_spill] sm:$0xff] %v17607_v30  ;;  %10072 = vst [vmem:[%s17018_s8 + $0xf0] sm:$0xff] %v9944_v38  ;;  %v13074_v34 = vpop.eup %13073  ;;  %v8099_v14 = vsub.f32 %v19390_v48, %v17468_v36  ;;  %13089 = vrcp.f32 %v8482_v58  ;;  %v8648_v40 = vsel %vm7609_vm2, %v13068_v45, 0.0  ;;  %v8657_v42 = vsel %vm7609_vm2, %v13070_v57, 0.0  ;;  %v19394_v57 = vld [vmem:[#allocation223_spill] sm:$0xff]  ;;  %v19395_v58 = vld [vmem:[#allocation169_spill] sm:$0xff] }
 0x3be   : > { %10328 = vst [vmem:[%s17024_s12 + $0xf0] sm:$0xff] %v10200_v26  ;;  %v13076_v49 = vpop.eup %13075  ;;  %13091 = vpow2.f32 %v9516_v41  ;;  %v8322_v55 = vmul.f32 1.442695, %v8094_v13  ;;  %v8098_v51 = vsub.f32 %v19391_v23, %v17485_v6  ;;  %v8328_v44 = vmul.f32 1.442695, %v8097_v39 }
 0x3bf   : > { %8649 = vadd.xlane.f32.xlu0 %v8648_v40  ;;  %v13078_v52 = vpop.eup %13077  ;;  %13093 = vpow2.f32 %v8318_v47  ;;  %v17619_v28 = vpop.xlane.xlu0 %7947  ;;  %v8326_v45 = vmul.f32 1.442695, %v8096_v37  ;;  %v8332_v26 = vmul.f32 1.442695, %v8099_v14  ;;  %v8101_v41 = vsub.f32 %v19394_v57, %v17487_v4 }
 0x3c0   : > { %8658 = vadd.xlane.f32.xlu1 %v8657_v42  ;;  %19392 = vst [vmem:[#allocation34_spill] sm:$0xff] %v17619_v28  ;;  %v17621_v38 = vpop.xlane.xlu1 %7956  ;;  %v13080_v24 = vpop.eup %13079  ;;  %13095 = vpow2.f32 %v8324_v31  ;;  %v8654_v13 = vsel %vm7609_vm2, %v13072_v18, 0.0  ;;  %v8663_v12 = vsel %vm7609_vm2, %v13074_v34, 0.0  ;;  %v9330_v48 = vsub.f32 %v19396_v43, %v19395_v58  ;;  %v19398_v42 = vld [vmem:[#allocation201_spill] sm:$0xff] }
 0x3c1   : > { %19393 = vst [vmem:[#allocation184_spill] sm:$0xff] %v17621_v38  ;;  %13097 = vpow2.f32 %v8322_v55  ;;  %v8330_v47 = vmul.f32 1.442695, %v8098_v51  ;;  %v13082_v39 = vpop.eup %13081  ;;  %v8660_v14 = vsel %vm7609_vm2, %v13076_v49, 0.0  ;;  %v8336_v34 = vmul.f32 1.442695, %v8101_v41 }
 0x3c2   : > { %13099 = vpow2.f32 %v8328_v44  ;;  %v8669_v55 = vsel %vm7609_vm2, %v13078_v52, 0.0  ;;  %v9514_v57 = vmul.f32 1.442695, %v9330_v48  ;;  %v19399_v44 = vld [vmem:[#allocation19_spill] sm:$0xff]  ;;  %v19401_v48 = vld [vmem:[#allocation20_spill] sm:$0xff] }
 0x3c3   : > { %8655 = vadd.xlane.f32.xlu0 %v8654_v13  ;;  %v17629_v40 = vpop.xlane.xlu0 %7953  ;;  %13101 = vpow2.f32 %v8326_v45  ;;  %v8666_v45 = vsel %vm7609_vm2, %v13080_v24, 0.0  ;;  %v13545_v41 = vld [vmem:[%s13853_s20 + $0x108] sm:$0xff]  ;;  %v19402_v24 = vld [vmem:[#allocation225_spill] sm:$0xff] }
 0x3c4   : > { %8664 = vadd.xlane.f32.xlu1 %v8663_v12  ;;  %19397 = vst [vmem:[#allocation35_spill] sm:$0xff] %v17629_v40  ;;  %v8491_v31 = vpop.xlane.xlu1 %8490  ;;  %v13084_v37 = vpop.eup %13083  ;;  %13103 = vpow2.f32 %v8332_v26  ;;  %v19400_v12 = vld [vmem:[#allocation224_spill] sm:$0xff]  ;;  %v13546_v52 = vld [vmem:[%s13847_s17 + $0x108] sm:$0xff] }
 0x3c5   : > { %v13086_v18 = vpop.eup %13085  ;;  %v9819_v23 = vmul.f32 %v13084_v37, %v19398_v42  ;;  %13105 = vpow2.f32 %v8330_v47  ;;  %v8100_v26 = vsub.f32 %v19400_v12, %v17500_v16  ;;  %v8103_v42 = vsub.f32 %v19402_v24, %v17539_v19  ;;  %v13548_v12 = vld [vmem:[%s13847_s17 + $0x100] sm:$0xff]  ;;  %v19403_v16 = vld [vmem:[#allocation163_spill] sm:$0xff] }
 0x3c6   : > { %v13088_v51 = vpop.eup %13087  ;;  %v9818_v13 = vmul.f32 %v13086_v18, %v19399_v44  ;;  %13107 = vpow2.f32 %v8336_v34  ;;  %v8675_v24 = vsel %vm7609_vm2, %v13082_v39, 0.0  ;;  %v19404_v19 = vld [vmem:[#allocation226_spill] sm:$0xff]  ;;  %v13552_v34 = vld [vmem:[%s13847_s17 + $0x110] sm:$0xff] }
 0x3c7   : > { %8661 = vadd.xlane.f32.xlu0 %v8660_v14  ;;  %v13090_v49 = vpop.eup %13089  ;;  %v9947_v58 = vmul.f32 %v13545_v41, %v9819_v23  ;;  %v10203_v43 = vmul.f32 %v13546_v52, %v9819_v23  ;;  %v9821_v47 = vmul.f32 %v13088_v51, %v19401_v48  ;;  %v8488_v37 = vpop.xlane.xlu0 %8487  ;;  %v13549_v51 = vld [vmem:[%s13853_s20 + $0x118] sm:$0xff]  ;;  %v8102_v36 = vsub.f32 %v19404_v19, %v17560_v27 }
 0x3c8   : > { %8670 = vadd.xlane.f32.xlu1 %v8669_v55  ;;  %v8497_v14 = vpop.xlane.xlu1 %8496  ;;  %v17641_v18 = vpop.eup %13091  ;;  %v13547_v55 = vld [vmem:[%s13853_s20 + $0x100] sm:$0xff]  ;;  %v10202_v41 = vmul.f32 %v13548_v12, %v9818_v13  ;;  %v9820_v4 = vmul.f32 %v13090_v49, %v19403_v16  ;;  %v13550_v48 = vld [vmem:[%s13847_s17 + $0x118] sm:$0xff]  ;;  %v13551_v16 = vld [vmem:[%s13853_s20 + $0x110] sm:$0xff]  ;;  %13109 = vrcp.f32 %v8491_v31  ;;  %v8340_v12 = vmul.f32 1.442695, %v8103_v42 }
 0x3c9   : > { %v9946_v44 = vmul.f32 %v13547_v55, %v9818_v13  ;;  %v13094_v23 = vpop.eup %13093  ;;  %10075 = vst [vmem:[%s17018_s8 + $0x108] sm:$0xff] %v9947_v58  ;;  %10331 = vst [vmem:[%s17024_s12 + $0x108] sm:$0xff] %v10203_v43  ;;  %v9949_v52 = vmul.f32 %v13549_v51, %v9821_v47  ;;  %v10205_v6 = vmul.f32 %v13550_v48, %v9821_v47  ;;  %v8334_v58 = vmul.f32 1.442695, %v8100_v26  ;;  %v19405_v43 = vld [vmem:[#allocation227_spill] sm:$0xff]  ;;  %v19407_v31 = vld [vmem:[#allocation232_spill] sm:$0xff] }
 0x3ca   : > { %v13096_v55 = vpop.eup %13095  ;;  %10330 = vst [vmem:[%s17024_s12 + $0x100] sm:$0xff] %v10202_v41  ;;  %v9948_v13 = vmul.f32 %v13551_v16, %v9820_v4  ;;  %v10204_v49 = vmul.f32 %v13552_v34, %v9820_v4  ;;  %v8105_v47 = vsub.f32 %v19405_v43, %v17562_v17  ;;  %13111 = vrcp.f32 %v8488_v37  ;;  %v19406_v41 = vld [vmem:[#allocation228_spill] sm:$0xff]  ;;  %v19408_v42 = vld [vmem:[#allocation234_spill] sm:$0xff] }
 0x3cb   : > { %10074 = vst [vmem:[%s17018_s8 + $0x100] sm:$0xff] %v9946_v44  ;;  %8667 = vadd.xlane.f32.xlu0 %v8666_v45  ;;  %10077 = vst [vmem:[%s17018_s8 + $0x118] sm:$0xff] %v9949_v52  ;;  %v8494_v39 = vpop.xlane.xlu0 %8493  ;;  %v13098_v44 = vpop.eup %13097  ;;  %v8104_v51 = vsub.f32 %v19406_v41, %v17573_v0  ;;  %13113 = vrcp.f32 %v8497_v14  ;;  %v8107_v45 = vsub.f32 %v19407_v31, %v17607_v30  ;;  %v8672_v26 = vsel %vm7609_vm2, %v13094_v23, 0.0 }
 0x3cc   : > { %8676 = vadd.xlane.f32.xlu1 %v8675_v24  ;;  %10333 = vst [vmem:[%s17024_s12 + $0x118] sm:$0xff] %v10205_v6  ;;  %v17663_v19 = vpop.xlane.xlu1 %7962  ;;  %10076 = vst [vmem:[%s17018_s8 + $0x110] sm:$0xff] %v9948_v13  ;;  %v13100_v4 = vpop.eup %13099  ;;  %13115 = vrcp.f32 %v8494_v39  ;;  %v8681_v6 = vsel %vm7609_vm2, %v13096_v55, 0.0  ;;  %v8338_v52 = vmul.f32 1.442695, %v8102_v36  ;;  %v8106_v48 = vsub.f32 %v19408_v42, %v17619_v28  ;;  %v19410_v55 = vld [vmem:[#allocation235_spill] sm:$0xff] }
 0x3cd   : > { %10332 = vst [vmem:[%s17024_s12 + $0x110] sm:$0xff] %v10204_v49  ;;  %v13102_v37 = vpop.eup %13101  ;;  %13117 = vpow2.f32 %v9514_v57  ;;  %v8344_v14 = vmul.f32 1.442695, %v8105_v47  ;;  %v8342_v23 = vmul.f32 1.442695, %v8104_v51  ;;  %v8109_v57 = vsub.f32 %v19410_v55, %v17621_v38  ;;  %v19413_v51 = vld [vmem:[#allocation62_spill] sm:$0xff] }
 0x3ce   : > { %v13104_v24 = vpop.eup %13103  ;;  %13119 = vpow2.f32 %v8334_v58  ;;  %v8348_v49 = vmul.f32 1.442695, %v8107_v45  ;;  %v8678_v36 = vsel %vm7609_vm2, %v13098_v44, 0.0  ;;  %v8687_v43 = vsel %vm7609_vm2, %v13100_v4, 0.0  ;;  %v19416_v55 = vld [vmem:[#allocation63_spill] sm:$0xff] }
 0x3cf   : > { %8673 = vadd.xlane.f32.xlu0 %v8672_v26  ;;  %v17675_v16 = vpop.xlane.xlu0 %7959  ;;  %v13106_v34 = vpop.eup %13105  ;;  %13121 = vpow2.f32 %v8340_v12  ;;  %v8346_v39 = vmul.f32 1.442695, %v8106_v48  ;;  %v19412_v12 = vld [vmem:[#allocation2_spill] sm:$0xff]  ;;  %v8684_v26 = vsel %vm7609_vm2, %v13102_v37, 0.0  ;;  %v8352_v4 = vmul.f32 1.442695, %v8109_v57 }
 0x3d0   : > { %8682 = vadd.xlane.f32.xlu1 %v8681_v6  ;;  %v17677_v13 = vpop.xlane.xlu1 %7968  ;;  %13123 = vpow2.f32 %v8338_v52  ;;  %v13108_v58 = vpop.eup %13107  ;;  %v9333_v45 = vsub.f32 %v19413_v51, %v19412_v12  ;;  %v19414_v6 = vld [vmem:[#allocation206_spill] sm:$0xff]  ;;  %v8693_v42 = vsel %vm7609_vm2, %v13104_v24, 0.0  ;;  %v8690_v37 = vsel %vm7609_vm2, %v13106_v34, 0.0  ;;  %v13554_v51 = vld [vmem:[%s13847_s17 + $0x128] sm:$0xff] }
 0x3d1   : > { %19409 = vst [vmem:[#allocation186_spill] sm:$0xff] %v17677_v13  ;;  %13125 = vpow2.f32 %v8344_v14  ;;  %v19415_v14 = vld [vmem:[#allocation92_spill] sm:$0xff]  ;;  %v19421_v38 = vld [vmem:[#allocation239_spill] sm:$0xff]  ;;  %v8699_v30 = vsel %vm7609_vm2, %v13108_v58, 0.0 }
 0x3d2   : > { %v13110_v31 = vpop.eup %13109  ;;  %13127 = vpow2.f32 %v8342_v23  ;;  %v8111_v28 = vsub.f32 %v19421_v38, %v17663_v19 }
 0x3d3   : > { %8679 = vadd.xlane.f32.xlu0 %v8678_v36  ;;  %v17683_v47 = vpop.xlane.xlu0 %7965  ;;  %13129 = vpow2.f32 %v8348_v49  ;;  %v9823_v52 = vmul.f32 %v13110_v31, %v19414_v6  ;;  %v9332_v36 = vsub.f32 %v19416_v55, %v19415_v14  ;;  %v19418_v49 = vld [vmem:[#allocation236_spill] sm:$0xff]  ;;  %v13553_v31 = vld [vmem:[%s13853_s20 + $0x128] sm:$0xff]  ;;  %v19419_v14 = vld [vmem:[#allocation22_spill] sm:$0xff] }
 0x3d4   : > { %8688 = vadd.xlane.f32.xlu1 %v8687_v43  ;;  %19411 = vst [vmem:[#allocation36_spill] sm:$0xff] %v17683_v47  ;;  %v8503_v41 = vpop.xlane.xlu1 %8502  ;;  %v13112_v44 = vpop.eup %13111  ;;  %13131 = vpow2.f32 %v8346_v39  ;;  %v19417_v43 = vld [vmem:[#allocation164_spill] sm:$0xff]  ;;  %v8108_v57 = vsub.f32 %v19418_v49, %v17629_v40 }
 0x3d5   : > { %v13114_v48 = vpop.eup %13113  ;;  %v9822_v12 = vmul.f32 %v13112_v44, %v19417_v43  ;;  %v9951_v24 = vmul.f32 %v13553_v31, %v9823_v52  ;;  %v10207_v6 = vmul.f32 %v13554_v51, %v9823_v52  ;;  %v13556_v43 = vld [vmem:[%s13847_s17 + $0x120] sm:$0xff]  ;;  %v19420_v40 = vld [vmem:[#allocation168_spill] sm:$0xff]  ;;  %13133 = vpow2.f32 %v8352_v4 }
 0x3d6   : > { %v13116_v23 = vpop.eup %13115  ;;  %v9825_v39 = vmul.f32 %v13114_v48, %v19419_v14  ;;  %v13557_v48 = vld [vmem:[%s13853_s20 + $0x138] sm:$0xff]  ;;  %13135 = vrcp.f32 %v8503_v41 }
 0x3d7   : > { %8685 = vadd.xlane.f32.xlu0 %v8684_v26  ;;  %v8500_v44 = vpop.xlane.xlu0 %8499  ;;  %v17699_v26 = vpop.eup %13117  ;;  %v10206_v49 = vmul.f32 %v13556_v43, %v9822_v12  ;;  %v9824_v31 = vmul.f32 %v13116_v23, %v19420_v40  ;;  %10079 = vst [vmem:[%s17018_s8 + $0x128] sm:$0xff] %v9951_v24  ;;  %10335 = vst [vmem:[%s17024_s12 + $0x128] sm:$0xff] %v10207_v6  ;;  %v13558_v14 = vld [vmem:[%s13847_s17 + $0x138] sm:$0xff]  ;;  %v9520_v43 = vmul.f32 1.442695, %v9333_v45  ;;  %v13559_v40 = vld [vmem:[%s13853_s20 + $0x130] sm:$0xff] }
 0x3d8   : > { %8694 = vadd.xlane.f32.xlu1 %v8693_v42  ;;  %v8509_v55 = vpop.xlane.xlu1 %8508  ;;  %v13555_v42 = vld [vmem:[%s13853_s20 + $0x120] sm:$0xff]  ;;  %v13120_v52 = vpop.eup %13119  ;;  %v9953_v51 = vmul.f32 %v13557_v48, %v9825_v39  ;;  %v13560_v23 = vld [vmem:[%s13847_s17 + $0x130] sm:$0xff]  ;;  %v8350_v24 = vmul.f32 1.442695, %v8108_v57  ;;  %v19422_v6 = vld [vmem:[#allocation241_spill] sm:$0xff]  ;;  %13137 = vrcp.f32 %v8500_v44 }
 0x3d9   : > { %v9950_v34 = vmul.f32 %v13555_v42, %v9822_v12  ;;  %v10209_v42 = vmul.f32 %v13558_v14, %v9825_v39  ;;  %v13122_v12 = vpop.eup %13121  ;;  %10334 = vst [vmem:[%s17024_s12 + $0x120] sm:$0xff] %v10206_v49  ;;  %v9952_v38 = vmul.f32 %v13559_v40, %v9824_v31  ;;  %v10208_v4 = vmul.f32 %v13560_v23, %v9824_v31  ;;  %v19424_v48 = vld [vmem:[#allocation242_spill] sm:$0xff] }
 0x3da   : > { %10081 = vst [vmem:[%s17018_s8 + $0x138] sm:$0xff] %v9953_v51  ;;  %v8110_v39 = vsub.f32 %v19422_v6, %v17675_v16  ;;  %v8356_v49 = vmul.f32 1.442695, %v8111_v28  ;;  %v8113_v31 = vsub.f32 %v19424_v48, %v17677_v13  ;;  %13139 = vrcp.f32 %v8509_v55  ;;  %v19440_v13 = vld [vmem:[#allocation5_spill] sm:$0xff] }
 0x3db   : > { %10078 = vst [vmem:[%s17018_s8 + $0x120] sm:$0xff] %v9950_v34  ;;  %8691 = vadd.xlane.f32.xlu0 %v8690_v37  ;;  %10337 = vst [vmem:[%s17024_s12 + $0x138] sm:$0xff] %v10209_v42  ;;  %v8506_v58 = vpop.xlane.xlu0 %8505  ;;  %v13124_v34 = vpop.eup %13123  ;;  %v8696_v57 = vsel %vm7609_vm2, %v13120_v52, 0.0  ;;  %v8705_v44 = vsel %vm7609_vm2, %v13122_v12, 0.0  ;;  %v9518_v14 = vmul.f32 1.442695, %v9332_v36 }
 0x3dc   : > { %8700 = vadd.xlane.f32.xlu1 %v8699_v30  ;;  %v17719_v45 = vpop.xlane.xlu1 %7974  ;;  %10080 = vst [vmem:[%s17018_s8 + $0x130] sm:$0xff] %v9952_v38  ;;  %10336 = vst [vmem:[%s17024_s12 + $0x130] sm:$0xff] %v10208_v4  ;;  %v13126_v41 = vpop.eup %13125  ;;  %v19425_v30 = vld [vmem:[#allocation243_spill] sm:$0xff]  ;;  %13141 = vrcp.f32 %v8506_v58  ;;  %v19426_v42 = vld [vmem:[#allocation246_spill] sm:$0xff]  ;;  %v8354_v55 = vmul.f32 1.442695, %v8110_v39 }
 0x3dd   : > { %19423 = vst [vmem:[#allocation37_spill] sm:$0xff] %v17719_v45  ;;  %v8112_v37 = vsub.f32 %v19425_v30, %v17683_v47  ;;  %v13128_v51 = vpop.eup %13127  ;;  %13143 = vpow2.f32 %v9520_v43  ;;  %v8115_v40 = vsub.f32 %v19426_v42, %v17719_v45  ;;  %v8360_v52 = vmul.f32 1.442695, %v8113_v31  ;;  %v19429_v12 = vld [vmem:[#allocation247_spill] sm:$0xff]  ;;  %v19430_v36 = vld [vmem:[#allocation248_spill] sm:$0xff] }
 0x3de   : > { %v13130_v28 = vpop.eup %13129  ;;  %13145 = vpow2.f32 %v8350_v24  ;;  %v8702_v48 = vsel %vm7609_vm2, %v13124_v34, 0.0  ;;  %v8711_v30 = vsel %vm7609_vm2, %v13126_v41, 0.0  ;;  %v19431_v24 = vld [vmem:[#allocation93_spill] sm:$0xff]  ;;  %v19432_v39 = vld [vmem:[#allocation64_spill] sm:$0xff]  ;;  %v8708_v41 = vsel %vm7609_vm2, %v13128_v51, 0.0 }
 0x3df   : > { %8697 = vadd.xlane.f32.xlu0 %v8696_v57  ;;  %v17731_v38 = vpop.xlane.xlu0 %7971  ;;  %v13132_v4 = vpop.eup %13131  ;;  %13147 = vpow2.f32 %v8356_v49  ;;  %v8358_v43 = vmul.f32 1.442695, %v8112_v37  ;;  %v9335_v57 = vsub.f32 %v19432_v39, %v19431_v24 }
 0x3e0   : > { %8706 = vadd.xlane.f32.xlu1 %v8705_v44  ;;  %19427 = vst [vmem:[#allocation112_spill] sm:$0xff] %v17731_v38  ;;  %v17733_v23 = vpop.xlane.xlu1 %7980  ;;  %v8114_v6 = vsub.f32 %v19429_v12, %v17731_v38  ;;  %13149 = vpow2.f32 %v9518_v14  ;;  %v8364_v44 = vmul.f32 1.442695, %v8115_v40  ;;  %v13134_v49 = vpop.eup %13133  ;;  %v19434_v12 = vld [vmem:[#allocation173_spill] sm:$0xff] }
 0x3e1   : > { %19428 = vst [vmem:[#allocation238_spill] sm:$0xff] %v17733_v23  ;;  %v8117_v58 = vsub.f32 %v19430_v36, %v17733_v23  ;;  %13151 = vpow2.f32 %v8354_v55  ;;  %v13136_v37 = vpop.eup %13135  ;;  %v19435_v38 = vld [vmem:[#allocation65_spill] sm:$0xff]  ;;  %v8717_v55 = vsel %vm7609_vm2, %v13130_v28, 0.0  ;;  %v9524_v39 = vmul.f32 1.442695, %v9335_v57  ;;  %v19438_v28 = vld [vmem:[#allocation26_spill] sm:$0xff] }
 0x3e2   : > { %13153 = vpow2.f32 %v8360_v52  ;;  %v8362_v34 = vmul.f32 1.442695, %v8114_v6  ;;  %v13138_v14 = vpop.eup %13137  ;;  %v19436_v40 = vld [vmem:[#allocation229_spill] sm:$0xff]  ;;  %v8714_v52 = vsel %vm7609_vm2, %v13132_v4, 0.0  ;;  %v13561_v6 = vld [vmem:[%s13853_s20 + $0x148] sm:$0xff]  ;;  %v13564_v36 = vld [vmem:[%s13847_s17 + $0x140] sm:$0xff] }
 0x3e3   : > { %8703 = vadd.xlane.f32.xlu0 %v8702_v48  ;;  %v17743_v31 = vpop.xlane.xlu0 %7977  ;;  %13155 = vpow2.f32 %v8358_v43  ;;  %v9827_v48 = vmul.f32 %v13136_v37, %v19436_v40  ;;  %v19437_v23 = vld [vmem:[#allocation25_spill] sm:$0xff]  ;;  %v13562_v37 = vld [vmem:[%s13847_s17 + $0x148] sm:$0xff] }
 0x3e4   : > { %8712 = vadd.xlane.f32.xlu1 %v8711_v30  ;;  %19433 = vst [vmem:[#allocation114_spill] sm:$0xff] %v17743_v31  ;;  %v8515_v42 = vpop.xlane.xlu1 %8514  ;;  %v8368_v30 = vmul.f32 1.442695, %v8117_v58  ;;  %v13140_v24 = vpop.eup %13139  ;;  %v9826_v45 = vmul.f32 %v13138_v14, %v19437_v23  ;;  %13157 = vpow2.f32 %v8364_v44  ;;  %v19439_v57 = vld [vmem:[#allocation249_spill] sm:$0xff] }
 0x3e5   : > { %v9955_v43 = vmul.f32 %v13561_v6, %v9827_v48  ;;  %v10211_v58 = vmul.f32 %v13562_v37, %v9827_v48  ;;  %v9829_v40 = vmul.f32 %v13140_v24, %v19438_v28  ;;  %v8116_v23 = vsub.f32 %v19439_v57, %v17743_v31  ;;  %v13565_v24 = vld [vmem:[%s13853_s20 + $0x158] sm:$0xff] }
 0x3e6   : > { %v13142_v51 = vpop.eup %13141  ;;  %v10210_v6 = vmul.f32 %v13564_v36, %v9826_v45  ;;  %13159 = vpow2.f32 %v8362_v34  ;;  %v13566_v28 = vld [vmem:[%s13847_s17 + $0x158] sm:$0xff] }
 0x3e7   : > { %8709 = vadd.xlane.f32.xlu0 %v8708_v41  ;;  %v8512_v44 = vpop.xlane.xlu0 %8511  ;;  %v17757_v41 = vpop.eup %13143  ;;  %v9828_v47 = vmul.f32 %v13142_v51, %v17295_v61  ;;  %10083 = vst [vmem:[%s17018_s8 + $0x148] sm:$0xff] %v9955_v43  ;;  %10339 = vst [vmem:[%s17024_s12 + $0x148] sm:$0xff] %v10211_v58  ;;  %v9957_v37 = vmul.f32 %v13565_v24, %v9829_v40  ;;  %v10213_v57 = vmul.f32 %v13566_v28, %v9829_v40  ;;  %v13567_v61 = vld [vmem:[%s13853_s20 + $0x150] sm:$0xff]  ;;  %v19442_v58 = vld [vmem:[#allocation174_spill] sm:$0xff] }
 0x3e8   : > { %8718 = vadd.xlane.f32.xlu1 %v8717_v55  ;;  %v8521_v14 = vpop.xlane.xlu1 %8520  ;;  %v13563_v55 = vld [vmem:[%s13853_s20 + $0x140] sm:$0xff]  ;;  %v13146_v48 = vpop.eup %13145  ;;  %13161 = vpow2.f32 %v8368_v30  ;;  %10338 = vst [vmem:[%s17024_s12 + $0x140] sm:$0xff] %v10210_v6  ;;  %v13568_v51 = vld [vmem:[%s13847_s17 + $0x150] sm:$0xff]  ;;  %v19443_v40 = vld [vmem:[#allocation67_spill] sm:$0xff]  ;;  %v19445_v6 = vsub.f32 %v19435_v38, %v19434_v12 }
 0x3e9   : > { %v9954_v4 = vmul.f32 %v13563_v55, %v9826_v45  ;;  %v8723_v55 = vsel %vm7609_vm2, %v13134_v49, 0.0  ;;  %v13148_v31 = vpop.eup %13147  ;;  %v19441_v45 = vld [vmem:[#allocation66_spill] sm:$0xff]  ;;  %v9956_v34 = vmul.f32 %v13567_v61, %v9828_v47  ;;  %v10212_v43 = vmul.f32 %v13568_v51, %v9828_v47  ;;  %10085 = vst [vmem:[%s17018_s8 + $0x158] sm:$0xff] %v9957_v37  ;;  %10341 = vst [vmem:[%s17024_s12 + $0x158] sm:$0xff] %v10213_v57  ;;  %v19444_v47 = vld [vmem:[#allocation252_spill] sm:$0xff] }
 0x3ea   : > { %v9337_v36 = vsub.f32 %v19441_v45, %v19440_v13  ;;  %13163 = vrcp.f32 %v8515_v42  ;;  %v9336_v30 = vsub.f32 %v19443_v40, %v19442_v58  ;;  %v8366_v49 = vmul.f32 1.442695, %v8116_v23  ;;  %v19446_v61 = vld [vmem:[#allocation3_spill] sm:$0xff] }
 0x3eb   : > { %10082 = vst [vmem:[%s17018_s8 + $0x140] sm:$0xff] %v9954_v4  ;;  %8715 = vadd.xlane.f32.xlu0 %v8714_v52  ;;  %13165 = vrcp.f32 %v8512_v44  ;;  %v8518_v24 = vpop.xlane.xlu0 %8517  ;;  %v17779_v4 = vpop.eup %13149  ;;  %10084 = vst [vmem:[%s17018_s8 + $0x150] sm:$0xff] %v9956_v34  ;;  %v9522_v28 = vmul.f32 1.442695, %v19445_v6  ;;  %v8720_v23 = vsel %vm7609_vm2, %v13146_v48, 0.0  ;;  %v8729_v44 = vsel %vm7609_vm2, %v13148_v31, 0.0 }
 0x3ec   : > { %8724 = vadd.xlane.f32.xlu1 %v8723_v55  ;;  %v17777_v13 = vpop.xlane.xlu1 %7986  ;;  %10340 = vst [vmem:[%s17024_s12 + $0x150] sm:$0xff] %v10212_v43  ;;  %13167 = vrcp.f32 %v8521_v14  ;;  %v13152_v52 = vpop.eup %13151  ;;  %v9528_v57 = vmul.f32 1.442695, %v9337_v36  ;;  %v9526_v45 = vmul.f32 1.442695, %v9336_v30  ;;  %v19447_v34 = vld [vmem:[#allocation68_spill] sm:$0xff] }
 0x3ed   : > { %v8119_v42 = vsub.f32 %v19444_v47, %v17777_v13  ;;  %13169 = vrcp.f32 %v8518_v24  ;;  %v13154_v37 = vpop.eup %13153  ;;  %v9339_v51 = vsub.f32 %v19447_v34, %v19446_v61  ;;  %v19448_v48 = vld [vmem:[#allocation69_spill] sm:$0xff]  ;;  %v19450_v58 = vld [vmem:[#allocation255_spill] sm:$0xff]  ;;  %v8726_v30 = vsel %vm7609_vm2, %v13152_v52, 0.0  ;;  %v19451_v52 = vld [vmem:[#allocation256_spill] sm:$0xff] }
 0x3ee   : > { %13171 = vpow2.f32 %v9524_v39  ;;  %v13156_v14 = vpop.eup %13155  ;;  %v9338_v31 = vsub.f32 %v19448_v48, %v19276_v59  ;;  %v19449_v39 = vld [vmem:[#allocation254_spill] sm:$0xff] }
 0x3ef   : > { %v8372_v55 = vmul.f32 1.442695, %v8119_v42  ;;  %8721 = vadd.xlane.f32.xlu0 %v8720_v23  ;;  %13173 = vpow2.f32 %v8366_v49  ;;  %v17792_v43 = vpop.xlane.xlu0 %7983  ;;  %v13158_v12 = vpop.eup %13157  ;;  %v8735_v49 = vsel %vm7609_vm2, %v13154_v37, 0.0  ;;  %v19453_v34 = vld [vmem:[#allocation70_spill] sm:$0xff] }
 0x3f0   : > { %8730 = vadd.xlane.f32.xlu1 %v8729_v44  ;;  %v17794_v38 = vpop.xlane.xlu1 %7992  ;;  %v8118_v36 = vsub.f32 %v19449_v39, %v17792_v43  ;;  %v13160_v24 = vpop.eup %13159  ;;  %v17806_v61 = vmul.f32 1.442695, %v9338_v31 }
 0x3f1   : > { %13175 = vpow2.f32 %v8372_v55  ;;  %v8121_v40 = vsub.f32 %v19450_v58, %v17794_v38  ;;  %v9532_v55 = vmul.f32 1.442695, %v9339_v51 }
 0x3f2   : > { %13177 = vpow2.f32 %v9522_v28  ;;  %v8370_v47 = vmul.f32 1.442695, %v8118_v36  ;;  %v13162_v6 = vpop.eup %13161  ;;  %v8741_v36 = vsel %vm7609_vm2, %v13158_v12, 0.0 }
 0x3f3   : > { %13179 = vpow2.f32 %v9528_v57  ;;  %v8376_v42 = vmul.f32 1.442695, %v8121_v40  ;;  %8727 = vadd.xlane.f32.xlu0 %v8726_v30  ;;  %v17804_v59 = vpop.xlane.xlu0 %7989  ;;  %v19452_v57 = vld [vmem:[#allocation175_spill] sm:$0xff]  ;;  %v8738_v40 = vsel %vm7609_vm2, %v13160_v24, 0.0  ;;  %v13572_v24 = vld [vmem:[%s13847_s17 + $0x160] sm:$0xff] }
 0x3f4   : > { %8736 = vadd.xlane.f32.xlu1 %v8735_v49  ;;  %13181 = vpow2.f32 %v9526_v45  ;;  %v8527_v23 = vpop.xlane.xlu1 %8526  ;;  %v13164_v44 = vpop.eup %13163  ;;  %v8120_v28 = vsub.f32 %v19451_v52, %v17804_v59  ;;  %v9341_v48 = vsub.f32 %v19453_v34, %v19452_v57  ;;  %v8732_v45 = vsel %vm7609_vm2, %v13156_v14, 0.0  ;;  %v13569_v49 = vld [vmem:[%s13853_s20 + $0x168] sm:$0xff]  ;;  %v13571_v52 = vld [vmem:[%s13853_s20 + $0x160] sm:$0xff] }
 0x3f5   : > { %13183 = vpow2.f32 %v8370_v47  ;;  %v13166_v37 = vpop.eup %13165  ;;  %v9831_v39 = vmul.f32 %v13164_v44, %v17311_v1  ;;  %v13570_v1 = vld [vmem:[%s13847_s17 + $0x168] sm:$0xff] }
 0x3f6   : > { %v13168_v58 = vpop.eup %13167  ;;  %v9830_v51 = vmul.f32 %v13166_v37, %v17320_v25  ;;  %13185 = vpow2.f32 %v8376_v42  ;;  %v8374_v31 = vmul.f32 1.442695, %v8120_v28 }
 0x3f7   : > { %8733 = vadd.xlane.f32.xlu0 %v8732_v45  ;;  %v13170_v30 = vpop.eup %13169  ;;  %v9959_v47 = vmul.f32 %v13569_v49, %v9831_v39  ;;  %v10215_v14 = vmul.f32 %v13570_v1, %v9831_v39  ;;  %v9833_v12 = vmul.f32 %v13168_v58, %v17372_v5  ;;  %13187 = vrcp.f32 %v8527_v23  ;;  %v8524_v25 = vpop.xlane.xlu0 %8523  ;;  %v13573_v5 = vld [vmem:[%s13853_s20 + $0x178] sm:$0xff]  ;;  %v19454_v49 = vld [vmem:[#allocation71_spill] sm:$0xff] }
 0x3f8   : > { %8742 = vadd.xlane.f32.xlu1 %v8741_v36  ;;  %v8533_v42 = vpop.xlane.xlu1 %8532  ;;  %v17820_v44 = vpop.eup %13171  ;;  %v9958_v28 = vmul.f32 %v13571_v52, %v9830_v51  ;;  %v10214_v37 = vmul.f32 %v13572_v24, %v9830_v51  ;;  %v9832_v57 = vmul.f32 %v13170_v30, %v17388_v20  ;;  %13189 = vpow2.f32 %v8374_v31  ;;  %v13574_v39 = vld [vmem:[%s13847_s17 + $0x178] sm:$0xff]  ;;  %v13575_v20 = vld [vmem:[%s13853_s20 + $0x170] sm:$0xff] }
 0x3f9   : > { %v13174_v34 = vpop.eup %13173  ;;  %10087 = vst [vmem:[%s17018_s8 + $0x168] sm:$0xff] %v9959_v47  ;;  %10343 = vst [vmem:[%s17024_s12 + $0x168] sm:$0xff] %v10215_v14  ;;  %v9961_v23 = vmul.f32 %v13573_v5, %v9833_v12  ;;  %v10217_v45 = vmul.f32 %v13574_v39, %v9833_v12  ;;  %13191 = vrcp.f32 %v8524_v25  ;;  %v8747_v36 = vsel %vm7609_vm2, %v13162_v6, 0.0  ;;  %v13576_v30 = vld [vmem:[%s13847_s17 + $0x170] sm:$0xff] }
 0x3fa   : > { %v9340_v51 = vsub.f32 %v19454_v49, %v19284_v35  ;;  %10086 = vst [vmem:[%s17018_s8 + $0x160] sm:$0xff] %v9958_v28  ;;  %10342 = vst [vmem:[%s17024_s12 + $0x160] sm:$0xff] %v10214_v37  ;;  %v9960_v31 = vmul.f32 %v13575_v20, %v9832_v57  ;;  %v10216_v47 = vmul.f32 %v13576_v30, %v9832_v57  ;;  %13193 = vrcp.f32 %v8533_v42  ;;  %v19455_v14 = vld [vmem:[#allocation72_spill] sm:$0xff]  ;;  %v19456_v42 = vld [vmem:[#allocation73_spill] sm:$0xff] }
 0x3fb   : > { %v13176_v58 = vpop.eup %13175  ;;  %8739 = vadd.xlane.f32.xlu0 %v8738_v40  ;;  %13195 = vpow2.f32 %v9532_v55  ;;  %v9536_v6 = vmul.f32 1.442695, %v9341_v48  ;;  %v9343_v12 = vsub.f32 %v19455_v14, %v19288_v21  ;;  %10089 = vst [vmem:[%s17018_s8 + $0x178] sm:$0xff] %v9961_v23  ;;  %10345 = vst [vmem:[%s17024_s12 + $0x178] sm:$0xff] %v10217_v45  ;;  %v8530_v35 = vpop.xlane.xlu0 %8529  ;;  %v8744_v40 = vsel %vm7609_vm2, %v13174_v34, 0.0 }
 0x3fc   : > { %8748 = vadd.xlane.f32.xlu1 %v8747_v36  ;;  %v17836_v1 = vpop.eup %13177  ;;  %v8539_v25 = vpop.xlane.xlu1 %8538  ;;  %10088 = vst [vmem:[%s17018_s8 + $0x170] sm:$0xff] %v9960_v31  ;;  %10344 = vst [vmem:[%s17024_s12 + $0x170] sm:$0xff] %v10216_v47  ;;  %13197 = vrcp.f32 %v8530_v35  ;;  %v8753_v55 = vsel %vm7609_vm2, %v13176_v58, 0.0  ;;  %v9534_v21 = vmul.f32 1.442695, %v9340_v51  ;;  %v9342_v24 = vsub.f32 %v19456_v42, %v19292_v60  ;;  %v19457_v60 = vld [vmem:[#allocation7_spill] sm:$0xff] }
 0x3fd   : > { %v17842_v52 = vpop.eup %13179  ;;  %13199 = vrcp.f32 %v8539_v25  ;;  %v9540_v37 = vmul.f32 1.442695, %v9343_v12  ;;  %v19458_v58 = vld [vmem:[#allocation74_spill] sm:$0xff]  ;;  %v19459_v47 = vld [vmem:[#allocation57_spill] sm:$0xff]  ;;  %v13577_v12 = vld [vmem:[%s13853_s20 + $0x188] sm:$0xff] }
 0x3fe   : > { %v17846_v28 = vpop.eup %13181  ;;  %13201 = vpow2.f32 %v17806_v61  ;;  %v9538_v36 = vmul.f32 1.442695, %v9342_v24  ;;  %v9345_v49 = vsub.f32 %v19458_v58, %v19457_v60  ;;  %v13578_v25 = vld [vmem:[%s13847_s17 + $0x188] sm:$0xff]  ;;  %v19463_v60 = vld [vmem:[#allocation76_spill] sm:$0xff]  ;;  %v13581_v58 = vld [vmem:[%s13853_s20 + $0x198] sm:$0xff] }
 0x3ff   : > { %v13184_v48 = vpop.eup %13183  ;;  %8745 = vadd.xlane.f32.xlu0 %v8744_v40  ;;  %13203 = vpow2.f32 %v9536_v6  ;;  %v8536_v57 = vpop.xlane.xlu0 %8535  ;;  %v9271_v6 = vsel %vm2040_vm0, %v19459_v47, 0.0 }
 0x400   : > { %8754 = vadd.xlane.f32.xlu1 %v8753_v55  ;;  %v8545_v5 = vpop.xlane.xlu1 %8544  ;;  %v13186_v23 = vpop.eup %13185  ;;  %13205 = vrcp.f32 %v8536_v57  ;;  %v8750_v34 = vsel %vm7609_vm2, %v13184_v48, 0.0  ;;  %v19460_v48 = vld [vmem:[#allocation181_spill] sm:$0xff] }
 0x401   : > { %v13188_v39 = vpop.eup %13187  ;;  %13207 = vrcp.f32 %v8545_v5  ;;  %v8759_v45 = vsel %vm7609_vm2, %v13186_v23, 0.0  ;;  %v9544_v5 = vmul.f32 1.442695, %v9345_v49  ;;  %v13579_v23 = vld [vmem:[%s13853_s20 + $0x180] sm:$0xff]  ;;  %v13582_v49 = vld [vmem:[%s13847_s17 + $0x198] sm:$0xff] }
 0x402   : > { %v13190_v61 = vpop.eup %13189  ;;  %13209 = vpow2.f32 %v9534_v21  ;;  %v9835_v51 = vmul.f32 %v13188_v39, %v17397_v3  ;;  %v19461_v21 = vld [vmem:[#allocation75_spill] sm:$0xff]  ;;  %v13580_v39 = vld [vmem:[%s13847_s17 + $0x180] sm:$0xff] }
 0x403   : > { %8751 = vadd.xlane.f32.xlu0 %v8750_v34  ;;  %v13192_v20 = vpop.eup %13191  ;;  %13211 = vpow2.f32 %v9540_v37  ;;  %v8542_v31 = vpop.xlane.xlu0 %8541  ;;  %v9344_v42 = vsub.f32 %v19461_v21, %v19460_v48  ;;  %v8756_v37 = vsel %vm7609_vm2, %v13190_v61, 0.0 }
 0x404   : > { %8760 = vadd.xlane.f32.xlu1 %v8759_v45  ;;  %v8551_v30 = vpop.xlane.xlu1 %8550  ;;  %v13194_v14 = vpop.eup %13193  ;;  %v9963_v35 = vmul.f32 %v13577_v12, %v9835_v51  ;;  %v10219_v40 = vmul.f32 %v13578_v25, %v9835_v51  ;;  %v9834_v3 = vmul.f32 %v13192_v20, %v17445_v53  ;;  %13213 = vrcp.f32 %v8542_v31  ;;  %v19462_v45 = vld [vmem:[#allocation8_spill] sm:$0xff] }
 0x405   : > { %v17863_v55 = vpop.eup %13195  ;;  %v9837_v24 = vmul.f32 %v13194_v14, %v17461_v15  ;;  %13215 = vrcp.f32 %v8551_v30  ;;  %v9347_v61 = vsub.f32 %v19463_v60, %v19462_v45  ;;  %v13583_v12 = vld [vmem:[%s13853_s20 + $0x190] sm:$0xff]  ;;  %v9542_v21 = vmul.f32 1.442695, %v9344_v42  ;;  %v19467_v45 = vld [vmem:[#allocation9_spill] sm:$0xff]  ;;  %v19468_v60 = vld [vmem:[#allocation78_spill] sm:$0xff] }
 0x406   : > { %v13198_v57 = vpop.eup %13197  ;;  %13217 = vpow2.f32 %v9538_v36  ;;  %10091 = vst [vmem:[%s17018_s8 + $0x188] sm:$0xff] %v9963_v35  ;;  %10347 = vst [vmem:[%s17024_s12 + $0x188] sm:$0xff] %v10219_v40  ;;  %v9962_v53 = vmul.f32 %v13579_v23, %v9834_v3  ;;  %v10218_v34 = vmul.f32 %v13580_v39, %v9834_v3  ;;  %v13584_v25 = vld [vmem:[%s13847_s17 + $0x190] sm:$0xff]  ;;  %v19464_v40 = vld [vmem:[#allocation58_spill] sm:$0xff] }
 0x407   : > { %8757 = vadd.xlane.f32.xlu0 %v8756_v37  ;;  %v13200_v15 = vpop.eup %13199  ;;  %v9965_v36 = vmul.f32 %v13581_v58, %v9837_v24  ;;  %v10221_v51 = vmul.f32 %v13582_v49, %v9837_v24  ;;  %v9836_v20 = vmul.f32 %v13198_v57, %v17470_v46  ;;  %v8548_v31 = vpop.xlane.xlu0 %8547  ;;  %v9268_v3 = vsel %vm2040_vm0, %v19464_v40, 0.0  ;;  %v19465_v24 = vld [vmem:[#allocation182_spill] sm:$0xff]  ;;  %v13585_v57 = vld [vmem:[%s13853_s20 + $0x1a8] sm:$0xff] }
 0x408   : > { %9272 = vadd.xlane.f32.xlu1 %v9271_v6  ;;  %v8557_v30 = vpop.xlane.xlu1 %8556  ;;  %v17878_v47 = vpop.eup %13201  ;;  %10090 = vst [vmem:[%s17018_s8 + $0x180] sm:$0xff] %v9962_v53  ;;  %10346 = vst [vmem:[%s17024_s12 + $0x180] sm:$0xff] %v10218_v34  ;;  %v9839_v6 = vmul.f32 %v13200_v15, %v17518_v63  ;;  %13219 = vrcp.f32 %v8548_v31  ;;  %v19466_v63 = vld [vmem:[#allocation77_spill] sm:$0xff]  ;;  %v13586_v53 = vld [vmem:[%s13847_s17 + $0x1a8] sm:$0xff]  ;;  %v9548_v15 = vmul.f32 1.442695, %v9347_v61  ;;  %v9349_v58 = vsub.f32 %v19468_v60, %v19467_v45 }
 0x409   : > { %v17883_v14 = vpop.eup %13203  ;;  %10093 = vst [vmem:[%s17018_s8 + $0x198] sm:$0xff] %v9965_v36  ;;  %10349 = vst [vmem:[%s17024_s12 + $0x198] sm:$0xff] %v10221_v51  ;;  %v9964_v35 = vmul.f32 %v13583_v12, %v9836_v20  ;;  %v10220_v46 = vmul.f32 %v13584_v25, %v9836_v20  ;;  %13221 = vrcp.f32 %v8557_v30  ;;  %v9346_v37 = vsub.f32 %v19466_v63, %v19465_v24  ;;  %v13587_v61 = vld [vmem:[%s13853_s20 + $0x1a0] sm:$0xff]  ;;  %v19470_v24 = vld [vmem:[#allocation79_spill] sm:$0xff] }
 0x40a   : > { %v13206_v48 = vpop.eup %13205  ;;  %v9967_v23 = vmul.f32 %v13585_v57, %v9839_v6  ;;  %v10223_v39 = vmul.f32 %v13586_v53, %v9839_v6  ;;  %13223 = vpow2.f32 %v9544_v5  ;;  %v13588_v30 = vld [vmem:[%s13847_s17 + $0x1a0] sm:$0xff] }
 0x40b   : > { %9269 = vadd.xlane.f32.xlu0 %v9268_v3  ;;  %v13208_v34 = vpop.eup %13207  ;;  %10092 = vst [vmem:[%s17018_s8 + $0x190] sm:$0xff] %v9964_v35  ;;  %10348 = vst [vmem:[%s17024_s12 + $0x190] sm:$0xff] %v10220_v46  ;;  %v9838_v42 = vmul.f32 %v13206_v48, %v17532_v8  ;;  %v8554_v36 = vpop.xlane.xlu0 %8553  ;;  %v9546_v12 = vmul.f32 1.442695, %v9346_v37  ;;  %v13589_v35 = vld [vmem:[%s13853_s20 + $0x1b8] sm:$0xff]  ;;  %v19469_v48 = vld [vmem:[#allocation144_spill] sm:$0xff] }
 0x40c   : > { %v8563_v49 = vpop.xlane.xlu1 %8562  ;;  %v17900_v51 = vpop.eup %13209  ;;  %10095 = vst [vmem:[%s17018_s8 + $0x1a8] sm:$0xff] %v9967_v23  ;;  %10351 = vst [vmem:[%s17024_s12 + $0x1a8] sm:$0xff] %v10223_v39  ;;  %v9841_v20 = vmul.f32 %v13208_v34, %v17541_v50  ;;  %13225 = vrcp.f32 %v8554_v36  ;;  %v13590_v46 = vld [vmem:[%s13847_s17 + $0x1b8] sm:$0xff]  ;;  %v9552_v3 = vmul.f32 1.442695, %v9349_v58  ;;  %v9348_v63 = vsub.f32 %v19470_v24, %v19469_v48  ;;  %v13591_v39 = vld [vmem:[%s13853_s20 + $0x1b0] sm:$0xff] }
 0x40d   : > { %v17905_v5 = vpop.eup %13211  ;;  %v9966_v31 = vmul.f32 %v13587_v61, %v9838_v42  ;;  %v10222_v6 = vmul.f32 %v13588_v30, %v9838_v42  ;;  %13227 = vrcp.f32 %v8563_v49  ;;  %v19472_v58 = vld [vmem:[#allocation80_spill] sm:$0xff]  ;;  %v13593_v36 = vld [vmem:[%s13853_s20 + $0x1c8] sm:$0xff]  ;;  %v19473_v30 = vld [vmem:[#allocation10_spill] sm:$0xff] }
 0x40e   : > { %v13214_v8 = vpop.eup %13213  ;;  %13229 = vpow2.f32 %v9542_v21  ;;  %v9969_v25 = vmul.f32 %v13589_v35, %v9841_v20  ;;  %v10225_v50 = vmul.f32 %v13590_v46, %v9841_v20  ;;  %v13594_v20 = vld [vmem:[%s13847_s17 + $0x1c8] sm:$0xff]  ;;  %v13596_v48 = vld [vmem:[%s13847_s17 + $0x1c0] sm:$0xff] }
 0x40f   : > { %v13216_v40 = vpop.eup %13215  ;;  %13231 = vpow2.f32 %v9548_v15  ;;  %10094 = vst [vmem:[%s17018_s8 + $0x1a0] sm:$0xff] %v9966_v31  ;;  %10350 = vst [vmem:[%s17024_s12 + $0x1a0] sm:$0xff] %v10222_v6  ;;  %v9840_v57 = vmul.f32 %v13214_v8, %v17585_v54  ;;  %v8560_v21 = vpop.xlane.xlu0 %8559  ;;  %v13592_v15 = vld [vmem:[%s13847_s17 + $0x1b0] sm:$0xff]  ;;  %v19471_v54 = vld [vmem:[#allocation183_spill] sm:$0xff]  ;;  %v9550_v31 = vmul.f32 1.442695, %v9348_v63 }
 0x410   : > { %v8569_v37 = vpop.xlane.xlu1 %8568  ;;  %v17916_v23 = vpop.eup %13217  ;;  %10097 = vst [vmem:[%s17018_s8 + $0x1b8] sm:$0xff] %v9969_v25  ;;  %10353 = vst [vmem:[%s17024_s12 + $0x1b8] sm:$0xff] %v10225_v50  ;;  %v9843_v53 = vmul.f32 %v13216_v40, %v17641_v18  ;;  %13233 = vrcp.f32 %v8560_v21  ;;  %v9351_v42 = vsub.f32 %v19472_v58, %v19471_v54  ;;  %v19474_v6 = vld [vmem:[#allocation81_spill] sm:$0xff]  ;;  %v13595_v40 = vld [vmem:[%s13853_s20 + $0x1c0] sm:$0xff] }
 0x411   : > { %v9968_v34 = vmul.f32 %v13591_v39, %v9840_v57  ;;  %v10224_v45 = vmul.f32 %v13592_v15, %v9840_v57  ;;  %13235 = vrcp.f32 %v8569_v37  ;;  %v9350_v8 = vsub.f32 %v19474_v6, %v19473_v30  ;;  %v19475_v57 = vld [vmem:[#allocation185_spill] sm:$0xff]  ;;  %v19476_v21 = vld [vmem:[#allocation82_spill] sm:$0xff]  ;;  %v19478_v54 = vld [vmem:[#allocation83_spill] sm:$0xff] }
 0x412   : > { %v13220_v60 = vpop.eup %13219  ;;  %13237 = vpow2.f32 %v9546_v12  ;;  %v9971_v49 = vmul.f32 %v13593_v36, %v9843_v53  ;;  %v10227_v18 = vmul.f32 %v13594_v20, %v9843_v53  ;;  %v9353_v37 = vsub.f32 %v19476_v21, %v19475_v57  ;;  %v13597_v53 = vld [vmem:[%s13853_s20 + $0x1d8] sm:$0xff]  ;;  %v13600_v6 = vld [vmem:[%s13847_s17 + $0x1d0] sm:$0xff] }
 0x413   : > { %v13222_v61 = vpop.eup %13221  ;;  %13239 = vpow2.f32 %v9552_v3  ;;  %10096 = vst [vmem:[%s17018_s8 + $0x1b0] sm:$0xff] %v9968_v34  ;;  %10352 = vst [vmem:[%s17024_s12 + $0x1b0] sm:$0xff] %v10224_v45  ;;  %v9842_v12 = vmul.f32 %v13220_v60, %v17699_v26  ;;  %v8566_v35 = vpop.xlane.xlu0 %8565  ;;  %v9556_v26 = vmul.f32 1.442695, %v9351_v42  ;;  %v9554_v45 = vmul.f32 1.442695, %v9350_v8 }
 0x414   : > { %v8575_v25 = vpop.xlane.xlu1 %8574  ;;  %10099 = vst [vmem:[%s17018_s8 + $0x1c8] sm:$0xff] %v9971_v49  ;;  %10355 = vst [vmem:[%s17024_s12 + $0x1c8] sm:$0xff] %v10227_v18  ;;  %v9845_v46 = vmul.f32 %v13222_v61, %v17757_v41  ;;  %13241 = vrcp.f32 %v8566_v35  ;;  %v17935_v50 = vpop.eup %13223  ;;  %v13598_v41 = vld [vmem:[%s13847_s17 + $0x1d8] sm:$0xff]  ;;  %v19477_v60 = vld [vmem:[#allocation11_spill] sm:$0xff] }
 0x415   : > { %v9970_v3 = vmul.f32 %v13595_v40, %v9842_v12  ;;  %v10226_v24 = vmul.f32 %v13596_v48, %v9842_v12  ;;  %13243 = vrcp.f32 %v8575_v25  ;;  %v9352_v58 = vsub.f32 %v19478_v54, %v19477_v60  ;;  %v13601_v35 = vld [vmem:[%s13853_s20 + $0x1e8] sm:$0xff]  ;;  %v19479_v48 = vld [vmem:[#allocation190_spill] sm:$0xff]  ;;  %v19482_v54 = vld [vmem:[#allocation88_spill] sm:$0xff] }
 0x416   : > { %v13226_v63 = vpop.eup %13225  ;;  %v9973_v39 = vmul.f32 %v13597_v53, %v9845_v46  ;;  %v10229_v34 = vmul.f32 %v13598_v41, %v9845_v46  ;;  %13245 = vpow2.f32 %v9550_v31  ;;  %v13599_v31 = vld [vmem:[%s13853_s20 + $0x1d0] sm:$0xff]  ;;  %v9560_v12 = vmul.f32 1.442695, %v9353_v37  ;;  %v13602_v46 = vld [vmem:[%s13847_s17 + $0x1e8] sm:$0xff]  ;;  %v13603_v41 = vld [vmem:[%s13853_s20 + $0x1e0] sm:$0xff] }
 0x417   : > { %v13228_v15 = vpop.eup %13227  ;;  %10098 = vst [vmem:[%s17018_s8 + $0x1c0] sm:$0xff] %v9970_v3  ;;  %10354 = vst [vmem:[%s17024_s12 + $0x1c0] sm:$0xff] %v10226_v24  ;;  %v9844_v42 = vmul.f32 %v13226_v63, %v17779_v4  ;;  %v8572_v36 = vpop.xlane.xlu0 %8571  ;;  %v9558_v3 = vmul.f32 1.442695, %v9352_v58  ;;  %v19480_v24 = vld [vmem:[#allocation87_spill] sm:$0xff] }
 0x418   : > { %v8581_v49 = vpop.xlane.xlu1 %8580  ;;  %v17948_v20 = vpop.eup %13229  ;;  %10101 = vst [vmem:[%s17018_s8 + $0x1d8] sm:$0xff] %v9973_v39  ;;  %10357 = vst [vmem:[%s17024_s12 + $0x1d8] sm:$0xff] %v10229_v34  ;;  %v9847_v18 = vmul.f32 %v13228_v15, %v17820_v44  ;;  %13247 = vrcp.f32 %v8572_v36  ;;  %v9355_v63 = vsub.f32 %v19480_v24, %v19479_v48  ;;  %v13604_v15 = vld [vmem:[%s13847_s17 + $0x1e0] sm:$0xff]  ;;  %v19481_v60 = vld [vmem:[#allocation15_spill] sm:$0xff] }
 0x419   : > { %v17953_v61 = vpop.eup %13231  ;;  %v9972_v30 = vmul.f32 %v13599_v31, %v9844_v42  ;;  %v10228_v8 = vmul.f32 %v13600_v6, %v9844_v42  ;;  %13249 = vrcp.f32 %v8581_v49  ;;  %v9354_v58 = vsub.f32 %v19482_v54, %v19481_v60  ;;  %v13605_v42 = vld [vmem:[%s13853_s20 + $0x1f8] sm:$0xff] }
 0x41a   : > { %v13234_v4 = vpop.eup %13233  ;;  %13251 = vpow2.f32 %v9556_v26  ;;  %v9975_v25 = vmul.f32 %v13601_v35, %v9847_v18  ;;  %v10231_v40 = vmul.f32 %v13602_v46, %v9847_v18  ;;  %v9564_v31 = vmul.f32 1.442695, %v9355_v63  ;;  %v19484_v6 = vld [vmem:[#allocation89_spill] sm:$0xff]  ;;  %v19485_v63 = vld [vmem:[#allocation91_spill] sm:$0xff] }
 0x41b   : > { %v13236_v44 = vpop.eup %13235  ;;  %13253 = vpow2.f32 %v9554_v45  ;;  %10100 = vst [vmem:[%s17018_s8 + $0x1d0] sm:$0xff] %v9972_v30  ;;  %10356 = vst [vmem:[%s17024_s12 + $0x1d0] sm:$0xff] %v10228_v8  ;;  %v9846_v57 = vmul.f32 %v13234_v4, %v17836_v1  ;;  %v8578_v26 = vpop.xlane.xlu0 %8577  ;;  %v19483_v30 = vld [vmem:[#allocation221_spill] sm:$0xff] }
 0x41c   : > { %v8587_v21 = vpop.xlane.xlu1 %8586  ;;  %v17964_v37 = vpop.eup %13237  ;;  %10103 = vst [vmem:[%s17018_s8 + $0x1e8] sm:$0xff] %v9975_v25  ;;  %10359 = vst [vmem:[%s17024_s12 + $0x1e8] sm:$0xff] %v10231_v40  ;;  %v9849_v53 = vmul.f32 %v13236_v44, %v17842_v52  ;;  %13255 = vrcp.f32 %v8578_v26  ;;  %v13606_v52 = vld [vmem:[%s13847_s17 + $0x1f8] sm:$0xff]  ;;  %v9357_v8 = vsub.f32 %v19484_v6, %v19483_v30  ;;  %v13607_v40 = vld [vmem:[%s13853_s20 + $0x1f0] sm:$0xff] }
 0x41d   : > { %v17969_v39 = vpop.eup %13239  ;;  %v9974_v34 = vmul.f32 %v13603_v41, %v9846_v57  ;;  %v10230_v45 = vmul.f32 %v13604_v15, %v9846_v57  ;;  %13257 = vrcp.f32 %v8587_v21  ;;  %v9356_v57 = vsub.f32 %v19485_v63, %v19341_v11  ;;  %v13609_v26 = vld [vmem:[%s13853_s20 + $0x208] sm:$0xff]  ;;  %v13614_v6 = vld [vmem:[%s13847_s17 + $0x218] sm:$0xff]  ;;  %v13616_v63 = vld [vmem:[%s13847_s17 + $0x210] sm:$0xff] }
 0x41e   : > { %v13242_v1 = vpop.eup %13241  ;;  %13259 = vpow2.f32 %v9560_v12  ;;  %v9977_v36 = vmul.f32 %v13605_v42, %v9849_v53  ;;  %v10233_v49 = vmul.f32 %v13606_v52, %v9849_v53  ;;  %v19486_v15 = vld [vmem:[#allocation95_spill] sm:$0xff]  ;;  %v13612_v52 = vld [vmem:[%s13847_s17 + $0x200] sm:$0xff] }
 0x41f   : > { %v13244_v18 = vpop.eup %13243  ;;  %13261 = vpow2.f32 %v9558_v3  ;;  %10102 = vst [vmem:[%s17018_s8 + $0x1e0] sm:$0xff] %v9974_v34  ;;  %10358 = vst [vmem:[%s17024_s12 + $0x1e0] sm:$0xff] %v10230_v45  ;;  %v9848_v4 = vmul.f32 %v13242_v1, %v17846_v28  ;;  %v8584_v12 = vpop.xlane.xlu0 %8583  ;;  %v13608_v3 = vld [vmem:[%s13847_s17 + $0x1f0] sm:$0xff]  ;;  %v9562_v28 = vmul.f32 1.442695, %v9354_v58  ;;  %v9359_v45 = vsub.f32 %v19486_v15, %v17069_v9 }
 0x420   : > { %v8593_v35 = vpop.xlane.xlu1 %8592  ;;  %10105 = vst [vmem:[%s17018_s8 + $0x1f8] sm:$0xff] %v9977_v36  ;;  %10361 = vst [vmem:[%s17024_s12 + $0x1f8] sm:$0xff] %v10233_v49  ;;  %v9851_v25 = vmul.f32 %v13244_v18, %v17863_v55  ;;  %13263 = vrcp.f32 %v8584_v12  ;;  %v17985_v46 = vpop.eup %13245  ;;  %v13610_v55 = vld [vmem:[%s13847_s17 + $0x208] sm:$0xff]  ;;  %v9568_v34 = vmul.f32 1.442695, %v9357_v8  ;;  %v13611_v36 = vld [vmem:[%s13853_s20 + $0x200] sm:$0xff] }
 0x421   : > { %v9976_v44 = vmul.f32 %v13607_v40, %v9848_v4  ;;  %v10232_v48 = vmul.f32 %v13608_v3, %v9848_v4  ;;  %13265 = vrcp.f32 %v8593_v35  ;;  %v9566_v18 = vmul.f32 1.442695, %v9356_v57  ;;  %v19487_v12 = vld [vmem:[#allocation96_spill] sm:$0xff] }
 0x422   : > { %v13248_v24 = vpop.eup %13247  ;;  %v9979_v21 = vmul.f32 %v13609_v26, %v9851_v25  ;;  %v10235_v53 = vmul.f32 %v13610_v55, %v9851_v25  ;;  %13267 = vpow2.f32 %v9564_v31  ;;  %v13613_v31 = vld [vmem:[%s13853_s20 + $0x218] sm:$0xff]  ;;  %v9572_v4 = vmul.f32 1.442695, %v9359_v45  ;;  %v13617_v55 = vld [vmem:[%s13853_s20 + $0x228] sm:$0xff] }
 0x423   : > { %v13250_v41 = vpop.eup %13249  ;;  %10104 = vst [vmem:[%s17018_s8 + $0x1f0] sm:$0xff] %v9976_v44  ;;  %10360 = vst [vmem:[%s17024_s12 + $0x1f0] sm:$0xff] %v10232_v48  ;;  %v9850_v1 = vmul.f32 %v13248_v24, %v17878_v47  ;;  %v8590_v60 = vpop.xlane.xlu0 %8589  ;;  %v9358_v35 = vsub.f32 %v19487_v12, %v17085_v2  ;;  %v19488_v26 = vld [vmem:[#allocation97_spill] sm:$0xff] }
 0x424   : > { %v8599_v11 = vpop.xlane.xlu1 %8598  ;;  %v17998_v54 = vpop.eup %13251  ;;  %10107 = vst [vmem:[%s17018_s8 + $0x208] sm:$0xff] %v9979_v21  ;;  %10363 = vst [vmem:[%s17024_s12 + $0x208] sm:$0xff] %v10235_v53  ;;  %v9853_v58 = vmul.f32 %v13250_v41, %v17883_v14  ;;  %13269 = vrcp.f32 %v8590_v60  ;;  %v9361_v21 = vsub.f32 %v19488_v26, %v17087_v7  ;;  %v19489_v45 = vld [vmem:[#allocation205_spill] sm:$0xff] }
 0x425   : > { %v18003_v42 = vpop.eup %13253  ;;  %v9978_v9 = vmul.f32 %v13611_v36, %v9850_v1  ;;  %v10234_v49 = vmul.f32 %v13612_v52, %v9850_v1  ;;  %13271 = vrcp.f32 %v8599_v11  ;;  %v9570_v15 = vmul.f32 1.442695, %v9358_v35  ;;  %v19490_v1 = vld [vmem:[#allocation98_spill] sm:$0xff] }
 0x426   : > { %v13256_v47 = vpop.eup %13255  ;;  %13273 = vpow2.f32 %v9562_v28  ;;  %v9981_v30 = vmul.f32 %v13613_v31, %v9853_v58  ;;  %v10237_v8 = vmul.f32 %v13614_v6, %v9853_v58  ;;  %v13615_v28 = vld [vmem:[%s13853_s20 + $0x210] sm:$0xff]  ;;  %v9360_v60 = vsub.f32 %v19490_v1, %v19489_v45  ;;  %v13619_v52 = vld [vmem:[%s13853_s20 + $0x220] sm:$0xff]  ;;  %v19492_v6 = vld [vmem:[#allocation99_spill] sm:$0xff] }
 0x427   : > { %v13258_v14 = vpop.eup %13257  ;;  %13275 = vpow2.f32 %v9568_v34  ;;  %10106 = vst [vmem:[%s17018_s8 + $0x200] sm:$0xff] %v9978_v9  ;;  %10362 = vst [vmem:[%s17024_s12 + $0x200] sm:$0xff] %v10234_v49  ;;  %v9852_v25 = vmul.f32 %v13256_v47, %v17900_v51  ;;  %v8596_v40 = vpop.xlane.xlu0 %8595  ;;  %v13620_v47 = vld [vmem:[%s13847_s17 + $0x220] sm:$0xff]  ;;  %v13626_v45 = vld [vmem:[%s13847_s17 + $0x248] sm:$0xff] }
 0x428   : > { %v18014_v3 = vpop.eup %13259  ;;  %10109 = vst [vmem:[%s17018_s8 + $0x218] sm:$0xff] %v9981_v30  ;;  %10365 = vst [vmem:[%s17024_s12 + $0x218] sm:$0xff] %v10237_v8  ;;  %v9855_v48 = vmul.f32 %v13258_v14, %v17905_v5  ;;  %13277 = vrcp.f32 %v8596_v40  ;;  %v13618_v5 = vld [vmem:[%s13847_s17 + $0x228] sm:$0xff]  ;;  %v19491_v30 = vld [vmem:[#allocation21_spill] sm:$0xff] }
 0x429   : > { %v8605_v44 = vpop.xlane.xlu1 %8604  ;;  %v18019_v24 = vpop.eup %13261  ;;  %v9980_v2 = vmul.f32 %v13615_v28, %v9852_v25  ;;  %v10236_v57 = vmul.f32 %v13616_v63, %v9852_v25  ;;  %v9363_v8 = vsub.f32 %v19492_v6, %v19491_v30  ;;  %v13621_v14 = vld [vmem:[%s13853_s20 + $0x238] sm:$0xff]  ;;  %v9574_v25 = vmul.f32 1.442695, %v9360_v60  ;;  %v19493_v40 = vld [vmem:[#allocation23_spill] sm:$0xff]  ;;  %v13628_v6 = vld [vmem:[%s13847_s17 + $0x240] sm:$0xff] }
 0x42a   : > { %13279 = vrcp.f32 %v8605_v44  ;;  %v13264_v51 = vpop.eup %13263  ;;  %v9983_v53 = vmul.f32 %v13617_v55, %v9855_v48  ;;  %v10239_v41 = vmul.f32 %v13618_v5, %v9855_v48  ;;  %v19494_v44 = vld [vmem:[#allocation100_spill] sm:$0xff] }
 0x42b   : > { %13281 = vpow2.f32 %v9566_v18  ;;  %v13266_v34 = vpop.eup %13265  ;;  %10108 = vst [vmem:[%s17018_s8 + $0x210] sm:$0xff] %v9980_v2  ;;  %10364 = vst [vmem:[%s17024_s12 + $0x210] sm:$0xff] %v10236_v57  ;;  %v9854_v11 = vmul.f32 %v13264_v51, %v17916_v23  ;;  %v8602_v58 = vpop.xlane.xlu0 %8601  ;;  %v9576_v23 = vmul.f32 1.442695, %v9361_v21  ;;  %v9362_v48 = vsub.f32 %v19494_v44, %v19493_v40  ;;  %v13623_v21 = vld [vmem:[%s13853_s20 + $0x230] sm:$0xff] }
 0x42c   : > { %13283 = vpow2.f32 %v9572_v4  ;;  %10111 = vst [vmem:[%s17018_s8 + $0x228] sm:$0xff] %v9983_v53  ;;  %10367 = vst [vmem:[%s17024_s12 + $0x228] sm:$0xff] %v10239_v41  ;;  %v9857_v7 = vmul.f32 %v13266_v34, %v17935_v50  ;;  %v18035_v9 = vpop.eup %13267  ;;  %v13622_v50 = vld [vmem:[%s13847_s17 + $0x238] sm:$0xff]  ;;  %v13624_v53 = vld [vmem:[%s13847_s17 + $0x230] sm:$0xff]  ;;  %v9580_v41 = vmul.f32 1.442695, %v9363_v8 }
 0x42d   : > { %v8611_v36 = vpop.xlane.xlu1 %8610  ;;  %13285 = vrcp.f32 %v8602_v58  ;;  %v9982_v49 = vmul.f32 %v13619_v52, %v9854_v11  ;;  %v10238_v18 = vmul.f32 %v13620_v47, %v9854_v11  ;;  %v13625_v34 = vld [vmem:[%s13853_s20 + $0x248] sm:$0xff]  ;;  %v9578_v60 = vmul.f32 1.442695, %v9362_v48  ;;  %v19495_v11 = vld [vmem:[#allocation24_spill] sm:$0xff]  ;;  %v19496_v58 = vld [vmem:[#allocation101_spill] sm:$0xff] }
 0x42e   : > { %13287 = vrcp.f32 %v8611_v36  ;;  %v13270_v31 = vpop.eup %13269  ;;  %v9985_v4 = vmul.f32 %v13621_v14, %v9857_v7  ;;  %v10241_v12 = vmul.f32 %v13622_v50, %v9857_v7  ;;  %v9365_v36 = vsub.f32 %v19496_v58, %v19495_v11  ;;  %v19497_v14 = vld [vmem:[#allocation102_spill] sm:$0xff]  ;;  %v13629_v50 = vld [vmem:[%s13853_s20 + $0x258] sm:$0xff]  ;;  %v19498_v44 = vld [vmem:[#allocation104_spill] sm:$0xff] }
 0x42f   : > { %v13272_v35 = vpop.eup %13271  ;;  %13289 = vpow2.f32 %v9570_v15  ;;  %10110 = vst [vmem:[%s17018_s8 + $0x220] sm:$0xff] %v9982_v49  ;;  %10366 = vst [vmem:[%s17024_s12 + $0x220] sm:$0xff] %v10238_v18  ;;  %v9856_v28 = vmul.f32 %v13270_v31, %v17948_v20  ;;  %v8608_v2 = vpop.xlane.xlu0 %8607  ;;  %v9367_v48 = vsub.f32 %v19498_v44, %v17238_v56  ;;  %v13632_v56 = vld [vmem:[%s13847_s17 + $0x250] sm:$0xff] }
 0x430   : > { %v18048_v57 = vpop.eup %13273  ;;  %10113 = vst [vmem:[%s17018_s8 + $0x238] sm:$0xff] %v9985_v4  ;;  %10369 = vst [vmem:[%s17024_s12 + $0x238] sm:$0xff] %v10241_v12  ;;  %v9859_v51 = vmul.f32 %v13272_v35, %v17953_v61  ;;  %13291 = vrcp.f32 %v8608_v2  ;;  %v9364_v4 = vsub.f32 %v19497_v14, %v17195_v62  ;;  %v9584_v40 = vmul.f32 1.442695, %v9365_v36  ;;  %v13638_v14 = vld [vmem:[%s13847_s17 + $0x278] sm:$0xff] }
 0x431   : > { %v8617_v63 = vpop.xlane.xlu1 %8616  ;;  %v18053_v26 = vpop.eup %13275  ;;  %v9984_v55 = vmul.f32 %v13623_v21, %v9856_v28  ;;  %v10240_v5 = vmul.f32 %v13624_v53, %v9856_v28  ;;  %v13631_v21 = vld [vmem:[%s13853_s20 + $0x250] sm:$0xff] }
 0x432   : > { %13293 = vrcp.f32 %v8617_v63  ;;  %v13278_v20 = vpop.eup %13277  ;;  %v9987_v15 = vmul.f32 %v13625_v34, %v9859_v51  ;;  %v10243_v1 = vmul.f32 %v13626_v45, %v9859_v51  ;;  %v13633_v34 = vld [vmem:[%s13853_s20 + $0x268] sm:$0xff] }
 0x433   : > { %13295 = vpow2.f32 %v9576_v23  ;;  %10112 = vst [vmem:[%s17018_s8 + $0x230] sm:$0xff] %v9984_v55  ;;  %10368 = vst [vmem:[%s17024_s12 + $0x230] sm:$0xff] %v10240_v5  ;;  %v9858_v7 = vmul.f32 %v13278_v20, %v17964_v37  ;;  %v8614_v52 = vpop.xlane.xlu0 %8613  ;;  %v13627_v23 = vld [vmem:[%s13853_s20 + $0x240] sm:$0xff]  ;;  %v19499_v20 = vld [vmem:[#allocation105_spill] sm:$0xff] }
 0x434   : > { %v13280_v61 = vpop.eup %13279  ;;  %13297 = vpow2.f32 %v9574_v25  ;;  %10115 = vst [vmem:[%s17018_s8 + $0x248] sm:$0xff] %v9987_v15  ;;  %10371 = vst [vmem:[%s17024_s12 + $0x248] sm:$0xff] %v10243_v1 }
 0x435   : > { %v8623_v49 = vpop.xlane.xlu1 %8622  ;;  %v18064_v47 = vpop.eup %13281  ;;  %v9861_v18 = vmul.f32 %v13280_v61, %v17969_v39  ;;  %13299 = vrcp.f32 %v8614_v52  ;;  %v9986_v30 = vmul.f32 %v13627_v23, %v9858_v7  ;;  %v10242_v8 = vmul.f32 %v13628_v6, %v9858_v7  ;;  %v13630_v39 = vld [vmem:[%s13847_s17 + $0x258] sm:$0xff]  ;;  %v13636_v23 = vld [vmem:[%s13847_s17 + $0x260] sm:$0xff] }
 0x436   : > { %v18069_v31 = vpop.eup %13283  ;;  %13301 = vrcp.f32 %v8623_v49  ;;  %v9588_v61 = vmul.f32 1.442695, %v9367_v48 }
 0x437   : > { %v13286_v37 = vpop.eup %13285  ;;  %13303 = vpow2.f32 %v9580_v41  ;;  %v9989_v12 = vmul.f32 %v13629_v50, %v9861_v18  ;;  %v10245_v35 = vmul.f32 %v13630_v39, %v9861_v18  ;;  %10114 = vst [vmem:[%s17018_s8 + $0x240] sm:$0xff] %v9986_v30  ;;  %10370 = vst [vmem:[%s17024_s12 + $0x240] sm:$0xff] %v10242_v8  ;;  %v9366_v41 = vsub.f32 %v19499_v20, %v17254_v33  ;;  %v13635_v18 = vld [vmem:[%s13853_s20 + $0x260] sm:$0xff]  ;;  %v13637_v8 = vld [vmem:[%s13853_s20 + $0x278] sm:$0xff] }
 0x438   : > { %v13288_v25 = vpop.eup %13287  ;;  %13305 = vpow2.f32 %v9578_v60  ;;  %v9860_v28 = vmul.f32 %v13286_v37, %v17985_v46  ;;  %v8620_v2 = vpop.xlane.xlu0 %8619  ;;  %v9582_v46 = vmul.f32 1.442695, %v9364_v4  ;;  %v19500_v60 = vld [vmem:[#allocation106_spill] sm:$0xff]  ;;  %v19502_v39 = vld [vmem:[#allocation108_spill] sm:$0xff] }
 0x439   : > { %v8629_v63 = vpop.xlane.xlu1 %8628  ;;  %10117 = vst [vmem:[%s17018_s8 + $0x258] sm:$0xff] %v9989_v12  ;;  %10373 = vst [vmem:[%s17024_s12 + $0x258] sm:$0xff] %v10245_v35  ;;  %v9863_v62 = vmul.f32 %v13288_v25, %v17998_v54  ;;  %13307 = vrcp.f32 %v8620_v2  ;;  %v18085_v51 = vpop.eup %13289  ;;  %v13634_v54 = vld [vmem:[%s13847_s17 + $0x268] sm:$0xff]  ;;  %v9369_v11 = vsub.f32 %v19500_v60, %v19374_v22  ;;  %v9586_v6 = vmul.f32 1.442695, %v9366_v41 }
 0x43a   : > { %v9988_v55 = vmul.f32 %v13631_v21, %v9860_v28  ;;  %v10244_v53 = vmul.f32 %v13632_v56, %v9860_v28  ;;  %13309 = vrcp.f32 %v8629_v63  ;;  %v13292_v5 = vpop.eup %13291  ;;  %v19501_v12 = vld [vmem:[#allocation103_spill] sm:$0xff]  ;;  %v13639_v63 = vld [vmem:[%s13853_s20 + $0x270] sm:$0xff]  ;;  %v19503_v56 = vld [vmem:[#allocation230_spill] sm:$0xff] }
 0x43b   : > { %v9991_v15 = vmul.f32 %v13633_v34, %v9863_v62  ;;  %v10247_v45 = vmul.f32 %v13634_v54, %v9863_v62  ;;  %13311 = vpow2.f32 %v9584_v40  ;;  %v9862_v58 = vmul.f32 %v13292_v5, %v18003_v42  ;;  %v13640_v21 = vld [vmem:[%s13847_s17 + $0x270] sm:$0xff] }
 0x43c   : > { %v13294_v1 = vpop.eup %13293  ;;  %10116 = vst [vmem:[%s17018_s8 + $0x250] sm:$0xff] %v9988_v55  ;;  %10372 = vst [vmem:[%s17024_s12 + $0x250] sm:$0xff] %v10244_v53  ;;  %v8626_v36 = vpop.xlane.xlu0 %8625  ;;  %v9592_v50 = vmul.f32 1.442695, %v9369_v11  ;;  %v9368_v35 = vsub.f32 %v19502_v39, %v19501_v12  ;;  %v19504_v53 = vld [vmem:[#allocation109_spill] sm:$0xff]  ;;  %v19505_v54 = vld [vmem:[#allocation28_spill] sm:$0xff] }
 0x43d   : > { %v8635_v33 = vpop.xlane.xlu1 %8634  ;;  %v18098_v7 = vpop.eup %13295  ;;  %10119 = vst [vmem:[%s17018_s8 + $0x268] sm:$0xff] %v9991_v15  ;;  %10375 = vst [vmem:[%s17024_s12 + $0x268] sm:$0xff] %v10247_v45  ;;  %v9865_v52 = vmul.f32 %v13294_v1, %v18014_v3  ;;  %13313 = vrcp.f32 %v8626_v36  ;;  %v9990_v22 = vmul.f32 %v13635_v18, %v9862_v58  ;;  %v10246_v30 = vmul.f32 %v13636_v23, %v9862_v58  ;;  %v19506_v45 = vld [vmem:[#allocation110_spill] sm:$0xff]  ;;  %v19510_v12 = vld [vmem:[#allocation113_spill] sm:$0xff] }
 0x43e   : > { %v18103_v49 = vpop.eup %13297  ;;  %13315 = vrcp.f32 %v8635_v33  ;;  %v9371_v5 = vsub.f32 %v19504_v53, %v19503_v56  ;;  %v9590_v15 = vmul.f32 1.442695, %v9368_v35  ;;  %v9370_v1 = vsub.f32 %v19506_v45, %v19505_v54  ;;  %v13643_v33 = vld [vmem:[%s13853_s20 + $0x280] sm:$0xff]  ;;  %v13649_v53 = vld [vmem:[%s13853_s20 + $0x2a8] sm:$0xff] }
 0x43f   : > { %v13300_v42 = vpop.eup %13299  ;;  %13317 = vpow2.f32 %v9582_v46  ;;  %v9993_v37 = vmul.f32 %v13637_v8, %v9865_v52  ;;  %v10249_v4 = vmul.f32 %v13638_v14, %v9865_v52  ;;  %10118 = vst [vmem:[%s17018_s8 + $0x260] sm:$0xff] %v9990_v22  ;;  %10374 = vst [vmem:[%s17024_s12 + $0x260] sm:$0xff] %v10246_v30  ;;  %v13641_v46 = vld [vmem:[%s13853_s20 + $0x288] sm:$0xff]  ;;  %v13644_v18 = vld [vmem:[%s13847_s17 + $0x280] sm:$0xff] }
 0x440   : > { %v13302_v3 = vpop.eup %13301  ;;  %13319 = vpow2.f32 %v9588_v61  ;;  %v9864_v25 = vmul.f32 %v13300_v42, %v18019_v24  ;;  %v8632_v40 = vpop.xlane.xlu0 %8631  ;;  %v19507_v30 = vld [vmem:[#allocation107_spill] sm:$0xff]  ;;  %v13645_v8 = vld [vmem:[%s13853_s20 + $0x298] sm:$0xff] }
 0x441   : > { %v8641_v44 = vpop.xlane.xlu1 %8640  ;;  %v18114_v48 = vpop.eup %13303  ;;  %10121 = vst [vmem:[%s17018_s8 + $0x278] sm:$0xff] %v9993_v37  ;;  %10377 = vst [vmem:[%s17024_s12 + $0x278] sm:$0xff] %v10249_v4  ;;  %v9867_v28 = vmul.f32 %v13302_v3, %v18035_v9  ;;  %13321 = vrcp.f32 %v8632_v40  ;;  %v13642_v9 = vld [vmem:[%s13847_s17 + $0x288] sm:$0xff]  ;;  %v9594_v3 = vmul.f32 1.442695, %v9370_v1 }
 0x442   : > { %v18119_v2 = vpop.eup %13305  ;;  %v9992_v62 = vmul.f32 %v13639_v63, %v9864_v25  ;;  %v10248_v55 = vmul.f32 %v13640_v21, %v9864_v25  ;;  %13323 = vrcp.f32 %v8641_v44  ;;  %v19508_v42 = vld [vmem:[#allocation111_spill] sm:$0xff] }
 0x443   : > { %v13308_v24 = vpop.eup %13307  ;;  %13325 = vpow2.f32 %v9586_v6  ;;  %v9995_v20 = vmul.f32 %v13641_v46, %v9867_v28  ;;  %v10251_v41 = vmul.f32 %v13642_v9, %v9867_v28  ;;  %v9373_v6 = vsub.f32 %v19508_v42, %v19507_v30  ;;  %v13650_v46 = vld [vmem:[%s13847_s17 + $0x2a8] sm:$0xff] }
 0x444   : > { %v13310_v34 = vpop.eup %13309  ;;  %13327 = vpow2.f32 %v9592_v50  ;;  %10120 = vst [vmem:[%s17018_s8 + $0x270] sm:$0xff] %v9992_v62  ;;  %10376 = vst [vmem:[%s17024_s12 + $0x270] sm:$0xff] %v10248_v55  ;;  %v9866_v61 = vmul.f32 %v13308_v24, %v18048_v57  ;;  %v8638_v60 = vpop.xlane.xlu0 %8637  ;;  %v9596_v57 = vmul.f32 1.442695, %v9371_v5  ;;  %v19509_v50 = vld [vmem:[#allocation231_spill] sm:$0xff]  ;;  %v13647_v62 = vld [vmem:[%s13853_s20 + $0x290] sm:$0xff] }
 0x445   : > { %v8647_v11 = vpop.xlane.xlu1 %8646  ;;  %10123 = vst [vmem:[%s17018_s8 + $0x288] sm:$0xff] %v9995_v20  ;;  %10379 = vst [vmem:[%s17024_s12 + $0x288] sm:$0xff] %v10251_v41  ;;  %v9869_v58 = vmul.f32 %v13310_v34, %v18053_v26  ;;  %13329 = vrcp.f32 %v8638_v60  ;;  %v18135_v36 = vpop.eup %13311  ;;  %v13646_v26 = vld [vmem:[%s13847_s17 + $0x298] sm:$0xff]  ;;  %v9372_v39 = vsub.f32 %v19510_v12, %v19509_v50  ;;  %v13648_v55 = vld [vmem:[%s13847_s17 + $0x290] sm:$0xff]  ;;  %v9600_v56 = vmul.f32 1.442695, %v9373_v6 }
 0x446   : > { %v9994_v52 = vmul.f32 %v13643_v33, %v9866_v61  ;;  %v10250_v22 = vmul.f32 %v13644_v18, %v9866_v61  ;;  %13331 = vrcp.f32 %v8647_v11  ;;  %v19511_v41 = vld [vmem:[#allocation233_spill] sm:$0xff]  ;;  %v13655_v12 = vld [vmem:[%s13853_s20 + $0x2b0] sm:$0xff] }
 0x447   : > { %v13314_v23 = vpop.eup %13313  ;;  %v9997_v37 = vmul.f32 %v13645_v8, %v9869_v58  ;;  %v10253_v14 = vmul.f32 %v13646_v26, %v9869_v58  ;;  %13333 = vpow2.f32 %v9590_v15  ;;  %v9598_v9 = vmul.f32 1.442695, %v9372_v39  ;;  %v19512_v34 = vld [vmem:[#allocation117_spill] sm:$0xff]  ;;  %v13651_v58 = vld [vmem:[%s13853_s20 + $0x2a0] sm:$0xff] }
 0x448   : > { %v13316_v4 = vpop.eup %13315  ;;  %10122 = vst [vmem:[%s17018_s8 + $0x280] sm:$0xff] %v9994_v52  ;;  %10378 = vst [vmem:[%s17024_s12 + $0x280] sm:$0xff] %v10250_v22  ;;  %v9868_v35 = vmul.f32 %v13314_v23, %v18064_v47  ;;  %v8644_v25 = vpop.xlane.xlu0 %8643  ;;  %v9375_v15 = vsub.f32 %v19512_v34, %v19511_v41  ;;  %v13652_v52 = vld [vmem:[%s13847_s17 + $0x2a0] sm:$0xff] }
 0x449   : > { %v8653_v40 = vpop.xlane.xlu1 %8652  ;;  %v18148_v44 = vpop.eup %13317  ;;  %10125 = vst [vmem:[%s17018_s8 + $0x298] sm:$0xff] %v9997_v37  ;;  %10381 = vst [vmem:[%s17024_s12 + $0x298] sm:$0xff] %v10253_v14  ;;  %v9871_v28 = vmul.f32 %v13316_v4, %v18069_v31  ;;  %13335 = vrcp.f32 %v8644_v25  ;;  %v19513_v22 = vld [vmem:[#allocation118_spill] sm:$0xff]  ;;  %v19514_v37 = vld [vmem:[#allocation119_spill] sm:$0xff] }
 0x44a   : > { %v18153_v63 = vpop.eup %13319  ;;  %v9996_v21 = vmul.f32 %v13647_v62, %v9868_v35  ;;  %v10252_v24 = vmul.f32 %v13648_v55, %v9868_v35  ;;  %13337 = vrcp.f32 %v8653_v40  ;;  %v9374_v23 = vsub.f32 %v19513_v22, %v17410_v10  ;;  %v19515_v40 = vld [vmem:[#allocation121_spill] sm:$0xff]  ;;  %v13657_v62 = vld [vmem:[%s13853_s20 + $0x2c8] sm:$0xff]  ;;  %v13659_v34 = vld [vmem:[%s13853_s20 + $0x2c0] sm:$0xff] }
 0x44b   : > { %v13322_v47 = vpop.eup %13321  ;;  %13339 = vpow2.f32 %v9596_v57  ;;  %v9999_v5 = vmul.f32 %v13649_v53, %v9871_v28  ;;  %v10255_v20 = vmul.f32 %v13650_v46, %v9871_v28  ;;  %v13653_v57 = vld [vmem:[%s13853_s20 + $0x2b8] sm:$0xff]  ;;  %v9604_v8 = vmul.f32 1.442695, %v9375_v15  ;;  %v19519_v22 = vld [vmem:[#allocation126_spill] sm:$0xff] }
 0x44c   : > { %v13324_v31 = vpop.eup %13323  ;;  %13341 = vpow2.f32 %v9594_v3  ;;  %10124 = vst [vmem:[%s17018_s8 + $0x290] sm:$0xff] %v9996_v21  ;;  %10380 = vst [vmem:[%s17024_s12 + $0x290] sm:$0xff] %v10252_v24  ;;  %v9870_v54 = vmul.f32 %v13322_v47, %v18085_v51  ;;  %v8650_v45 = vpop.xlane.xlu0 %8649  ;;  %v9377_v26 = vsub.f32 %v19514_v37, %v17412_v29  ;;  %v13656_v29 = vld [vmem:[%s13847_s17 + $0x2b0] sm:$0xff]  ;;  %v9376_v28 = vsub.f32 %v19515_v40, %v17427_v32  ;;  %v19517_v53 = vld [vmem:[#allocation125_spill] sm:$0xff] }
 0x44d   : > { %v8659_v1 = vpop.xlane.xlu1 %8658  ;;  %v18164_v61 = vpop.eup %13325  ;;  %10127 = vst [vmem:[%s17018_s8 + $0x2a8] sm:$0xff] %v9999_v5  ;;  %10383 = vst [vmem:[%s17024_s12 + $0x2a8] sm:$0xff] %v10255_v20  ;;  %v9873_v60 = vmul.f32 %v13324_v31, %v18098_v7  ;;  %13343 = vrcp.f32 %v8650_v45  ;;  %v13654_v7 = vld [vmem:[%s13847_s17 + $0x2b8] sm:$0xff]  ;;  %v13663_v37 = vld [vmem:[%s13853_s20 + $0x2d0] sm:$0xff] }
 0x44e   : > { %v18169_v11 = vpop.eup %13327  ;;  %v9998_v33 = vmul.f32 %v13651_v58, %v9870_v54  ;;  %v10254_v18 = vmul.f32 %v13652_v52, %v9870_v54  ;;  %13345 = vrcp.f32 %v8659_v1  ;;  %v9608_v47 = vmul.f32 1.442695, %v9377_v26  ;;  %v13660_v54 = vld [vmem:[%s13847_s17 + $0x2c0] sm:$0xff]  ;;  %v19522_v40 = vld [vmem:[#allocation237_spill] sm:$0xff] }
 0x44f   : > { %v13330_v51 = vpop.eup %13329  ;;  %13347 = vpow2.f32 %v9600_v56  ;;  %v10001_v30 = vmul.f32 %v13653_v57, %v9873_v60  ;;  %v10257_v42 = vmul.f32 %v13654_v7, %v9873_v60  ;;  %v19516_v56 = vld [vmem:[#allocation29_spill] sm:$0xff]  ;;  %v9606_v1 = vmul.f32 1.442695, %v9376_v28 }
 0x450   : > { %v13332_v6 = vpop.eup %13331  ;;  %13349 = vpow2.f32 %v9598_v9  ;;  %10126 = vst [vmem:[%s17018_s8 + $0x2a0] sm:$0xff] %v9998_v33  ;;  %10382 = vst [vmem:[%s17024_s12 + $0x2a0] sm:$0xff] %v10254_v18  ;;  %v9872_v14 = vmul.f32 %v13330_v51, %v18103_v49  ;;  %v8656_v4 = vpop.xlane.xlu0 %8655  ;;  %v9602_v49 = vmul.f32 1.442695, %v9374_v23  ;;  %v9379_v5 = vsub.f32 %v19517_v53, %v19516_v56  ;;  %v13661_v60 = vld [vmem:[%s13853_s20 + $0x2d8] sm:$0xff]  ;;  %v19518_v51 = vld [vmem:[#allocation30_spill] sm:$0xff] }
 0x451   : > { %v8665_v3 = vpop.xlane.xlu1 %8664  ;;  %10129 = vst [vmem:[%s17018_s8 + $0x2b8] sm:$0xff] %v10001_v30  ;;  %10385 = vst [vmem:[%s17024_s12 + $0x2b8] sm:$0xff] %v10257_v42  ;;  %v9875_v10 = vmul.f32 %v13332_v6, %v18114_v48  ;;  %13351 = vrcp.f32 %v8656_v4  ;;  %v18185_v50 = vpop.eup %13333  ;;  %v13658_v48 = vld [vmem:[%s13847_s17 + $0x2c8] sm:$0xff]  ;;  %v13662_v33 = vld [vmem:[%s13847_s17 + $0x2d8] sm:$0xff]  ;;  %v9378_v23 = vsub.f32 %v19519_v22, %v19518_v51 }
 0x452   : > { %v10000_v39 = vmul.f32 %v13655_v12, %v9872_v14  ;;  %v10256_v35 = vmul.f32 %v13656_v29, %v9872_v14  ;;  %13353 = vrcp.f32 %v8665_v3  ;;  %v9612_v18 = vmul.f32 1.442695, %v9379_v5  ;;  %v13664_v14 = vld [vmem:[%s13847_s17 + $0x2d0] sm:$0xff]  ;;  %v19520_v3 = vld [vmem:[#allocation31_spill] sm:$0xff]  ;;  %v19523_v28 = vld [vmem:[#allocation129_spill] sm:$0xff] }
 0x453   : > { %v13336_v25 = vpop.eup %13335  ;;  %v10003_v21 = vmul.f32 %v13657_v62, %v9875_v10  ;;  %v10259_v55 = vmul.f32 %v13658_v48, %v9875_v10  ;;  %13355 = vpow2.f32 %v9604_v8  ;;  %v19521_v10 = vld [vmem:[#allocation127_spill] sm:$0xff]  ;;  %v9380_v62 = vsub.f32 %v19523_v28, %v19522_v40  ;;  %v13667_v56 = vld [vmem:[%s13853_s20 + $0x2e0] sm:$0xff]  ;;  %v19528_v28 = vld [vmem:[#allocation137_spill] sm:$0xff] }
 0x454   : > { %v13338_v24 = vpop.eup %13337  ;;  %10128 = vst [vmem:[%s17018_s8 + $0x2b0] sm:$0xff] %v10000_v39  ;;  %10384 = vst [vmem:[%s17024_s12 + $0x2b0] sm:$0xff] %v10256_v35  ;;  %v9874_v46 = vmul.f32 %v13336_v25, %v18119_v2  ;;  %v8662_v20 = vpop.xlane.xlu0 %8661  ;;  %v9381_v12 = vsub.f32 %v19521_v10, %v19520_v3  ;;  %v13665_v39 = vld [vmem:[%s13853_s20 + $0x2e8] sm:$0xff]  ;;  %v13668_v5 = vld [vmem:[%s13847_s17 + $0x2e0] sm:$0xff] }
 0x455   : > { %v8671_v32 = vpop.xlane.xlu1 %8670  ;;  %v18198_v31 = vpop.eup %13339  ;;  %10131 = vst [vmem:[%s17018_s8 + $0x2c8] sm:$0xff] %v10003_v21  ;;  %10387 = vst [vmem:[%s17024_s12 + $0x2c8] sm:$0xff] %v10259_v55  ;;  %v9877_v9 = vmul.f32 %v13338_v24, %v18135_v36  ;;  %13357 = vrcp.f32 %v8662_v20 }
 0x456   : > { %v18203_v41 = vpop.eup %13341  ;;  %v10002_v15 = vmul.f32 %v13659_v34, %v9874_v46  ;;  %v10258_v45 = vmul.f32 %v13660_v54, %v9874_v46  ;;  %13359 = vrcp.f32 %v8671_v32  ;;  %v19524_v32 = vld [vmem:[#allocation32_spill] sm:$0xff] }
 0x457   : > { %v13344_v2 = vpop.eup %13343  ;;  %13361 = vpow2.f32 %v9602_v49  ;;  %v10005_v58 = vmul.f32 %v13661_v60, %v9877_v9  ;;  %v10261_v52 = vmul.f32 %v13662_v33, %v9877_v9  ;;  %v9610_v49 = vmul.f32 1.442695, %v9378_v23  ;;  %v19525_v9 = vld [vmem:[#allocation133_spill] sm:$0xff]  ;;  %v19526_v60 = vld [vmem:[#allocation134_spill] sm:$0xff]  ;;  %v13671_v23 = vld [vmem:[%s13853_s20 + $0x2f0] sm:$0xff] }
 0x458   : > { %v13346_v36 = vpop.eup %13345  ;;  %13363 = vpow2.f32 %v9608_v47  ;;  %10130 = vst [vmem:[%s17018_s8 + $0x2c0] sm:$0xff] %v10002_v15  ;;  %10386 = vst [vmem:[%s17024_s12 + $0x2c0] sm:$0xff] %v10258_v45  ;;  %v9876_v57 = vmul.f32 %v13344_v2, %v18148_v44  ;;  %v8668_v30 = vpop.xlane.xlu0 %8667  ;;  %v9383_v34 = vsub.f32 %v19525_v9, %v19524_v32  ;;  %v13669_v15 = vld [vmem:[%s13853_s20 + $0x2f8] sm:$0xff] }
 0x459   : > { %v8677_v7 = vpop.xlane.xlu1 %8676  ;;  %v18214_v42 = vpop.eup %13347  ;;  %10133 = vst [vmem:[%s17018_s8 + $0x2d8] sm:$0xff] %v10005_v58  ;;  %10389 = vst [vmem:[%s17024_s12 + $0x2d8] sm:$0xff] %v10261_v52  ;;  %v9879_v6 = vmul.f32 %v13346_v36, %v18153_v63  ;;  %13365 = vrcp.f32 %v8668_v30  ;;  %v13666_v63 = vld [vmem:[%s13847_s17 + $0x2e8] sm:$0xff]  ;;  %v9382_v58 = vsub.f32 %v19526_v60, %v17560_v27 }
 0x45a   : > { %v18219_v8 = vpop.eup %13349  ;;  %v10004_v26 = vmul.f32 %v13663_v37, %v9876_v57  ;;  %v10260_v4 = vmul.f32 %v13664_v14, %v9876_v57  ;;  %13367 = vrcp.f32 %v8677_v7  ;;  %v13672_v57 = vld [vmem:[%s13847_s17 + $0x2f0] sm:$0xff]  ;;  %v9620_v7 = vmul.f32 1.442695, %v9383_v34 }
 0x45b   : > { %v13352_v44 = vpop.eup %13351  ;;  %13369 = vpow2.f32 %v9606_v1  ;;  %v10007_v29 = vmul.f32 %v13665_v39, %v9879_v6  ;;  %v10263_v35 = vmul.f32 %v13666_v63, %v9879_v6  ;;  %v9614_v1 = vmul.f32 1.442695, %v9380_v62  ;;  %v13673_v6 = vld [vmem:[%s13853_s20 + $0x308] sm:$0xff]  ;;  %v13679_v34 = vld [vmem:[%s13853_s20 + $0x310] sm:$0xff] }
 0x45c   : > { %v13354_v25 = vpop.eup %13353  ;;  %13371 = vpow2.f32 %v9612_v18  ;;  %10132 = vst [vmem:[%s17018_s8 + $0x2d0] sm:$0xff] %v10004_v26  ;;  %10388 = vst [vmem:[%s17024_s12 + $0x2d0] sm:$0xff] %v10260_v4  ;;  %v9878_v21 = vmul.f32 %v13352_v44, %v18164_v61  ;;  %v8674_v48 = vpop.xlane.xlu0 %8673  ;;  %v9616_v61 = vmul.f32 1.442695, %v9381_v12  ;;  %v13674_v26 = vld [vmem:[%s13847_s17 + $0x308] sm:$0xff]  ;;  %v9384_v62 = vsub.f32 %v19528_v28, %v17573_v0 }
 0x45d   : > { %v8683_v55 = vpop.xlane.xlu1 %8682  ;;  %10135 = vst [vmem:[%s17018_s8 + $0x2e8] sm:$0xff] %v10007_v29  ;;  %10391 = vst [vmem:[%s17024_s12 + $0x2e8] sm:$0xff] %v10263_v35  ;;  %v9881_v24 = vmul.f32 %v13354_v25, %v18169_v11  ;;  %13373 = vrcp.f32 %v8674_v48  ;;  %v18235_v47 = vpop.eup %13355  ;;  %v13670_v11 = vld [vmem:[%s13847_s17 + $0x2f8] sm:$0xff]  ;;  %v9618_v4 = vmul.f32 1.442695, %v9382_v58  ;;  %v19527_v44 = vld [vmem:[#allocation135_spill] sm:$0xff] }
 0x45e   : > { %v10006_v53 = vmul.f32 %v13667_v56, %v9878_v21  ;;  %v10262_v46 = vmul.f32 %v13668_v5, %v9878_v21  ;;  %13375 = vrcp.f32 %v8683_v55  ;;  %v9385_v3 = vsub.f32 %v19527_v44, %v17562_v17  ;;  %v13675_v25 = vld [vmem:[%s13853_s20 + $0x300] sm:$0xff]  ;;  %v13677_v21 = vld [vmem:[%s13853_s20 + $0x318] sm:$0xff]  ;;  %v13681_v58 = vld [vmem:[%s13853_s20 + $0x328] sm:$0xff] }
 0x45f   : > { %v13358_v20 = vpop.eup %13357  ;;  %v10009_v54 = vmul.f32 %v13669_v15, %v9881_v24  ;;  %v10265_v45 = vmul.f32 %v13670_v11, %v9881_v24  ;;  %13377 = vpow2.f32 %v9610_v49  ;;  %v13676_v49 = vld [vmem:[%s13847_s17 + $0x300] sm:$0xff]  ;;  %v19530_v5 = vld [vmem:[#allocation141_spill] sm:$0xff] }
 0x460   : > { %v13360_v2 = vpop.eup %13359  ;;  %10134 = vst [vmem:[%s17018_s8 + $0x2e0] sm:$0xff] %v10006_v53  ;;  %10390 = vst [vmem:[%s17024_s12 + $0x2e0] sm:$0xff] %v10262_v46  ;;  %v9880_v33 = vmul.f32 %v13358_v20, %v18185_v50  ;;  %v8680_v52 = vpop.xlane.xlu0 %8679  ;;  %v9624_v56 = vmul.f32 1.442695, %v9385_v3  ;;  %v19529_v53 = vld [vmem:[#allocation33_spill] sm:$0xff] }
 0x461   : > { %v8689_v36 = vpop.xlane.xlu1 %8688  ;;  %v18248_v18 = vpop.eup %13361  ;;  %10137 = vst [vmem:[%s17018_s8 + $0x2f8] sm:$0xff] %v10009_v54  ;;  %10393 = vst [vmem:[%s17024_s12 + $0x2f8] sm:$0xff] %v10265_v45  ;;  %v9883_v51 = vmul.f32 %v13360_v2, %v18198_v31  ;;  %13379 = vrcp.f32 %v8680_v52  ;;  %v9387_v46 = vsub.f32 %v19530_v5, %v19529_v53  ;;  %v13680_v54 = vld [vmem:[%s13847_s17 + $0x310] sm:$0xff]  ;;  %v19531_v2 = vld [vmem:[#allocation34_spill] sm:$0xff] }
 0x462   : > { %v18253_v22 = vpop.eup %13363  ;;  %v10008_v27 = vmul.f32 %v13671_v23, %v9880_v33  ;;  %v10264_v30 = vmul.f32 %v13672_v57, %v9880_v33  ;;  %13381 = vrcp.f32 %v8689_v36  ;;  %v19533_v23 = vld [vmem:[#allocation184_spill] sm:$0xff]  ;;  %v19537_v5 = vld [vmem:[#allocation149_spill] sm:$0xff] }
 0x463   : > { %v13366_v50 = vpop.eup %13365  ;;  %13383 = vpow2.f32 %v9616_v61  ;;  %v10011_v37 = vmul.f32 %v13673_v6, %v9883_v51  ;;  %v10267_v14 = vmul.f32 %v13674_v26, %v9883_v51  ;;  %v9628_v51 = vmul.f32 1.442695, %v9387_v46 }
 0x464   : > { %v13368_v31 = vpop.eup %13367  ;;  %13385 = vpow2.f32 %v9614_v1  ;;  %10136 = vst [vmem:[%s17018_s8 + $0x2f0] sm:$0xff] %v10008_v27  ;;  %10392 = vst [vmem:[%s17024_s12 + $0x2f0] sm:$0xff] %v10264_v30  ;;  %v9882_v10 = vmul.f32 %v13366_v50, %v18203_v41  ;;  %v8686_v12 = vpop.xlane.xlu0 %8685  ;;  %v19532_v1 = vld [vmem:[#allocation142_spill] sm:$0xff]  ;;  %v19534_v27 = vld [vmem:[#allocation143_spill] sm:$0xff]  ;;  %v9391_v46 = vsub.f32 %v19537_v5, %v17663_v19 }
 0x465   : > { %v8695_v39 = vpop.xlane.xlu1 %8694  ;;  %v18264_v29 = vpop.eup %13369  ;;  %10139 = vst [vmem:[%s17018_s8 + $0x308] sm:$0xff] %v10011_v37  ;;  %10395 = vst [vmem:[%s17024_s12 + $0x308] sm:$0xff] %v10267_v14  ;;  %v9885_v63 = vmul.f32 %v13368_v31, %v18214_v42  ;;  %13387 = vrcp.f32 %v8686_v12  ;;  %v13678_v42 = vld [vmem:[%s13847_s17 + $0x318] sm:$0xff]  ;;  %v9386_v60 = vsub.f32 %v19532_v1, %v19531_v2  ;;  %v9389_v57 = vsub.f32 %v19534_v27, %v19533_v23  ;;  %v13683_v14 = vld [vmem:[%s13853_s20 + $0x320] sm:$0xff] }
 0x466   : > { %v18269_v35 = vpop.eup %13371  ;;  %v10010_v17 = vmul.f32 %v13675_v25, %v9882_v10  ;;  %v10266_v40 = vmul.f32 %v13676_v49, %v9882_v10  ;;  %13389 = vrcp.f32 %v8695_v39  ;;  %v13685_v10 = vld [vmem:[%s13853_s20 + $0x338] sm:$0xff]  ;;  %v13691_v1 = vld [vmem:[%s13853_s20 + $0x340] sm:$0xff] }
 0x467   : > { %v13374_v41 = vpop.eup %13373  ;;  %13391 = vpow2.f32 %v9620_v7  ;;  %v10013_v48 = vmul.f32 %v13677_v21, %v9885_v63  ;;  %v10269_v55 = vmul.f32 %v13678_v42, %v9885_v63  ;;  %v9626_v3 = vmul.f32 1.442695, %v9386_v60  ;;  %v13686_v39 = vld [vmem:[%s13847_s17 + $0x338] sm:$0xff] }
 0x468   : > { %v13376_v24 = vpop.eup %13375  ;;  %13393 = vpow2.f32 %v9618_v4  ;;  %10138 = vst [vmem:[%s17018_s8 + $0x300] sm:$0xff] %v10010_v17  ;;  %10394 = vst [vmem:[%s17024_s12 + $0x300] sm:$0xff] %v10266_v40  ;;  %v9884_v20 = vmul.f32 %v13374_v41, %v18219_v8  ;;  %v8692_v61 = vpop.xlane.xlu0 %8691  ;;  %v9622_v8 = vmul.f32 1.442695, %v9384_v62  ;;  %v13684_v4 = vld [vmem:[%s13847_s17 + $0x320] sm:$0xff]  ;;  %v19535_v17 = vld [vmem:[#allocation35_spill] sm:$0xff] }
 0x469   : > { %v8701_v32 = vpop.xlane.xlu1 %8700  ;;  %10141 = vst [vmem:[%s17018_s8 + $0x318] sm:$0xff] %v10013_v48  ;;  %10397 = vst [vmem:[%s17024_s12 + $0x318] sm:$0xff] %v10269_v55  ;;  %v9887_v0 = vmul.f32 %v13376_v24, %v18235_v47  ;;  %13395 = vrcp.f32 %v8692_v61  ;;  %v18285_v9 = vpop.eup %13377  ;;  %v13682_v47 = vld [vmem:[%s13847_s17 + $0x328] sm:$0xff]  ;;  %v9632_v25 = vmul.f32 1.442695, %v9389_v57  ;;  %v19536_v49 = vld [vmem:[#allocation145_spill] sm:$0xff] }
 0x46a   : > { %v10012_v15 = vmul.f32 %v13679_v34, %v9884_v20  ;;  %v10268_v11 = vmul.f32 %v13680_v54, %v9884_v20  ;;  %13397 = vrcp.f32 %v8701_v32  ;;  %v9388_v40 = vsub.f32 %v19536_v49, %v19535_v17  ;;  %v13687_v55 = vld [vmem:[%s13853_s20 + $0x330] sm:$0xff]  ;;  %v13689_v20 = vld [vmem:[%s13853_s20 + $0x348] sm:$0xff]  ;;  %v13694_v27 = vld [vmem:[%s13847_s17 + $0x358] sm:$0xff] }
 0x46b   : > { %v13380_v45 = vpop.eup %13379  ;;  %v10015_v33 = vmul.f32 %v13681_v58, %v9887_v0  ;;  %v10271_v52 = vmul.f32 %v13682_v47, %v9887_v0  ;;  %13399 = vpow2.f32 %v9624_v56  ;;  %v13688_v56 = vld [vmem:[%s13847_s17 + $0x330] sm:$0xff]  ;;  %v13692_v58 = vld [vmem:[%s13847_s17 + $0x340] sm:$0xff]  ;;  %v9636_v47 = vmul.f32 1.442695, %v9391_v46  ;;  %v13698_v49 = vld [vmem:[%s13847_s17 + $0x368] sm:$0xff] }
 0x46c   : > { %v13382_v36 = vpop.eup %13381  ;;  %10140 = vst [vmem:[%s17018_s8 + $0x310] sm:$0xff] %v10012_v15  ;;  %10396 = vst [vmem:[%s17024_s12 + $0x310] sm:$0xff] %v10268_v11  ;;  %v9886_v30 = vmul.f32 %v13380_v45, %v18248_v18  ;;  %v8698_v50 = vpop.xlane.xlu0 %8697  ;;  %v9630_v34 = vmul.f32 1.442695, %v9388_v40  ;;  %v19538_v15 = vld [vmem:[#allocation150_spill] sm:$0xff] }
 0x46d   : > { %v8707_v7 = vpop.xlane.xlu1 %8706  ;;  %v13384_v6 = vpop.eup %13383  ;;  %10143 = vst [vmem:[%s17018_s8 + $0x328] sm:$0xff] %v10015_v33  ;;  %10399 = vst [vmem:[%s17024_s12 + $0x328] sm:$0xff] %v10271_v52  ;;  %v9889_v37 = vmul.f32 %v13382_v36, %v18253_v22  ;;  %13401 = vrcp.f32 %v8698_v50  ;;  %v9390_v54 = vsub.f32 %v19538_v15, %v17675_v16  ;;  %v19539_v52 = vld [vmem:[#allocation186_spill] sm:$0xff]  ;;  %v13701_v15 = vld [vmem:[%s13853_s20 + $0x378] sm:$0xff] }
 0x46e   : > { %v18301_v26 = vpop.eup %13385  ;;  %v10014_v31 = vmul.f32 %v13683_v14, %v9886_v30  ;;  %v10270_v44 = vmul.f32 %v13684_v4, %v9886_v30  ;;  %13403 = vrcp.f32 %v8707_v7  ;;  %v19541_v7 = vld [vmem:[#allocation36_spill] sm:$0xff]  ;;  %v13699_v46 = vld [vmem:[%s13853_s20 + $0x360] sm:$0xff] }
 0x46f   : > { %v13388_v18 = vpop.eup %13387  ;;  %13405 = vpow2.f32 %v9622_v8  ;;  %v10017_v12 = vmul.f32 %v13685_v10, %v9889_v37  ;;  %v10273_v63 = vmul.f32 %v13686_v39, %v9889_v37  ;;  %v9634_v50 = vmul.f32 1.442695, %v9390_v54  ;;  %v13695_v10 = vld [vmem:[%s13853_s20 + $0x350] sm:$0xff] }
 0x470   : > { %v13390_v22 = vpop.eup %13389  ;;  %13407 = vpow2.f32 %v9628_v51  ;;  %10142 = vst [vmem:[%s17018_s8 + $0x320] sm:$0xff] %v10014_v31  ;;  %10398 = vst [vmem:[%s17024_s12 + $0x320] sm:$0xff] %v10270_v44  ;;  %v9888_v41 = vmul.f32 %v13388_v18, %v18264_v29  ;;  %v8704_v28 = vpop.xlane.xlu0 %8703  ;;  %v13693_v51 = vld [vmem:[%s13853_s20 + $0x358] sm:$0xff]  ;;  %v13696_v39 = vld [vmem:[%s13847_s17 + $0x350] sm:$0xff] }
 0x471   : > { %v8713_v62 = vpop.xlane.xlu1 %8712  ;;  %v13392_v21 = vpop.eup %13391  ;;  %10145 = vst [vmem:[%s17018_s8 + $0x338] sm:$0xff] %v10017_v12  ;;  %10401 = vst [vmem:[%s17024_s12 + $0x338] sm:$0xff] %v10273_v63  ;;  %v9891_v48 = vmul.f32 %v13390_v22, %v18269_v35  ;;  %13409 = vrcp.f32 %v8704_v28  ;;  %v13690_v35 = vld [vmem:[%s13847_s17 + $0x348] sm:$0xff] }
 0x472   : > { %v18315_v42 = vpop.eup %13393  ;;  %v10016_v24 = vmul.f32 %v13687_v55, %v9888_v41  ;;  %v10272_v53 = vmul.f32 %v13688_v56, %v9888_v41  ;;  %13411 = vrcp.f32 %v8713_v62  ;;  %v19543_v62 = vld [vmem:[#allocation37_spill] sm:$0xff] }
 0x473   : > { %v13396_v29 = vpop.eup %13395  ;;  %13413 = vpow2.f32 %v9626_v3  ;;  %v10019_v61 = vmul.f32 %v13689_v20, %v9891_v48  ;;  %v10275_v32 = vmul.f32 %v13690_v35, %v9891_v48 }
 0x474   : > { %v13398_v0 = vpop.eup %13397  ;;  %13415 = vpow2.f32 %v9632_v25  ;;  %10144 = vst [vmem:[%s17018_s8 + $0x330] sm:$0xff] %v10016_v24  ;;  %10400 = vst [vmem:[%s17024_s12 + $0x330] sm:$0xff] %v10272_v53  ;;  %v9890_v11 = vmul.f32 %v13396_v29, %v18285_v9  ;;  %v8710_v45 = vpop.xlane.xlu0 %8709  ;;  %v19540_v9 = vld [vmem:[#allocation151_spill] sm:$0xff] }
 0x475   : > { %v8719_v8 = vpop.xlane.xlu1 %8718  ;;  %10147 = vst [vmem:[%s17018_s8 + $0x348] sm:$0xff] %v10019_v61  ;;  %10403 = vst [vmem:[%s17024_s12 + $0x348] sm:$0xff] %v10275_v32  ;;  %v9893_v19 = vmul.f32 %v13398_v0, %v13384_v6  ;;  %13417 = vrcp.f32 %v8710_v45  ;;  %v13400_v2 = vpop.eup %13399  ;;  %v9393_v36 = vsub.f32 %v19540_v9, %v19539_v52  ;;  %v19542_v6 = vld [vmem:[#allocation153_spill] sm:$0xff]  ;;  %v13697_v25 = vld [vmem:[%s13853_s20 + $0x368] sm:$0xff] }
 0x476   : > { %v10018_v60 = vmul.f32 %v13691_v1, %v9890_v11  ;;  %v10274_v33 = vmul.f32 %v13692_v58, %v9890_v11  ;;  %13419 = vrcp.f32 %v8719_v8  ;;  %v9392_v37 = vsub.f32 %v19542_v6, %v19541_v7  ;;  %v13700_v61 = vld [vmem:[%s13847_s17 + $0x360] sm:$0xff]  ;;  %v13702_v11 = vld [vmem:[%s13847_s17 + $0x378] sm:$0xff]  ;;  %v19548_v1 = vld [vmem:[#allocation159_spill] sm:$0xff] }
 0x477   : > { %v13402_v16 = vpop.eup %13401  ;;  %v10021_v23 = vmul.f32 %v13693_v51, %v9893_v19  ;;  %v10277_v57 = vmul.f32 %v13694_v27, %v9893_v19  ;;  %13421 = vpow2.f32 %v9630_v34  ;;  %v19546_v0 = vld [vmem:[#allocation158_spill] sm:$0xff]  ;;  %v13703_v9 = vld [vmem:[%s13853_s20 + $0x370] sm:$0xff]  ;;  %v13705_v6 = vld [vmem:[%s13853_s20 + $0x388] sm:$0xff] }
 0x478   : > { %v13404_v30 = vpop.eup %13403  ;;  %10146 = vst [vmem:[%s17018_s8 + $0x340] sm:$0xff] %v10018_v60  ;;  %10402 = vst [vmem:[%s17024_s12 + $0x340] sm:$0xff] %v10274_v33  ;;  %v9892_v14 = vmul.f32 %v13402_v16, %v18301_v26  ;;  %v8716_v31 = vpop.xlane.xlu0 %8715  ;;  %v9640_v26 = vmul.f32 1.442695, %v9393_v36  ;;  %v9638_v28 = vmul.f32 1.442695, %v9392_v37 }
 0x479   : > { %v8725_v4 = vpop.xlane.xlu1 %8724  ;;  %v13406_v44 = vpop.eup %13405  ;;  %10149 = vst [vmem:[%s17018_s8 + $0x358] sm:$0xff] %v10021_v23  ;;  %10405 = vst [vmem:[%s17024_s12 + $0x358] sm:$0xff] %v10277_v57  ;;  %v9895_v18 = vmul.f32 %v13404_v30, %v13392_v21  ;;  %13423 = vrcp.f32 %v8716_v31  ;;  %v19544_v21 = vld [vmem:[#allocation157_spill] sm:$0xff]  ;;  %v13704_v51 = vld [vmem:[%s13847_s17 + $0x370] sm:$0xff] }
 0x47a   : > { %v13408_v3 = vpop.eup %13407  ;;  %v10020_v12 = vmul.f32 %v13695_v10, %v9892_v14  ;;  %v10276_v63 = vmul.f32 %v13696_v39, %v9892_v14  ;;  %13425 = vrcp.f32 %v8725_v4  ;;  %v9395_v48 = vsub.f32 %v19544_v21, %v19543_v62  ;;  %v19549_v30 = vld [vmem:[#allocation114_spill] sm:$0xff]  ;;  %v13706_v14 = vld [vmem:[%s13847_s17 + $0x388] sm:$0xff]  ;;  %v13710_v21 = vld [vmem:[%s13847_s17 + $0x398] sm:$0xff] }
 0x47b   : > { %v13410_v22 = vpop.eup %13409  ;;  %13427 = vpow2.f32 %v9636_v47  ;;  %v10023_v17 = vmul.f32 %v13697_v25, %v9895_v18  ;;  %v10279_v40 = vmul.f32 %v13698_v49, %v9895_v18  ;;  %v19551_v18 = vld [vmem:[#allocation165_spill] sm:$0xff]  ;;  %v13707_v25 = vld [vmem:[%s13853_s20 + $0x380] sm:$0xff] }
 0x47c   : > { %v13412_v41 = vpop.eup %13411  ;;  %13429 = vpow2.f32 %v9634_v50  ;;  %10148 = vst [vmem:[%s17018_s8 + $0x350] sm:$0xff] %v10020_v12  ;;  %10404 = vst [vmem:[%s17024_s12 + $0x350] sm:$0xff] %v10276_v63  ;;  %v9894_v55 = vmul.f32 %v13410_v22, %v18315_v42  ;;  %v8722_v24 = vpop.xlane.xlu0 %8721  ;;  %v19545_v42 = vld [vmem:[#allocation112_spill] sm:$0xff]  ;;  %v9644_v19 = vmul.f32 1.442695, %v9395_v48  ;;  %v19550_v50 = vld [vmem:[#allocation161_spill] sm:$0xff] }
 0x47d   : > { %v8731_v56 = vpop.xlane.xlu1 %8730  ;;  %v13414_v53 = vpop.eup %13413  ;;  %10151 = vst [vmem:[%s17018_s8 + $0x368] sm:$0xff] %v10023_v17  ;;  %10407 = vst [vmem:[%s17024_s12 + $0x368] sm:$0xff] %v10279_v40  ;;  %v9897_v29 = vmul.f32 %v13412_v41, %v13400_v2  ;;  %13431 = vrcp.f32 %v8722_v24  ;;  %v9394_v34 = vsub.f32 %v19546_v0, %v19545_v42  ;;  %v19547_v2 = vld [vmem:[#allocation238_spill] sm:$0xff]  ;;  %v9396_v7 = vsub.f32 %v19550_v50, %v19549_v30  ;;  %v13712_v0 = vld [vmem:[%s13847_s17 + $0x390] sm:$0xff] }
 0x47e   : > { %v13416_v5 = vpop.eup %13415  ;;  %v10022_v20 = vmul.f32 %v13699_v46, %v9894_v55  ;;  %v10278_v35 = vmul.f32 %v13700_v61, %v9894_v55  ;;  %13433 = vrcp.f32 %v8731_v56  ;;  %v9397_v60 = vsub.f32 %v19548_v1, %v19547_v2  ;;  %v13708_v49 = vld [vmem:[%s13847_s17 + $0x380] sm:$0xff] }
 0x47f   : > { %v13418_v32 = vpop.eup %13417  ;;  %13435 = vpow2.f32 %v9640_v26  ;;  %v10025_v54 = vmul.f32 %v13701_v15, %v9897_v29  ;;  %v10281_v45 = vmul.f32 %v13702_v11, %v9897_v29  ;;  %v9642_v57 = vmul.f32 1.442695, %v9394_v34  ;;  %v19552_v56 = vld [vmem:[#allocation166_spill] sm:$0xff]  ;;  %v13713_v15 = vld [vmem:[%s13853_s20 + $0x3a8] sm:$0xff] }
 0x480   : > { %v13420_v8 = vpop.eup %13419  ;;  %13437 = vpow2.f32 %v9638_v28  ;;  %10150 = vst [vmem:[%s17018_s8 + $0x360] sm:$0xff] %v10022_v20  ;;  %10406 = vst [vmem:[%s17024_s12 + $0x360] sm:$0xff] %v10278_v35  ;;  %v9896_v58 = vmul.f32 %v13418_v32, %v13406_v44  ;;  %v8728_v33 = vpop.xlane.xlu0 %8727  ;;  %v9648_v44 = vmul.f32 1.442695, %v9397_v60  ;;  %v9646_v41 = vmul.f32 1.442695, %v9396_v7 }
 0x481   : > { %v8737_v16 = vpop.xlane.xlu1 %8736  ;;  %10153 = vst [vmem:[%s17018_s8 + $0x378] sm:$0xff] %v10025_v54  ;;  %10409 = vst [vmem:[%s17024_s12 + $0x378] sm:$0xff] %v10281_v45  ;;  %v9899_v47 = vmul.f32 %v13420_v8, %v13408_v3  ;;  %13439 = vrcp.f32 %v8728_v33  ;;  %v13422_v52 = vpop.eup %13421  ;;  %v9399_v3 = vsub.f32 %v19551_v18, %v17777_v13  ;;  %v13709_v28 = vld [vmem:[%s13853_s20 + $0x398] sm:$0xff]  ;;  %v13711_v32 = vld [vmem:[%s13853_s20 + $0x390] sm:$0xff] }
 0x482   : > { %v10024_v36 = vmul.f32 %v13703_v9, %v9896_v58  ;;  %v10280_v23 = vmul.f32 %v13704_v51, %v9896_v58  ;;  %13441 = vrcp.f32 %v8737_v16  ;;  %v13714_v11 = vld [vmem:[%s13847_s17 + $0x3a8] sm:$0xff]  ;;  %v13715_v16 = vld [vmem:[%s13853_s20 + $0x3a0] sm:$0xff]  ;;  %v13717_v51 = vld [vmem:[%s13853_s20 + $0x3b8] sm:$0xff] }
 0x483   : > { %v13424_v27 = vpop.eup %13423  ;;  %v10027_v37 = vmul.f32 %v13705_v6, %v9899_v47  ;;  %v10283_v31 = vmul.f32 %v13706_v14, %v9899_v47  ;;  %13443 = vpow2.f32 %v9644_v19  ;;  %v9652_v24 = vmul.f32 1.442695, %v9399_v3  ;;  %v13720_v18 = vld [vmem:[%s13847_s17 + $0x3b0] sm:$0xff] }
 0x484   : > { %v13426_v4 = vpop.eup %13425  ;;  %10152 = vst [vmem:[%s17018_s8 + $0x370] sm:$0xff] %v10024_v36  ;;  %10408 = vst [vmem:[%s17024_s12 + $0x370] sm:$0xff] %v10280_v23  ;;  %v9898_v10 = vmul.f32 %v13424_v27, %v13414_v53  ;;  %v8734_v12 = vpop.xlane.xlu0 %8733  ;;  %v9398_v53 = vsub.f32 %v19552_v56, %v17792_v43  ;;  %v13718_v27 = vld [vmem:[%s13847_s17 + $0x3b8] sm:$0xff] }
 0x485   : > { %v8743_v39 = vpop.xlane.xlu1 %8742  ;;  %v13428_v63 = vpop.eup %13427  ;;  %10155 = vst [vmem:[%s17018_s8 + $0x388] sm:$0xff] %v10027_v37  ;;  %10411 = vst [vmem:[%s17024_s12 + $0x388] sm:$0xff] %v10283_v31  ;;  %v9901_v22 = vmul.f32 %v13426_v4, %v13416_v5  ;;  %13445 = vrcp.f32 %v8734_v12  ;;  %v13719_v4 = vld [vmem:[%s13853_s20 + $0x3b0] sm:$0xff]  ;;  %v13721_v12 = vld [vmem:[%s13853_s20 + $0x3c8] sm:$0xff] }
 0x486   : > { %v13430_v26 = vpop.eup %13429  ;;  %v10026_v17 = vmul.f32 %v13707_v25, %v9898_v10  ;;  %v10282_v40 = vmul.f32 %v13708_v49, %v9898_v10  ;;  %13447 = vrcp.f32 %v8743_v39  ;;  %v9650_v19 = vmul.f32 1.442695, %v9398_v53  ;;  %v13725_v56 = vld [vmem:[%s13853_s20 + $0x3d8] sm:$0xff] }
 0x487   : > { %v13432_v13 = vpop.eup %13431  ;;  %13449 = vpow2.f32 %v9642_v57  ;;  %v10029_v62 = vmul.f32 %v13709_v28, %v9901_v22  ;;  %v10285_v48 = vmul.f32 %v13710_v21, %v9901_v22 }
 0x488   : > { %v13434_v55 = vpop.eup %13433  ;;  %13451 = vpow2.f32 %v9648_v44  ;;  %10154 = vst [vmem:[%s17018_s8 + $0x380] sm:$0xff] %v10026_v17  ;;  %10410 = vst [vmem:[%s17024_s12 + $0x380] sm:$0xff] %v10282_v40  ;;  %v9900_v29 = vmul.f32 %v13432_v13, %v13422_v52  ;;  %v8740_v5 = vpop.xlane.xlu0 %8739  ;;  %v13716_v52 = vld [vmem:[%s13847_s17 + $0x3a0] sm:$0xff] }
 0x489   : > { %v8749_v46 = vpop.xlane.xlu1 %8748  ;;  %v13436_v20 = vpop.eup %13435  ;;  %10157 = vst [vmem:[%s17018_s8 + $0x398] sm:$0xff] %v10029_v62  ;;  %10413 = vst [vmem:[%s17024_s12 + $0x398] sm:$0xff] %v10285_v48  ;;  %v9903_v61 = vmul.f32 %v13434_v55, %v13428_v63  ;;  %13453 = vrcp.f32 %v8740_v5  ;;  %v13722_v63 = vld [vmem:[%s13847_s17 + $0x3c8] sm:$0xff]  ;;  %v13723_v62 = vld [vmem:[%s13853_s20 + $0x3c0] sm:$0xff] }
 0x48a   : > { %v13438_v35 = vpop.eup %13437  ;;  %v10028_v42 = vmul.f32 %v13711_v32, %v9900_v29  ;;  %v10284_v34 = vmul.f32 %v13712_v0, %v9900_v29  ;;  %13455 = vrcp.f32 %v8749_v46  ;;  %v13724_v48 = vld [vmem:[%s13847_s17 + $0x3c0] sm:$0xff]  ;;  %v13726_v29 = vld [vmem:[%s13847_s17 + $0x3d8] sm:$0xff]  ;;  %v13727_v0 = vld [vmem:[%s13853_s20 + $0x3d0] sm:$0xff] }
 0x48b   : > { %v13440_v43 = vpop.eup %13439  ;;  %13457 = vpow2.f32 %v9646_v41  ;;  %v10031_v54 = vmul.f32 %v13713_v15, %v9903_v61  ;;  %v10287_v45 = vmul.f32 %v13714_v11, %v9903_v61  ;;  %v13729_v11 = vld [vmem:[%s13853_s20 + $0x3e8] sm:$0xff] }
 0x48c   : > { %v13442_v8 = vpop.eup %13441  ;;  %13459 = vpow2.f32 %v9652_v24  ;;  %10156 = vst [vmem:[%s17018_s8 + $0x390] sm:$0xff] %v10028_v42  ;;  %10412 = vst [vmem:[%s17024_s12 + $0x390] sm:$0xff] %v10284_v34  ;;  %v9902_v2 = vmul.f32 %v13440_v43, %v13430_v26  ;;  %v8746_v1 = vpop.xlane.xlu0 %8745  ;;  %v13728_v43 = vld [vmem:[%s13847_s17 + $0x3d0] sm:$0xff] }
 0x48d   : > { %v8755_v60 = vpop.xlane.xlu1 %8754  ;;  %10159 = vst [vmem:[%s17018_s8 + $0x3a8] sm:$0xff] %v10031_v54  ;;  %10415 = vst [vmem:[%s17024_s12 + $0x3a8] sm:$0xff] %v10287_v45  ;;  %v9905_v58 = vmul.f32 %v13442_v8, %v13436_v20  ;;  %13461 = vrcp.f32 %v8746_v1  ;;  %v13444_v33 = vpop.eup %13443  ;;  %v13730_v8 = vld [vmem:[%s13847_s17 + $0x3e8] sm:$0xff]  ;;  %v13731_v1 = vld [vmem:[%s13853_s20 + $0x3e0] sm:$0xff] }
 0x48e   : > { %v10030_v47 = vmul.f32 %v13715_v16, %v9902_v2  ;;  %v10286_v9 = vmul.f32 %v13716_v52, %v9902_v2  ;;  %13463 = vrcp.f32 %v8755_v60 }
 0x48f   : > { %v13446_v36 = vpop.eup %13445  ;;  %v10033_v23 = vmul.f32 %v13717_v51, %v9905_v58  ;;  %v10289_v57 = vmul.f32 %v13718_v27, %v9905_v58  ;;  %13465 = vpow2.f32 %v9650_v19  ;;  %v13732_v58 = vld [vmem:[%s13847_s17 + $0x3e0] sm:$0xff] }
 0x490   : > { %v13448_v30 = vpop.eup %13447  ;;  %10158 = vst [vmem:[%s17018_s8 + $0x3a0] sm:$0xff] %v10030_v47  ;;  %10414 = vst [vmem:[%s17024_s12 + $0x3a0] sm:$0xff] %v10286_v9  ;;  %v9904_v50 = vmul.f32 %v13446_v36, %v13438_v35  ;;  %v8752_v7 = vpop.xlane.xlu0 %8751  ;;  %v13733_v36 = vld [vmem:[%s13853_s20 + $0x3f8] sm:$0xff] }
 0x491   : > { %v8761_v6 = vpop.xlane.xlu1 %8760  ;;  %v13450_v37 = vpop.eup %13449  ;;  %10161 = vst [vmem:[%s17018_s8 + $0x3b8] sm:$0xff] %v10033_v23  ;;  %10417 = vst [vmem:[%s17024_s12 + $0x3b8] sm:$0xff] %v10289_v57  ;;  %v9907_v14 = vmul.f32 %v13448_v30, %v13444_v33  ;;  %13467 = vrcp.f32 %v8752_v7  ;;  %v13734_v23 = vld [vmem:[%s13847_s17 + $0x3f8] sm:$0xff] }
 0x492   : > { %v13452_v31 = vpop.eup %13451  ;;  %v10032_v44 = vmul.f32 %v13719_v4, %v9904_v50  ;;  %v10288_v3 = vmul.f32 %v13720_v18, %v9904_v50  ;;  %13469 = vrcp.f32 %v8761_v6  ;;  %v13735_v50 = vld [vmem:[%s13853_s20 + $0x3f0] sm:$0xff] }
 0x493   : > { %v13454_v10 = vpop.eup %13453  ;;  %v10035_v39 = vmul.f32 %v13721_v12, %v9907_v14  ;;  %v10291_v22 = vmul.f32 %v13722_v63, %v9907_v14  ;;  %v13736_v6 = vld [vmem:[%s13847_s17 + $0x3f0] sm:$0xff] }
 0x494   : > { %v13456_v26 = vpop.eup %13455  ;;  %10160 = vst [vmem:[%s17018_s8 + $0x3b0] sm:$0xff] %v10032_v44  ;;  %10416 = vst [vmem:[%s17024_s12 + $0x3b0] sm:$0xff] %v10288_v3  ;;  %v9906_v25 = vmul.f32 %v13454_v10, %v13450_v37  ;;  %v8758_v17 = vpop.xlane.xlu0 %8757 }
 0x495   : > { %v9273_v49 = vpop.xlane.xlu1 %9272  ;;  %v13458_v40 = vpop.eup %13457  ;;  %10163 = vst [vmem:[%s17018_s8 + $0x3c8] sm:$0xff] %v10035_v39  ;;  %10419 = vst [vmem:[%s17024_s12 + $0x3c8] sm:$0xff] %v10291_v22  ;;  %v9909_v13 = vmul.f32 %v13456_v26, %v13452_v31 }
 0x496   : > { %v9401_v41 = vsub.f32 %v9273_v49, %v17794_v38  ;;  %v13460_v28 = vpop.eup %13459  ;;  %v10034_v21 = vmul.f32 %v13723_v62, %v9906_v25  ;;  %v10290_v55 = vmul.f32 %v13724_v48, %v9906_v25 }
 0x497   : > { %v13462_v24 = vpop.eup %13461  ;;  %v10037_v53 = vmul.f32 %v13725_v56, %v9909_v13  ;;  %v10293_v5 = vmul.f32 %v13726_v29, %v9909_v13 }
 0x498   : > { %v9656_v46 = vmul.f32 1.442695, %v9401_v41  ;;  %v13464_v20 = vpop.eup %13463  ;;  %10162 = vst [vmem:[%s17018_s8 + $0x3c0] sm:$0xff] %v10034_v21  ;;  %10418 = vst [vmem:[%s17024_s12 + $0x3c0] sm:$0xff] %v10290_v55  ;;  %v9908_v38 = vmul.f32 %v13462_v24, %v13458_v40  ;;  %v9270_v61 = vpop.xlane.xlu0 %9269 }
 0x499   : > { %10165 = vst [vmem:[%s17018_s8 + $0x3d8] sm:$0xff] %v10037_v53  ;;  %10421 = vst [vmem:[%s17024_s12 + $0x3d8] sm:$0xff] %v10293_v5  ;;  %v9911_v35 = vmul.f32 %v13464_v20, %v13460_v28  ;;  %v9400_v32 = vsub.f32 %v9270_v61, %v17804_v59  ;;  %v13466_v42 = vpop.eup %13465 }
 0x49a   : > { %13471 = vpow2.f32 %v9656_v46  ;;  %v10036_v34 = vmul.f32 %v13727_v0, %v9908_v38  ;;  %v10292_v15 = vmul.f32 %v13728_v43, %v9908_v38 }
 0x49b   : > { %v13468_v54 = vpop.eup %13467  ;;  %v10039_v45 = vmul.f32 %v13729_v11, %v9911_v35  ;;  %v10295_v19 = vmul.f32 %v13730_v8, %v9911_v35  ;;  %v9654_v2 = vmul.f32 1.442695, %v9400_v32  ;;  %13473 = vrcp.f32 %v8758_v17 }
 0x49c   : > { %10164 = vst [vmem:[%s17018_s8 + $0x3d0] sm:$0xff] %v10036_v34  ;;  %10420 = vst [vmem:[%s17024_s12 + $0x3d0] sm:$0xff] %v10292_v15  ;;  %v9910_v59 = vmul.f32 %v13468_v54, %v13466_v42  ;;  %v13470_v16 = vpop.eup %13469 }
 0x49d   : > { %10167 = vst [vmem:[%s17018_s8 + $0x3e8] sm:$0xff] %v10039_v45  ;;  %10423 = vst [vmem:[%s17024_s12 + $0x3e8] sm:$0xff] %v10295_v19  ;;  %13475 = vpow2.f32 %v9654_v2 }
 0x49e   : > { %v10038_v60 = vmul.f32 %v13731_v1, %v9910_v59  ;;  %v10294_v33 = vmul.f32 %v13732_v58, %v9910_v59 }
 0x4a0   : > { %10166 = vst [vmem:[%s17018_s8 + $0x3e0] sm:$0xff] %v10038_v60  ;;  %10422 = vst [vmem:[%s17024_s12 + $0x3e0] sm:$0xff] %v10294_v33 }
 0x4a4   : > { %v13472_v47 = vpop.eup %13471 }
 0x4a5   : > { %v9913_v52 = vmul.f32 %v13472_v47, %v13470_v16  ;;  %v13474_v9 = vpop.eup %13473 }
 0x4a7   : > { %v10041_v51 = vmul.f32 %v13733_v36, %v9913_v52  ;;  %v10297_v27 = vmul.f32 %v13734_v23, %v9913_v52  ;;  %v13476_v57 = vpop.eup %13475 }
 0x4a8   : > { %v9912_v30 = vmul.f32 %v13476_v57, %v13474_v9 }
 0x4a9   : > { %10169 = vst [vmem:[%s17018_s8 + $0x3f8] sm:$0xff] %v10041_v51  ;;  %10425 = vst [vmem:[%s17024_s12 + $0x3f8] sm:$0xff] %v10297_v27 }
 0x4aa   : > { %v10040_v7 = vmul.f32 %v13735_v50, %v9912_v30  ;;  %v10296_v37 = vmul.f32 %v13736_v6, %v9912_v30 }
 0x4ac   : > { %10168 = vst [vmem:[%s17018_s8 + $0x3f0] sm:$0xff] %v10040_v7  ;;  %10424 = vst [vmem:[%s17024_s12 + $0x3f0] sm:$0xff] %v10296_v37 }
 0x4ad PF: > { %s18_s24 = sadd.s32 1, %s13743_s24  }
 0x4ae   : > { %p15_p4 = scmp.ge.s32.totalorder %s18_s24, 4  }
 0x4b0   :  { %17 = sbr.rel (!%p15_p4) target bundleno = 1 (0x1), region = 89 }

</bundles_post_ra>
